<compile_context>
chip_gen: v7x
topology: tpu7x:2x2x1
jax: 0.10.0
libtpu: 0.0.40
codegen_flags: <defaults>
</compile_context>

<pallas_src>
import functools

import jax
import jax.numpy as jnp
from jax.experimental import pallas as pl
from jax.experimental.pallas import tpu as pltpu

HIDDEN_DIM = 512
CONV1D_CONCAT_LEN = 20
BN_EPS = 1e-5
POOL_K = 4  # MaxPool1d(kernel_size=4, stride=4) after conv1

# Static conv geometry (c_in, c_out, kernel, stride, pad) — kept OUT of the
# jit-traced params pytree so all loop bounds / slice starts are Python ints.
CONV_CFG = (
    (CONV1D_CONCAT_LEN, 64, 51, 4, 25),
    (64, 128, 21, 2, 10),
    (128, 256, 9, 2, 4),
)


def _round_up(v, m):
    return ((v + m - 1) // m) * m


def _conv_len(l, k, s, p):
    return (l + 2 * p - k) // s + 1


def _vmem_spec():
    return pl.BlockSpec(memory_space=pltpu.MemorySpace.VMEM)


def _geometry(length, batch):
    (ci1, co1, k1, st1, p1), (ci2, co2, k2, st2, p2), (ci3, co3, k3, st3, p3) = CONV_CFG
    l1 = _conv_len(length, k1, st1, p1)
    l1p = l1 // POOL_K                      # MaxPool drops the remainder (PyTorch)
    l2 = _conv_len(l1p, k2, st2, p2)
    l3 = _conv_len(l2, k3, st3, p3)
    lq = -(-(length + 2 * p1) // st1)       # rows of the phase-packed conv1 input
    return dict(
        batch=batch,
        # conv1 (stride folded into channels => stride-1 taps)
        kq1=-(-k1 // st1), cq1=st1 * ci1, pitch_q=_round_up(lq, 8),
        l1=l1, co1=co1, pitch1=_round_up(l1, 8),
        # maxpool + conv2
        l1p=l1p, k2=k2, st2=st2, ci2=ci2, co2=co2, pad2=p2,
        pitch2=_round_up(l1p + 2 * p2, 8), l2=l2,
        # conv3
        k3=k3, st3=st3, ci3=ci3, co3=co3, pad3=p3,
        pitch3=_round_up(l2 + 2 * p3, 8), l3=l3,
    )


# ---------------------------------------------------------------------------
# The single fused kernel
# ---------------------------------------------------------------------------
def _fused_kernel(*refs, cfg, num_layers):
    (xq_ref,
     w1_ref, sc1_ref, sh1_ref,
     w2_ref, sc2_ref, sh2_ref,
     w3_ref, sc3_ref, sh3_ref) = refs[:10]
    pos = 10
    lstm_refs = [(refs[pos + 2 * i], refs[pos + 2 * i + 1]) for i in range(num_layers)]
    pos += 2 * num_layers
    cw1_ref, csc_ref, csh_ref, cw2_ref, cb2_ref = refs[pos:pos + 5]
    pos += 5
    out_ref, h_ref, c_ref = refs[pos:pos + 3]
    s1_ref, s2_ref, s3_ref, feat_ref = refs[pos + 3:pos + 7]

    B = cfg["batch"]
    l1, l1p, l2, l3 = cfg["l1"], cfg["l1p"], cfg["l2"], cfg["l3"]
    co1, co2, co3 = cfg["co1"], cfg["co2"], cfg["co3"]

    # conv2 / conv3 read their zero padding from these scratches -> zero once.
    s2_ref[...] = jnp.zeros_like(s2_ref)
    s3_ref[...] = jnp.zeros_like(s3_ref)

    for b in range(B):  # static unroll; batch is tiny and everything is static
        # ---- conv1 + BN + ReLU -------------------------------------------
        # The wrapper folded stride 4 into the channel dim, so tap q is a
        # contiguous (l1, 4*c_in) read and the whole conv is kq1 matmuls.
        acc = jnp.zeros((l1, co1), jnp.float32)
        for q in range(cfg["kq1"]):
            xk = xq_ref[pl.ds(b * cfg["pitch_q"] + q, l1), :]
            wk = w1_ref[pl.ds(q * cfg["cq1"], cfg["cq1"]), :]
            acc = acc + jnp.dot(xk.astype(jnp.bfloat16), wk,
                                preferred_element_type=jnp.float32)
        y1 = jnp.maximum(acc * sc1_ref[...] + sh1_ref[...], 0.0)
        s1_ref[pl.ds(b * cfg["pitch1"], l1), :] = y1

        # ---- MaxPool1d(4, 4): max of 4 stride-4 strided reads -------------
        base1 = b * cfg["pitch1"]
        pooled = s1_ref[pl.ds(base1, l1p, POOL_K), :]
        for o in range(1, POOL_K):
            pooled = jnp.maximum(pooled, s1_ref[pl.ds(base1 + o, l1p, POOL_K), :])
        s2_ref[pl.ds(b * cfg["pitch2"] + cfg["pad2"], l1p), :] = pooled

        # ---- conv2 + BN + ReLU (stride 2, per-tap strided reads) ----------
        acc = jnp.zeros((l2, co2), jnp.float32)
        for k in range(cfg["k2"]):
            xk = s2_ref[pl.ds(b * cfg["pitch2"] + k, l2, cfg["st2"]), :]
            wk = w2_ref[pl.ds(k * cfg["ci2"], cfg["ci2"]), :]
            acc = acc + jnp.dot(xk.astype(jnp.bfloat16), wk,
                                preferred_element_type=jnp.float32)
        y2 = jnp.maximum(acc * sc2_ref[...] + sh2_ref[...], 0.0)
        s3_ref[pl.ds(b * cfg["pitch3"] + cfg["pad3"], l2), :] = y2

        # ---- conv3 + BN + ReLU --------------------------------------------
        acc = jnp.zeros((l3, co3), jnp.float32)
        for k in range(cfg["k3"]):
            xk = s3_ref[pl.ds(b * cfg["pitch3"] + k, l3, cfg["st3"]), :]
            wk = w3_ref[pl.ds(k * cfg["ci3"], cfg["ci3"]), :]
            acc = acc + jnp.dot(xk.astype(jnp.bfloat16), wk,
                                preferred_element_type=jnp.float32)
        y3 = jnp.maximum(acc * sc3_ref[...] + sh3_ref[...], 0.0)

        # ---- AdaptiveAvgPool1d(1): in-kernel mean over the length axis ----
        feat_ref[pl.ds(b, 1), :] = jnp.sum(y3, axis=0, keepdims=True) * (1.0 / l3)

    feat = feat_ref[pl.ds(0, B), :]          # (B, 256)

    # ---- LSTM stack: seq_len == 1 with zero initial state =>
    #      h0 @ W_hh == 0 and f * c0 == 0, so W_hh and the forget-gate columns
    #      were never materialized (weights packed as [i | g | o]).
    h_dim = HIDDEN_DIM
    inp = feat
    for layer, (wih_ref, b_ref) in enumerate(lstm_refs):
        gates = jnp.dot(inp.astype(jnp.bfloat16), wih_ref[...],
                        preferred_element_type=jnp.float32) + b_ref[...]
        i_g = jax.nn.sigmoid(gates[:, 0 * h_dim:1 * h_dim])
        g_g = jnp.tanh(gates[:, 1 * h_dim:2 * h_dim])
        o_g = jax.nn.sigmoid(gates[:, 2 * h_dim:3 * h_dim])
        c_new = i_g * g_g
        h_new = o_g * jnp.tanh(c_new)
        h_ref[pl.ds(layer * B, B), :] = h_new
        c_ref[pl.ds(layer * B, B), :] = c_new
        inp = h_new  # inter-layer dropout is identity in inference

    # ---- classifier: Linear(512->64) + BN + ReLU + Linear(64->1) ----------
    z = jnp.dot(inp.astype(jnp.bfloat16), cw1_ref[...],
                preferred_element_type=jnp.float32)
    z = jnp.maximum(z * csc_ref[...] + csh_ref[...], 0.0)
    out_ref[...] = jnp.sum(z * cw2_ref[...], axis=-1, keepdims=True) + cb2_ref[...]


def _fused_forward(xq, params, cfg, num_layers, bsz):
    inputs = [xq]
    for p in params["convs"]:
        inputs += [p["w"], p["scale"], p["shift"]]
    for p in params["lstm"]:
        inputs += [p["wih_t"], p["b"]]
    cls = params["cls"]
    inputs += [cls["w1t"], cls["s"], cls["t"], cls["w2"], cls["b2"]]

    return pl.pallas_call(
        functools.partial(_fused_kernel, cfg=cfg, num_layers=num_layers),
        out_shape=(
            jax.ShapeDtypeStruct((bsz, 1), jnp.float32),
            jax.ShapeDtypeStruct((num_layers * bsz, HIDDEN_DIM), jnp.float32),
            jax.ShapeDtypeStruct((num_layers * bsz, HIDDEN_DIM), jnp.float32),
        ),
        in_specs=[_vmem_spec()] * len(inputs),
        out_specs=(_vmem_spec(), _vmem_spec(), _vmem_spec()),
        scratch_shapes=[
            pltpu.VMEM((bsz * cfg["pitch1"], cfg["co1"]), jnp.float32),   # conv1 out
            pltpu.VMEM((bsz * cfg["pitch2"], cfg["ci2"]), jnp.float32),   # conv2 in (padded)
            pltpu.VMEM((bsz * cfg["pitch3"], cfg["ci3"]), jnp.float32),   # conv3 in (padded)
            pltpu.VMEM((_round_up(bsz, 8), cfg["co3"]), jnp.float32),     # avg-pooled feats
        ],
    )(*inputs)


# ---------------------------------------------------------------------------
# Glue: input phase-packing (layout only, on the raw input), params, forward.
# ---------------------------------------------------------------------------
def init_params(key, num_layers):
    keys = iter(jax.random.split(key, 64))
    inv_std = float((1.0 + BN_EPS) ** -0.5)  # eval-mode BN, fresh running stats
    params = {"convs": [], "lstm": []}

    for li, (c_in, c_out, k, stride, pad) in enumerate(CONV_CFG):
        w = jax.random.normal(next(keys), (c_out, c_in, k), jnp.float32) / jnp.sqrt(float(c_in * k))
        b = jax.random.normal(next(keys), (c_out,), jnp.float32) * 0.01
        w_t = jnp.transpose(w, (2, 1, 0))                      # (k, c_in, c_out)
        if li == 0:
            # Phase-pack conv1's weight to match the stride-folded input:
            # row = q * (stride*c_in) + r * c_in + c  with k_tap = q*stride + r.
            kq = -(-k // stride)
            w_t = jnp.pad(w_t, ((0, kq * stride - k), (0, 0), (0, 0)))
            w_flat = w_t.reshape(kq * stride * c_in, c_out)
        else:
            w_flat = w_t.reshape(k * c_in, c_out)              # row = k_tap*c_in + c
        params["convs"].append({
            "w": w_flat.astype(jnp.bfloat16),
            "scale": jnp.full((1, c_out), inv_std, jnp.float32),
            "shift": (b * inv_std).reshape(1, c_out).astype(jnp.float32),
        })

    in_size = CONV_CFG[-1][1]
    H = HIDDEN_DIM
    keep = jnp.concatenate([jnp.arange(0, H), jnp.arange(2 * H, 4 * H)])  # i, g, o
    for _ in range(num_layers):
        w_ih = jax.random.normal(next(keys), (4 * H, in_size), jnp.float32) / jnp.sqrt(float(H))
        b_ih = jax.random.normal(next(keys), (4 * H,), jnp.float32) * 0.01
        b_hh = jax.random.normal(next(keys), (4 * H,), jnp.float32) * 0.01
        # W_hh and the forget gate are mathematically dead for seq_len == 1
        # with zero initial state -> never materialized or DMA'd.
        params["lstm"].append({
            "wih_t": w_ih[keep].T.astype(jnp.bfloat16),        # (in, 3H)
            "b": (b_ih + b_hh)[keep].reshape(1, 3 * H).astype(jnp.float32),
        })
        in_size = H

    w1 = jax.random.normal(next(keys), (64, H), jnp.float32) / jnp.sqrt(float(H))
    b1 = jax.random.normal(next(keys), (64,), jnp.float32) * 0.01
    w2 = jax.random.normal(next(keys), (1, 64), jnp.float32) / 8.0
    b2 = jax.random.normal(next(keys), (1,), jnp.float32) * 0.01
    params["cls"] = {
        "w1t": w1.T.astype(jnp.bfloat16),                      # (512, 64)
        "s": jnp.full((1, 64), inv_std, jnp.float32),
        "t": (b1 * inv_std).reshape(1, 64).astype(jnp.float32),
        "w2": w2.astype(jnp.float32),                          # (1, 64)
        "b2": b2.reshape(1, 1).astype(jnp.float32),
    }
    return params


def cnn1d_lstm_forward(x_ncl, params):
    """x_ncl: (B, 20, L) float32, same NCL layout as the PyTorch module."""
    bsz, c_in, length = x_ncl.shape
    num_layers = len(params["lstm"])
    cfg = _geometry(length, bsz)
    _, _, _, st1, p1 = CONV_CFG[0]

    # Conv1 phase packing (layout plumbing on the raw input only): pad L by
    # `pad` on each side, round to a multiple of the stride, and fold the
    # stride into the channel dim so the in-kernel conv1 taps are contiguous.
    x = jnp.transpose(x_ncl, (0, 2, 1)).astype(jnp.float32)    # NCL -> NLC
    lq = -(-(length + 2 * p1) // st1)
    xp = jnp.pad(x, ((0, 0), (p1, lq * st1 - length - p1), (0, 0)))
    xq = xp.reshape(bsz, lq, st1 * c_in)
    xq = jnp.pad(xq, ((0, 0), (0, cfg["pitch_q"] - lq), (0, 0)))
    xq = xq.reshape(bsz * cfg["pitch_q"], st1 * c_in)

    out, h_flat, c_flat = _fused_forward(xq, params, cfg, num_layers, bsz)
    h_n = h_flat.reshape(num_layers, bsz, HIDDEN_DIM)
    c_n = c_flat.reshape(num_layers, bsz, HIDDEN_DIM)
    return out, (h_n, c_n)


if __name__ == "__main__":
    num_layers = 2
    batch, c_in, length = 2, CONV1D_CONCAT_LEN, 256

    key = jax.random.PRNGKey(0)
    k_x, k_p = jax.random.split(key)
    x = jax.random.normal(k_x, (batch, c_in, length), jnp.float32)
    params = init_params(k_p, num_layers)

    fwd = jax.jit(cnn1d_lstm_forward)
    out, (h_n, c_n) = fwd(x, params)
    jax.block_until_ready((out, h_n, c_n))

    assert out.shape == (batch, 1), out.shape
    assert h_n.shape == (num_layers, batch, HIDDEN_DIM), h_n.shape
    assert c_n.shape == (num_layers, batch, HIDDEN_DIM), c_n.shape
    assert bool(jnp.all(jnp.isfinite(out)))
    print("KERNEL_OK")
</pallas_src>

<mosaic_0001>
module attributes {stable_mosaic.version = 11 : i64} {
  func.func @_fused_kernel(%arg0: memref<160x80xf32, #tpu.memory_space<vmem>>, %arg1: memref<1040x64xbf16, #tpu.memory_space<vmem>>, %arg2: memref<1x64xf32, #tpu.memory_space<vmem>>, %arg3: memref<1x64xf32, #tpu.memory_space<vmem>>, %arg4: memref<1344x128xbf16, #tpu.memory_space<vmem>>, %arg5: memref<1x128xf32, #tpu.memory_space<vmem>>, %arg6: memref<1x128xf32, #tpu.memory_space<vmem>>, %arg7: memref<1152x256xbf16, #tpu.memory_space<vmem>>, %arg8: memref<1x256xf32, #tpu.memory_space<vmem>>, %arg9: memref<1x256xf32, #tpu.memory_space<vmem>>, %arg10: memref<256x1536xbf16, #tpu.memory_space<vmem>>, %arg11: memref<1x1536xf32, #tpu.memory_space<vmem>>, %arg12: memref<512x1536xbf16, #tpu.memory_space<vmem>>, %arg13: memref<1x1536xf32, #tpu.memory_space<vmem>>, %arg14: memref<512x64xbf16, #tpu.memory_space<vmem>>, %arg15: memref<1x64xf32, #tpu.memory_space<vmem>>, %arg16: memref<1x64xf32, #tpu.memory_space<vmem>>, %arg17: memref<1x64xf32, #tpu.memory_space<vmem>>, %arg18: memref<1x1xf32, #tpu.memory_space<vmem>>, %arg19: memref<2x1xf32, #tpu.memory_space<vmem>>, %arg20: memref<4x512xf32, #tpu.memory_space<vmem>>, %arg21: memref<4x512xf32, #tpu.memory_space<vmem>>, %arg22: memref<128x64xf32, #tpu.memory_space<vmem>>, %arg23: memref<80x64xf32, #tpu.memory_space<vmem>>, %arg24: memref<32x128xf32, #tpu.memory_space<vmem>>, %arg25: memref<8x256xf32, #tpu.memory_space<vmem>>) attributes {dimension_semantics = [], scalar_prefetch = 0 : i64, scratch_operands = 4 : i64, tpu.core_type = #tpu.core_type<tc>} {
    %cst = arith.constant 0.000000e+00 : f32
    %0 = vector.broadcast %cst : f32 to vector<80x64xf32>
    %c0 = arith.constant 0 : index
    %c0_0 = arith.constant 0 : index
    %1 = vector.load %arg23[%c0, %c0_0] : memref<80x64xf32, #tpu.memory_space<vmem>>, vector<80x64xf32>
    tpu.vector_store %arg23[%c0, %c0_0], %0 {strides = array<i32>} : memref<80x64xf32, #tpu.memory_space<vmem>>, vector<80x64xf32>,
    %cst_1 = arith.constant 0.000000e+00 : f32
    %2 = vector.broadcast %cst_1 : f32 to vector<32x128xf32>
    %c0_2 = arith.constant 0 : index
    %c0_3 = arith.constant 0 : index
    %3 = vector.load %arg24[%c0_2, %c0_3] : memref<32x128xf32, #tpu.memory_space<vmem>>, vector<32x128xf32>
    tpu.vector_store %arg24[%c0_2, %c0_3], %2 {strides = array<i32>} : memref<32x128xf32, #tpu.memory_space<vmem>>, vector<32x128xf32>,
    %cst_4 = arith.constant 0.000000e+00 : f32
    %4 = vector.broadcast %cst_4 : f32 to vector<64x64xf32>
    %c0_5 = arith.constant 0 : index
    %c0_6 = arith.constant 0 : index
    %5 = vector.load %arg0[%c0_5, %c0_6] : memref<160x80xf32, #tpu.memory_space<vmem>>, vector<64x80xf32>
    %c0_7 = arith.constant 0 : index
    %c0_8 = arith.constant 0 : index
    %6 = vector.load %arg1[%c0_7, %c0_8] : memref<1040x64xbf16, #tpu.memory_space<vmem>>, vector<80x64xbf16>
    %7 = arith.truncf %5 : vector<64x80xf32> to vector<64x80xbf16>
    %cst_9 = arith.constant dense<0.000000e+00> : vector<64x64xf32>
    %8 = tpu.matmul %7, %6, %cst_9 {dimension_numbers = #tpu.dot_dimension_numbers<[1], [0], [0], [1], [0, 0, 1, 1], [], []>} : vector<64x80xbf16>, vector<80x64xbf16>, vector<64x64xf32> -> vector<64x64xf32>
    %9 = arith.addf %4, %8 : vector<64x64xf32>
    %c1 = arith.constant 1 : index
    %c0_10 = arith.constant 0 : index
    %10 = vector.load %arg0[%c1, %c0_10] : memref<160x80xf32, #tpu.memory_space<vmem>>, vector<64x80xf32>
    %c80 = arith.constant 80 : index
    %c0_11 = arith.constant 0 : index
    %11 = vector.load %arg1[%c80, %c0_11] : memref<1040x64xbf16, #tpu.memory_space<vmem>>, vector<80x64xbf16>
    %12 = arith.truncf %10 : vector<64x80xf32> to vector<64x80xbf16>
    %cst_12 = arith.constant dense<0.000000e+00> : vector<64x64xf32>
    %13 = tpu.matmul %12, %11, %cst_12 {dimension_numbers = #tpu.dot_dimension_numbers<[1], [0], [0], [1], [0, 0, 1, 1], [], []>} : vector<64x80xbf16>, vector<80x64xbf16>, vector<64x64xf32> -> vector<64x64xf32>
    %14 = arith.addf %9, %13 : vector<64x64xf32>
    %c2 = arith.constant 2 : index
    %c0_13 = arith.constant 0 : index
    %15 = vector.load %arg0[%c2, %c0_13] : memref<160x80xf32, #tpu.memory_space<vmem>>, vector<64x80xf32>
    %c160 = arith.constant 160 : index
    %c0_14 = arith.constant 0 : index
    %16 = vector.load %arg1[%c160, %c0_14] : memref<1040x64xbf16, #tpu.memory_space<vmem>>, vector<80x64xbf16>
    %17 = arith.truncf %15 : vector<64x80xf32> to vector<64x80xbf16>
    %cst_15 = arith.constant dense<0.000000e+00> : vector<64x64xf32>
    %18 = tpu.matmul %17, %16, %cst_15 {dimension_numbers = #tpu.dot_dimension_numbers<[1], [0], [0], [1], [0, 0, 1, 1], [], []>} : vector<64x80xbf16>, vector<80x64xbf16>, vector<64x64xf32> -> vector<64x64xf32>
    %19 = arith.addf %14, %18 : vector<64x64xf32>
    %c3 = arith.constant 3 : index
    %c0_16 = arith.constant 0 : index
    %20 = vector.load %arg0[%c3, %c0_16] : memref<160x80xf32, #tpu.memory_space<vmem>>, vector<64x80xf32>
    %c240 = arith.constant 240 : index
    %c0_17 = arith.constant 0 : index
    %21 = vector.load %arg1[%c240, %c0_17] : memref<1040x64xbf16, #tpu.memory_space<vmem>>, vector<80x64xbf16>
    %22 = arith.truncf %20 : vector<64x80xf32> to vector<64x80xbf16>
    %cst_18 = arith.constant dense<0.000000e+00> : vector<64x64xf32>
    %23 = tpu.matmul %22, %21, %cst_18 {dimension_numbers = #tpu.dot_dimension_numbers<[1], [0], [0], [1], [0, 0, 1, 1], [], []>} : vector<64x80xbf16>, vector<80x64xbf16>, vector<64x64xf32> -> vector<64x64xf32>
    %24 = arith.addf %19, %23 : vector<64x64xf32>
    %c4 = arith.constant 4 : index
    %c0_19 = arith.constant 0 : index
    %25 = vector.load %arg0[%c4, %c0_19] : memref<160x80xf32, #tpu.memory_space<vmem>>, vector<64x80xf32>
    %c320 = arith.constant 320 : index
    %c0_20 = arith.constant 0 : index
    %26 = vector.load %arg1[%c320, %c0_20] : memref<1040x64xbf16, #tpu.memory_space<vmem>>, vector<80x64xbf16>
    %27 = arith.truncf %25 : vector<64x80xf32> to vector<64x80xbf16>
    %cst_21 = arith.constant dense<0.000000e+00> : vector<64x64xf32>
    %28 = tpu.matmul %27, %26, %cst_21 {dimension_numbers = #tpu.dot_dimension_numbers<[1], [0], [0], [1], [0, 0, 1, 1], [], []>} : vector<64x80xbf16>, vector<80x64xbf16>, vector<64x64xf32> -> vector<64x64xf32>
    %29 = arith.addf %24, %28 : vector<64x64xf32>
    %c5 = arith.constant 5 : index
    %c0_22 = arith.constant 0 : index
    %30 = vector.load %arg0[%c5, %c0_22] : memref<160x80xf32, #tpu.memory_space<vmem>>, vector<64x80xf32>
    %c400 = arith.constant 400 : index
    %c0_23 = arith.constant 0 : index
    %31 = vector.load %arg1[%c400, %c0_23] : memref<1040x64xbf16, #tpu.memory_space<vmem>>, vector<80x64xbf16>
    %32 = arith.truncf %30 : vector<64x80xf32> to vector<64x80xbf16>
    %cst_24 = arith.constant dense<0.000000e+00> : vector<64x64xf32>
    %33 = tpu.matmul %32, %31, %cst_24 {dimension_numbers = #tpu.dot_dimension_numbers<[1], [0], [0], [1], [0, 0, 1, 1], [], []>} : vector<64x80xbf16>, vector<80x64xbf16>, vector<64x64xf32> -> vector<64x64xf32>
    %34 = arith.addf %29, %33 : vector<64x64xf32>
    %c6 = arith.constant 6 : index
    %c0_25 = arith.constant 0 : index
    %35 = vector.load %arg0[%c6, %c0_25] : memref<160x80xf32, #tpu.memory_space<vmem>>, vector<64x80xf32>
    %c480 = arith.constant 480 : index
    %c0_26 = arith.constant 0 : index
    %36 = vector.load %arg1[%c480, %c0_26] : memref<1040x64xbf16, #tpu.memory_space<vmem>>, vector<80x64xbf16>
    %37 = arith.truncf %35 : vector<64x80xf32> to vector<64x80xbf16>
    %cst_27 = arith.constant dense<0.000000e+00> : vector<64x64xf32>
    %38 = tpu.matmul %37, %36, %cst_27 {dimension_numbers = #tpu.dot_dimension_numbers<[1], [0], [0], [1], [0, 0, 1, 1], [], []>} : vector<64x80xbf16>, vector<80x64xbf16>, vector<64x64xf32> -> vector<64x64xf32>
    %39 = arith.addf %34, %38 : vector<64x64xf32>
    %c7 = arith.constant 7 : index
    %c0_28 = arith.constant 0 : index
    %40 = vector.load %arg0[%c7, %c0_28] : memref<160x80xf32, #tpu.memory_space<vmem>>, vector<64x80xf32>
    %c560 = arith.constant 560 : index
    %c0_29 = arith.constant 0 : index
    %41 = vector.load %arg1[%c560, %c0_29] : memref<1040x64xbf16, #tpu.memory_space<vmem>>, vector<80x64xbf16>
    %42 = arith.truncf %40 : vector<64x80xf32> to vector<64x80xbf16>
    %cst_30 = arith.constant dense<0.000000e+00> : vector<64x64xf32>
    %43 = tpu.matmul %42, %41, %cst_30 {dimension_numbers = #tpu.dot_dimension_numbers<[1], [0], [0], [1], [0, 0, 1, 1], [], []>} : vector<64x80xbf16>, vector<80x64xbf16>, vector<64x64xf32> -> vector<64x64xf32>
    %44 = arith.addf %39, %43 : vector<64x64xf32>
    %c8 = arith.constant 8 : index
    %c0_31 = arith.constant 0 : index
    %45 = vector.load %arg0[%c8, %c0_31] : memref<160x80xf32, #tpu.memory_space<vmem>>, vector<64x80xf32>
    %c640 = arith.constant 640 : index
    %c0_32 = arith.constant 0 : index
    %46 = vector.load %arg1[%c640, %c0_32] : memref<1040x64xbf16, #tpu.memory_space<vmem>>, vector<80x64xbf16>
    %47 = arith.truncf %45 : vector<64x80xf32> to vector<64x80xbf16>
    %cst_33 = arith.constant dense<0.000000e+00> : vector<64x64xf32>
    %48 = tpu.matmul %47, %46, %cst_33 {dimension_numbers = #tpu.dot_dimension_numbers<[1], [0], [0], [1], [0, 0, 1, 1], [], []>} : vector<64x80xbf16>, vector<80x64xbf16>, vector<64x64xf32> -> vector<64x64xf32>
    %49 = arith.addf %44, %48 : vector<64x64xf32>
    %c9 = arith.constant 9 : index
    %c0_34 = arith.constant 0 : index
    %50 = vector.load %arg0[%c9, %c0_34] : memref<160x80xf32, #tpu.memory_space<vmem>>, vector<64x80xf32>
    %c720 = arith.constant 720 : index
    %c0_35 = arith.constant 0 : index
    %51 = vector.load %arg1[%c720, %c0_35] : memref<1040x64xbf16, #tpu.memory_space<vmem>>, vector<80x64xbf16>
    %52 = arith.truncf %50 : vector<64x80xf32> to vector<64x80xbf16>
    %cst_36 = arith.constant dense<0.000000e+00> : vector<64x64xf32>
    %53 = tpu.matmul %52, %51, %cst_36 {dimension_numbers = #tpu.dot_dimension_numbers<[1], [0], [0], [1], [0, 0, 1, 1], [], []>} : vector<64x80xbf16>, vector<80x64xbf16>, vector<64x64xf32> -> vector<64x64xf32>
    %54 = arith.addf %49, %53 : vector<64x64xf32>
    %c10 = arith.constant 10 : index
    %c0_37 = arith.constant 0 : index
    %55 = vector.load %arg0[%c10, %c0_37] : memref<160x80xf32, #tpu.memory_space<vmem>>, vector<64x80xf32>
    %c800 = arith.constant 800 : index
    %c0_38 = arith.constant 0 : index
    %56 = vector.load %arg1[%c800, %c0_38] : memref<1040x64xbf16, #tpu.memory_space<vmem>>, vector<80x64xbf16>
    %57 = arith.truncf %55 : vector<64x80xf32> to vector<64x80xbf16>
    %cst_39 = arith.constant dense<0.000000e+00> : vector<64x64xf32>
    %58 = tpu.matmul %57, %56, %cst_39 {dimension_numbers = #tpu.dot_dimension_numbers<[1], [0], [0], [1], [0, 0, 1, 1], [], []>} : vector<64x80xbf16>, vector<80x64xbf16>, vector<64x64xf32> -> vector<64x64xf32>
    %59 = arith.addf %54, %58 : vector<64x64xf32>
    %c11 = arith.constant 11 : index
    %c0_40 = arith.constant 0 : index
    %60 = vector.load %arg0[%c11, %c0_40] : memref<160x80xf32, #tpu.memory_space<vmem>>, vector<64x80xf32>
    %c880 = arith.constant 880 : index
    %c0_41 = arith.constant 0 : index
    %61 = vector.load %arg1[%c880, %c0_41] : memref<1040x64xbf16, #tpu.memory_space<vmem>>, vector<80x64xbf16>
    %62 = arith.truncf %60 : vector<64x80xf32> to vector<64x80xbf16>
    %cst_42 = arith.constant dense<0.000000e+00> : vector<64x64xf32>
    %63 = tpu.matmul %62, %61, %cst_42 {dimension_numbers = #tpu.dot_dimension_numbers<[1], [0], [0], [1], [0, 0, 1, 1], [], []>} : vector<64x80xbf16>, vector<80x64xbf16>, vector<64x64xf32> -> vector<64x64xf32>
    %64 = arith.addf %59, %63 : vector<64x64xf32>
    %c12 = arith.constant 12 : index
    %c0_43 = arith.constant 0 : index
    %65 = vector.load %arg0[%c12, %c0_43] : memref<160x80xf32, #tpu.memory_space<vmem>>, vector<64x80xf32>
    %c960 = arith.constant 960 : index
    %c0_44 = arith.constant 0 : index
    %66 = vector.load %arg1[%c960, %c0_44] : memref<1040x64xbf16, #tpu.memory_space<vmem>>, vector<80x64xbf16>
    %67 = arith.truncf %65 : vector<64x80xf32> to vector<64x80xbf16>
    %cst_45 = arith.constant dense<0.000000e+00> : vector<64x64xf32>
    %68 = tpu.matmul %67, %66, %cst_45 {dimension_numbers = #tpu.dot_dimension_numbers<[1], [0], [0], [1], [0, 0, 1, 1], [], []>} : vector<64x80xbf16>, vector<80x64xbf16>, vector<64x64xf32> -> vector<64x64xf32>
    %69 = arith.addf %64, %68 : vector<64x64xf32>
    %c0_46 = arith.constant 0 : index
    %c0_47 = arith.constant 0 : index
    %70 = vector.load %arg2[%c0_46, %c0_47] : memref<1x64xf32, #tpu.memory_space<vmem>>, vector<1x64xf32>
    %71 = vector.broadcast %70 : vector<1x64xf32> to vector<64x64xf32>
    %72 = arith.mulf %69, %71 : vector<64x64xf32>
    %c0_48 = arith.constant 0 : index
    %c0_49 = arith.constant 0 : index
    %73 = vector.load %arg3[%c0_48, %c0_49] : memref<1x64xf32, #tpu.memory_space<vmem>>, vector<1x64xf32>
    %74 = vector.broadcast %73 : vector<1x64xf32> to vector<64x64xf32>
    %75 = arith.addf %72, %74 : vector<64x64xf32>
    %cst_50 = arith.constant 0.000000e+00 : f32
    %76 = vector.broadcast %cst_50 : f32 to vector<64x64xf32>
    %77 = arith.maximumf %75, %76 : vector<64x64xf32>
    %c0_51 = arith.constant 0 : index
    %c0_52 = arith.constant 0 : index
    %78 = vector.load %arg22[%c0_51, %c0_52] : memref<128x64xf32, #tpu.memory_space<vmem>>, vector<64x64xf32>
    tpu.vector_store %arg22[%c0_51, %c0_52], %77 {strides = array<i32>} : memref<128x64xf32, #tpu.memory_space<vmem>>, vector<64x64xf32>,
    %c0_53 = arith.constant 0 : index
    %c0_54 = arith.constant 0 : index
    %79 = tpu.strided_load %arg22[%c0_53, %c0_54] {strides = array<i32: 4, 1>} : memref<128x64xf32, #tpu.memory_space<vmem>>, vector<16x64xf32>
    %c1_55 = arith.constant 1 : index
    %c0_56 = arith.constant 0 : index
    %80 = tpu.strided_load %arg22[%c1_55, %c0_56] {strides = array<i32: 4, 1>} : memref<128x64xf32, #tpu.memory_space<vmem>>, vector<16x64xf32>
    %81 = arith.maximumf %79, %80 : vector<16x64xf32>
    %c2_57 = arith.constant 2 : index
    %c0_58 = arith.constant 0 : index
    %82 = tpu.strided_load %arg22[%c2_57, %c0_58] {strides = array<i32: 4, 1>} : memref<128x64xf32, #tpu.memory_space<vmem>>, vector<16x64xf32>
    %83 = arith.maximumf %81, %82 : vector<16x64xf32>
    %c3_59 = arith.constant 3 : index
    %c0_60 = arith.constant 0 : index
    %84 = tpu.strided_load %arg22[%c3_59, %c0_60] {strides = array<i32: 4, 1>} : memref<128x64xf32, #tpu.memory_space<vmem>>, vector<16x64xf32>
    %85 = arith.maximumf %83, %84 : vector<16x64xf32>
    %c10_61 = arith.constant 10 : index
    %c0_62 = arith.constant 0 : index
    %86 = vector.load %arg23[%c10_61, %c0_62] : memref<80x64xf32, #tpu.memory_space<vmem>>, vector<16x64xf32>
    tpu.vector_store %arg23[%c10_61, %c0_62], %85 {strides = array<i32>} : memref<80x64xf32, #tpu.memory_space<vmem>>, vector<16x64xf32>,
    %cst_63 = arith.constant 0.000000e+00 : f32
    %87 = vector.broadcast %cst_63 : f32 to vector<8x128xf32>
    %c0_64 = arith.constant 0 : index
    %c0_65 = arith.constant 0 : index
    %88 = tpu.strided_load %arg23[%c0_64, %c0_65] {strides = array<i32: 2, 1>} : memref<80x64xf32, #tpu.memory_space<vmem>>, vector<8x64xf32>
    %c0_66 = arith.constant 0 : index
    %c0_67 = arith.constant 0 : index
    %89 = vector.load %arg4[%c0_66, %c0_67] : memref<1344x128xbf16, #tpu.memory_space<vmem>>, vector<64x128xbf16>
    %90 = arith.truncf %88 : vector<8x64xf32> to vector<8x64xbf16>
    %cst_68 = arith.constant dense<0.000000e+00> : vector<8x128xf32>
    %91 = tpu.matmul %90, %89, %cst_68 {dimension_numbers = #tpu.dot_dimension_numbers<[1], [0], [0], [1], [0, 0, 1, 1], [], []>} : vector<8x64xbf16>, vector<64x128xbf16>, vector<8x128xf32> -> vector<8x128xf32>
    %92 = arith.addf %87, %91 : vector<8x128xf32>
    %c1_69 = arith.constant 1 : index
    %c0_70 = arith.constant 0 : index
    %93 = tpu.strided_load %arg23[%c1_69, %c0_70] {strides = array<i32: 2, 1>} : memref<80x64xf32, #tpu.memory_space<vmem>>, vector<8x64xf32>
    %c64 = arith.constant 64 : index
    %c0_71 = arith.constant 0 : index
    %94 = vector.load %arg4[%c64, %c0_71] : memref<1344x128xbf16, #tpu.memory_space<vmem>>, vector<64x128xbf16>
    %95 = arith.truncf %93 : vector<8x64xf32> to vector<8x64xbf16>
    %cst_72 = arith.constant dense<0.000000e+00> : vector<8x128xf32>
    %96 = tpu.matmul %95, %94, %cst_72 {dimension_numbers = #tpu.dot_dimension_numbers<[1], [0], [0], [1], [0, 0, 1, 1], [], []>} : vector<8x64xbf16>, vector<64x128xbf16>, vector<8x128xf32> -> vector<8x128xf32>
    %97 = arith.addf %92, %96 : vector<8x128xf32>
    %c2_73 = arith.constant 2 : index
    %c0_74 = arith.constant 0 : index
    %98 = tpu.strided_load %arg23[%c2_73, %c0_74] {strides = array<i32: 2, 1>} : memref<80x64xf32, #tpu.memory_space<vmem>>, vector<8x64xf32>
    %c128 = arith.constant 128 : index
    %c0_75 = arith.constant 0 : index
    %99 = vector.load %arg4[%c128, %c0_75] : memref<1344x128xbf16, #tpu.memory_space<vmem>>, vector<64x128xbf16>
    %100 = arith.truncf %98 : vector<8x64xf32> to vector<8x64xbf16>
    %cst_76 = arith.constant dense<0.000000e+00> : vector<8x128xf32>
    %101 = tpu.matmul %100, %99, %cst_76 {dimension_numbers = #tpu.dot_dimension_numbers<[1], [0], [0], [1], [0, 0, 1, 1], [], []>} : vector<8x64xbf16>, vector<64x128xbf16>, vector<8x128xf32> -> vector<8x128xf32>
    %102 = arith.addf %97, %101 : vector<8x128xf32>
    %c3_77 = arith.constant 3 : index
    %c0_78 = arith.constant 0 : index
    %103 = tpu.strided_load %arg23[%c3_77, %c0_78] {strides = array<i32: 2, 1>} : memref<80x64xf32, #tpu.memory_space<vmem>>, vector<8x64xf32>
    %c192 = arith.constant 192 : index
    %c0_79 = arith.constant 0 : index
    %104 = vector.load %arg4[%c192, %c0_79] : memref<1344x128xbf16, #tpu.memory_space<vmem>>, vector<64x128xbf16>
    %105 = arith.truncf %103 : vector<8x64xf32> to vector<8x64xbf16>
    %cst_80 = arith.constant dense<0.000000e+00> : vector<8x128xf32>
    %106 = tpu.matmul %105, %104, %cst_80 {dimension_numbers = #tpu.dot_dimension_numbers<[1], [0], [0], [1], [0, 0, 1, 1], [], []>} : vector<8x64xbf16>, vector<64x128xbf16>, vector<8x128xf32> -> vector<8x128xf32>
    %107 = arith.addf %102, %106 : vector<8x128xf32>
    %c4_81 = arith.constant 4 : index
    %c0_82 = arith.constant 0 : index
    %108 = tpu.strided_load %arg23[%c4_81, %c0_82] {strides = array<i32: 2, 1>} : memref<80x64xf32, #tpu.memory_space<vmem>>, vector<8x64xf32>
    %c256 = arith.constant 256 : index
    %c0_83 = arith.constant 0 : index
    %109 = vector.load %arg4[%c256, %c0_83] : memref<1344x128xbf16, #tpu.memory_space<vmem>>, vector<64x128xbf16>
    %110 = arith.truncf %108 : vector<8x64xf32> to vector<8x64xbf16>
    %cst_84 = arith.constant dense<0.000000e+00> : vector<8x128xf32>
    %111 = tpu.matmul %110, %109, %cst_84 {dimension_numbers = #tpu.dot_dimension_numbers<[1], [0], [0], [1], [0, 0, 1, 1], [], []>} : vector<8x64xbf16>, vector<64x128xbf16>, vector<8x128xf32> -> vector<8x128xf32>
    %112 = arith.addf %107, %111 : vector<8x128xf32>
    %c5_85 = arith.constant 5 : index
    %c0_86 = arith.constant 0 : index
    %113 = tpu.strided_load %arg23[%c5_85, %c0_86] {strides = array<i32: 2, 1>} : memref<80x64xf32, #tpu.memory_space<vmem>>, vector<8x64xf32>
    %c320_87 = arith.constant 320 : index
    %c0_88 = arith.constant 0 : index
    %114 = vector.load %arg4[%c320_87, %c0_88] : memref<1344x128xbf16, #tpu.memory_space<vmem>>, vector<64x128xbf16>
    %115 = arith.truncf %113 : vector<8x64xf32> to vector<8x64xbf16>
    %cst_89 = arith.constant dense<0.000000e+00> : vector<8x128xf32>
    %116 = tpu.matmul %115, %114, %cst_89 {dimension_numbers = #tpu.dot_dimension_numbers<[1], [0], [0], [1], [0, 0, 1, 1], [], []>} : vector<8x64xbf16>, vector<64x128xbf16>, vector<8x128xf32> -> vector<8x128xf32>
    %117 = arith.addf %112, %116 : vector<8x128xf32>
    %c6_90 = arith.constant 6 : index
    %c0_91 = arith.constant 0 : index
    %118 = tpu.strided_load %arg23[%c6_90, %c0_91] {strides = array<i32: 2, 1>} : memref<80x64xf32, #tpu.memory_space<vmem>>, vector<8x64xf32>
    %c384 = arith.constant 384 : index
    %c0_92 = arith.constant 0 : index
    %119 = vector.load %arg4[%c384, %c0_92] : memref<1344x128xbf16, #tpu.memory_space<vmem>>, vector<64x128xbf16>
    %120 = arith.truncf %118 : vector<8x64xf32> to vector<8x64xbf16>
    %cst_93 = arith.constant dense<0.000000e+00> : vector<8x128xf32>
    %121 = tpu.matmul %120, %119, %cst_93 {dimension_numbers = #tpu.dot_dimension_numbers<[1], [0], [0], [1], [0, 0, 1, 1], [], []>} : vector<8x64xbf16>, vector<64x128xbf16>, vector<8x128xf32> -> vector<8x128xf32>
    %122 = arith.addf %117, %121 : vector<8x128xf32>
    %c7_94 = arith.constant 7 : index
    %c0_95 = arith.constant 0 : index
    %123 = tpu.strided_load %arg23[%c7_94, %c0_95] {strides = array<i32: 2, 1>} : memref<80x64xf32, #tpu.memory_space<vmem>>, vector<8x64xf32>
    %c448 = arith.constant 448 : index
    %c0_96 = arith.constant 0 : index
    %124 = vector.load %arg4[%c448, %c0_96] : memref<1344x128xbf16, #tpu.memory_space<vmem>>, vector<64x128xbf16>
    %125 = arith.truncf %123 : vector<8x64xf32> to vector<8x64xbf16>
    %cst_97 = arith.constant dense<0.000000e+00> : vector<8x128xf32>
    %126 = tpu.matmul %125, %124, %cst_97 {dimension_numbers = #tpu.dot_dimension_numbers<[1], [0], [0], [1], [0, 0, 1, 1], [], []>} : vector<8x64xbf16>, vector<64x128xbf16>, vector<8x128xf32> -> vector<8x128xf32>
    %127 = arith.addf %122, %126 : vector<8x128xf32>
    %c8_98 = arith.constant 8 : index
    %c0_99 = arith.constant 0 : index
    %128 = tpu.strided_load %arg23[%c8_98, %c0_99] {strides = array<i32: 2, 1>} : memref<80x64xf32, #tpu.memory_space<vmem>>, vector<8x64xf32>
    %c512 = arith.constant 512 : index
    %c0_100 = arith.constant 0 : index
    %129 = vector.load %arg4[%c512, %c0_100] : memref<1344x128xbf16, #tpu.memory_space<vmem>>, vector<64x128xbf16>
    %130 = arith.truncf %128 : vector<8x64xf32> to vector<8x64xbf16>
    %cst_101 = arith.constant dense<0.000000e+00> : vector<8x128xf32>
    %131 = tpu.matmul %130, %129, %cst_101 {dimension_numbers = #tpu.dot_dimension_numbers<[1], [0], [0], [1], [0, 0, 1, 1], [], []>} : vector<8x64xbf16>, vector<64x128xbf16>, vector<8x128xf32> -> vector<8x128xf32>
    %132 = arith.addf %127, %131 : vector<8x128xf32>
    %c9_102 = arith.constant 9 : index
    %c0_103 = arith.constant 0 : index
    %133 = tpu.strided_load %arg23[%c9_102, %c0_103] {strides = array<i32: 2, 1>} : memref<80x64xf32, #tpu.memory_space<vmem>>, vector<8x64xf32>
    %c576 = arith.constant 576 : index
    %c0_104 = arith.constant 0 : index
    %134 = vector.load %arg4[%c576, %c0_104] : memref<1344x128xbf16, #tpu.memory_space<vmem>>, vector<64x128xbf16>
    %135 = arith.truncf %133 : vector<8x64xf32> to vector<8x64xbf16>
    %cst_105 = arith.constant dense<0.000000e+00> : vector<8x128xf32>
    %136 = tpu.matmul %135, %134, %cst_105 {dimension_numbers = #tpu.dot_dimension_numbers<[1], [0], [0], [1], [0, 0, 1, 1], [], []>} : vector<8x64xbf16>, vector<64x128xbf16>, vector<8x128xf32> -> vector<8x128xf32>
    %137 = arith.addf %132, %136 : vector<8x128xf32>
    %c10_106 = arith.constant 10 : index
    %c0_107 = arith.constant 0 : index
    %138 = tpu.strided_load %arg23[%c10_106, %c0_107] {strides = array<i32: 2, 1>} : memref<80x64xf32, #tpu.memory_space<vmem>>, vector<8x64xf32>
    %c640_108 = arith.constant 640 : index
    %c0_109 = arith.constant 0 : index
    %139 = vector.load %arg4[%c640_108, %c0_109] : memref<1344x128xbf16, #tpu.memory_space<vmem>>, vector<64x128xbf16>
    %140 = arith.truncf %138 : vector<8x64xf32> to vector<8x64xbf16>
    %cst_110 = arith.constant dense<0.000000e+00> : vector<8x128xf32>
    %141 = tpu.matmul %140, %139, %cst_110 {dimension_numbers = #tpu.dot_dimension_numbers<[1], [0], [0], [1], [0, 0, 1, 1], [], []>} : vector<8x64xbf16>, vector<64x128xbf16>, vector<8x128xf32> -> vector<8x128xf32>
    %142 = arith.addf %137, %141 : vector<8x128xf32>
    %c11_111 = arith.constant 11 : index
    %c0_112 = arith.constant 0 : index
    %143 = tpu.strided_load %arg23[%c11_111, %c0_112] {strides = array<i32: 2, 1>} : memref<80x64xf32, #tpu.memory_space<vmem>>, vector<8x64xf32>
    %c704 = arith.constant 704 : index
    %c0_113 = arith.constant 0 : index
    %144 = vector.load %arg4[%c704, %c0_113] : memref<1344x128xbf16, #tpu.memory_space<vmem>>, vector<64x128xbf16>
    %145 = arith.truncf %143 : vector<8x64xf32> to vector<8x64xbf16>
    %cst_114 = arith.constant dense<0.000000e+00> : vector<8x128xf32>
    %146 = tpu.matmul %145, %144, %cst_114 {dimension_numbers = #tpu.dot_dimension_numbers<[1], [0], [0], [1], [0, 0, 1, 1], [], []>} : vector<8x64xbf16>, vector<64x128xbf16>, vector<8x128xf32> -> vector<8x128xf32>
    %147 = arith.addf %142, %146 : vector<8x128xf32>
    %c12_115 = arith.constant 12 : index
    %c0_116 = arith.constant 0 : index
    %148 = tpu.strided_load %arg23[%c12_115, %c0_116] {strides = array<i32: 2, 1>} : memref<80x64xf32, #tpu.memory_space<vmem>>, vector<8x64xf32>
    %c768 = arith.constant 768 : index
    %c0_117 = arith.constant 0 : index
    %149 = vector.load %arg4[%c768, %c0_117] : memref<1344x128xbf16, #tpu.memory_space<vmem>>, vector<64x128xbf16>
    %150 = arith.truncf %148 : vector<8x64xf32> to vector<8x64xbf16>
    %cst_118 = arith.constant dense<0.000000e+00> : vector<8x128xf32>
    %151 = tpu.matmul %150, %149, %cst_118 {dimension_numbers = #tpu.dot_dimension_numbers<[1], [0], [0], [1], [0, 0, 1, 1], [], []>} : vector<8x64xbf16>, vector<64x128xbf16>, vector<8x128xf32> -> vector<8x128xf32>
    %152 = arith.addf %147, %151 : vector<8x128xf32>
    %c13 = arith.constant 13 : index
    %c0_119 = arith.constant 0 : index
    %153 = tpu.strided_load %arg23[%c13, %c0_119] {strides = array<i32: 2, 1>} : memref<80x64xf32, #tpu.memory_space<vmem>>, vector<8x64xf32>
    %c832 = arith.constant 832 : index
    %c0_120 = arith.constant 0 : index
    %154 = vector.load %arg4[%c832, %c0_120] : memref<1344x128xbf16, #tpu.memory_space<vmem>>, vector<64x128xbf16>
    %155 = arith.truncf %153 : vector<8x64xf32> to vector<8x64xbf16>
    %cst_121 = arith.constant dense<0.000000e+00> : vector<8x128xf32>
    %156 = tpu.matmul %155, %154, %cst_121 {dimension_numbers = #tpu.dot_dimension_numbers<[1], [0], [0], [1], [0, 0, 1, 1], [], []>} : vector<8x64xbf16>, vector<64x128xbf16>, vector<8x128xf32> -> vector<8x128xf32>
    %157 = arith.addf %152, %156 : vector<8x128xf32>
    %c14 = arith.constant 14 : index
    %c0_122 = arith.constant 0 : index
    %158 = tpu.strided_load %arg23[%c14, %c0_122] {strides = array<i32: 2, 1>} : memref<80x64xf32, #tpu.memory_space<vmem>>, vector<8x64xf32>
    %c896 = arith.constant 896 : index
    %c0_123 = arith.constant 0 : index
    %159 = vector.load %arg4[%c896, %c0_123] : memref<1344x128xbf16, #tpu.memory_space<vmem>>, vector<64x128xbf16>
    %160 = arith.truncf %158 : vector<8x64xf32> to vector<8x64xbf16>
    %cst_124 = arith.constant dense<0.000000e+00> : vector<8x128xf32>
    %161 = tpu.matmul %160, %159, %cst_124 {dimension_numbers = #tpu.dot_dimension_numbers<[1], [0], [0], [1], [0, 0, 1, 1], [], []>} : vector<8x64xbf16>, vector<64x128xbf16>, vector<8x128xf32> -> vector<8x128xf32>
    %162 = arith.addf %157, %161 : vector<8x128xf32>
    %c15 = arith.constant 15 : index
    %c0_125 = arith.constant 0 : index
    %163 = tpu.strided_load %arg23[%c15, %c0_125] {strides = array<i32: 2, 1>} : memref<80x64xf32, #tpu.memory_space<vmem>>, vector<8x64xf32>
    %c960_126 = arith.constant 960 : index
    %c0_127 = arith.constant 0 : index
    %164 = vector.load %arg4[%c960_126, %c0_127] : memref<1344x128xbf16, #tpu.memory_space<vmem>>, vector<64x128xbf16>
    %165 = arith.truncf %163 : vector<8x64xf32> to vector<8x64xbf16>
    %cst_128 = arith.constant dense<0.000000e+00> : vector<8x128xf32>
    %166 = tpu.matmul %165, %164, %cst_128 {dimension_numbers = #tpu.dot_dimension_numbers<[1], [0], [0], [1], [0, 0, 1, 1], [], []>} : vector<8x64xbf16>, vector<64x128xbf16>, vector<8x128xf32> -> vector<8x128xf32>
    %167 = arith.addf %162, %166 : vector<8x128xf32>
    %c16 = arith.constant 16 : index
    %c0_129 = arith.constant 0 : index
    %168 = tpu.strided_load %arg23[%c16, %c0_129] {strides = array<i32: 2, 1>} : memref<80x64xf32, #tpu.memory_space<vmem>>, vector<8x64xf32>
    %c1024 = arith.constant 1024 : index
    %c0_130 = arith.constant 0 : index
    %169 = vector.load %arg4[%c1024, %c0_130] : memref<1344x128xbf16, #tpu.memory_space<vmem>>, vector<64x128xbf16>
    %170 = arith.truncf %168 : vector<8x64xf32> to vector<8x64xbf16>
    %cst_131 = arith.constant dense<0.000000e+00> : vector<8x128xf32>
    %171 = tpu.matmul %170, %169, %cst_131 {dimension_numbers = #tpu.dot_dimension_numbers<[1], [0], [0], [1], [0, 0, 1, 1], [], []>} : vector<8x64xbf16>, vector<64x128xbf16>, vector<8x128xf32> -> vector<8x128xf32>
    %172 = arith.addf %167, %171 : vector<8x128xf32>
    %c17 = arith.constant 17 : index
    %c0_132 = arith.constant 0 : index
    %173 = tpu.strided_load %arg23[%c17, %c0_132] {strides = array<i32: 2, 1>} : memref<80x64xf32, #tpu.memory_space<vmem>>, vector<8x64xf32>
    %c1088 = arith.constant 1088 : index
    %c0_133 = arith.constant 0 : index
    %174 = vector.load %arg4[%c1088, %c0_133] : memref<1344x128xbf16, #tpu.memory_space<vmem>>, vector<64x128xbf16>
    %175 = arith.truncf %173 : vector<8x64xf32> to vector<8x64xbf16>
    %cst_134 = arith.constant dense<0.000000e+00> : vector<8x128xf32>
    %176 = tpu.matmul %175, %174, %cst_134 {dimension_numbers = #tpu.dot_dimension_numbers<[1], [0], [0], [1], [0, 0, 1, 1], [], []>} : vector<8x64xbf16>, vector<64x128xbf16>, vector<8x128xf32> -> vector<8x128xf32>
    %177 = arith.addf %172, %176 : vector<8x128xf32>
    %c18 = arith.constant 18 : index
    %c0_135 = arith.constant 0 : index
    %178 = tpu.strided_load %arg23[%c18, %c0_135] {strides = array<i32: 2, 1>} : memref<80x64xf32, #tpu.memory_space<vmem>>, vector<8x64xf32>
    %c1152 = arith.constant 1152 : index
    %c0_136 = arith.constant 0 : index
    %179 = vector.load %arg4[%c1152, %c0_136] : memref<1344x128xbf16, #tpu.memory_space<vmem>>, vector<64x128xbf16>
    %180 = arith.truncf %178 : vector<8x64xf32> to vector<8x64xbf16>
    %cst_137 = arith.constant dense<0.000000e+00> : vector<8x128xf32>
    %181 = tpu.matmul %180, %179, %cst_137 {dimension_numbers = #tpu.dot_dimension_numbers<[1], [0], [0], [1], [0, 0, 1, 1], [], []>} : vector<8x64xbf16>, vector<64x128xbf16>, vector<8x128xf32> -> vector<8x128xf32>
    %182 = arith.addf %177, %181 : vector<8x128xf32>
    %c19 = arith.constant 19 : index
    %c0_138 = arith.constant 0 : index
    %183 = tpu.strided_load %arg23[%c19, %c0_138] {strides = array<i32: 2, 1>} : memref<80x64xf32, #tpu.memory_space<vmem>>, vector<8x64xf32>
    %c1216 = arith.constant 1216 : index
    %c0_139 = arith.constant 0 : index
    %184 = vector.load %arg4[%c1216, %c0_139] : memref<1344x128xbf16, #tpu.memory_space<vmem>>, vector<64x128xbf16>
    %185 = arith.truncf %183 : vector<8x64xf32> to vector<8x64xbf16>
    %cst_140 = arith.constant dense<0.000000e+00> : vector<8x128xf32>
    %186 = tpu.matmul %185, %184, %cst_140 {dimension_numbers = #tpu.dot_dimension_numbers<[1], [0], [0], [1], [0, 0, 1, 1], [], []>} : vector<8x64xbf16>, vector<64x128xbf16>, vector<8x128xf32> -> vector<8x128xf32>
    %187 = arith.addf %182, %186 : vector<8x128xf32>
    %c20 = arith.constant 20 : index
    %c0_141 = arith.constant 0 : index
    %188 = tpu.strided_load %arg23[%c20, %c0_141] {strides = array<i32: 2, 1>} : memref<80x64xf32, #tpu.memory_space<vmem>>, vector<8x64xf32>
    %c1280 = arith.constant 1280 : index
    %c0_142 = arith.constant 0 : index
    %189 = vector.load %arg4[%c1280, %c0_142] : memref<1344x128xbf16, #tpu.memory_space<vmem>>, vector<64x128xbf16>
    %190 = arith.truncf %188 : vector<8x64xf32> to vector<8x64xbf16>
    %cst_143 = arith.constant dense<0.000000e+00> : vector<8x128xf32>
    %191 = tpu.matmul %190, %189, %cst_143 {dimension_numbers = #tpu.dot_dimension_numbers<[1], [0], [0], [1], [0, 0, 1, 1], [], []>} : vector<8x64xbf16>, vector<64x128xbf16>, vector<8x128xf32> -> vector<8x128xf32>
    %192 = arith.addf %187, %191 : vector<8x128xf32>
    %c0_144 = arith.constant 0 : index
    %c0_145 = arith.constant 0 : index
    %193 = vector.load %arg5[%c0_144, %c0_145] : memref<1x128xf32, #tpu.memory_space<vmem>>, vector<1x128xf32>
    %194 = vector.broadcast %193 : vector<1x128xf32> to vector<8x128xf32>
    %195 = arith.mulf %192, %194 : vector<8x128xf32>
    %c0_146 = arith.constant 0 : index
    %c0_147 = arith.constant 0 : index
    %196 = vector.load %arg6[%c0_146, %c0_147] : memref<1x128xf32, #tpu.memory_space<vmem>>, vector<1x128xf32>
    %197 = vector.broadcast %196 : vector<1x128xf32> to vector<8x128xf32>
    %198 = arith.addf %195, %197 : vector<8x128xf32>
    %cst_148 = arith.constant 0.000000e+00 : f32
    %199 = vector.broadcast %cst_148 : f32 to vector<8x128xf32>
    %200 = arith.maximumf %198, %199 : vector<8x128xf32>
    %c4_149 = arith.constant 4 : index
    %c0_150 = arith.constant 0 : index
    %201 = vector.load %arg24[%c4_149, %c0_150] : memref<32x128xf32, #tpu.memory_space<vmem>>, vector<8x128xf32>
    tpu.vector_store %arg24[%c4_149, %c0_150], %200 {strides = array<i32>} : memref<32x128xf32, #tpu.memory_space<vmem>>, vector<8x128xf32>,
    %cst_151 = arith.constant 0.000000e+00 : f32
    %202 = vector.broadcast %cst_151 : f32 to vector<4x256xf32>
    %c0_152 = arith.constant 0 : index
    %c0_153 = arith.constant 0 : index
    %203 = tpu.strided_load %arg24[%c0_152, %c0_153] {strides = array<i32: 2, 1>} : memref<32x128xf32, #tpu.memory_space<vmem>>, vector<4x128xf32>
    %c0_154 = arith.constant 0 : index
    %c0_155 = arith.constant 0 : index
    %204 = vector.load %arg7[%c0_154, %c0_155] : memref<1152x256xbf16, #tpu.memory_space<vmem>>, vector<128x256xbf16>
    %205 = arith.truncf %203 : vector<4x128xf32> to vector<4x128xbf16>
    %cst_156 = arith.constant dense<0.000000e+00> : vector<4x256xf32>
    %206 = tpu.matmul %205, %204, %cst_156 {dimension_numbers = #tpu.dot_dimension_numbers<[1], [0], [0], [1], [0, 0, 1, 1], [], []>} : vector<4x128xbf16>, vector<128x256xbf16>, vector<4x256xf32> -> vector<4x256xf32>
    %207 = arith.addf %202, %206 : vector<4x256xf32>
    %c1_157 = arith.constant 1 : index
    %c0_158 = arith.constant 0 : index
    %208 = tpu.strided_load %arg24[%c1_157, %c0_158] {strides = array<i32: 2, 1>} : memref<32x128xf32, #tpu.memory_space<vmem>>, vector<4x128xf32>
    %c128_159 = arith.constant 128 : index
    %c0_160 = arith.constant 0 : index
    %209 = vector.load %arg7[%c128_159, %c0_160] : memref<1152x256xbf16, #tpu.memory_space<vmem>>, vector<128x256xbf16>
    %210 = arith.truncf %208 : vector<4x128xf32> to vector<4x128xbf16>
    %cst_161 = arith.constant dense<0.000000e+00> : vector<4x256xf32>
    %211 = tpu.matmul %210, %209, %cst_161 {dimension_numbers = #tpu.dot_dimension_numbers<[1], [0], [0], [1], [0, 0, 1, 1], [], []>} : vector<4x128xbf16>, vector<128x256xbf16>, vector<4x256xf32> -> vector<4x256xf32>
    %212 = arith.addf %207, %211 : vector<4x256xf32>
    %c2_162 = arith.constant 2 : index
    %c0_163 = arith.constant 0 : index
    %213 = tpu.strided_load %arg24[%c2_162, %c0_163] {strides = array<i32: 2, 1>} : memref<32x128xf32, #tpu.memory_space<vmem>>, vector<4x128xf32>
    %c256_164 = arith.constant 256 : index
    %c0_165 = arith.constant 0 : index
    %214 = vector.load %arg7[%c256_164, %c0_165] : memref<1152x256xbf16, #tpu.memory_space<vmem>>, vector<128x256xbf16>
    %215 = arith.truncf %213 : vector<4x128xf32> to vector<4x128xbf16>
    %cst_166 = arith.constant dense<0.000000e+00> : vector<4x256xf32>
    %216 = tpu.matmul %215, %214, %cst_166 {dimension_numbers = #tpu.dot_dimension_numbers<[1], [0], [0], [1], [0, 0, 1, 1], [], []>} : vector<4x128xbf16>, vector<128x256xbf16>, vector<4x256xf32> -> vector<4x256xf32>
    %217 = arith.addf %212, %216 : vector<4x256xf32>
    %c3_167 = arith.constant 3 : index
    %c0_168 = arith.constant 0 : index
    %218 = tpu.strided_load %arg24[%c3_167, %c0_168] {strides = array<i32: 2, 1>} : memref<32x128xf32, #tpu.memory_space<vmem>>, vector<4x128xf32>
    %c384_169 = arith.constant 384 : index
    %c0_170 = arith.constant 0 : index
    %219 = vector.load %arg7[%c384_169, %c0_170] : memref<1152x256xbf16, #tpu.memory_space<vmem>>, vector<128x256xbf16>
    %220 = arith.truncf %218 : vector<4x128xf32> to vector<4x128xbf16>
    %cst_171 = arith.constant dense<0.000000e+00> : vector<4x256xf32>
    %221 = tpu.matmul %220, %219, %cst_171 {dimension_numbers = #tpu.dot_dimension_numbers<[1], [0], [0], [1], [0, 0, 1, 1], [], []>} : vector<4x128xbf16>, vector<128x256xbf16>, vector<4x256xf32> -> vector<4x256xf32>
    %222 = arith.addf %217, %221 : vector<4x256xf32>
    %c4_172 = arith.constant 4 : index
    %c0_173 = arith.constant 0 : index
    %223 = tpu.strided_load %arg24[%c4_172, %c0_173] {strides = array<i32: 2, 1>} : memref<32x128xf32, #tpu.memory_space<vmem>>, vector<4x128xf32>
    %c512_174 = arith.constant 512 : index
    %c0_175 = arith.constant 0 : index
    %224 = vector.load %arg7[%c512_174, %c0_175] : memref<1152x256xbf16, #tpu.memory_space<vmem>>, vector<128x256xbf16>
    %225 = arith.truncf %223 : vector<4x128xf32> to vector<4x128xbf16>
    %cst_176 = arith.constant dense<0.000000e+00> : vector<4x256xf32>
    %226 = tpu.matmul %225, %224, %cst_176 {dimension_numbers = #tpu.dot_dimension_numbers<[1], [0], [0], [1], [0, 0, 1, 1], [], []>} : vector<4x128xbf16>, vector<128x256xbf16>, vector<4x256xf32> -> vector<4x256xf32>
    %227 = arith.addf %222, %226 : vector<4x256xf32>
    %c5_177 = arith.constant 5 : index
    %c0_178 = arith.constant 0 : index
    %228 = tpu.strided_load %arg24[%c5_177, %c0_178] {strides = array<i32: 2, 1>} : memref<32x128xf32, #tpu.memory_space<vmem>>, vector<4x128xf32>
    %c640_179 = arith.constant 640 : index
    %c0_180 = arith.constant 0 : index
    %229 = vector.load %arg7[%c640_179, %c0_180] : memref<1152x256xbf16, #tpu.memory_space<vmem>>, vector<128x256xbf16>
    %230 = arith.truncf %228 : vector<4x128xf32> to vector<4x128xbf16>
    %cst_181 = arith.constant dense<0.000000e+00> : vector<4x256xf32>
    %231 = tpu.matmul %230, %229, %cst_181 {dimension_numbers = #tpu.dot_dimension_numbers<[1], [0], [0], [1], [0, 0, 1, 1], [], []>} : vector<4x128xbf16>, vector<128x256xbf16>, vector<4x256xf32> -> vector<4x256xf32>
    %232 = arith.addf %227, %231 : vector<4x256xf32>
    %c6_182 = arith.constant 6 : index
    %c0_183 = arith.constant 0 : index
    %233 = tpu.strided_load %arg24[%c6_182, %c0_183] {strides = array<i32: 2, 1>} : memref<32x128xf32, #tpu.memory_space<vmem>>, vector<4x128xf32>
    %c768_184 = arith.constant 768 : index
    %c0_185 = arith.constant 0 : index
    %234 = vector.load %arg7[%c768_184, %c0_185] : memref<1152x256xbf16, #tpu.memory_space<vmem>>, vector<128x256xbf16>
    %235 = arith.truncf %233 : vector<4x128xf32> to vector<4x128xbf16>
    %cst_186 = arith.constant dense<0.000000e+00> : vector<4x256xf32>
    %236 = tpu.matmul %235, %234, %cst_186 {dimension_numbers = #tpu.dot_dimension_numbers<[1], [0], [0], [1], [0, 0, 1, 1], [], []>} : vector<4x128xbf16>, vector<128x256xbf16>, vector<4x256xf32> -> vector<4x256xf32>
    %237 = arith.addf %232, %236 : vector<4x256xf32>
    %c7_187 = arith.constant 7 : index
    %c0_188 = arith.constant 0 : index
    %238 = tpu.strided_load %arg24[%c7_187, %c0_188] {strides = array<i32: 2, 1>} : memref<32x128xf32, #tpu.memory_space<vmem>>, vector<4x128xf32>
    %c896_189 = arith.constant 896 : index
    %c0_190 = arith.constant 0 : index
    %239 = vector.load %arg7[%c896_189, %c0_190] : memref<1152x256xbf16, #tpu.memory_space<vmem>>, vector<128x256xbf16>
    %240 = arith.truncf %238 : vector<4x128xf32> to vector<4x128xbf16>
    %cst_191 = arith.constant dense<0.000000e+00> : vector<4x256xf32>
    %241 = tpu.matmul %240, %239, %cst_191 {dimension_numbers = #tpu.dot_dimension_numbers<[1], [0], [0], [1], [0, 0, 1, 1], [], []>} : vector<4x128xbf16>, vector<128x256xbf16>, vector<4x256xf32> -> vector<4x256xf32>
    %242 = arith.addf %237, %241 : vector<4x256xf32>
    %c8_192 = arith.constant 8 : index
    %c0_193 = arith.constant 0 : index
    %243 = tpu.strided_load %arg24[%c8_192, %c0_193] {strides = array<i32: 2, 1>} : memref<32x128xf32, #tpu.memory_space<vmem>>, vector<4x128xf32>
    %c1024_194 = arith.constant 1024 : index
    %c0_195 = arith.constant 0 : index
    %244 = vector.load %arg7[%c1024_194, %c0_195] : memref<1152x256xbf16, #tpu.memory_space<vmem>>, vector<128x256xbf16>
    %245 = arith.truncf %243 : vector<4x128xf32> to vector<4x128xbf16>
    %cst_196 = arith.constant dense<0.000000e+00> : vector<4x256xf32>
    %246 = tpu.matmul %245, %244, %cst_196 {dimension_numbers = #tpu.dot_dimension_numbers<[1], [0], [0], [1], [0, 0, 1, 1], [], []>} : vector<4x128xbf16>, vector<128x256xbf16>, vector<4x256xf32> -> vector<4x256xf32>
    %247 = arith.addf %242, %246 : vector<4x256xf32>
    %c0_197 = arith.constant 0 : index
    %c0_198 = arith.constant 0 : index
    %248 = vector.load %arg8[%c0_197, %c0_198] : memref<1x256xf32, #tpu.memory_space<vmem>>, vector<1x256xf32>
    %249 = vector.broadcast %248 : vector<1x256xf32> to vector<4x256xf32>
    %250 = arith.mulf %247, %249 : vector<4x256xf32>
    %c0_199 = arith.constant 0 : index
    %c0_200 = arith.constant 0 : index
    %251 = vector.load %arg9[%c0_199, %c0_200] : memref<1x256xf32, #tpu.memory_space<vmem>>, vector<1x256xf32>
    %252 = vector.broadcast %251 : vector<1x256xf32> to vector<4x256xf32>
    %253 = arith.addf %250, %252 : vector<4x256xf32>
    %cst_201 = arith.constant 0.000000e+00 : f32
    %254 = vector.broadcast %cst_201 : f32 to vector<4x256xf32>
    %255 = arith.maximumf %253, %254 : vector<4x256xf32>
    %cst_202 = arith.constant dense<0.000000e+00> : vector<256xf32>
    %256 = vector.multi_reduction <add>, %255, %cst_202 [0] : vector<4x256xf32> to vector<256xf32>
    %257 = vector.shape_cast %256 : vector<256xf32> to vector<1x256xf32>
    %cst_203 = arith.constant 2.500000e-01 : f32
    %258 = vector.broadcast %cst_203 : f32 to vector<1x256xf32>
    %259 = arith.mulf %257, %258 : vector<1x256xf32>
    %c0_204 = arith.constant 0 : index
    %c0_205 = arith.constant 0 : index
    %260 = vector.load %arg25[%c0_204, %c0_205] : memref<8x256xf32, #tpu.memory_space<vmem>>, vector<1x256xf32>
    tpu.vector_store %arg25[%c0_204, %c0_205], %259 {strides = array<i32>} : memref<8x256xf32, #tpu.memory_space<vmem>>, vector<1x256xf32>,
    %cst_206 = arith.constant 0.000000e+00 : f32
    %261 = vector.broadcast %cst_206 : f32 to vector<64x64xf32>
    %c80_207 = arith.constant 80 : index
    %c0_208 = arith.constant 0 : index
    %262 = vector.load %arg0[%c80_207, %c0_208] : memref<160x80xf32, #tpu.memory_space<vmem>>, vector<64x80xf32>
    %c0_209 = arith.constant 0 : index
    %c0_210 = arith.constant 0 : index
    %263 = vector.load %arg1[%c0_209, %c0_210] : memref<1040x64xbf16, #tpu.memory_space<vmem>>, vector<80x64xbf16>
    %264 = arith.truncf %262 : vector<64x80xf32> to vector<64x80xbf16>
    %cst_211 = arith.constant dense<0.000000e+00> : vector<64x64xf32>
    %265 = tpu.matmul %264, %263, %cst_211 {dimension_numbers = #tpu.dot_dimension_numbers<[1], [0], [0], [1], [0, 0, 1, 1], [], []>} : vector<64x80xbf16>, vector<80x64xbf16>, vector<64x64xf32> -> vector<64x64xf32>
    %266 = arith.addf %261, %265 : vector<64x64xf32>
    %c81 = arith.constant 81 : index
    %c0_212 = arith.constant 0 : index
    %267 = vector.load %arg0[%c81, %c0_212] : memref<160x80xf32, #tpu.memory_space<vmem>>, vector<64x80xf32>
    %c80_213 = arith.constant 80 : index
    %c0_214 = arith.constant 0 : index
    %268 = vector.load %arg1[%c80_213, %c0_214] : memref<1040x64xbf16, #tpu.memory_space<vmem>>, vector<80x64xbf16>
    %269 = arith.truncf %267 : vector<64x80xf32> to vector<64x80xbf16>
    %cst_215 = arith.constant dense<0.000000e+00> : vector<64x64xf32>
    %270 = tpu.matmul %269, %268, %cst_215 {dimension_numbers = #tpu.dot_dimension_numbers<[1], [0], [0], [1], [0, 0, 1, 1], [], []>} : vector<64x80xbf16>, vector<80x64xbf16>, vector<64x64xf32> -> vector<64x64xf32>
    %271 = arith.addf %266, %270 : vector<64x64xf32>
    %c82 = arith.constant 82 : index
    %c0_216 = arith.constant 0 : index
    %272 = vector.load %arg0[%c82, %c0_216] : memref<160x80xf32, #tpu.memory_space<vmem>>, vector<64x80xf32>
    %c160_217 = arith.constant 160 : index
    %c0_218 = arith.constant 0 : index
    %273 = vector.load %arg1[%c160_217, %c0_218] : memref<1040x64xbf16, #tpu.memory_space<vmem>>, vector<80x64xbf16>
    %274 = arith.truncf %272 : vector<64x80xf32> to vector<64x80xbf16>
    %cst_219 = arith.constant dense<0.000000e+00> : vector<64x64xf32>
    %275 = tpu.matmul %274, %273, %cst_219 {dimension_numbers = #tpu.dot_dimension_numbers<[1], [0], [0], [1], [0, 0, 1, 1], [], []>} : vector<64x80xbf16>, vector<80x64xbf16>, vector<64x64xf32> -> vector<64x64xf32>
    %276 = arith.addf %271, %275 : vector<64x64xf32>
    %c83 = arith.constant 83 : index
    %c0_220 = arith.constant 0 : index
    %277 = vector.load %arg0[%c83, %c0_220] : memref<160x80xf32, #tpu.memory_space<vmem>>, vector<64x80xf32>
    %c240_221 = arith.constant 240 : index
    %c0_222 = arith.constant 0 : index
    %278 = vector.load %arg1[%c240_221, %c0_222] : memref<1040x64xbf16, #tpu.memory_space<vmem>>, vector<80x64xbf16>
    %279 = arith.truncf %277 : vector<64x80xf32> to vector<64x80xbf16>
    %cst_223 = arith.constant dense<0.000000e+00> : vector<64x64xf32>
    %280 = tpu.matmul %279, %278, %cst_223 {dimension_numbers = #tpu.dot_dimension_numbers<[1], [0], [0], [1], [0, 0, 1, 1], [], []>} : vector<64x80xbf16>, vector<80x64xbf16>, vector<64x64xf32> -> vector<64x64xf32>
    %281 = arith.addf %276, %280 : vector<64x64xf32>
    %c84 = arith.constant 84 : index
    %c0_224 = arith.constant 0 : index
    %282 = vector.load %arg0[%c84, %c0_224] : memref<160x80xf32, #tpu.memory_space<vmem>>, vector<64x80xf32>
    %c320_225 = arith.constant 320 : index
    %c0_226 = arith.constant 0 : index
    %283 = vector.load %arg1[%c320_225, %c0_226] : memref<1040x64xbf16, #tpu.memory_space<vmem>>, vector<80x64xbf16>
    %284 = arith.truncf %282 : vector<64x80xf32> to vector<64x80xbf16>
    %cst_227 = arith.constant dense<0.000000e+00> : vector<64x64xf32>
    %285 = tpu.matmul %284, %283, %cst_227 {dimension_numbers = #tpu.dot_dimension_numbers<[1], [0], [0], [1], [0, 0, 1, 1], [], []>} : vector<64x80xbf16>, vector<80x64xbf16>, vector<64x64xf32> -> vector<64x64xf32>
    %286 = arith.addf %281, %285 : vector<64x64xf32>
    %c85 = arith.constant 85 : index
    %c0_228 = arith.constant 0 : index
    %287 = vector.load %arg0[%c85, %c0_228] : memref<160x80xf32, #tpu.memory_space<vmem>>, vector<64x80xf32>
    %c400_229 = arith.constant 400 : index
    %c0_230 = arith.constant 0 : index
    %288 = vector.load %arg1[%c400_229, %c0_230] : memref<1040x64xbf16, #tpu.memory_space<vmem>>, vector<80x64xbf16>
    %289 = arith.truncf %287 : vector<64x80xf32> to vector<64x80xbf16>
    %cst_231 = arith.constant dense<0.000000e+00> : vector<64x64xf32>
    %290 = tpu.matmul %289, %288, %cst_231 {dimension_numbers = #tpu.dot_dimension_numbers<[1], [0], [0], [1], [0, 0, 1, 1], [], []>} : vector<64x80xbf16>, vector<80x64xbf16>, vector<64x64xf32> -> vector<64x64xf32>
    %291 = arith.addf %286, %290 : vector<64x64xf32>
    %c86 = arith.constant 86 : index
    %c0_232 = arith.constant 0 : index
    %292 = vector.load %arg0[%c86, %c0_232] : memref<160x80xf32, #tpu.memory_space<vmem>>, vector<64x80xf32>
    %c480_233 = arith.constant 480 : index
    %c0_234 = arith.constant 0 : index
    %293 = vector.load %arg1[%c480_233, %c0_234] : memref<1040x64xbf16, #tpu.memory_space<vmem>>, vector<80x64xbf16>
    %294 = arith.truncf %292 : vector<64x80xf32> to vector<64x80xbf16>
    %cst_235 = arith.constant dense<0.000000e+00> : vector<64x64xf32>
    %295 = tpu.matmul %294, %293, %cst_235 {dimension_numbers = #tpu.dot_dimension_numbers<[1], [0], [0], [1], [0, 0, 1, 1], [], []>} : vector<64x80xbf16>, vector<80x64xbf16>, vector<64x64xf32> -> vector<64x64xf32>
    %296 = arith.addf %291, %295 : vector<64x64xf32>
    %c87 = arith.constant 87 : index
    %c0_236 = arith.constant 0 : index
    %297 = vector.load %arg0[%c87, %c0_236] : memref<160x80xf32, #tpu.memory_space<vmem>>, vector<64x80xf32>
    %c560_237 = arith.constant 560 : index
    %c0_238 = arith.constant 0 : index
    %298 = vector.load %arg1[%c560_237, %c0_238] : memref<1040x64xbf16, #tpu.memory_space<vmem>>, vector<80x64xbf16>
    %299 = arith.truncf %297 : vector<64x80xf32> to vector<64x80xbf16>
    %cst_239 = arith.constant dense<0.000000e+00> : vector<64x64xf32>
    %300 = tpu.matmul %299, %298, %cst_239 {dimension_numbers = #tpu.dot_dimension_numbers<[1], [0], [0], [1], [0, 0, 1, 1], [], []>} : vector<64x80xbf16>, vector<80x64xbf16>, vector<64x64xf32> -> vector<64x64xf32>
    %301 = arith.addf %296, %300 : vector<64x64xf32>
    %c88 = arith.constant 88 : index
    %c0_240 = arith.constant 0 : index
    %302 = vector.load %arg0[%c88, %c0_240] : memref<160x80xf32, #tpu.memory_space<vmem>>, vector<64x80xf32>
    %c640_241 = arith.constant 640 : index
    %c0_242 = arith.constant 0 : index
    %303 = vector.load %arg1[%c640_241, %c0_242] : memref<1040x64xbf16, #tpu.memory_space<vmem>>, vector<80x64xbf16>
    %304 = arith.truncf %302 : vector<64x80xf32> to vector<64x80xbf16>
    %cst_243 = arith.constant dense<0.000000e+00> : vector<64x64xf32>
    %305 = tpu.matmul %304, %303, %cst_243 {dimension_numbers = #tpu.dot_dimension_numbers<[1], [0], [0], [1], [0, 0, 1, 1], [], []>} : vector<64x80xbf16>, vector<80x64xbf16>, vector<64x64xf32> -> vector<64x64xf32>
    %306 = arith.addf %301, %305 : vector<64x64xf32>
    %c89 = arith.constant 89 : index
    %c0_244 = arith.constant 0 : index
    %307 = vector.load %arg0[%c89, %c0_244] : memref<160x80xf32, #tpu.memory_space<vmem>>, vector<64x80xf32>
    %c720_245 = arith.constant 720 : index
    %c0_246 = arith.constant 0 : index
    %308 = vector.load %arg1[%c720_245, %c0_246] : memref<1040x64xbf16, #tpu.memory_space<vmem>>, vector<80x64xbf16>
    %309 = arith.truncf %307 : vector<64x80xf32> to vector<64x80xbf16>
    %cst_247 = arith.constant dense<0.000000e+00> : vector<64x64xf32>
    %310 = tpu.matmul %309, %308, %cst_247 {dimension_numbers = #tpu.dot_dimension_numbers<[1], [0], [0], [1], [0, 0, 1, 1], [], []>} : vector<64x80xbf16>, vector<80x64xbf16>, vector<64x64xf32> -> vector<64x64xf32>
    %311 = arith.addf %306, %310 : vector<64x64xf32>
    %c90 = arith.constant 90 : index
    %c0_248 = arith.constant 0 : index
    %312 = vector.load %arg0[%c90, %c0_248] : memref<160x80xf32, #tpu.memory_space<vmem>>, vector<64x80xf32>
    %c800_249 = arith.constant 800 : index
    %c0_250 = arith.constant 0 : index
    %313 = vector.load %arg1[%c800_249, %c0_250] : memref<1040x64xbf16, #tpu.memory_space<vmem>>, vector<80x64xbf16>
    %314 = arith.truncf %312 : vector<64x80xf32> to vector<64x80xbf16>
    %cst_251 = arith.constant dense<0.000000e+00> : vector<64x64xf32>
    %315 = tpu.matmul %314, %313, %cst_251 {dimension_numbers = #tpu.dot_dimension_numbers<[1], [0], [0], [1], [0, 0, 1, 1], [], []>} : vector<64x80xbf16>, vector<80x64xbf16>, vector<64x64xf32> -> vector<64x64xf32>
    %316 = arith.addf %311, %315 : vector<64x64xf32>
    %c91 = arith.constant 91 : index
    %c0_252 = arith.constant 0 : index
    %317 = vector.load %arg0[%c91, %c0_252] : memref<160x80xf32, #tpu.memory_space<vmem>>, vector<64x80xf32>
    %c880_253 = arith.constant 880 : index
    %c0_254 = arith.constant 0 : index
    %318 = vector.load %arg1[%c880_253, %c0_254] : memref<1040x64xbf16, #tpu.memory_space<vmem>>, vector<80x64xbf16>
    %319 = arith.truncf %317 : vector<64x80xf32> to vector<64x80xbf16>
    %cst_255 = arith.constant dense<0.000000e+00> : vector<64x64xf32>
    %320 = tpu.matmul %319, %318, %cst_255 {dimension_numbers = #tpu.dot_dimension_numbers<[1], [0], [0], [1], [0, 0, 1, 1], [], []>} : vector<64x80xbf16>, vector<80x64xbf16>, vector<64x64xf32> -> vector<64x64xf32>
    %321 = arith.addf %316, %320 : vector<64x64xf32>
    %c92 = arith.constant 92 : index
    %c0_256 = arith.constant 0 : index
    %322 = vector.load %arg0[%c92, %c0_256] : memref<160x80xf32, #tpu.memory_space<vmem>>, vector<64x80xf32>
    %c960_257 = arith.constant 960 : index
    %c0_258 = arith.constant 0 : index
    %323 = vector.load %arg1[%c960_257, %c0_258] : memref<1040x64xbf16, #tpu.memory_space<vmem>>, vector<80x64xbf16>
    %324 = arith.truncf %322 : vector<64x80xf32> to vector<64x80xbf16>
    %cst_259 = arith.constant dense<0.000000e+00> : vector<64x64xf32>
    %325 = tpu.matmul %324, %323, %cst_259 {dimension_numbers = #tpu.dot_dimension_numbers<[1], [0], [0], [1], [0, 0, 1, 1], [], []>} : vector<64x80xbf16>, vector<80x64xbf16>, vector<64x64xf32> -> vector<64x64xf32>
    %326 = arith.addf %321, %325 : vector<64x64xf32>
    %c0_260 = arith.constant 0 : index
    %c0_261 = arith.constant 0 : index
    %327 = vector.load %arg2[%c0_260, %c0_261] : memref<1x64xf32, #tpu.memory_space<vmem>>, vector<1x64xf32>
    %328 = vector.broadcast %327 : vector<1x64xf32> to vector<64x64xf32>
    %329 = arith.mulf %326, %328 : vector<64x64xf32>
    %c0_262 = arith.constant 0 : index
    %c0_263 = arith.constant 0 : index
    %330 = vector.load %arg3[%c0_262, %c0_263] : memref<1x64xf32, #tpu.memory_space<vmem>>, vector<1x64xf32>
    %331 = vector.broadcast %330 : vector<1x64xf32> to vector<64x64xf32>
    %332 = arith.addf %329, %331 : vector<64x64xf32>
    %cst_264 = arith.constant 0.000000e+00 : f32
    %333 = vector.broadcast %cst_264 : f32 to vector<64x64xf32>
    %334 = arith.maximumf %332, %333 : vector<64x64xf32>
    %c64_265 = arith.constant 64 : index
    %c0_266 = arith.constant 0 : index
    %335 = vector.load %arg22[%c64_265, %c0_266] : memref<128x64xf32, #tpu.memory_space<vmem>>, vector<64x64xf32>
    tpu.vector_store %arg22[%c64_265, %c0_266], %334 {strides = array<i32>} : memref<128x64xf32, #tpu.memory_space<vmem>>, vector<64x64xf32>,
    %c64_267 = arith.constant 64 : index
    %c0_268 = arith.constant 0 : index
    %336 = tpu.strided_load %arg22[%c64_267, %c0_268] {strides = array<i32: 4, 1>} : memref<128x64xf32, #tpu.memory_space<vmem>>, vector<16x64xf32>
    %c65 = arith.constant 65 : index
    %c0_269 = arith.constant 0 : index
    %337 = tpu.strided_load %arg22[%c65, %c0_269] {strides = array<i32: 4, 1>} : memref<128x64xf32, #tpu.memory_space<vmem>>, vector<16x64xf32>
    %338 = arith.maximumf %336, %337 : vector<16x64xf32>
    %c66 = arith.constant 66 : index
    %c0_270 = arith.constant 0 : index
    %339 = tpu.strided_load %arg22[%c66, %c0_270] {strides = array<i32: 4, 1>} : memref<128x64xf32, #tpu.memory_space<vmem>>, vector<16x64xf32>
    %340 = arith.maximumf %338, %339 : vector<16x64xf32>
    %c67 = arith.constant 67 : index
    %c0_271 = arith.constant 0 : index
    %341 = tpu.strided_load %arg22[%c67, %c0_271] {strides = array<i32: 4, 1>} : memref<128x64xf32, #tpu.memory_space<vmem>>, vector<16x64xf32>
    %342 = arith.maximumf %340, %341 : vector<16x64xf32>
    %c50 = arith.constant 50 : index
    %c0_272 = arith.constant 0 : index
    %343 = vector.load %arg23[%c50, %c0_272] : memref<80x64xf32, #tpu.memory_space<vmem>>, vector<16x64xf32>
    tpu.vector_store %arg23[%c50, %c0_272], %342 {strides = array<i32>} : memref<80x64xf32, #tpu.memory_space<vmem>>, vector<16x64xf32>,
    %cst_273 = arith.constant 0.000000e+00 : f32
    %344 = vector.broadcast %cst_273 : f32 to vector<8x128xf32>
    %c40 = arith.constant 40 : index
    %c0_274 = arith.constant 0 : index
    %345 = tpu.strided_load %arg23[%c40, %c0_274] {strides = array<i32: 2, 1>} : memref<80x64xf32, #tpu.memory_space<vmem>>, vector<8x64xf32>
    %c0_275 = arith.constant 0 : index
    %c0_276 = arith.constant 0 : index
    %346 = vector.load %arg4[%c0_275, %c0_276] : memref<1344x128xbf16, #tpu.memory_space<vmem>>, vector<64x128xbf16>
    %347 = arith.truncf %345 : vector<8x64xf32> to vector<8x64xbf16>
    %cst_277 = arith.constant dense<0.000000e+00> : vector<8x128xf32>
    %348 = tpu.matmul %347, %346, %cst_277 {dimension_numbers = #tpu.dot_dimension_numbers<[1], [0], [0], [1], [0, 0, 1, 1], [], []>} : vector<8x64xbf16>, vector<64x128xbf16>, vector<8x128xf32> -> vector<8x128xf32>
    %349 = arith.addf %344, %348 : vector<8x128xf32>
    %c41 = arith.constant 41 : index
    %c0_278 = arith.constant 0 : index
    %350 = tpu.strided_load %arg23[%c41, %c0_278] {strides = array<i32: 2, 1>} : memref<80x64xf32, #tpu.memory_space<vmem>>, vector<8x64xf32>
    %c64_279 = arith.constant 64 : index
    %c0_280 = arith.constant 0 : index
    %351 = vector.load %arg4[%c64_279, %c0_280] : memref<1344x128xbf16, #tpu.memory_space<vmem>>, vector<64x128xbf16>
    %352 = arith.truncf %350 : vector<8x64xf32> to vector<8x64xbf16>
    %cst_281 = arith.constant dense<0.000000e+00> : vector<8x128xf32>
    %353 = tpu.matmul %352, %351, %cst_281 {dimension_numbers = #tpu.dot_dimension_numbers<[1], [0], [0], [1], [0, 0, 1, 1], [], []>} : vector<8x64xbf16>, vector<64x128xbf16>, vector<8x128xf32> -> vector<8x128xf32>
    %354 = arith.addf %349, %353 : vector<8x128xf32>
    %c42 = arith.constant 42 : index
    %c0_282 = arith.constant 0 : index
    %355 = tpu.strided_load %arg23[%c42, %c0_282] {strides = array<i32: 2, 1>} : memref<80x64xf32, #tpu.memory_space<vmem>>, vector<8x64xf32>
    %c128_283 = arith.constant 128 : index
    %c0_284 = arith.constant 0 : index
    %356 = vector.load %arg4[%c128_283, %c0_284] : memref<1344x128xbf16, #tpu.memory_space<vmem>>, vector<64x128xbf16>
    %357 = arith.truncf %355 : vector<8x64xf32> to vector<8x64xbf16>
    %cst_285 = arith.constant dense<0.000000e+00> : vector<8x128xf32>
    %358 = tpu.matmul %357, %356, %cst_285 {dimension_numbers = #tpu.dot_dimension_numbers<[1], [0], [0], [1], [0, 0, 1, 1], [], []>} : vector<8x64xbf16>, vector<64x128xbf16>, vector<8x128xf32> -> vector<8x128xf32>
    %359 = arith.addf %354, %358 : vector<8x128xf32>
    %c43 = arith.constant 43 : index
    %c0_286 = arith.constant 0 : index
    %360 = tpu.strided_load %arg23[%c43, %c0_286] {strides = array<i32: 2, 1>} : memref<80x64xf32, #tpu.memory_space<vmem>>, vector<8x64xf32>
    %c192_287 = arith.constant 192 : index
    %c0_288 = arith.constant 0 : index
    %361 = vector.load %arg4[%c192_287, %c0_288] : memref<1344x128xbf16, #tpu.memory_space<vmem>>, vector<64x128xbf16>
    %362 = arith.truncf %360 : vector<8x64xf32> to vector<8x64xbf16>
    %cst_289 = arith.constant dense<0.000000e+00> : vector<8x128xf32>
    %363 = tpu.matmul %362, %361, %cst_289 {dimension_numbers = #tpu.dot_dimension_numbers<[1], [0], [0], [1], [0, 0, 1, 1], [], []>} : vector<8x64xbf16>, vector<64x128xbf16>, vector<8x128xf32> -> vector<8x128xf32>
    %364 = arith.addf %359, %363 : vector<8x128xf32>
    %c44 = arith.constant 44 : index
    %c0_290 = arith.constant 0 : index
    %365 = tpu.strided_load %arg23[%c44, %c0_290] {strides = array<i32: 2, 1>} : memref<80x64xf32, #tpu.memory_space<vmem>>, vector<8x64xf32>
    %c256_291 = arith.constant 256 : index
    %c0_292 = arith.constant 0 : index
    %366 = vector.load %arg4[%c256_291, %c0_292] : memref<1344x128xbf16, #tpu.memory_space<vmem>>, vector<64x128xbf16>
    %367 = arith.truncf %365 : vector<8x64xf32> to vector<8x64xbf16>
    %cst_293 = arith.constant dense<0.000000e+00> : vector<8x128xf32>
    %368 = tpu.matmul %367, %366, %cst_293 {dimension_numbers = #tpu.dot_dimension_numbers<[1], [0], [0], [1], [0, 0, 1, 1], [], []>} : vector<8x64xbf16>, vector<64x128xbf16>, vector<8x128xf32> -> vector<8x128xf32>
    %369 = arith.addf %364, %368 : vector<8x128xf32>
    %c45 = arith.constant 45 : index
    %c0_294 = arith.constant 0 : index
    %370 = tpu.strided_load %arg23[%c45, %c0_294] {strides = array<i32: 2, 1>} : memref<80x64xf32, #tpu.memory_space<vmem>>, vector<8x64xf32>
    %c320_295 = arith.constant 320 : index
    %c0_296 = arith.constant 0 : index
    %371 = vector.load %arg4[%c320_295, %c0_296] : memref<1344x128xbf16, #tpu.memory_space<vmem>>, vector<64x128xbf16>
    %372 = arith.truncf %370 : vector<8x64xf32> to vector<8x64xbf16>
    %cst_297 = arith.constant dense<0.000000e+00> : vector<8x128xf32>
    %373 = tpu.matmul %372, %371, %cst_297 {dimension_numbers = #tpu.dot_dimension_numbers<[1], [0], [0], [1], [0, 0, 1, 1], [], []>} : vector<8x64xbf16>, vector<64x128xbf16>, vector<8x128xf32> -> vector<8x128xf32>
    %374 = arith.addf %369, %373 : vector<8x128xf32>
    %c46 = arith.constant 46 : index
    %c0_298 = arith.constant 0 : index
    %375 = tpu.strided_load %arg23[%c46, %c0_298] {strides = array<i32: 2, 1>} : memref<80x64xf32, #tpu.memory_space<vmem>>, vector<8x64xf32>
    %c384_299 = arith.constant 384 : index
    %c0_300 = arith.constant 0 : index
    %376 = vector.load %arg4[%c384_299, %c0_300] : memref<1344x128xbf16, #tpu.memory_space<vmem>>, vector<64x128xbf16>
    %377 = arith.truncf %375 : vector<8x64xf32> to vector<8x64xbf16>
    %cst_301 = arith.constant dense<0.000000e+00> : vector<8x128xf32>
    %378 = tpu.matmul %377, %376, %cst_301 {dimension_numbers = #tpu.dot_dimension_numbers<[1], [0], [0], [1], [0, 0, 1, 1], [], []>} : vector<8x64xbf16>, vector<64x128xbf16>, vector<8x128xf32> -> vector<8x128xf32>
    %379 = arith.addf %374, %378 : vector<8x128xf32>
    %c47 = arith.constant 47 : index
    %c0_302 = arith.constant 0 : index
    %380 = tpu.strided_load %arg23[%c47, %c0_302] {strides = array<i32: 2, 1>} : memref<80x64xf32, #tpu.memory_space<vmem>>, vector<8x64xf32>
    %c448_303 = arith.constant 448 : index
    %c0_304 = arith.constant 0 : index
    %381 = vector.load %arg4[%c448_303, %c0_304] : memref<1344x128xbf16, #tpu.memory_space<vmem>>, vector<64x128xbf16>
    %382 = arith.truncf %380 : vector<8x64xf32> to vector<8x64xbf16>
    %cst_305 = arith.constant dense<0.000000e+00> : vector<8x128xf32>
    %383 = tpu.matmul %382, %381, %cst_305 {dimension_numbers = #tpu.dot_dimension_numbers<[1], [0], [0], [1], [0, 0, 1, 1], [], []>} : vector<8x64xbf16>, vector<64x128xbf16>, vector<8x128xf32> -> vector<8x128xf32>
    %384 = arith.addf %379, %383 : vector<8x128xf32>
    %c48 = arith.constant 48 : index
    %c0_306 = arith.constant 0 : index
    %385 = tpu.strided_load %arg23[%c48, %c0_306] {strides = array<i32: 2, 1>} : memref<80x64xf32, #tpu.memory_space<vmem>>, vector<8x64xf32>
    %c512_307 = arith.constant 512 : index
    %c0_308 = arith.constant 0 : index
    %386 = vector.load %arg4[%c512_307, %c0_308] : memref<1344x128xbf16, #tpu.memory_space<vmem>>, vector<64x128xbf16>
    %387 = arith.truncf %385 : vector<8x64xf32> to vector<8x64xbf16>
    %cst_309 = arith.constant dense<0.000000e+00> : vector<8x128xf32>
    %388 = tpu.matmul %387, %386, %cst_309 {dimension_numbers = #tpu.dot_dimension_numbers<[1], [0], [0], [1], [0, 0, 1, 1], [], []>} : vector<8x64xbf16>, vector<64x128xbf16>, vector<8x128xf32> -> vector<8x128xf32>
    %389 = arith.addf %384, %388 : vector<8x128xf32>
    %c49 = arith.constant 49 : index
    %c0_310 = arith.constant 0 : index
    %390 = tpu.strided_load %arg23[%c49, %c0_310] {strides = array<i32: 2, 1>} : memref<80x64xf32, #tpu.memory_space<vmem>>, vector<8x64xf32>
    %c576_311 = arith.constant 576 : index
    %c0_312 = arith.constant 0 : index
    %391 = vector.load %arg4[%c576_311, %c0_312] : memref<1344x128xbf16, #tpu.memory_space<vmem>>, vector<64x128xbf16>
    %392 = arith.truncf %390 : vector<8x64xf32> to vector<8x64xbf16>
    %cst_313 = arith.constant dense<0.000000e+00> : vector<8x128xf32>
    %393 = tpu.matmul %392, %391, %cst_313 {dimension_numbers = #tpu.dot_dimension_numbers<[1], [0], [0], [1], [0, 0, 1, 1], [], []>} : vector<8x64xbf16>, vector<64x128xbf16>, vector<8x128xf32> -> vector<8x128xf32>
    %394 = arith.addf %389, %393 : vector<8x128xf32>
    %c50_314 = arith.constant 50 : index
    %c0_315 = arith.constant 0 : index
    %395 = tpu.strided_load %arg23[%c50_314, %c0_315] {strides = array<i32: 2, 1>} : memref<80x64xf32, #tpu.memory_space<vmem>>, vector<8x64xf32>
    %c640_316 = arith.constant 640 : index
    %c0_317 = arith.constant 0 : index
    %396 = vector.load %arg4[%c640_316, %c0_317] : memref<1344x128xbf16, #tpu.memory_space<vmem>>, vector<64x128xbf16>
    %397 = arith.truncf %395 : vector<8x64xf32> to vector<8x64xbf16>
    %cst_318 = arith.constant dense<0.000000e+00> : vector<8x128xf32>
    %398 = tpu.matmul %397, %396, %cst_318 {dimension_numbers = #tpu.dot_dimension_numbers<[1], [0], [0], [1], [0, 0, 1, 1], [], []>} : vector<8x64xbf16>, vector<64x128xbf16>, vector<8x128xf32> -> vector<8x128xf32>
    %399 = arith.addf %394, %398 : vector<8x128xf32>
    %c51 = arith.constant 51 : index
    %c0_319 = arith.constant 0 : index
    %400 = tpu.strided_load %arg23[%c51, %c0_319] {strides = array<i32: 2, 1>} : memref<80x64xf32, #tpu.memory_space<vmem>>, vector<8x64xf32>
    %c704_320 = arith.constant 704 : index
    %c0_321 = arith.constant 0 : index
    %401 = vector.load %arg4[%c704_320, %c0_321] : memref<1344x128xbf16, #tpu.memory_space<vmem>>, vector<64x128xbf16>
    %402 = arith.truncf %400 : vector<8x64xf32> to vector<8x64xbf16>
    %cst_322 = arith.constant dense<0.000000e+00> : vector<8x128xf32>
    %403 = tpu.matmul %402, %401, %cst_322 {dimension_numbers = #tpu.dot_dimension_numbers<[1], [0], [0], [1], [0, 0, 1, 1], [], []>} : vector<8x64xbf16>, vector<64x128xbf16>, vector<8x128xf32> -> vector<8x128xf32>
    %404 = arith.addf %399, %403 : vector<8x128xf32>
    %c52 = arith.constant 52 : index
    %c0_323 = arith.constant 0 : index
    %405 = tpu.strided_load %arg23[%c52, %c0_323] {strides = array<i32: 2, 1>} : memref<80x64xf32, #tpu.memory_space<vmem>>, vector<8x64xf32>
    %c768_324 = arith.constant 768 : index
    %c0_325 = arith.constant 0 : index
    %406 = vector.load %arg4[%c768_324, %c0_325] : memref<1344x128xbf16, #tpu.memory_space<vmem>>, vector<64x128xbf16>
    %407 = arith.truncf %405 : vector<8x64xf32> to vector<8x64xbf16>
    %cst_326 = arith.constant dense<0.000000e+00> : vector<8x128xf32>
    %408 = tpu.matmul %407, %406, %cst_326 {dimension_numbers = #tpu.dot_dimension_numbers<[1], [0], [0], [1], [0, 0, 1, 1], [], []>} : vector<8x64xbf16>, vector<64x128xbf16>, vector<8x128xf32> -> vector<8x128xf32>
    %409 = arith.addf %404, %408 : vector<8x128xf32>
    %c53 = arith.constant 53 : index
    %c0_327 = arith.constant 0 : index
    %410 = tpu.strided_load %arg23[%c53, %c0_327] {strides = array<i32: 2, 1>} : memref<80x64xf32, #tpu.memory_space<vmem>>, vector<8x64xf32>
    %c832_328 = arith.constant 832 : index
    %c0_329 = arith.constant 0 : index
    %411 = vector.load %arg4[%c832_328, %c0_329] : memref<1344x128xbf16, #tpu.memory_space<vmem>>, vector<64x128xbf16>
    %412 = arith.truncf %410 : vector<8x64xf32> to vector<8x64xbf16>
    %cst_330 = arith.constant dense<0.000000e+00> : vector<8x128xf32>
    %413 = tpu.matmul %412, %411, %cst_330 {dimension_numbers = #tpu.dot_dimension_numbers<[1], [0], [0], [1], [0, 0, 1, 1], [], []>} : vector<8x64xbf16>, vector<64x128xbf16>, vector<8x128xf32> -> vector<8x128xf32>
    %414 = arith.addf %409, %413 : vector<8x128xf32>
    %c54 = arith.constant 54 : index
    %c0_331 = arith.constant 0 : index
    %415 = tpu.strided_load %arg23[%c54, %c0_331] {strides = array<i32: 2, 1>} : memref<80x64xf32, #tpu.memory_space<vmem>>, vector<8x64xf32>
    %c896_332 = arith.constant 896 : index
    %c0_333 = arith.constant 0 : index
    %416 = vector.load %arg4[%c896_332, %c0_333] : memref<1344x128xbf16, #tpu.memory_space<vmem>>, vector<64x128xbf16>
    %417 = arith.truncf %415 : vector<8x64xf32> to vector<8x64xbf16>
    %cst_334 = arith.constant dense<0.000000e+00> : vector<8x128xf32>
    %418 = tpu.matmul %417, %416, %cst_334 {dimension_numbers = #tpu.dot_dimension_numbers<[1], [0], [0], [1], [0, 0, 1, 1], [], []>} : vector<8x64xbf16>, vector<64x128xbf16>, vector<8x128xf32> -> vector<8x128xf32>
    %419 = arith.addf %414, %418 : vector<8x128xf32>
    %c55 = arith.constant 55 : index
    %c0_335 = arith.constant 0 : index
    %420 = tpu.strided_load %arg23[%c55, %c0_335] {strides = array<i32: 2, 1>} : memref<80x64xf32, #tpu.memory_space<vmem>>, vector<8x64xf32>
    %c960_336 = arith.constant 960 : index
    %c0_337 = arith.constant 0 : index
    %421 = vector.load %arg4[%c960_336, %c0_337] : memref<1344x128xbf16, #tpu.memory_space<vmem>>, vector<64x128xbf16>
    %422 = arith.truncf %420 : vector<8x64xf32> to vector<8x64xbf16>
    %cst_338 = arith.constant dense<0.000000e+00> : vector<8x128xf32>
    %423 = tpu.matmul %422, %421, %cst_338 {dimension_numbers = #tpu.dot_dimension_numbers<[1], [0], [0], [1], [0, 0, 1, 1], [], []>} : vector<8x64xbf16>, vector<64x128xbf16>, vector<8x128xf32> -> vector<8x128xf32>
    %424 = arith.addf %419, %423 : vector<8x128xf32>
    %c56 = arith.constant 56 : index
    %c0_339 = arith.constant 0 : index
    %425 = tpu.strided_load %arg23[%c56, %c0_339] {strides = array<i32: 2, 1>} : memref<80x64xf32, #tpu.memory_space<vmem>>, vector<8x64xf32>
    %c1024_340 = arith.constant 1024 : index
    %c0_341 = arith.constant 0 : index
    %426 = vector.load %arg4[%c1024_340, %c0_341] : memref<1344x128xbf16, #tpu.memory_space<vmem>>, vector<64x128xbf16>
    %427 = arith.truncf %425 : vector<8x64xf32> to vector<8x64xbf16>
    %cst_342 = arith.constant dense<0.000000e+00> : vector<8x128xf32>
    %428 = tpu.matmul %427, %426, %cst_342 {dimension_numbers = #tpu.dot_dimension_numbers<[1], [0], [0], [1], [0, 0, 1, 1], [], []>} : vector<8x64xbf16>, vector<64x128xbf16>, vector<8x128xf32> -> vector<8x128xf32>
    %429 = arith.addf %424, %428 : vector<8x128xf32>
    %c57 = arith.constant 57 : index
    %c0_343 = arith.constant 0 : index
    %430 = tpu.strided_load %arg23[%c57, %c0_343] {strides = array<i32: 2, 1>} : memref<80x64xf32, #tpu.memory_space<vmem>>, vector<8x64xf32>
    %c1088_344 = arith.constant 1088 : index
    %c0_345 = arith.constant 0 : index
    %431 = vector.load %arg4[%c1088_344, %c0_345] : memref<1344x128xbf16, #tpu.memory_space<vmem>>, vector<64x128xbf16>
    %432 = arith.truncf %430 : vector<8x64xf32> to vector<8x64xbf16>
    %cst_346 = arith.constant dense<0.000000e+00> : vector<8x128xf32>
    %433 = tpu.matmul %432, %431, %cst_346 {dimension_numbers = #tpu.dot_dimension_numbers<[1], [0], [0], [1], [0, 0, 1, 1], [], []>} : vector<8x64xbf16>, vector<64x128xbf16>, vector<8x128xf32> -> vector<8x128xf32>
    %434 = arith.addf %429, %433 : vector<8x128xf32>
    %c58 = arith.constant 58 : index
    %c0_347 = arith.constant 0 : index
    %435 = tpu.strided_load %arg23[%c58, %c0_347] {strides = array<i32: 2, 1>} : memref<80x64xf32, #tpu.memory_space<vmem>>, vector<8x64xf32>
    %c1152_348 = arith.constant 1152 : index
    %c0_349 = arith.constant 0 : index
    %436 = vector.load %arg4[%c1152_348, %c0_349] : memref<1344x128xbf16, #tpu.memory_space<vmem>>, vector<64x128xbf16>
    %437 = arith.truncf %435 : vector<8x64xf32> to vector<8x64xbf16>
    %cst_350 = arith.constant dense<0.000000e+00> : vector<8x128xf32>
    %438 = tpu.matmul %437, %436, %cst_350 {dimension_numbers = #tpu.dot_dimension_numbers<[1], [0], [0], [1], [0, 0, 1, 1], [], []>} : vector<8x64xbf16>, vector<64x128xbf16>, vector<8x128xf32> -> vector<8x128xf32>
    %439 = arith.addf %434, %438 : vector<8x128xf32>
    %c59 = arith.constant 59 : index
    %c0_351 = arith.constant 0 : index
    %440 = tpu.strided_load %arg23[%c59, %c0_351] {strides = array<i32: 2, 1>} : memref<80x64xf32, #tpu.memory_space<vmem>>, vector<8x64xf32>
    %c1216_352 = arith.constant 1216 : index
    %c0_353 = arith.constant 0 : index
    %441 = vector.load %arg4[%c1216_352, %c0_353] : memref<1344x128xbf16, #tpu.memory_space<vmem>>, vector<64x128xbf16>
    %442 = arith.truncf %440 : vector<8x64xf32> to vector<8x64xbf16>
    %cst_354 = arith.constant dense<0.000000e+00> : vector<8x128xf32>
    %443 = tpu.matmul %442, %441, %cst_354 {dimension_numbers = #tpu.dot_dimension_numbers<[1], [0], [0], [1], [0, 0, 1, 1], [], []>} : vector<8x64xbf16>, vector<64x128xbf16>, vector<8x128xf32> -> vector<8x128xf32>
    %444 = arith.addf %439, %443 : vector<8x128xf32>
    %c60 = arith.constant 60 : index
    %c0_355 = arith.constant 0 : index
    %445 = tpu.strided_load %arg23[%c60, %c0_355] {strides = array<i32: 2, 1>} : memref<80x64xf32, #tpu.memory_space<vmem>>, vector<8x64xf32>
    %c1280_356 = arith.constant 1280 : index
    %c0_357 = arith.constant 0 : index
    %446 = vector.load %arg4[%c1280_356, %c0_357] : memref<1344x128xbf16, #tpu.memory_space<vmem>>, vector<64x128xbf16>
    %447 = arith.truncf %445 : vector<8x64xf32> to vector<8x64xbf16>
    %cst_358 = arith.constant dense<0.000000e+00> : vector<8x128xf32>
    %448 = tpu.matmul %447, %446, %cst_358 {dimension_numbers = #tpu.dot_dimension_numbers<[1], [0], [0], [1], [0, 0, 1, 1], [], []>} : vector<8x64xbf16>, vector<64x128xbf16>, vector<8x128xf32> -> vector<8x128xf32>
    %449 = arith.addf %444, %448 : vector<8x128xf32>
    %c0_359 = arith.constant 0 : index
    %c0_360 = arith.constant 0 : index
    %450 = vector.load %arg5[%c0_359, %c0_360] : memref<1x128xf32, #tpu.memory_space<vmem>>, vector<1x128xf32>
    %451 = vector.broadcast %450 : vector<1x128xf32> to vector<8x128xf32>
    %452 = arith.mulf %449, %451 : vector<8x128xf32>
    %c0_361 = arith.constant 0 : index
    %c0_362 = arith.constant 0 : index
    %453 = vector.load %arg6[%c0_361, %c0_362] : memref<1x128xf32, #tpu.memory_space<vmem>>, vector<1x128xf32>
    %454 = vector.broadcast %453 : vector<1x128xf32> to vector<8x128xf32>
    %455 = arith.addf %452, %454 : vector<8x128xf32>
    %cst_363 = arith.constant 0.000000e+00 : f32
    %456 = vector.broadcast %cst_363 : f32 to vector<8x128xf32>
    %457 = arith.maximumf %455, %456 : vector<8x128xf32>
    %c20_364 = arith.constant 20 : index
    %c0_365 = arith.constant 0 : index
    %458 = vector.load %arg24[%c20_364, %c0_365] : memref<32x128xf32, #tpu.memory_space<vmem>>, vector<8x128xf32>
    tpu.vector_store %arg24[%c20_364, %c0_365], %457 {strides = array<i32>} : memref<32x128xf32, #tpu.memory_space<vmem>>, vector<8x128xf32>,
    %cst_366 = arith.constant 0.000000e+00 : f32
    %459 = vector.broadcast %cst_366 : f32 to vector<4x256xf32>
    %c16_367 = arith.constant 16 : index
    %c0_368 = arith.constant 0 : index
    %460 = tpu.strided_load %arg24[%c16_367, %c0_368] {strides = array<i32: 2, 1>} : memref<32x128xf32, #tpu.memory_space<vmem>>, vector<4x128xf32>
    %c0_369 = arith.constant 0 : index
    %c0_370 = arith.constant 0 : index
    %461 = vector.load %arg7[%c0_369, %c0_370] : memref<1152x256xbf16, #tpu.memory_space<vmem>>, vector<128x256xbf16>
    %462 = arith.truncf %460 : vector<4x128xf32> to vector<4x128xbf16>
    %cst_371 = arith.constant dense<0.000000e+00> : vector<4x256xf32>
    %463 = tpu.matmul %462, %461, %cst_371 {dimension_numbers = #tpu.dot_dimension_numbers<[1], [0], [0], [1], [0, 0, 1, 1], [], []>} : vector<4x128xbf16>, vector<128x256xbf16>, vector<4x256xf32> -> vector<4x256xf32>
    %464 = arith.addf %459, %463 : vector<4x256xf32>
    %c17_372 = arith.constant 17 : index
    %c0_373 = arith.constant 0 : index
    %465 = tpu.strided_load %arg24[%c17_372, %c0_373] {strides = array<i32: 2, 1>} : memref<32x128xf32, #tpu.memory_space<vmem>>, vector<4x128xf32>
    %c128_374 = arith.constant 128 : index
    %c0_375 = arith.constant 0 : index
    %466 = vector.load %arg7[%c128_374, %c0_375] : memref<1152x256xbf16, #tpu.memory_space<vmem>>, vector<128x256xbf16>
    %467 = arith.truncf %465 : vector<4x128xf32> to vector<4x128xbf16>
    %cst_376 = arith.constant dense<0.000000e+00> : vector<4x256xf32>
    %468 = tpu.matmul %467, %466, %cst_376 {dimension_numbers = #tpu.dot_dimension_numbers<[1], [0], [0], [1], [0, 0, 1, 1], [], []>} : vector<4x128xbf16>, vector<128x256xbf16>, vector<4x256xf32> -> vector<4x256xf32>
    %469 = arith.addf %464, %468 : vector<4x256xf32>
    %c18_377 = arith.constant 18 : index
    %c0_378 = arith.constant 0 : index
    %470 = tpu.strided_load %arg24[%c18_377, %c0_378] {strides = array<i32: 2, 1>} : memref<32x128xf32, #tpu.memory_space<vmem>>, vector<4x128xf32>
    %c256_379 = arith.constant 256 : index
    %c0_380 = arith.constant 0 : index
    %471 = vector.load %arg7[%c256_379, %c0_380] : memref<1152x256xbf16, #tpu.memory_space<vmem>>, vector<128x256xbf16>
    %472 = arith.truncf %470 : vector<4x128xf32> to vector<4x128xbf16>
    %cst_381 = arith.constant dense<0.000000e+00> : vector<4x256xf32>
    %473 = tpu.matmul %472, %471, %cst_381 {dimension_numbers = #tpu.dot_dimension_numbers<[1], [0], [0], [1], [0, 0, 1, 1], [], []>} : vector<4x128xbf16>, vector<128x256xbf16>, vector<4x256xf32> -> vector<4x256xf32>
    %474 = arith.addf %469, %473 : vector<4x256xf32>
    %c19_382 = arith.constant 19 : index
    %c0_383 = arith.constant 0 : index
    %475 = tpu.strided_load %arg24[%c19_382, %c0_383] {strides = array<i32: 2, 1>} : memref<32x128xf32, #tpu.memory_space<vmem>>, vector<4x128xf32>
    %c384_384 = arith.constant 384 : index
    %c0_385 = arith.constant 0 : index
    %476 = vector.load %arg7[%c384_384, %c0_385] : memref<1152x256xbf16, #tpu.memory_space<vmem>>, vector<128x256xbf16>
    %477 = arith.truncf %475 : vector<4x128xf32> to vector<4x128xbf16>
    %cst_386 = arith.constant dense<0.000000e+00> : vector<4x256xf32>
    %478 = tpu.matmul %477, %476, %cst_386 {dimension_numbers = #tpu.dot_dimension_numbers<[1], [0], [0], [1], [0, 0, 1, 1], [], []>} : vector<4x128xbf16>, vector<128x256xbf16>, vector<4x256xf32> -> vector<4x256xf32>
    %479 = arith.addf %474, %478 : vector<4x256xf32>
    %c20_387 = arith.constant 20 : index
    %c0_388 = arith.constant 0 : index
    %480 = tpu.strided_load %arg24[%c20_387, %c0_388] {strides = array<i32: 2, 1>} : memref<32x128xf32, #tpu.memory_space<vmem>>, vector<4x128xf32>
    %c512_389 = arith.constant 512 : index
    %c0_390 = arith.constant 0 : index
    %481 = vector.load %arg7[%c512_389, %c0_390] : memref<1152x256xbf16, #tpu.memory_space<vmem>>, vector<128x256xbf16>
    %482 = arith.truncf %480 : vector<4x128xf32> to vector<4x128xbf16>
    %cst_391 = arith.constant dense<0.000000e+00> : vector<4x256xf32>
    %483 = tpu.matmul %482, %481, %cst_391 {dimension_numbers = #tpu.dot_dimension_numbers<[1], [0], [0], [1], [0, 0, 1, 1], [], []>} : vector<4x128xbf16>, vector<128x256xbf16>, vector<4x256xf32> -> vector<4x256xf32>
    %484 = arith.addf %479, %483 : vector<4x256xf32>
    %c21 = arith.constant 21 : index
    %c0_392 = arith.constant 0 : index
    %485 = tpu.strided_load %arg24[%c21, %c0_392] {strides = array<i32: 2, 1>} : memref<32x128xf32, #tpu.memory_space<vmem>>, vector<4x128xf32>
    %c640_393 = arith.constant 640 : index
    %c0_394 = arith.constant 0 : index
    %486 = vector.load %arg7[%c640_393, %c0_394] : memref<1152x256xbf16, #tpu.memory_space<vmem>>, vector<128x256xbf16>
    %487 = arith.truncf %485 : vector<4x128xf32> to vector<4x128xbf16>
    %cst_395 = arith.constant dense<0.000000e+00> : vector<4x256xf32>
    %488 = tpu.matmul %487, %486, %cst_395 {dimension_numbers = #tpu.dot_dimension_numbers<[1], [0], [0], [1], [0, 0, 1, 1], [], []>} : vector<4x128xbf16>, vector<128x256xbf16>, vector<4x256xf32> -> vector<4x256xf32>
    %489 = arith.addf %484, %488 : vector<4x256xf32>
    %c22 = arith.constant 22 : index
    %c0_396 = arith.constant 0 : index
    %490 = tpu.strided_load %arg24[%c22, %c0_396] {strides = array<i32: 2, 1>} : memref<32x128xf32, #tpu.memory_space<vmem>>, vector<4x128xf32>
    %c768_397 = arith.constant 768 : index
    %c0_398 = arith.constant 0 : index
    %491 = vector.load %arg7[%c768_397, %c0_398] : memref<1152x256xbf16, #tpu.memory_space<vmem>>, vector<128x256xbf16>
    %492 = arith.truncf %490 : vector<4x128xf32> to vector<4x128xbf16>
    %cst_399 = arith.constant dense<0.000000e+00> : vector<4x256xf32>
    %493 = tpu.matmul %492, %491, %cst_399 {dimension_numbers = #tpu.dot_dimension_numbers<[1], [0], [0], [1], [0, 0, 1, 1], [], []>} : vector<4x128xbf16>, vector<128x256xbf16>, vector<4x256xf32> -> vector<4x256xf32>
    %494 = arith.addf %489, %493 : vector<4x256xf32>
    %c23 = arith.constant 23 : index
    %c0_400 = arith.constant 0 : index
    %495 = tpu.strided_load %arg24[%c23, %c0_400] {strides = array<i32: 2, 1>} : memref<32x128xf32, #tpu.memory_space<vmem>>, vector<4x128xf32>
    %c896_401 = arith.constant 896 : index
    %c0_402 = arith.constant 0 : index
    %496 = vector.load %arg7[%c896_401, %c0_402] : memref<1152x256xbf16, #tpu.memory_space<vmem>>, vector<128x256xbf16>
    %497 = arith.truncf %495 : vector<4x128xf32> to vector<4x128xbf16>
    %cst_403 = arith.constant dense<0.000000e+00> : vector<4x256xf32>
    %498 = tpu.matmul %497, %496, %cst_403 {dimension_numbers = #tpu.dot_dimension_numbers<[1], [0], [0], [1], [0, 0, 1, 1], [], []>} : vector<4x128xbf16>, vector<128x256xbf16>, vector<4x256xf32> -> vector<4x256xf32>
    %499 = arith.addf %494, %498 : vector<4x256xf32>
    %c24 = arith.constant 24 : index
    %c0_404 = arith.constant 0 : index
    %500 = tpu.strided_load %arg24[%c24, %c0_404] {strides = array<i32: 2, 1>} : memref<32x128xf32, #tpu.memory_space<vmem>>, vector<4x128xf32>
    %c1024_405 = arith.constant 1024 : index
    %c0_406 = arith.constant 0 : index
    %501 = vector.load %arg7[%c1024_405, %c0_406] : memref<1152x256xbf16, #tpu.memory_space<vmem>>, vector<128x256xbf16>
    %502 = arith.truncf %500 : vector<4x128xf32> to vector<4x128xbf16>
    %cst_407 = arith.constant dense<0.000000e+00> : vector<4x256xf32>
    %503 = tpu.matmul %502, %501, %cst_407 {dimension_numbers = #tpu.dot_dimension_numbers<[1], [0], [0], [1], [0, 0, 1, 1], [], []>} : vector<4x128xbf16>, vector<128x256xbf16>, vector<4x256xf32> -> vector<4x256xf32>
    %504 = arith.addf %499, %503 : vector<4x256xf32>
    %c0_408 = arith.constant 0 : index
    %c0_409 = arith.constant 0 : index
    %505 = vector.load %arg8[%c0_408, %c0_409] : memref<1x256xf32, #tpu.memory_space<vmem>>, vector<1x256xf32>
    %506 = vector.broadcast %505 : vector<1x256xf32> to vector<4x256xf32>
    %507 = arith.mulf %504, %506 : vector<4x256xf32>
    %c0_410 = arith.constant 0 : index
    %c0_411 = arith.constant 0 : index
    %508 = vector.load %arg9[%c0_410, %c0_411] : memref<1x256xf32, #tpu.memory_space<vmem>>, vector<1x256xf32>
    %509 = vector.broadcast %508 : vector<1x256xf32> to vector<4x256xf32>
    %510 = arith.addf %507, %509 : vector<4x256xf32>
    %cst_412 = arith.constant 0.000000e+00 : f32
    %511 = vector.broadcast %cst_412 : f32 to vector<4x256xf32>
    %512 = arith.maximumf %510, %511 : vector<4x256xf32>
    %cst_413 = arith.constant dense<0.000000e+00> : vector<256xf32>
    %513 = vector.multi_reduction <add>, %512, %cst_413 [0] : vector<4x256xf32> to vector<256xf32>
    %514 = vector.shape_cast %513 : vector<256xf32> to vector<1x256xf32>
    %cst_414 = arith.constant 2.500000e-01 : f32
    %515 = vector.broadcast %cst_414 : f32 to vector<1x256xf32>
    %516 = arith.mulf %514, %515 : vector<1x256xf32>
    %c1_415 = arith.constant 1 : index
    %c0_416 = arith.constant 0 : index
    %517 = vector.load %arg25[%c1_415, %c0_416] : memref<8x256xf32, #tpu.memory_space<vmem>>, vector<1x256xf32>
    tpu.vector_store %arg25[%c1_415, %c0_416], %516 {strides = array<i32>} : memref<8x256xf32, #tpu.memory_space<vmem>>, vector<1x256xf32>,
    %c0_417 = arith.constant 0 : index
    %c0_418 = arith.constant 0 : index
    %518 = vector.load %arg25[%c0_417, %c0_418] : memref<8x256xf32, #tpu.memory_space<vmem>>, vector<2x256xf32>
    %519 = arith.truncf %518 : vector<2x256xf32> to vector<2x256xbf16>
    %c0_419 = arith.constant 0 : index
    %c0_420 = arith.constant 0 : index
    %520 = vector.load %arg10[%c0_419, %c0_420] : memref<256x1536xbf16, #tpu.memory_space<vmem>>, vector<256x1536xbf16>
    %cst_421 = arith.constant dense<0.000000e+00> : vector<2x1536xf32>
    %521 = tpu.matmul %519, %520, %cst_421 {dimension_numbers = #tpu.dot_dimension_numbers<[1], [0], [0], [1], [0, 0, 1, 1], [], []>} : vector<2x256xbf16>, vector<256x1536xbf16>, vector<2x1536xf32> -> vector<2x1536xf32>
    %c0_422 = arith.constant 0 : index
    %c0_423 = arith.constant 0 : index
    %522 = vector.load %arg11[%c0_422, %c0_423] : memref<1x1536xf32, #tpu.memory_space<vmem>>, vector<1x1536xf32>
    %523 = vector.broadcast %522 : vector<1x1536xf32> to vector<2x1536xf32>
    %524 = arith.addf %521, %523 : vector<2x1536xf32>
    %525 = vector.extract_strided_slice %524 {offsets = [0, 0], sizes = [2, 512], strides = [1, 1]} : vector<2x1536xf32> to vector<2x512xf32>
    %526 = arith.negf %525 : vector<2x512xf32>
    %527 = math.exp %526 : vector<2x512xf32>
    %cst_424 = arith.constant 1.000000e+00 : f32
    %528 = vector.broadcast %cst_424 : f32 to vector<2x512xf32>
    %529 = arith.addf %528, %527 : vector<2x512xf32>
    %530 = arith.divf %528, %529 : vector<2x512xf32>
    %531 = vector.extract_strided_slice %524 {offsets = [0, 512], sizes = [2, 512], strides = [1, 1]} : vector<2x1536xf32> to vector<2x512xf32>
    %532 = math.tanh %531 : vector<2x512xf32>
    %533 = vector.extract_strided_slice %524 {offsets = [0, 1024], sizes = [2, 512], strides = [1, 1]} : vector<2x1536xf32> to vector<2x512xf32>
    %534 = arith.negf %533 : vector<2x512xf32>
    %535 = math.exp %534 : vector<2x512xf32>
    %cst_425 = arith.constant 1.000000e+00 : f32
    %536 = vector.broadcast %cst_425 : f32 to vector<2x512xf32>
    %537 = arith.addf %536, %535 : vector<2x512xf32>
    %538 = arith.divf %536, %537 : vector<2x512xf32>
    %539 = arith.mulf %530, %532 : vector<2x512xf32>
    %540 = math.tanh %539 : vector<2x512xf32>
    %541 = arith.mulf %538, %540 : vector<2x512xf32>
    %c0_426 = arith.constant 0 : index
    %c0_427 = arith.constant 0 : index
    %542 = vector.load %arg20[%c0_426, %c0_427] : memref<4x512xf32, #tpu.memory_space<vmem>>, vector<2x512xf32>
    tpu.vector_store %arg20[%c0_426, %c0_427], %541 {strides = array<i32>} : memref<4x512xf32, #tpu.memory_space<vmem>>, vector<2x512xf32>,
    %c0_428 = arith.constant 0 : index
    %c0_429 = arith.constant 0 : index
    %543 = vector.load %arg21[%c0_428, %c0_429] : memref<4x512xf32, #tpu.memory_space<vmem>>, vector<2x512xf32>
    tpu.vector_store %arg21[%c0_428, %c0_429], %539 {strides = array<i32>} : memref<4x512xf32, #tpu.memory_space<vmem>>, vector<2x512xf32>,
    %544 = arith.truncf %541 : vector<2x512xf32> to vector<2x512xbf16>
    %c0_430 = arith.constant 0 : index
    %c0_431 = arith.constant 0 : index
    %545 = vector.load %arg12[%c0_430, %c0_431] : memref<512x1536xbf16, #tpu.memory_space<vmem>>, vector<512x1536xbf16>
    %cst_432 = arith.constant dense<0.000000e+00> : vector<2x1536xf32>
    %546 = tpu.matmul %544, %545, %cst_432 {dimension_numbers = #tpu.dot_dimension_numbers<[1], [0], [0], [1], [0, 0, 1, 1], [], []>} : vector<2x512xbf16>, vector<512x1536xbf16>, vector<2x1536xf32> -> vector<2x1536xf32>
    %c0_433 = arith.constant 0 : index
    %c0_434 = arith.constant 0 : index
    %547 = vector.load %arg13[%c0_433, %c0_434] : memref<1x1536xf32, #tpu.memory_space<vmem>>, vector<1x1536xf32>
    %548 = vector.broadcast %547 : vector<1x1536xf32> to vector<2x1536xf32>
    %549 = arith.addf %546, %548 : vector<2x1536xf32>
    %550 = vector.extract_strided_slice %549 {offsets = [0, 0], sizes = [2, 512], strides = [1, 1]} : vector<2x1536xf32> to vector<2x512xf32>
    %551 = arith.negf %550 : vector<2x512xf32>
    %552 = math.exp %551 : vector<2x512xf32>
    %cst_435 = arith.constant 1.000000e+00 : f32
    %553 = vector.broadcast %cst_435 : f32 to vector<2x512xf32>
    %554 = arith.addf %553, %552 : vector<2x512xf32>
    %555 = arith.divf %553, %554 : vector<2x512xf32>
    %556 = vector.extract_strided_slice %549 {offsets = [0, 512], sizes = [2, 512], strides = [1, 1]} : vector<2x1536xf32> to vector<2x512xf32>
    %557 = math.tanh %556 : vector<2x512xf32>
    %558 = vector.extract_strided_slice %549 {offsets = [0, 1024], sizes = [2, 512], strides = [1, 1]} : vector<2x1536xf32> to vector<2x512xf32>
    %559 = arith.negf %558 : vector<2x512xf32>
    %560 = math.exp %559 : vector<2x512xf32>
    %cst_436 = arith.constant 1.000000e+00 : f32
    %561 = vector.broadcast %cst_436 : f32 to vector<2x512xf32>
    %562 = arith.addf %561, %560 : vector<2x512xf32>
    %563 = arith.divf %561, %562 : vector<2x512xf32>
    %564 = arith.mulf %555, %557 : vector<2x512xf32>
    %565 = math.tanh %564 : vector<2x512xf32>
    %566 = arith.mulf %563, %565 : vector<2x512xf32>
    %c2_437 = arith.constant 2 : index
    %c0_438 = arith.constant 0 : index
    %567 = vector.load %arg20[%c2_437, %c0_438] : memref<4x512xf32, #tpu.memory_space<vmem>>, vector<2x512xf32>
    tpu.vector_store %arg20[%c2_437, %c0_438], %566 {strides = array<i32>} : memref<4x512xf32, #tpu.memory_space<vmem>>, vector<2x512xf32>,
    %c2_439 = arith.constant 2 : index
    %c0_440 = arith.constant 0 : index
    %568 = vector.load %arg21[%c2_439, %c0_440] : memref<4x512xf32, #tpu.memory_space<vmem>>, vector<2x512xf32>
    tpu.vector_store %arg21[%c2_439, %c0_440], %564 {strides = array<i32>} : memref<4x512xf32, #tpu.memory_space<vmem>>, vector<2x512xf32>,
    %569 = arith.truncf %566 : vector<2x512xf32> to vector<2x512xbf16>
    %c0_441 = arith.constant 0 : index
    %c0_442 = arith.constant 0 : index
    %570 = vector.load %arg14[%c0_441, %c0_442] : memref<512x64xbf16, #tpu.memory_space<vmem>>, vector<512x64xbf16>
    %cst_443 = arith.constant dense<0.000000e+00> : vector<2x64xf32>
    %571 = tpu.matmul %569, %570, %cst_443 {dimension_numbers = #tpu.dot_dimension_numbers<[1], [0], [0], [1], [0, 0, 1, 1], [], []>} : vector<2x512xbf16>, vector<512x64xbf16>, vector<2x64xf32> -> vector<2x64xf32>
    %c0_444 = arith.constant 0 : index
    %c0_445 = arith.constant 0 : index
    %572 = vector.load %arg15[%c0_444, %c0_445] : memref<1x64xf32, #tpu.memory_space<vmem>>, vector<1x64xf32>
    %573 = vector.broadcast %572 : vector<1x64xf32> to vector<2x64xf32>
    %574 = arith.mulf %571, %573 : vector<2x64xf32>
    %c0_446 = arith.constant 0 : index
    %c0_447 = arith.constant 0 : index
    %575 = vector.load %arg16[%c0_446, %c0_447] : memref<1x64xf32, #tpu.memory_space<vmem>>, vector<1x64xf32>
    %576 = vector.broadcast %575 : vector<1x64xf32> to vector<2x64xf32>
    %577 = arith.addf %574, %576 : vector<2x64xf32>
    %cst_448 = arith.constant 0.000000e+00 : f32
    %578 = vector.broadcast %cst_448 : f32 to vector<2x64xf32>
    %579 = arith.maximumf %577, %578 : vector<2x64xf32>
    %c0_449 = arith.constant 0 : index
    %c0_450 = arith.constant 0 : index
    %580 = vector.load %arg17[%c0_449, %c0_450] : memref<1x64xf32, #tpu.memory_space<vmem>>, vector<1x64xf32>
    %581 = vector.broadcast %580 : vector<1x64xf32> to vector<2x64xf32>
    %582 = arith.mulf %579, %581 : vector<2x64xf32>
    %cst_451 = arith.constant dense<0.000000e+00> : vector<2xf32>
    %583 = vector.multi_reduction <add>, %582, %cst_451 [1] : vector<2x64xf32> to vector<2xf32>
    %584 = vector.shape_cast %583 : vector<2xf32> to vector<2x1xf32>
    %c0_452 = arith.constant 0 : index
    %c0_453 = arith.constant 0 : index
    %585 = vector.load %arg18[%c0_452, %c0_453] : memref<1x1xf32, #tpu.memory_space<vmem>>, vector<1x1xf32>
    %586 = vector.broadcast %585 : vector<1x1xf32> to vector<2x1xf32>
    %587 = arith.addf %584, %586 : vector<2x1xf32>
    %c0_454 = arith.constant 0 : index
    %c0_455 = arith.constant 0 : index
    %588 = vector.load %arg19[%c0_454, %c0_455] : memref<2x1xf32, #tpu.memory_space<vmem>>, vector<2x1xf32>
    tpu.vector_store %arg19[%c0_454, %c0_455], %587 {strides = array<i32>} : memref<2x1xf32, #tpu.memory_space<vmem>>, vector<2x1xf32>,
    return
  }
}

</mosaic_0001>

<bundles_post_ra>
// kernel: cnn1d_lstm_forward.1
= control target key start
LH: loop header
LB: loop body
LE: loop exit
PB: predicated region body
PF: predicated region fallthrough
CT: control target
= control target key end

     0   :  { %s23487_s0 = inlined_call_operand.vmem [shape: f32[160,80], index: 0, kind: input, shape index: {}]   ;;  %s23488_s1 = inlined_call_operand.vmem [shape: bf16[1040,64], index: 1, kind: input, shape index: {}]   ;;  %s23489_s2 = inlined_call_operand.vmem [shape: f32[1,64], index: 2, kind: input, shape index: {}]   ;;  %s23490_s3 = inlined_call_operand.vmem [shape: f32[1,64], index: 3, kind: input, shape index: {}]   ;;  %s23491_s4 = inlined_call_operand.vmem [shape: bf16[1344,128], index: 4, kind: input, shape index: {}]   ;;  %s23492_s5 = inlined_call_operand.vmem [shape: f32[1,128], index: 5, kind: input, shape index: {}]   ;;  %s23493_s6 = inlined_call_operand.vmem [shape: f32[1,128], index: 6, kind: input, shape index: {}]   ;;  %s23494_s7 = inlined_call_operand.hbm [shape: bf16[1152,256], index: 7, kind: input, shape index: {}]   ;;  %s23495_s8 = inlined_call_operand.vmem [shape: f32[1,256], index: 8, kind: input, shape index: {}]   ;;  %s23496_s9 = inlined_call_operand.vmem [shape: f32[1,256], index: 9, kind: input, shape index: {}]   ;;  %s23497_s10 = inlined_call_operand.hbm [shape: bf16[256,1536], index: 10, kind: input, shape index: {}]   ;;  %s23498_s11 = inlined_call_operand.vmem [shape: f32[1,1536], index: 11, kind: input, shape index: {}]   ;;  %s23499_s12 = inlined_call_operand.vmem [shape: bf16[512,1536], index: 12, kind: input, shape index: {}]   ;;  %s23500_s13 = inlined_call_operand.vmem [shape: f32[1,1536], index: 13, kind: input, shape index: {}]   ;;  %s23501_s14 = inlined_call_operand.vmem [shape: bf16[512,64], index: 14, kind: input, shape index: {}]   ;;  %s23502_s15 = inlined_call_operand.vmem [shape: f32[1,64], index: 15, kind: input, shape index: {}]   ;;  %s23503_s16 = inlined_call_operand.vmem [shape: f32[1,64], index: 16, kind: input, shape index: {}]   ;;  %s23504_s17 = inlined_call_operand.vmem [shape: f32[1,64], index: 17, kind: input, shape index: {}]   ;;  %s23505_s18 = inlined_call_operand.<no memory space> [shape: f32[1,1], index: 18, kind: input, shape index: {}]   ;;  %s23506_s19 = inlined_call_operand.vmem [shape: f32[2,1], index: 19, kind: output, shape index: {0}]   ;;  %s23507_s20 = inlined_call_operand.vmem [shape: f32[4,512], index: 20, kind: output, shape index: {1}]   ;;  %s23508_s21 = inlined_call_operand.vmem [shape: f32[4,512], index: 21, kind: output, shape index: {2}]  }
   0x1   :  { %23515 = sst [smem:[#allocation13_spill]] %s23487_s0  ;;  %v27_v0 = vstv %s23505_s18 }
   0x2   :  { %23516 = sst [smem:[#allocation14_spill]] %s23488_s1  ;;  %28 = vst [vmem:[#allocation6] sm:$0x1] %v27_v0 }
   0x3   :  { %23517 = sst [smem:[#allocation15_spill]] %s23489_s2 }
   0x4   :  { %23518 = sst [smem:[#allocation16_spill]] %s23490_s3 }
   0x5   :  { %23519 = sst [smem:[#allocation17_spill]] %s23491_s4 }
   0x6   :  { %23520 = sst [smem:[#allocation18_spill]] %s23492_s5 }
   0x7   :  { %29 = vsyncpa [#allocation8], 0 }
   0x8   :  { %30 = vsyncpa [#allocation10], 0  ;;  %s19799_s26 = smov [#allocation7]   ;;  %s19751_s29 = scalar_lea.hbm %s23494_s7, 18432 }
   0x9   :  { %s50_s27 = sshll.u32 %s19799_s26, 4  ;;  %p19752_p0 = scmp.ne.s32.totalorder %s23494_s7, %s19751_s29  ;;  %s51_s27 = int_to_ptr.vmem [resolvable:$true] %s50_s27 }
   0xa   :  { %p19755_p1 = scmp.lt.u32.totalorder %s19751_s29, %s23494_s7 }
   0xc   :  { %p19757_p2 = pnand %p19755_p1, %p19752_p0 }
   0xe   :  { %19760 = shalt.err (!%p19757_p2)
}
   0xf   :  { %s19761_s18 = scalar_lea.vmem %s51_s27, 18432  ;;  %p19766_p4 = scmp.lt.s32.totalorder %s51_s27, %s51_s27 }
  0x10   :  { %p19762_p3 = scmp.ne.s32.totalorder %s51_s27, %s19761_s18  ;;  %p19767_p5 = scmp.lt.s32.totalorder %s19761_s18, %s19761_s18 }
  0x12   :  { %p19768_p6 = por %p19767_p5, %p19766_p4 }
  0x14   :  { %p19769_p7 = pnand %p19768_p6, %p19762_p3 }
  0x16   :  { %19772 = shalt.err (!%p19769_p7)
}
  0x17   :  { %s19800_s22 = smov 128   ;;  %s19801_s23 = smov 8  }
  0x18   :  { %56 = dma.hbm_to_vmem [thread:$0]  %s23494_s7, 18432, %s51_s27, [#allocation8], %s19800_s22, %s19800_s22, %s19801_s23  }
  0x19   :  { %s19802_s2 = smov [#allocation9]   ;;  %s19773_s28 = scalar_lea.hbm %s23497_s10, 24576 }
  0x1a   :  { %s66_s25 = sshll.u32 %s19802_s2, 4  ;;  %p19774_p8 = scmp.ne.s32.totalorder %s23497_s10, %s19773_s28  ;;  %s67_s25 = int_to_ptr.vmem [resolvable:$true] %s66_s25 }
  0x1b   :  { %p19777_p9 = scmp.lt.u32.totalorder %s19773_s28, %s23497_s10 }
  0x1d   :  { %p19779_p10 = pnand %p19777_p9, %p19774_p8 }
  0x1f   :  { %19782 = shalt.err (!%p19779_p10)
}
  0x20   :  { %s19783_s5 = scalar_lea.vmem %s67_s25, 24576  ;;  %p19788_p12 = scmp.lt.s32.totalorder %s67_s25, %s67_s25 }
  0x21   :  { %p19784_p11 = scmp.ne.s32.totalorder %s67_s25, %s19783_s5  ;;  %p19789_p13 = scmp.lt.s32.totalorder %s19783_s5, %s19783_s5 }
  0x23   :  { %p19790_p0 = por %p19789_p13, %p19788_p12 }
  0x25   :  { %p19791_p1 = pnand %p19790_p0, %p19784_p11 }
  0x27   :  { %19794 = shalt.err (!%p19791_p1)
}
  0x28   :  { %s19803_s7 = smov 768   ;;  %s19804_s27 = smov 48  }
  0x29   :  { %72 = dma.hbm_to_vmem [thread:$0]  %s23497_s10, 24576, %s67_s25, [#allocation10], %s19803_s7, %s19803_s7, %s19804_s27  }
  0x2a   :  { %19795 = dma.done.wait [#allocation8], 18432  }
  0x2b   :  { %19796 = vsyncadd [#allocation8], 4294948864 }
  0x2c   :  { %19797 = dma.done.wait [#allocation10], 24576  }
  0x2d   :  { %19798 = vsyncadd [#allocation10], 4294942720  ;;  %s23521_s24 = sld [smem:[#allocation14_spill]]  ;;  %s23522_s29 = sld [smem:[#allocation13_spill]]  ;;  %vm185_vm0 = vcmask 654336   ;;  %vm96_vm1 = vcmask 523264  }
  0x2e   :  { %s23523_s3 = sld [smem:[#allocation17_spill]]  ;;  %vm19806_vm2 = vmmov 0   ;;  %s23524_s27 = sld [smem:[#allocation15_spill]]  ;;  %vm4923_vm3 = vcmask 1043456   ;;  %vm14682_vm5 = vcmask 517120   ;;  %vm14694_vm6 = vcmask 1024  }
  0x2f   :  { %s23525_s23 = sld [smem:[#allocation16_spill]]  ;;  %s23526_s22 = sld [smem:[#allocation18_spill]] }
  0x33   :  { %v18000_v1 = vld [vmem:[%s23521_s24 + $0x28] sm:$0xff]   ;;  %v18001_v2 = vld [vmem:[%s23521_s24 + $0x30] sm:$0xff]   ;;  %v18002_v3 = vld [vmem:[%s23521_s24 + $0x38] sm:$0xff]  }
  0x34   :  { %16566 = vmatprep.subr.bf16.mxu0 %v18000_v1  ;;  %v133_v4 = vld [vmem:[%s23522_s29 + $0x1] sm:$0xff]  ;;  %v134_v5 = vld [vmem:[%s23522_s29 + $0x9] sm:$0xff]  ;;  %v135_v10 = vld [vmem:[%s23522_s29 + $0x11] sm:$0xff] }
  0x35   :  { %16567 = vmatpush3.bf16.msra.mxu0 %v18000_v1  ;;  %v151_v6 = vpack.c.bf16 %v134_v5, %v133_v4  ;;  %v18003_v7 = vld [vmem:[%s23521_s24 + $0x40] sm:$0xff]   ;;  %v18004_v8 = vld [vmem:[%s23521_s24 + $0x48] sm:$0xff]   ;;  %v18007_v17 = vld [vmem:[%s23521_s24 + $0x10] sm:$0xff]  }
  0x36   :  { %16568 = vmatprep.subr.bf16.mxu0 %v18001_v2  ;;  %v18005_v9 = vld [vmem:[%s23521_s24] sm:$0xff]   ;;  %v138_v13 = vld [vmem:[%s23522_s29 + $0x29] sm:$0xff]  ;;  %v139_v18 = vld [vmem:[%s23522_s29 + $0x31] sm:$0xff] }
  0x37   :  { %16576 = vmatprep.mubr.msk.bf16.mxu0 %vm185_vm0, %v151_v6  ;;  %v19977_v11 = vld [vmem:[%s23522_s29 + $0x19] sm:$0xff]  ;;  %v19982_v12 = vld [vmem:[%s23522_s29 + $0x21] sm:$0xff]  ;;  %v18010_v26 = vld [vmem:[%s23521_s24 + $0x50] sm:$0xff]  }
  0x38   :  { %v152_v14 = vpack.c.bf16 %v19977_v11, %v135_v10  ;;  %v153_v15 = vpack.c.bf16 %v138_v13, %v19982_v12  ;;  %v18006_v16 = vld [vmem:[%s23521_s24 + $0x8] sm:$0xff]   ;;  %v140_v19 = vld [vmem:[%s23522_s29 + $0x39] sm:$0xff]  ;;  %v20026_v27 = vld [vmem:[%s23522_s29 + $0x10] sm:$0xff]  ;;  %v1348_v63 = vpack.c.bf16 %v19982_v12, %v19977_v11 }
  0x39   :  { %16569 = vmatpush3.bf16.msra.mxu0 %v18001_v2  ;;  %v111_v20 = vld [vmem:[%s23522_s29] sm:$0xff]  ;;  %v20009_v21 = vld [vmem:[%s23522_s29 + $0x8] sm:$0xff]  ;;  %v154_v22 = vpack.c.bf16 %v140_v19, %v139_v18  ;;  %v18008_v24 = vld [vmem:[%s23521_s24 + $0x18] sm:$0xff]  }
  0x3a   :  { %16570 = vmatprep.subr.bf16.mxu0 %v18002_v3  ;;  %v129_v23 = vpack.c.bf16 %v20009_v21, %v111_v20  ;;  %v18009_v25 = vld [vmem:[%s23521_s24 + $0x20] sm:$0xff]   ;;  %v20031_v28 = vld [vmem:[%s23522_s29 + $0x18] sm:$0xff]  ;;  %v20041_v30 = vld [vmem:[%s23522_s29 + $0x28] sm:$0xff]  ;;  %v1210_v42 = vpack.c.bf16 %v20026_v27, %v20009_v21 }
  0x3b   :  { %v20036_v29 = vld [vmem:[%s23522_s29 + $0x20] sm:$0xff]  ;;  %v130_v31 = vpack.c.bf16 %v20031_v28, %v20026_v27  ;;  %v18011_v33 = vld [vmem:[%s23521_s24 + $0x58] sm:$0xff]   ;;  %v20058_v35 = vld [vmem:[%s23522_s29 + $0x30] sm:$0xff] }
  0x3c   :  { %v131_v32 = vpack.c.bf16 %v20041_v30, %v20036_v29  ;;  %v18012_v34 = vld [vmem:[%s23521_s24 + $0x60] sm:$0xff]   ;;  %v118_v36 = vld [vmem:[%s23522_s29 + $0x38] sm:$0xff]  ;;  %v371_v38 = vld [vmem:[%s23522_s29 + $0xa] sm:$0xff]  ;;  %v1211_v44 = vpack.c.bf16 %v20036_v29, %v20031_v28  ;;  %v1212_v56 = vpack.c.bf16 %v20058_v35, %v20041_v30 }
  0x3d   :  { %16571 = vmatpush3.bf16.msra.mxu0 %v18002_v3  ;;  %v370_v37 = vld [vmem:[%s23522_s29 + $0x2] sm:$0xff]  ;;  %v132_v39 = vpack.c.bf16 %v118_v36, %v20058_v35  ;;  %v18014_v43 = vld [vmem:[%s23521_s24 + $0x70] sm:$0xff]   ;;  %v18015_v45 = vld [vmem:[%s23521_s24 + $0x78] sm:$0xff]  }
  0x3e   :  { %16572 = vmatprep.subr.bf16.mxu0 %v18003_v7  ;;  %v388_v40 = vpack.c.bf16 %v371_v38, %v370_v37  ;;  %v18013_v41 = vld [vmem:[%s23521_s24 + $0x68] sm:$0xff]   ;;  %v372_v46 = vld [vmem:[%s23522_s29 + $0x12] sm:$0xff]  ;;  %v373_v47 = vld [vmem:[%s23522_s29 + $0x1a] sm:$0xff] }
  0x3f   :  { %v374_v48 = vld [vmem:[%s23522_s29 + $0x22] sm:$0xff]  ;;  %v375_v49 = vld [vmem:[%s23522_s29 + $0x2a] sm:$0xff]  ;;  %v389_v50 = vpack.c.bf16 %v373_v47, %v372_v46  ;;  %v376_v54 = vld [vmem:[%s23522_s29 + $0x32] sm:$0xff] }
  0x40   :  { %v390_v51 = vpack.c.bf16 %v375_v49, %v374_v48  ;;  %v18016_v52 = vld [vmem:[%s23521_s24 + $0x80] sm:$0xff]   ;;  %v18017_v53 = vld [vmem:[%s23521_s24 + $0x88] sm:$0xff]   ;;  %v18018_v61 = vld [vmem:[%s23521_s24 + $0x90] sm:$0xff]  }
  0x41   :  { %16573 = vmatpush3.bf16.msra.mxu0 %v18003_v7  ;;  %v377_v55 = vld [vmem:[%s23522_s29 + $0x3a] sm:$0xff]  ;;  %v507_v57 = vld [vmem:[%s23522_s29 + $0x3] sm:$0xff]  ;;  %v508_v58 = vld [vmem:[%s23522_s29 + $0xb] sm:$0xff] }
  0x42   :  { %16574 = vmatprep.subr.bf16.mxu0 %v18004_v8  ;;  %v391_v59 = vpack.c.bf16 %v377_v55, %v376_v54  ;;  %v525_v60 = vpack.c.bf16 %v508_v58, %v507_v57  ;;  %v18019_v62 = vld [vmem:[%s23521_s24 + $0x98] sm:$0xff]   ;;  %v18020_v2 = vld [vmem:[%s23521_s24 + $0xa0] sm:$0xff]   ;;  %v512_v4 = vld [vmem:[%s23522_s29 + $0x2b] sm:$0xff] }
  0x43   :  { %v509_v0 = vld [vmem:[%s23522_s29 + $0x13] sm:$0xff]  ;;  %v510_v1 = vld [vmem:[%s23522_s29 + $0x1b] sm:$0xff]  ;;  %v511_v3 = vld [vmem:[%s23522_s29 + $0x23] sm:$0xff] }
  0x44   :  { %v526_v5 = vpack.c.bf16 %v510_v1, %v509_v0  ;;  %v18021_v6 = vld [vmem:[%s23521_s24 + $0xa8] sm:$0xff]   ;;  %v527_v7 = vpack.c.bf16 %v512_v4, %v511_v3  ;;  %v18022_v10 = vld [vmem:[%s23521_s24 + $0xb0] sm:$0xff]   ;;  %v18024_v18 = vld [vmem:[%s23521_s24 + $0xc0] sm:$0xff]  }
  0x45   :  { %16575 = vmatpush3.bf16.msra.mxu0 %v18004_v8  ;;  %v513_v8 = vld [vmem:[%s23522_s29 + $0x33] sm:$0xff]  ;;  %v644_v13 = vld [vmem:[%s23522_s29 + $0x4] sm:$0xff]  ;;  %v647_v20 = vld [vmem:[%s23522_s29 + $0x1c] sm:$0xff] }
  0x46   :  { %16584 = vmatprep.subr.bf16.mxu0 %v18005_v9  ;;  %v646_v19 = vld [vmem:[%s23522_s29 + $0x14] sm:$0xff]  ;;  %v781_v36 = vld [vmem:[%s23522_s29 + $0x5] sm:$0xff] }
  0x47   :  { %v782_v37 = vld [vmem:[%s23522_s29 + $0xd] sm:$0xff]  ;;  %v785_v47 = vld [vmem:[%s23522_s29 + $0x25] sm:$0xff]  ;;  %v18035_v1 = vld [vmem:[%s23521_s24 + $0x118] sm:$0xff]  }
  0x48   :  { %16577 = vmatmul.mubr.msk.bf16.vlgmr.msra.gmra.mrb[0].mxu0 %vm185_vm0, %v152_v14  ;;  %v645_v14 = vld [vmem:[%s23522_s29 + $0xc] sm:$0xff]  ;;  %v18032_v54 = vld [vmem:[%s23521_s24 + $0x100] sm:$0xff]   ;;  %v18047_v21 = vld [vmem:[%s23521_s24 + $0x178] sm:$0xff]  }
  0x49   :  { %16585 = vmatpush3.bf16.msra.mxu0 %v18005_v9  ;;  %16580 = vmatprep.mubr.msk.bf16.mxu0 %vm185_vm0, %v153_v15  ;;  %v514_v9 = vld [vmem:[%s23522_s29 + $0x3b] sm:$0xff]  ;;  %v18030_v46 = vld [vmem:[%s23521_s24 + $0xf0] sm:$0xff]   ;;  %v918_v55 = vld [vmem:[%s23522_s29 + $0x6] sm:$0xff] }
  0x4a   :  { %16586 = vmatprep.subr.bf16.mxu0 %v18006_v16  ;;  %v528_v15 = vpack.c.bf16 %v514_v9, %v513_v8  ;;  %v786_v48 = vld [vmem:[%s23522_s29 + $0x2d] sm:$0xff]  ;;  %v921_v0 = vld [vmem:[%s23522_s29 + $0x1e] sm:$0xff] }
  0x4b   :  { %v919_v57 = vld [vmem:[%s23522_s29 + $0xe] sm:$0xff]  ;;  %v925_v8 = vld [vmem:[%s23522_s29 + $0x3e] sm:$0xff] }
  0x4c   :  { %v923_v3 = vld [vmem:[%s23522_s29 + $0x2e] sm:$0xff]  ;;  %v18048_v27 = vld [vmem:[%s23521_s24 + $0x180] sm:$0xff]   ;;  %v19722_v28 = vld [vmem:[%s23522_s29 + $0x38] sm:$0xff] }
  0x4d   :  { %16587 = vmatpush3.bf16.msra.mxu0 %v18006_v16  ;;  %v18023_v16 = vld [vmem:[%s23521_s24 + $0xb8] sm:$0xff]   ;;  %v18037_v9 = vld [vmem:[%s23521_s24 + $0x128] sm:$0xff]  }
  0x4e   :  { %16588 = vmatprep.subr.bf16.mxu0 %v18007_v17  ;;  %v19724_v30 = vld [vmem:[%s23522_s29 + $0x11] sm:$0xff] }
  0x4f   :  { %v19728_v11 = vld [vmem:[%s23522_s29 + $0xa] sm:$0xff]  ;;  %v19729_v12 = vld [vmem:[%s23522_s29 + $0x12] sm:$0xff] }
  0x50   :  { %16581 = vmatmul.mubr.msk.bf16.gmra.mrb[4].mxu0 %vm185_vm0, %v154_v22  ;;  %v18025_v22 = vld [vmem:[%s23521_s24 + $0xc8] sm:$0xff]  }
  0x51   :  { %16589 = vmatpush3.bf16.msra.mxu0 %v18007_v17  ;;  %16594 = vmatprep.mubr.msk.bf16.mxu0 %vm185_vm0, %v129_v23  ;;  %v662_v17 = vpack.c.bf16 %v645_v14, %v644_v13  ;;  %v648_v23 = vld [vmem:[%s23522_s29 + $0x24] sm:$0xff]  ;;  %v1056_v13 = vld [vmem:[%s23522_s29 + $0xf] sm:$0xff] }
  0x52   :  { %16590 = vmatprep.subr.bf16.mxu0 %v18008_v24  ;;  %v18038_v14 = vld [vmem:[%s23521_s24 + $0x130] sm:$0xff]  }
  0x55   :  { %16591 = vmatpush3.bf16.msra.mxu0 %v18008_v24  ;;  %v649_v24 = vld [vmem:[%s23522_s29 + $0x2c] sm:$0xff] }
  0x56   :  { %16592 = vmatprep.subr.bf16.mxu0 %v18009_v25 }
  0x59   :  { %16593 = vmatpush3.bf16.msra.mxu0 %v18009_v25  ;;  %v663_v25 = vpack.c.bf16 %v647_v20, %v646_v19  ;;  %v1058_v19 = vld [vmem:[%s23522_s29 + $0x1f] sm:$0xff] }
  0x5a   :  { %16602 = vmatprep.subr.bf16.mxu0 %v18010_v26  ;;  %v18040_v20 = vld [vmem:[%s23521_s24 + $0x140] sm:$0xff]  }
  0x5c   :  { %16595 = vmatmul.mubr.msk.bf16.vlgmr.msra.gmra.mrb[0].mxu0 %vm185_vm0, %v130_v31  ;;  %v664_v31 = vpack.c.bf16 %v649_v24, %v648_v23  ;;  %v1060_v23 = vld [vmem:[%s23522_s29 + $0x2f] sm:$0xff] }
  0x5d   :  { %16603 = vmatpush3.bf16.msra.mxu0 %v18010_v26  ;;  %16598 = vmatprep.mubr.msk.bf16.mxu0 %vm185_vm0, %v131_v32  ;;  %v18026_v26 = vld [vmem:[%s23521_s24 + $0xd0] sm:$0xff]  }
  0x5e   :  { %16604 = vmatprep.subr.bf16.mxu0 %v18011_v33  ;;  %v650_v32 = vld [vmem:[%s23522_s29 + $0x34] sm:$0xff] }
  0x61   :  { %16605 = vmatpush3.bf16.msra.mxu0 %v18011_v33  ;;  %v651_v33 = vld [vmem:[%s23522_s29 + $0x3c] sm:$0xff] }
  0x62   :  { %16606 = vmatprep.subr.bf16.mxu0 %v18012_v34  ;;  %v665_v38 = vpack.c.bf16 %v651_v33, %v650_v32  ;;  %v1062_v32 = vld [vmem:[%s23522_s29 + $0x3f] sm:$0xff]  ;;  %v18042_v33 = vld [vmem:[%s23521_s24 + $0x150] sm:$0xff]  }
  0x64   :  { %16599 = vmatmul.mubr.msk.bf16.gmra.mrb[4].mxu0 %vm185_vm0, %v132_v39  ;;  %v18028_v39 = vld [vmem:[%s23521_s24 + $0xe0] sm:$0xff]  }
  0x65   :  { %16607 = vmatpush3.bf16.msra.mxu0 %v18012_v34  ;;  %16612 = vmatprep.mubr.msk.bf16.mxu0 %vm185_vm0, %v388_v40  ;;  %v18027_v34 = vld [vmem:[%s23521_s24 + $0xd8] sm:$0xff]   ;;  %v799_v40 = vpack.c.bf16 %v782_v37, %v781_v36  ;;  %v18044_v37 = vld [vmem:[%s23521_s24 + $0x160] sm:$0xff]  }
  0x66   :  { %16608 = vmatprep.subr.bf16.mxu0 %v18013_v41 }
  0x69   :  { %16609 = vmatpush3.bf16.msra.mxu0 %v18013_v41  ;;  %v18029_v41 = vld [vmem:[%s23521_s24 + $0xe8] sm:$0xff]  }
  0x6a   :  { %16610 = vmatprep.subr.bf16.mxu0 %v18014_v43 }
  0x6d   :  { %16611 = vmatpush3.bf16.msra.mxu0 %v18014_v43  ;;  %v783_v43 = vld [vmem:[%s23522_s29 + $0x15] sm:$0xff] }
  0x6e   :  { %16620 = vmatprep.subr.bf16.mxu0 %v18015_v45 }
  0x70   :  { %16613 = vmatmul.mubr.msk.bf16.vlgmr.msra.gmra.mrb[0].mxu0 %vm185_vm0, %v389_v50  ;;  %v18031_v50 = vld [vmem:[%s23521_s24 + $0xf8] sm:$0xff]  }
  0x71   :  { %16621 = vmatpush3.bf16.msra.mxu0 %v18015_v45  ;;  %16616 = vmatprep.mubr.msk.bf16.mxu0 %vm185_vm0, %v390_v51  ;;  %v784_v45 = vld [vmem:[%s23522_s29 + $0x1d] sm:$0xff]  ;;  %v801_v51 = vpack.c.bf16 %v786_v48, %v785_v47 }
  0x72   :  { %16622 = vmatprep.subr.bf16.mxu0 %v18016_v52  ;;  %v800_v49 = vpack.c.bf16 %v784_v45, %v783_v43  ;;  %v19725_v43 = vld [vmem:[%s23522_s29 + $0x29] sm:$0xff]  ;;  %v19726_v45 = vld [vmem:[%s23522_s29 + $0x31] sm:$0xff]  ;;  %v1336_v47 = vld [vmem:[%s23522_s29 + $0x41] sm:$0xff] }
  0x73   :  { %v18052_v48 = vld [vmem:[%s23521_s24 + $0x1a0] sm:$0xff]  }
  0x75   :  { %16623 = vmatpush3.bf16.msra.mxu0 %v18016_v52  ;;  %v787_v52 = vld [vmem:[%s23522_s29 + $0x35] sm:$0xff] }
  0x76   :  { %16624 = vmatprep.subr.bf16.mxu0 %v18017_v53 }
  0x78   :  { %16617 = vmatmul.mubr.msk.bf16.gmra.mrb[4].mxu0 %vm185_vm0, %v391_v59  ;;  %v18033_v59 = vld [vmem:[%s23521_s24 + $0x108] sm:$0xff]  }
  0x79   :  { %16625 = vmatpush3.bf16.msra.mxu0 %v18017_v53  ;;  %16630 = vmatprep.mubr.msk.bf16.mxu0 %vm185_vm0, %v525_v60  ;;  %v788_v53 = vld [vmem:[%s23522_s29 + $0x3d] sm:$0xff]  ;;  %v936_v60 = vpack.c.bf16 %v919_v57, %v918_v55 }
  0x7a   :  { %16626 = vmatprep.subr.bf16.mxu0 %v18018_v61  ;;  %v802_v58 = vpack.c.bf16 %v788_v53, %v787_v52  ;;  %v18054_v52 = vld [vmem:[%s23521_s24 + $0x1b0] sm:$0xff]   ;;  %v18055_v53 = vld [vmem:[%s23521_s24 + $0x1b8] sm:$0xff]   ;;  %v19731_v55 = vld [vmem:[%s23522_s29 + $0x22] sm:$0xff] }
  0x7d   :  { %16627 = vmatpush3.bf16.msra.mxu0 %v18018_v61  ;;  %v18034_v61 = vld [vmem:[%s23521_s24 + $0x110] sm:$0xff]  }
  0x7e   :  { %16628 = vmatprep.subr.bf16.mxu0 %v18019_v62 }
  0x81   :  { %16629 = vmatpush3.bf16.msra.mxu0 %v18019_v62  ;;  %v920_v62 = vld [vmem:[%s23522_s29 + $0x16] sm:$0xff] }
  0x82   :  { %16638 = vmatprep.subr.bf16.mxu0 %v18020_v2  ;;  %v937_v4 = vpack.c.bf16 %v921_v0, %v920_v62  ;;  %v1473_v62 = vld [vmem:[%s23522_s29 + $0x42] sm:$0xff] }
  0x83   :  { %v18057_v0 = vld [vmem:[%s23521_s24 + $0x1c8] sm:$0xff]  }
  0x84   :  { %16631 = vmatmul.mubr.msk.bf16.vlgmr.msra.gmra.mrb[0].mxu0 %vm185_vm0, %v526_v5  ;;  %v18036_v5 = vld [vmem:[%s23521_s24 + $0x120] sm:$0xff]  }
  0x85   :  { %16639 = vmatpush3.bf16.msra.mxu0 %v18020_v2  ;;  %16634 = vmatprep.mubr.msk.bf16.mxu0 %vm185_vm0, %v527_v7  ;;  %v922_v2 = vld [vmem:[%s23522_s29 + $0x26] sm:$0xff]  ;;  %v924_v7 = vld [vmem:[%s23522_s29 + $0x36] sm:$0xff] }
  0x86   :  { %16640 = vmatprep.subr.bf16.mxu0 %v18021_v6 }
  0x89   :  { %16641 = vmatpush3.bf16.msra.mxu0 %v18021_v6  ;;  %v938_v6 = vpack.c.bf16 %v923_v3, %v922_v2  ;;  %v19734_v2 = vld [vmem:[%s23522_s29 + $0x3a] sm:$0xff] }
  0x8a   :  { %16642 = vmatprep.subr.bf16.mxu0 %v18022_v10  ;;  %v1487_v3 = vpack.c.bf16 %v1473_v62, %v19734_v2 }
  0x8c   :  { %16635 = vmatmul.mubr.msk.bf16.gmra.mrb[4].mxu0 %vm185_vm0, %v528_v15  ;;  %v939_v15 = vpack.c.bf16 %v925_v8, %v924_v7  ;;  %v18059_v7 = vld [vmem:[%s23521_s24 + $0x1d8] sm:$0xff]   ;;  %v18060_v8 = vld [vmem:[%s23521_s24 + $0x1e0] sm:$0xff]  }
  0x8d   :  { %16643 = vmatpush3.bf16.msra.mxu0 %v18022_v10  ;;  %16648 = vmatprep.mubr.msk.bf16.mxu0 %vm185_vm0, %v662_v17  ;;  %v1055_v10 = vld [vmem:[%s23522_s29 + $0x7] sm:$0xff]  ;;  %v18039_v17 = vld [vmem:[%s23521_s24 + $0x138] sm:$0xff]  }
  0x8e   :  { %16644 = vmatprep.subr.bf16.mxu0 %v18023_v16 }
  0x91   :  { %16645 = vmatpush3.bf16.msra.mxu0 %v18023_v16  ;;  %v1073_v16 = vpack.c.bf16 %v1056_v13, %v1055_v10  ;;  %v19738_v10 = vld [vmem:[%s23522_s29 + $0x23] sm:$0xff] }
  0x92   :  { %16646 = vmatprep.subr.bf16.mxu0 %v18024_v18 }
  0x95   :  { %16647 = vmatpush3.bf16.msra.mxu0 %v18024_v18  ;;  %v1057_v18 = vld [vmem:[%s23522_s29 + $0x17] sm:$0xff] }
  0x96   :  { %16656 = vmatprep.subr.bf16.mxu0 %v18025_v22  ;;  %v1074_v24 = vpack.c.bf16 %v1058_v19, %v1057_v18  ;;  %v1610_v18 = vld [vmem:[%s23522_s29 + $0x43] sm:$0xff]  ;;  %v18062_v19 = vld [vmem:[%s23521_s24 + $0x1f0] sm:$0xff]  }
  0x98   :  { %16649 = vmatmul.mubr.msk.bf16.vlgmr.msra.gmra.mrb[0].mxu0 %vm185_vm0, %v663_v25  ;;  %v18041_v25 = vld [vmem:[%s23521_s24 + $0x148] sm:$0xff]  }
  0x99   :  { %16657 = vmatpush3.bf16.msra.mxu0 %v18025_v22  ;;  %16652 = vmatprep.mubr.msk.bf16.mxu0 %vm185_vm0, %v664_v31  ;;  %v1059_v22 = vld [vmem:[%s23522_s29 + $0x27] sm:$0xff]  ;;  %v1061_v31 = vld [vmem:[%s23522_s29 + $0x37] sm:$0xff] }
  0x9a   :  { %16658 = vmatprep.subr.bf16.mxu0 %v18026_v26  ;;  %v1076_v36 = vpack.c.bf16 %v1062_v32, %v1061_v31  ;;  %v18064_v31 = vld [vmem:[%s23521_s24 + $0x200] sm:$0xff]  }
  0x9b   :  { %v19744_v32 = vld [vmem:[%s23522_s29 + $0x1c] sm:$0xff] }
  0x9d   :  { %16659 = vmatpush3.bf16.msra.mxu0 %v18026_v26  ;;  %v1075_v26 = vpack.c.bf16 %v1060_v23, %v1059_v22  ;;  %v18063_v23 = vld [vmem:[%s23521_s24 + $0x1f8] sm:$0xff]  }
  0x9e   :  { %16660 = vmatprep.subr.bf16.mxu0 %v18027_v34 }
  0xa0   :  { %16653 = vmatmul.mubr.msk.bf16.gmra.mrb[4].mxu0 %vm185_vm0, %v665_v38  ;;  %v18045_v38 = vld [vmem:[%s23521_s24 + $0x168] sm:$0xff]  }
  0xa1   :  { %16661 = vmatpush3.bf16.msra.mxu0 %v18027_v34  ;;  %16666 = vmatprep.mubr.msk.bf16.mxu0 %vm185_vm0, %v799_v40  ;;  %v18043_v34 = vld [vmem:[%s23521_s24 + $0x158] sm:$0xff]   ;;  %v1199_v40 = vld [vmem:[%s23522_s29 + $0x40] sm:$0xff] }
  0xa2   :  { %16662 = vmatprep.subr.bf16.mxu0 %v18028_v39  ;;  %v1213_v29 = vpack.c.bf16 %v1199_v40, %v19722_v28  ;;  %v19748_v40 = vld [vmem:[%s23522_s29 + $0x3c] sm:$0xff]  ;;  %v19805_v28 = vmov 0.0  }
  0xa3   :  { %16800 = vmatprep.subr.bf16.mxu1 %v19805_v28  ;;  %97 = vst.msk [vmem:[#allocation3] sm:$0xff] %vm96_vm1, %v19805_v28  ;;  %98 = vst.msk [vmem:[#allocation3 + $0x8] sm:$0xff] %vm96_vm1, %v19805_v28  ;;  %16808 = vmatprep.mubr.msk.bf16.mxu1 %vm19806_vm2, %v19805_v28 }
  0xa4   :  { %99 = vst.msk [vmem:[#allocation3 + $0x10] sm:$0xff] %vm96_vm1, %v19805_v28  ;;  %100 = vst.msk [vmem:[#allocation3 + $0x18] sm:$0xff] %vm96_vm1, %v19805_v28 }
  0xa5   :  { %16663 = vmatpush3.bf16.msra.mxu0 %v18028_v39  ;;  %v18046_v39 = vld [vmem:[%s23521_s24 + $0x170] sm:$0xff]   ;;  %101 = vst.msk [vmem:[#allocation3 + $0x20] sm:$0xff] %vm96_vm1, %v19805_v28  ;;  %102 = vst.msk [vmem:[#allocation3 + $0x28] sm:$0xff] %vm96_vm1, %v19805_v28 }
  0xa6   :  { %16664 = vmatprep.subr.bf16.mxu0 %v18029_v41  ;;  %103 = vst.msk [vmem:[#allocation3 + $0x30] sm:$0xff] %vm96_vm1, %v19805_v28  ;;  %104 = vst.msk [vmem:[#allocation3 + $0x38] sm:$0xff] %vm96_vm1, %v19805_v28 }
  0xa7   :  { %105 = vst.msk [vmem:[#allocation3 + $0x40] sm:$0xff] %vm96_vm1, %v19805_v28  ;;  %106 = vst.msk [vmem:[#allocation3 + $0x48] sm:$0xff] %vm96_vm1, %v19805_v28 }
  0xa8   :  { %107 = vst [vmem:[#allocation4] sm:$0xff] %v19805_v28  ;;  %108 = vst [vmem:[#allocation4 + $0x8] sm:$0xff] %v19805_v28 }
  0xa9   :  { %16665 = vmatpush3.bf16.msra.mxu0 %v18029_v41  ;;  %v18051_v41 = vld [vmem:[%s23521_s24 + $0x198] sm:$0xff]   ;;  %109 = vst [vmem:[#allocation4 + $0x10] sm:$0xff] %v19805_v28  ;;  %110 = vst [vmem:[#allocation4 + $0x18] sm:$0xff] %v19805_v28 }
  0xaa   :  { %16674 = vmatprep.subr.bf16.mxu0 %v18030_v46 }
  0xac   :  { %16667 = vmatmul.mubr.msk.bf16.vlgmr.msra.gmra.mrb[0].mxu0 %vm185_vm0, %v800_v49  ;;  %v18053_v49 = vld [vmem:[%s23521_s24 + $0x1a8] sm:$0xff]  }
  0xad   :  { %16675 = vmatpush3.bf16.msra.mxu0 %v18030_v46  ;;  %16670 = vmatprep.mubr.msk.bf16.mxu0 %vm185_vm0, %v801_v51  ;;  %v1349_v46 = vpack.c.bf16 %v19726_v45, %v19725_v43 }
  0xae   :  { %16676 = vmatprep.subr.bf16.mxu0 %v18031_v50 }
  0xb1   :  { %16677 = vmatpush3.bf16.msra.mxu0 %v18031_v50  ;;  %v19727_v50 = vld [vmem:[%s23522_s29 + $0x39] sm:$0xff] }
  0xb2   :  { %16678 = vmatprep.subr.bf16.mxu0 %v18032_v54  ;;  %v1350_v51 = vpack.c.bf16 %v1336_v47, %v19727_v50 }
  0xb4   :  { %16671 = vmatmul.mubr.msk.bf16.gmra.mrb[4].mxu0 %vm185_vm0, %v802_v58  ;;  %v18056_v58 = vld [vmem:[%s23521_s24 + $0x1c0] sm:$0xff]  }
  0xb5   :  { %16679 = vmatpush3.bf16.msra.mxu0 %v18032_v54  ;;  %16684 = vmatprep.mubr.msk.bf16.mxu0 %vm185_vm0, %v936_v60  ;;  %v19730_v54 = vld [vmem:[%s23522_s29 + $0x1a] sm:$0xff]  ;;  %v19733_v60 = vld [vmem:[%s23522_s29 + $0x32] sm:$0xff] }
  0xb6   :  { %16680 = vmatprep.subr.bf16.mxu0 %v18033_v59  ;;  %v1485_v57 = vpack.c.bf16 %v19731_v55, %v19730_v54 }
  0xb9   :  { %16681 = vmatpush3.bf16.msra.mxu0 %v18033_v59  ;;  %v19732_v59 = vld [vmem:[%s23522_s29 + $0x2a] sm:$0xff] }
  0xba   :  { %16682 = vmatprep.subr.bf16.mxu0 %v18034_v61 }
  0xbd   :  { %16683 = vmatpush3.bf16.msra.mxu0 %v18034_v61  ;;  %v1486_v61 = vpack.c.bf16 %v19733_v60, %v19732_v59 }
  0xbe   :  { %16692 = vmatprep.subr.bf16.mxu0 %v18035_v1 }
  0xc0   :  { %16685 = vmatmul.mubr.msk.bf16.vlgmr.msra.gmra.mrb[0].mxu0 %vm185_vm0, %v937_v4  ;;  %v19735_v4 = vld [vmem:[%s23522_s29 + $0xb] sm:$0xff] }
  0xc1   :  { %16693 = vmatpush3.bf16.msra.mxu0 %v18035_v1  ;;  %16688 = vmatprep.mubr.msk.bf16.mxu0 %vm185_vm0, %v938_v6  ;;  %v18058_v1 = vld [vmem:[%s23521_s24 + $0x1d0] sm:$0xff]  }
  0xc2   :  { %16694 = vmatprep.subr.bf16.mxu0 %v18036_v5 }
  0xc5   :  { %16695 = vmatpush3.bf16.msra.mxu0 %v18036_v5  ;;  %v19736_v5 = vld [vmem:[%s23522_s29 + $0x13] sm:$0xff] }
  0xc6   :  { %16696 = vmatprep.subr.bf16.mxu0 %v18037_v9  ;;  %v1621_v6 = vpack.c.bf16 %v19736_v5, %v19735_v4 }
  0xc8   :  { %16689 = vmatmul.mubr.msk.bf16.gmra.mrb[4].mxu0 %vm185_vm0, %v939_v15  ;;  %v19739_v15 = vld [vmem:[%s23522_s29 + $0x2b] sm:$0xff] }
  0xc9   :  { %16697 = vmatpush3.bf16.msra.mxu0 %v18037_v9  ;;  %16702 = vmatprep.mubr.msk.bf16.mxu0 %vm185_vm0, %v1073_v16  ;;  %v19737_v9 = vld [vmem:[%s23522_s29 + $0x1b] sm:$0xff]  ;;  %v19740_v16 = vld [vmem:[%s23522_s29 + $0x33] sm:$0xff] }
  0xca   :  { %16698 = vmatprep.subr.bf16.mxu0 %v18038_v14  ;;  %v1622_v13 = vpack.c.bf16 %v19738_v10, %v19737_v9 }
  0xcd   :  { %16699 = vmatpush3.bf16.msra.mxu0 %v18038_v14  ;;  %v18061_v14 = vld [vmem:[%s23521_s24 + $0x1e8] sm:$0xff]  }
  0xce   :  { %16700 = vmatprep.subr.bf16.mxu0 %v18039_v17 }
  0xd1   :  { %16701 = vmatpush3.bf16.msra.mxu0 %v18039_v17  ;;  %v1623_v17 = vpack.c.bf16 %v19740_v16, %v19739_v15 }
  0xd2   :  { %16710 = vmatprep.subr.bf16.mxu0 %v18040_v20 }
  0xd4   :  { %16703 = vmatmul.mubr.msk.bf16.vlgmr.msra.gmra.mrb[0].mxu0 %vm185_vm0, %v1074_v24  ;;  %v19742_v24 = vld [vmem:[%s23522_s29 + $0xc] sm:$0xff] }
  0xd5   :  { %16711 = vmatpush3.bf16.msra.mxu0 %v18040_v20  ;;  %16706 = vmatprep.mubr.msk.bf16.mxu0 %vm185_vm0, %v1075_v26  ;;  %v19741_v20 = vld [vmem:[%s23522_s29 + $0x3b] sm:$0xff] }
  0xd6   :  { %16712 = vmatprep.subr.bf16.mxu0 %v18041_v25  ;;  %v1624_v22 = vpack.c.bf16 %v1610_v18, %v19741_v20 }
  0xd9   :  { %16713 = vmatpush3.bf16.msra.mxu0 %v18041_v25  ;;  %v19743_v25 = vld [vmem:[%s23522_s29 + $0x14] sm:$0xff] }
  0xda   :  { %16714 = vmatprep.subr.bf16.mxu0 %v18042_v33  ;;  %v1758_v26 = vpack.c.bf16 %v19743_v25, %v19742_v24 }
  0xdc   :  { %16707 = vmatmul.mubr.msk.bf16.gmra.mrb[4].mxu0 %vm185_vm0, %v1076_v36  ;;  %v19746_v36 = vld [vmem:[%s23522_s29 + $0x2c] sm:$0xff] }
  0xdd   :  { %16715 = vmatpush3.bf16.msra.mxu0 %v18042_v33  ;;  %16720 = vmatprep.mubr.msk.bf16.mxu0 %vm185_vm0, %v1210_v42  ;;  %v19723_v42 = vld [vmem:[%s23522_s29 + $0x9] sm:$0xff] }
  0xde   :  { %16716 = vmatprep.subr.bf16.mxu0 %v18043_v34  ;;  %v1347_v35 = vpack.c.bf16 %v19724_v30, %v19723_v42  ;;  %v19745_v33 = vld [vmem:[%s23522_s29 + $0x24] sm:$0xff]  ;;  %v18067_v42 = vld [vmem:[%s23523_s3 + $0x30] sm:$0xff]   ;;  %v18068_v30 = vld [vmem:[%s23523_s3 + $0x38] sm:$0xff]  }
  0xe1   :  { %16717 = vmatpush3.bf16.msra.mxu0 %v18043_v34  ;;  %v1759_v34 = vpack.c.bf16 %v19745_v33, %v19744_v32  ;;  %v18070_v33 = vld [vmem:[%s23523_s3 + $0x8] sm:$0xff]  }
  0xe2   :  { %16718 = vmatprep.subr.bf16.mxu0 %v18044_v37 }
  0xe5   :  { %16719 = vmatpush3.bf16.msra.mxu0 %v18044_v37  ;;  %v19747_v37 = vld [vmem:[%s23522_s29 + $0x34] sm:$0xff] }
  0xe6   :  { %16728 = vmatprep.subr.bf16.mxu0 %v18045_v38 }
  0xe8   :  { %16721 = vmatmul.mubr.msk.bf16.vlgmr.msra.gmra.mrb[0].mxu0 %vm185_vm0, %v1211_v44  ;;  %v18049_v44 = vld [vmem:[%s23521_s24 + $0x188] sm:$0xff]  }
  0xe9   :  { %16729 = vmatpush3.bf16.msra.mxu0 %v18045_v38  ;;  %16724 = vmatprep.mubr.msk.bf16.mxu0 %vm185_vm0, %v1212_v56  ;;  %v18050_v56 = vld [vmem:[%s23521_s24 + $0x190] sm:$0xff]   ;;  %v1760_v38 = vpack.c.bf16 %v19747_v37, %v19746_v36  ;;  %v18072_v36 = vld [vmem:[%s23523_s3 + $0x18] sm:$0xff]  }
  0xea   :  { %16730 = vmatprep.subr.bf16.mxu0 %v18046_v39 }
  0xed   :  { %16731 = vmatpush3.bf16.msra.mxu0 %v18046_v39  ;;  %v1747_v39 = vld [vmem:[%s23522_s29 + $0x44] sm:$0xff] }
  0xee   :  { %16732 = vmatprep.subr.bf16.mxu0 %v18047_v21 }
  0xf0   :  { %16725 = vmatmul.mubr.msk.bf16.gmra.mrb[4].mxu0 %vm185_vm0, %v1213_v29  ;;  %v18066_v29 = vld [vmem:[%s23523_s3 + $0x28] sm:$0xff]  }
  0xf1   :  { %16733 = vmatpush3.bf16.msra.mxu0 %v18047_v21  ;;  %16738 = vmatprep.mubr.msk.bf16.mxu0 %vm185_vm0, %v1347_v35  ;;  %v1761_v21 = vpack.c.bf16 %v1747_v39, %v19748_v40  ;;  %v14827_v35 = vld [vmem:[%s23524_s27] ss:$0 sm:$0xff]  ;;  %v18074_v40 = vld [vmem:[%s23523_s3 + $0x48] sm:$0xff]  }
  0xf2   :  { %16734 = vmatprep.subr.bf16.mxu0 %v18048_v27 }
  0xf5   :  { %16735 = vmatpush3.bf16.msra.mxu0 %v18048_v27  ;;  %v18065_v27 = vld [vmem:[%s23523_s3 + $0x20] sm:$0xff]  }
  0xf6   :  { %16736 = vmatprep.subr.bf16.mxu0 %v18049_v44  ;;  %16801 = vmatpush3.bf16.msra.mxu1 %v18065_v27  ;;  %v18075_v27 = vld [vmem:[%s23523_s3 + $0x50] sm:$0xff]  }
  0xf7   :  { %16802 = vmatprep.subr.bf16.mxu1 %v19805_v28 }
  0xf9   :  { %16737 = vmatpush3.bf16.msra.mxu0 %v18049_v44  ;;  %v14828_v44 = vld [vmem:[%s23525_s23] ss:$0 sm:$0xff] }
  0xfa   :  { %16746 = vmatprep.subr.bf16.mxu0 %v18050_v56  ;;  %16803 = vmatpush3.bf16.msra.mxu1 %v18066_v29  ;;  %v18076_v29 = vld [vmem:[%s23523_s3 + $0x58] sm:$0xff]  }
  0xfb   :  { %16804 = vmatprep.subr.bf16.mxu1 %v19805_v28 }
  0xfc   :  { %16739 = vmatmul.mubr.msk.bf16.vlgmr.msra.gmra.mrb[0].mxu0 %vm185_vm0, %v1348_v63  ;;  %v1484_v63 = vpack.c.bf16 %v19729_v12, %v19728_v11 }
  0xfd   :  { %16747 = vmatpush3.bf16.msra.mxu0 %v18050_v56  ;;  %16742 = vmatprep.mubr.msk.bf16.mxu0 %vm185_vm0, %v1349_v46 }
  0xfe   :  { %16748 = vmatprep.subr.bf16.mxu0 %v18051_v41  ;;  %16805 = vmatpush3.bf16.msra.mxu1 %v18067_v42 }
  0xff   :  { %16806 = vmatprep.subr.bf16.mxu1 %v19805_v28 }
 0x101   :  { %16749 = vmatpush3.bf16.msra.mxu0 %v18051_v41 }
 0x102   :  { %16750 = vmatprep.subr.bf16.mxu0 %v18052_v48  ;;  %16807 = vmatpush3.bf16.msra.mxu1 %v18068_v30 }
 0x103   :  { %16812 = vmatprep.subr.bf16.mxu1 %v19805_v28 }
 0x104   :  { %16743 = vmatmul.mubr.msk.bf16.gmra.mrb[4].mxu0 %vm185_vm0, %v1350_v51 }
 0x105   :  { %16751 = vmatpush3.bf16.msra.mxu0 %v18052_v48  ;;  %16756 = vmatprep.mubr.msk.bf16.mxu0 %vm185_vm0, %v1484_v63 }
 0x106   :  { %16752 = vmatprep.subr.bf16.mxu0 %v18053_v49 }
 0x109   :  { %16753 = vmatpush3.bf16.msra.mxu0 %v18053_v49 }
 0x10a   :  { %16754 = vmatprep.subr.bf16.mxu0 %v18054_v52 }
 0x10d   :  { %16755 = vmatpush3.bf16.msra.mxu0 %v18054_v52 }
 0x10e   :  { %16764 = vmatprep.subr.bf16.mxu0 %v18055_v53 }
 0x110   :  { %16757 = vmatmul.mubr.msk.bf16.vlgmr.msra.gmra.mrb[0].mxu0 %vm185_vm0, %v1485_v57 }
 0x111   :  { %16765 = vmatpush3.bf16.msra.mxu0 %v18055_v53  ;;  %16760 = vmatprep.mubr.msk.bf16.mxu0 %vm185_vm0, %v1486_v61 }
 0x112   :  { %16766 = vmatprep.subr.bf16.mxu0 %v18056_v58 }
 0x115   :  { %16767 = vmatpush3.bf16.msra.mxu0 %v18056_v58 }
 0x116   :  { %16768 = vmatprep.subr.bf16.mxu0 %v18057_v0 }
 0x118   :  { %16761 = vmatmul.mubr.msk.bf16.gmra.mrb[4].mxu0 %vm185_vm0, %v1487_v3 }
 0x119   :  { %16769 = vmatpush3.bf16.msra.mxu0 %v18057_v0  ;;  %16774 = vmatprep.mubr.msk.bf16.mxu0 %vm185_vm0, %v1621_v6 }
 0x11a   :  { %16770 = vmatprep.subr.bf16.mxu0 %v18058_v1 }
 0x11d   :  { %16771 = vmatpush3.bf16.msra.mxu0 %v18058_v1 }
 0x11e   :  { %16772 = vmatprep.subr.bf16.mxu0 %v18059_v7 }
 0x121   :  { %16773 = vmatpush3.bf16.msra.mxu0 %v18059_v7 }
 0x122   :  { %16782 = vmatprep.subr.bf16.mxu0 %v18060_v8 }
 0x124   :  { %16775 = vmatmul.mubr.msk.bf16.vlgmr.msra.gmra.mrb[0].mxu0 %vm185_vm0, %v1622_v13 }
 0x125   :  { %16783 = vmatpush3.bf16.msra.mxu0 %v18060_v8  ;;  %16778 = vmatprep.mubr.msk.bf16.mxu0 %vm185_vm0, %v1623_v17 }
 0x126   :  { %16784 = vmatprep.subr.bf16.mxu0 %v18061_v14 }
 0x129   :  { %16785 = vmatpush3.bf16.msra.mxu0 %v18061_v14 }
 0x12a   :  { %16786 = vmatprep.subr.bf16.mxu0 %v18062_v19 }
 0x12c   :  { %16779 = vmatmul.mubr.msk.bf16.gmra.mrb[4].mxu0 %vm185_vm0, %v1624_v22 }
 0x12d   :  { %16787 = vmatpush3.bf16.msra.mxu0 %v18062_v19  ;;  %16792 = vmatprep.mubr.msk.bf16.mxu0 %vm185_vm0, %v1758_v26 }
 0x12e   :  { %16788 = vmatprep.subr.bf16.mxu0 %v18063_v23 }
 0x131   :  { %16789 = vmatpush3.bf16.msra.mxu0 %v18063_v23 }
 0x132   :  { %16790 = vmatprep.subr.bf16.mxu0 %v18064_v31 }
 0x135   :  { %16791 = vmatpush3.bf16.msra.mxu0 %v18064_v31  ;;  %v18069_v31 = vld [vmem:[%s23523_s3] sm:$0xff]  }
 0x138   :  { %16793 = vmatmul.mubr.msk.bf16.vlgmr.msra.gmra.mrb[0].mxu0 %vm185_vm0, %v1759_v34  ;;  %v18071_v34 = vld [vmem:[%s23523_s3 + $0x10] sm:$0xff]  }
 0x139   :  { %16796 = vmatprep.mubr.msk.bf16.mxu0 %vm185_vm0, %v1760_v38  ;;  %v18073_v38 = vld [vmem:[%s23523_s3 + $0x40] sm:$0xff]  }
 0x140   :  { %16797 = vmatmul.mubr.msk.bf16.gmra.mrb[4].mxu0 %vm185_vm0, %v1761_v21  ;;  %v20612_v21 = vld [vmem:[#allocation4] sm:$0xff] }
 0x20b   :  { %v16794_v56 = vpop.f32.mrb[0].mxu0 }
 0x20c   :  { %v1886_v41 = vmul.f32 %v16794_v56, %v14827_v35  ;;  %v1838_v43 = vpop.f32.mrb[1].mxu0  ;;  %v18080_v56 = vld [vmem:[%s23523_s3 + $0x78] sm:$0xff]  }
 0x20d   :  { %v1884_v45 = vmul.f32 %v14827_v35, %v1838_v43  ;;  %v16795_v46 = vpop.f32.mrb[2].mxu0  ;;  %v18081_v43 = vld [vmem:[%s23523_s3 + $0x80] sm:$0xff]  }
 0x20e   :  { %v1901_v47 = vadd.f32 %v14828_v44, %v1886_v41  ;;  %v1887_v48 = vmul.f32 %v16795_v46, %v14827_v35  ;;  %v1841_v49 = vpop.f32.mrb[3].mxu0  ;;  %v18082_v46 = vld [vmem:[%s23523_s3 + $0x88] sm:$0xff]  }
 0x20f   :  { %v1899_v50 = vadd.f32 %v14828_v44, %v1884_v45  ;;  %v1885_v51 = vmul.f32 %v14827_v35, %v1841_v49 }
 0x210   :  { %v1909_v11 = vmax.f32 %v1901_v47, 0.0  ;;  %v1902_v12 = vadd.f32 %v14828_v44, %v1887_v48  ;;  %v18083_v47 = vld [vmem:[%s23523_s3 + $0x90] sm:$0xff]   ;;  %v18084_v48 = vld [vmem:[%s23523_s3 + $0x98] sm:$0xff]  }
 0x211   :  { %v1907_v63 = vmax.f32 %v1899_v50, 0.0  ;;  %v1900_v52 = vadd.f32 %v14828_v44, %v1885_v51  ;;  %v18085_v50 = vld [vmem:[%s23523_s3 + $0xa0] sm:$0xff]  }
 0x212   :  { %1917 = vst.msk [vmem:[#allocation2 + $0x10] sm:$0xff] %vm96_vm1, %v1909_v11  ;;  %v1910_v53 = vmax.f32 %v1902_v12, 0.0  ;;  %v18086_v11 = vld [vmem:[%s23523_s3 + $0xa8] sm:$0xff]   ;;  %v18087_v12 = vld [vmem:[%s23523_s3 + $0xb0] sm:$0xff]  }
 0x213   :  { %1915 = vst.msk [vmem:[#allocation2] sm:$0xff] %vm96_vm1, %v1907_v63  ;;  %v1908_v54 = vmax.f32 %v1900_v52, 0.0  ;;  %v16798_v55 = vpop.f32.mrb[4].mxu0  ;;  %v18088_v63 = vld [vmem:[%s23523_s3 + $0xb8] sm:$0xff]  }
 0x214   :  { %1918 = vst.msk [vmem:[#allocation2 + $0x18] sm:$0xff] %vm96_vm1, %v1910_v53  ;;  %v1890_v57 = vmul.f32 %v16798_v55, %v14827_v35  ;;  %v1854_v58 = vpop.f32.mrb[5].mxu0  ;;  %v18089_v53 = vld [vmem:[%s23523_s3 + $0xc0] sm:$0xff]   ;;  %v18090_v55 = vld [vmem:[%s23523_s3 + $0xc8] sm:$0xff]  }
 0x215   :  { %1916 = vst.msk [vmem:[#allocation2 + $0x8] sm:$0xff] %vm96_vm1, %v1908_v54  ;;  %v1888_v59 = vmul.f32 %v14827_v35, %v1854_v58  ;;  %v16799_v60 = vpop.f32.mrb[6].mxu0  ;;  %v18092_v58 = vld [vmem:[%s23523_s3 + $0xd8] sm:$0xff]  }
 0x216   :  { %v1905_v61 = vadd.f32 %v14828_v44, %v1890_v57  ;;  %v1891_v62 = vmul.f32 %v16799_v60, %v14827_v35  ;;  %v1857_v0 = vpop.f32.mrb[7].mxu0  ;;  %v18091_v57 = vld [vmem:[%s23523_s3 + $0xd0] sm:$0xff]   ;;  %v18093_v60 = vld [vmem:[%s23523_s3 + $0xe0] sm:$0xff]  }
 0x217   :  { %v1903_v1 = vadd.f32 %v14828_v44, %v1888_v59  ;;  %v1889_v2 = vmul.f32 %v14827_v35, %v1857_v0  ;;  %v18078_v35 = vld [vmem:[%s23523_s3 + $0x68] sm:$0xff]   ;;  %v18095_v0 = vld [vmem:[%s23523_s3 + $0xf0] sm:$0xff]  }
 0x218   :  { %v1913_v3 = vmax.f32 %v1905_v61, 0.0  ;;  %v1906_v4 = vadd.f32 %v14828_v44, %v1891_v62  ;;  %v18094_v62 = vld [vmem:[%s23523_s3 + $0xe8] sm:$0xff]  }
 0x219   :  { %v1911_v5 = vmax.f32 %v1903_v1, 0.0  ;;  %v1904_v6 = vadd.f32 %v14828_v44, %v1889_v2  ;;  %v18079_v44 = vld [vmem:[%s23523_s3 + $0x70] sm:$0xff]   ;;  %v18096_v1 = vld [vmem:[%s23523_s3 + $0xf8] sm:$0xff]  }
 0x21a   :  { %1921 = vst.msk [vmem:[#allocation2 + $0x30] sm:$0xff] %vm96_vm1, %v1913_v3  ;;  %v1914_v7 = vmax.f32 %v1906_v4, 0.0  ;;  %v18097_v3 = vld [vmem:[%s23523_s3 + $0x100] sm:$0xff]  }
 0x21b   :  { %1919 = vst.msk [vmem:[#allocation2 + $0x20] sm:$0xff] %vm96_vm1, %v1911_v5  ;;  %v1912_v8 = vmax.f32 %v1904_v6, 0.0  ;;  %v18098_v5 = vld [vmem:[%s23523_s3 + $0x108] sm:$0xff]   ;;  %v18099_v6 = vld [vmem:[%s23523_s3 + $0x110] sm:$0xff]  }
 0x21c   :  { %v1923_v9 = vld [vmem:[#allocation2] ss:$4 sm:$0xff]  ;;  %v1927_v10 = vld [vmem:[#allocation2 + $0x1] ss:$4 sm:$0xff]  ;;  %1922 = vst.msk [vmem:[#allocation2 + $0x38] sm:$0xff] %vm96_vm1, %v1914_v7 }
 0x21d   :  { %v1930_v13 = vmax.f32 %v1923_v9, %v1927_v10  ;;  %v1933_v14 = vld [vmem:[#allocation2 + $0x2] ss:$4 sm:$0xff]  ;;  %1920 = vst.msk [vmem:[#allocation2 + $0x28] sm:$0xff] %vm96_vm1, %v1912_v8  ;;  %v1939_v16 = vld [vmem:[#allocation2 + $0x3] ss:$4 sm:$0xff] }
 0x21e   :  { %v18100_v7 = vld [vmem:[%s23523_s3 + $0x118] sm:$0xff]   ;;  %v18101_v9 = vld [vmem:[%s23523_s3 + $0x120] sm:$0xff]  }
 0x21f   :  { %v1936_v15 = vmax.f32 %v1930_v13, %v1933_v14  ;;  %v18102_v13 = vld [vmem:[%s23523_s3 + $0x128] sm:$0xff]   ;;  %v18103_v14 = vld [vmem:[%s23523_s3 + $0x130] sm:$0xff]  }
 0x221   :  { %v1942_v17 = vmax.f32 %v1936_v15, %v1939_v16  ;;  %v18104_v15 = vld [vmem:[%s23523_s3 + $0x138] sm:$0xff]  }
 0x223   :  { %1944 = vst.msk [vmem:[#allocation3 + $0xa] sm:$0xff] %vm96_vm1, %v1942_v17  ;;  %v18105_v17 = vld [vmem:[%s23523_s3 + $0x140] sm:$0xff]  }
 0x224   :  { %v1925_v18 = vld [vmem:[#allocation2 + $0x20] ss:$4 sm:$0xff]  ;;  %v1929_v19 = vld [vmem:[#allocation2 + $0x21] ss:$4 sm:$0xff]  ;;  %v1935_v22 = vld [vmem:[#allocation2 + $0x22] ss:$4 sm:$0xff] }
 0x225   :  { %v1931_v20 = vmax.f32 %v1925_v18, %v1929_v19  ;;  %v1941_v24 = vld [vmem:[#allocation2 + $0x23] ss:$4 sm:$0xff] }
 0x226   :  { %v18106_v19 = vld [vmem:[%s23523_s3 + $0x148] sm:$0xff]  }
 0x227   :  { %v1937_v23 = vmax.f32 %v1931_v20, %v1935_v22  ;;  %v18107_v20 = vld [vmem:[%s23523_s3 + $0x150] sm:$0xff]   ;;  %v18108_v22 = vld [vmem:[%s23523_s3 + $0x158] sm:$0xff]  }
 0x229   :  { %v1943_v25 = vmax.f32 %v1937_v23, %v1941_v24  ;;  %v18109_v24 = vld [vmem:[%s23523_s3 + $0x160] sm:$0xff]  }
 0x22a   :  { %v1957_v26 = vld [vmem:[#allocation3 + $0x1] ss:$2 sm:$0xff]  ;;  %v1946_v37 = vld [vmem:[#allocation3] ss:$2 sm:$0xff] }
 0x22b   :  { %1945 = vst.msk [vmem:[#allocation3 + $0x12] sm:$0xff] %vm96_vm1, %v1943_v25  ;;  %v1966_v32 = vpack.c.bf16 %v1957_v26, %v1957_v26  ;;  %v1955_v39 = vpack.c.bf16 %v1946_v37, %v1946_v37  ;;  %v2102_v42 = vld [vmem:[#allocation3 + $0x2] ss:$2 sm:$0xff]  ;;  %v2181_v41 = vld [vmem:[#allocation3 + $0x3] ss:$2 sm:$0xff] }
 0x22c   :  { %v2111_v30 = vpack.c.bf16 %v2102_v42, %v2102_v42  ;;  %v2190_v45 = vpack.c.bf16 %v2181_v41, %v2181_v41  ;;  %v18110_v26 = vld [vmem:[%s23523_s3 + $0x168] sm:$0xff]  }
 0x22d   :  { %16809 = vmatmul.mubr.msk.bf16.vlgmr.msra.gmra.mrb[0].mxu1 %vm96_vm1, %v1966_v32  ;;  %v18112_v32 = vld [vmem:[%s23523_s3 + $0x178] sm:$0xff]   ;;  %v18114_v37 = vld [vmem:[%s23523_s3 + $0x188] sm:$0xff]  }
 0x22e   :  { %16813 = vmatpush3.bf16.msra.mxu1 %v18069_v31  ;;  %16820 = vmatprep.mubr.msk.bf16.mxu1 %vm19806_vm2, %v19805_v28  ;;  %v18111_v31 = vld [vmem:[%s23523_s3 + $0x170] sm:$0xff]   ;;  %v18118_v42 = vld [vmem:[%s23523_s3 + $0x1a8] sm:$0xff]  }
 0x22f   :  { %16814 = vmatprep.subr.bf16.mxu1 %v19805_v28  ;;  %v18122_v41 = vld [vmem:[%s23523_s3 + $0x1c8] sm:$0xff]  }
 0x232   :  { %16815 = vmatpush3.bf16.msra.mxu1 %v18070_v33  ;;  %v2260_v49 = vld [vmem:[#allocation3 + $0x4] ss:$2 sm:$0xff]  ;;  %v2339_v52 = vld [vmem:[#allocation3 + $0x5] ss:$2 sm:$0xff] }
 0x233   :  { %16816 = vmatprep.subr.bf16.mxu1 %v19805_v28  ;;  %v2269_v51 = vpack.c.bf16 %v2260_v49, %v2260_v49  ;;  %v2348_v54 = vpack.c.bf16 %v2339_v52, %v2339_v52  ;;  %v2418_v59 = vld [vmem:[#allocation3 + $0x6] ss:$2 sm:$0xff]  ;;  %v2497_v2 = vld [vmem:[#allocation3 + $0x7] ss:$2 sm:$0xff] }
 0x234   :  { %v2427_v61 = vpack.c.bf16 %v2418_v59, %v2418_v59  ;;  %v2506_v4 = vpack.c.bf16 %v2497_v2, %v2497_v2  ;;  %v2576_v8 = vld [vmem:[#allocation3 + $0x8] ss:$2 sm:$0xff]  ;;  %v2655_v16 = vld [vmem:[#allocation3 + $0x9] ss:$2 sm:$0xff] }
 0x235   :  { %v2585_v10 = vpack.c.bf16 %v2576_v8, %v2576_v8  ;;  %v2664_v18 = vpack.c.bf16 %v2655_v16, %v2655_v16  ;;  %v2734_v23 = vld [vmem:[#allocation3 + $0xa] ss:$2 sm:$0xff]  ;;  %v2813_v33 = vld [vmem:[#allocation3 + $0xb] ss:$2 sm:$0xff] }
 0x236   :  { %16817 = vmatpush3.bf16.msra.mxu1 %v18071_v34  ;;  %v2743_v25 = vpack.c.bf16 %v2734_v23, %v2734_v23  ;;  %v18113_v34 = vld [vmem:[%s23523_s3 + $0x180] sm:$0xff]   ;;  %v18126_v49 = vld [vmem:[%s23523_s3 + $0x1e8] sm:$0xff]  }
 0x237   :  { %16818 = vmatprep.subr.bf16.mxu1 %v19805_v28  ;;  %v18130_v52 = vld [vmem:[%s23523_s3 + $0x208] sm:$0xff]   ;;  %v3524_v23 = vld [vmem:[#allocation3 + $0x14] ss:$2 sm:$0xff] }
 0x238   :  { %v18134_v59 = vld [vmem:[%s23523_s3 + $0x228] sm:$0xff]  }
 0x239   :  { %v18138_v2 = vld [vmem:[%s23523_s3 + $0x248] sm:$0xff]  }
 0x23a   :  { %16819 = vmatpush3.bf16.msra.mxu1 %v18072_v36  ;;  %v2822_v36 = vpack.c.bf16 %v2813_v33, %v2813_v33  ;;  %v18142_v8 = vld [vmem:[%s23523_s3 + $0x268] sm:$0xff]  }
 0x23b   :  { %16824 = vmatprep.subr.bf16.mxu1 %v19805_v28  ;;  %v18146_v16 = vld [vmem:[%s23523_s3 + $0x288] sm:$0xff]  }
 0x23c   :  { %v20994_v33 = vld [vmem:[%s23522_s29 + $0x61] sm:$0xff] }
 0x23d   :  { %16821 = vmatmul.mubr.msk.bf16.vlgmr.msra.gmra.mrb[0].mxu1 %vm96_vm1, %v1955_v39  ;;  %v18116_v39 = vld [vmem:[%s23523_s3 + $0x198] sm:$0xff]  }
 0x23e   :  { %16825 = vmatpush3.bf16.msra.mxu1 %v18073_v38  ;;  %16832 = vmatprep.mubr.msk.bf16.mxu1 %vm19806_vm2, %v19805_v28  ;;  %v18077_v28 = vld [vmem:[%s23523_s3 + $0x60] sm:$0xff]   ;;  %v18115_v38 = vld [vmem:[%s23523_s3 + $0x190] sm:$0xff]  }
 0x23f   :  { %16826 = vmatprep.subr.bf16.mxu1 %v20612_v21 }
 0x242   :  { %16827 = vmatpush3.bf16.msra.mxu1 %v18074_v40  ;;  %v2892_v40 = vld [vmem:[#allocation3 + $0xc] ss:$2 sm:$0xff] }
 0x243   :  { %16828 = vmatprep.subr.bf16.mxu1 %v20612_v21 }
 0x246   :  { %16829 = vmatpush3.bf16.msra.mxu1 %v18075_v27  ;;  %v18117_v27 = vld [vmem:[%s23523_s3 + $0x1a0] sm:$0xff]  }
 0x247   :  { %16830 = vmatprep.subr.bf16.mxu1 %v20612_v21 }
 0x24a   :  { %16831 = vmatpush3.bf16.msra.mxu1 %v18076_v29  ;;  %v2901_v29 = vpack.c.bf16 %v2892_v40, %v2892_v40 }
 0x24b   :  { %16836 = vmatprep.subr.bf16.mxu1 %v20612_v21 }
 0x24d   :  { %16833 = vmatmul.mubr.msk.bf16.vlgmr.msra.gmra.mrb[0].mxu1 %vm96_vm1, %v2111_v30  ;;  %v18120_v30 = vld [vmem:[%s23523_s3 + $0x1b8] sm:$0xff]  }
 0x24e   :  { %16837 = vmatpush3.bf16.msra.mxu1 %v18077_v28  ;;  %16844 = vmatprep.mubr.msk.bf16.mxu1 %vm19806_vm2, %v20612_v21  ;;  %v18119_v28 = vld [vmem:[%s23523_s3 + $0x1b0] sm:$0xff]  }
 0x24f   :  { %16838 = vmatprep.subr.bf16.mxu1 %v20612_v21 }
 0x252   :  { %16839 = vmatpush3.bf16.msra.mxu1 %v18078_v35  ;;  %v2971_v35 = vld [vmem:[#allocation3 + $0xd] ss:$2 sm:$0xff] }
 0x253   :  { %16840 = vmatprep.subr.bf16.mxu1 %v20612_v21 }
 0x256   :  { %16841 = vmatpush3.bf16.msra.mxu1 %v18079_v44  ;;  %v18121_v44 = vld [vmem:[%s23523_s3 + $0x1c0] sm:$0xff]  }
 0x257   :  { %16842 = vmatprep.subr.bf16.mxu1 %v20612_v21 }
 0x25a   :  { %16843 = vmatpush3.bf16.msra.mxu1 %v18080_v56  ;;  %v2980_v56 = vpack.c.bf16 %v2971_v35, %v2971_v35  ;;  %v21042_v35 = vld [vmem:[%s23522_s29 + $0x58] sm:$0xff] }
 0x25b   :  { %16848 = vmatprep.subr.bf16.mxu1 %v20612_v21 }
 0x25d   :  { %16845 = vmatmul.mubr.msk.bf16.vlgmr.msra.gmra.mrb[0].mxu1 %vm96_vm1, %v2190_v45  ;;  %v18124_v45 = vld [vmem:[%s23523_s3 + $0x1d8] sm:$0xff]  }
 0x25e   :  { %16849 = vmatpush3.bf16.msra.mxu1 %v18081_v43  ;;  %16856 = vmatprep.mubr.msk.bf16.mxu1 %vm19806_vm2, %v20612_v21  ;;  %v18123_v43 = vld [vmem:[%s23523_s3 + $0x1d0] sm:$0xff]  }
 0x25f   :  { %16850 = vmatprep.subr.bf16.mxu1 %v20612_v21 }
 0x262   :  { %16851 = vmatpush3.bf16.msra.mxu1 %v18082_v46  ;;  %v3050_v46 = vld [vmem:[#allocation3 + $0xe] ss:$2 sm:$0xff] }
 0x263   :  { %16852 = vmatprep.subr.bf16.mxu1 %v20612_v21 }
 0x266   :  { %16853 = vmatpush3.bf16.msra.mxu1 %v18083_v47  ;;  %v18125_v47 = vld [vmem:[%s23523_s3 + $0x1e0] sm:$0xff]  }
 0x267   :  { %16854 = vmatprep.subr.bf16.mxu1 %v20612_v21 }
 0x26a   :  { %16855 = vmatpush3.bf16.msra.mxu1 %v18084_v48  ;;  %v3059_v48 = vpack.c.bf16 %v3050_v46, %v3050_v46  ;;  %v21063_v46 = vld [vmem:[%s23522_s29 + $0x68] sm:$0xff] }
 0x26b   :  { %16860 = vmatprep.subr.bf16.mxu1 %v20612_v21 }
 0x26d   :  { %16857 = vmatmul.mubr.msk.bf16.vlgmr.msra.gmra.mrb[0].mxu1 %vm96_vm1, %v2269_v51  ;;  %v18128_v51 = vld [vmem:[%s23523_s3 + $0x1f8] sm:$0xff]  }
 0x26e   :  { %16861 = vmatpush3.bf16.msra.mxu1 %v18085_v50  ;;  %16868 = vmatprep.mubr.msk.bf16.mxu1 %vm19806_vm2, %v20612_v21  ;;  %v18127_v50 = vld [vmem:[%s23523_s3 + $0x1f0] sm:$0xff]  }
 0x26f   :  { %16862 = vmatprep.subr.bf16.mxu1 %v20612_v21 }
 0x272   :  { %16863 = vmatpush3.bf16.msra.mxu1 %v18086_v11  ;;  %v3129_v11 = vld [vmem:[#allocation3 + $0xf] ss:$2 sm:$0xff] }
 0x273   :  { %16864 = vmatprep.subr.bf16.mxu1 %v20612_v21 }
 0x276   :  { %16865 = vmatpush3.bf16.msra.mxu1 %v18087_v12  ;;  %v18129_v12 = vld [vmem:[%s23523_s3 + $0x200] sm:$0xff]  }
 0x277   :  { %16866 = vmatprep.subr.bf16.mxu1 %v20612_v21 }
 0x27a   :  { %16867 = vmatpush3.bf16.msra.mxu1 %v18088_v63  ;;  %v3138_v63 = vpack.c.bf16 %v3129_v11, %v3129_v11  ;;  %v18160_v11 = vld [vmem:[%s23521_s24 + $0x58] sm:$0xff]  }
 0x27b   :  { %16872 = vmatprep.subr.bf16.mxu1 %v20612_v21 }
 0x27d   :  { %16869 = vmatmul.mubr.msk.bf16.vlgmr.msra.gmra.mrb[0].mxu1 %vm96_vm1, %v2348_v54  ;;  %v18132_v54 = vld [vmem:[%s23523_s3 + $0x218] sm:$0xff]  }
 0x27e   :  { %16873 = vmatpush3.bf16.msra.mxu1 %v18089_v53  ;;  %16880 = vmatprep.mubr.msk.bf16.mxu1 %vm19806_vm2, %v20612_v21  ;;  %v18131_v53 = vld [vmem:[%s23523_s3 + $0x210] sm:$0xff]  }
 0x27f   :  { %16874 = vmatprep.subr.bf16.mxu1 %v20612_v21 }
 0x282   :  { %16875 = vmatpush3.bf16.msra.mxu1 %v18090_v55  ;;  %v3208_v55 = vld [vmem:[#allocation3 + $0x10] ss:$2 sm:$0xff] }
 0x283   :  { %16876 = vmatprep.subr.bf16.mxu1 %v20612_v21 }
 0x286   :  { %16877 = vmatpush3.bf16.msra.mxu1 %v18091_v57  ;;  %v18133_v57 = vld [vmem:[%s23523_s3 + $0x220] sm:$0xff]  }
 0x287   :  { %16878 = vmatprep.subr.bf16.mxu1 %v20612_v21 }
 0x28a   :  { %16879 = vmatpush3.bf16.msra.mxu1 %v18092_v58  ;;  %v3217_v58 = vpack.c.bf16 %v3208_v55, %v3208_v55 }
 0x28b   :  { %16884 = vmatprep.subr.bf16.mxu1 %v20612_v21 }
 0x28d   :  { %16881 = vmatmul.mubr.msk.bf16.vlgmr.msra.gmra.mrb[0].mxu1 %vm96_vm1, %v2427_v61  ;;  %v18136_v61 = vld [vmem:[%s23523_s3 + $0x238] sm:$0xff]  }
 0x28e   :  { %16885 = vmatpush3.bf16.msra.mxu1 %v18093_v60  ;;  %16892 = vmatprep.mubr.msk.bf16.mxu1 %vm19806_vm2, %v20612_v21  ;;  %v18135_v60 = vld [vmem:[%s23523_s3 + $0x230] sm:$0xff]  }
 0x28f   :  { %16886 = vmatprep.subr.bf16.mxu1 %v20612_v21 }
 0x292   :  { %16887 = vmatpush3.bf16.msra.mxu1 %v18094_v62  ;;  %v3287_v62 = vld [vmem:[#allocation3 + $0x11] ss:$2 sm:$0xff] }
 0x293   :  { %16888 = vmatprep.subr.bf16.mxu1 %v20612_v21 }
 0x296   :  { %16889 = vmatpush3.bf16.msra.mxu1 %v18095_v0  ;;  %v18137_v0 = vld [vmem:[%s23523_s3 + $0x240] sm:$0xff]  }
 0x297   :  { %16890 = vmatprep.subr.bf16.mxu1 %v20612_v21 }
 0x29a   :  { %16891 = vmatpush3.bf16.msra.mxu1 %v18096_v1  ;;  %v3296_v1 = vpack.c.bf16 %v3287_v62, %v3287_v62  ;;  %v18164_v62 = vld [vmem:[%s23521_s24 + $0x78] sm:$0xff]  }
 0x29b   :  { %16896 = vmatprep.subr.bf16.mxu1 %v20612_v21 }
 0x29d   :  { %16893 = vmatmul.mubr.msk.bf16.vlgmr.msra.gmra.mrb[0].mxu1 %vm96_vm1, %v2506_v4  ;;  %v18140_v4 = vld [vmem:[%s23523_s3 + $0x258] sm:$0xff]  }
 0x29e   :  { %16897 = vmatpush3.bf16.msra.mxu1 %v18097_v3  ;;  %16904 = vmatprep.mubr.msk.bf16.mxu1 %vm19806_vm2, %v20612_v21  ;;  %v18139_v3 = vld [vmem:[%s23523_s3 + $0x250] sm:$0xff]  }
 0x29f   :  { %16898 = vmatprep.subr.bf16.mxu1 %v20612_v21 }
 0x2a2   :  { %16899 = vmatpush3.bf16.msra.mxu1 %v18098_v5  ;;  %v3366_v5 = vld [vmem:[#allocation3 + $0x12] ss:$2 sm:$0xff] }
 0x2a3   :  { %16900 = vmatprep.subr.bf16.mxu1 %v20612_v21 }
 0x2a6   :  { %16901 = vmatpush3.bf16.msra.mxu1 %v18099_v6  ;;  %v18141_v6 = vld [vmem:[%s23523_s3 + $0x260] sm:$0xff]  }
 0x2a7   :  { %16902 = vmatprep.subr.bf16.mxu1 %v20612_v21 }
 0x2aa   :  { %16903 = vmatpush3.bf16.msra.mxu1 %v18100_v7  ;;  %v3375_v7 = vpack.c.bf16 %v3366_v5, %v3366_v5  ;;  %v21154_v5 = vld [vmem:[%s23522_s29 + $0x82] sm:$0xff] }
 0x2ab   :  { %16908 = vmatprep.subr.bf16.mxu1 %v20612_v21 }
 0x2ad   :  { %16905 = vmatmul.mubr.msk.bf16.vlgmr.msra.gmra.mrb[0].mxu1 %vm96_vm1, %v2585_v10  ;;  %v18144_v10 = vld [vmem:[%s23523_s3 + $0x278] sm:$0xff]  }
 0x2ae   :  { %16909 = vmatpush3.bf16.msra.mxu1 %v18101_v9  ;;  %16916 = vmatprep.mubr.msk.bf16.mxu1 %vm19806_vm2, %v20612_v21  ;;  %v18143_v9 = vld [vmem:[%s23523_s3 + $0x270] sm:$0xff]  }
 0x2af   :  { %16910 = vmatprep.subr.bf16.mxu1 %v20612_v21 }
 0x2b2   :  { %16911 = vmatpush3.bf16.msra.mxu1 %v18102_v13  ;;  %v3445_v13 = vld [vmem:[#allocation3 + $0x13] ss:$2 sm:$0xff] }
 0x2b3   :  { %16912 = vmatprep.subr.bf16.mxu1 %v20612_v21 }
 0x2b6   :  { %16913 = vmatpush3.bf16.msra.mxu1 %v18103_v14  ;;  %v18145_v14 = vld [vmem:[%s23523_s3 + $0x280] sm:$0xff]  }
 0x2b7   :  { %16914 = vmatprep.subr.bf16.mxu1 %v20612_v21 }
 0x2ba   :  { %16915 = vmatpush3.bf16.msra.mxu1 %v18104_v15  ;;  %v3454_v15 = vpack.c.bf16 %v3445_v13, %v3445_v13 }
 0x2bb   :  { %16920 = vmatprep.subr.bf16.mxu1 %v20612_v21 }
 0x2bd   :  { %16917 = vmatmul.mubr.msk.bf16.vlgmr.msra.gmra.mrb[0].mxu1 %vm96_vm1, %v2664_v18  ;;  %v18148_v18 = vld [vmem:[%s23523_s3 + $0x298] sm:$0xff]  }
 0x2be   :  { %16921 = vmatpush3.bf16.msra.mxu1 %v18105_v17  ;;  %16928 = vmatprep.mubr.msk.bf16.mxu1 %vm19806_vm2, %v20612_v21  ;;  %v18147_v17 = vld [vmem:[%s23523_s3 + $0x290] sm:$0xff]  }
 0x2bf   :  { %16922 = vmatprep.subr.bf16.mxu1 %v20612_v21 }
 0x2c2   :  { %16923 = vmatpush3.bf16.msra.mxu1 %v18106_v19  ;;  %v18149_v19 = vld [vmem:[%s23521_s24 + $0x28] sm:$0xff]  }
 0x2c3   :  { %16924 = vmatprep.subr.bf16.mxu1 %v20612_v21 }
 0x2c6   :  { %16925 = vmatpush3.bf16.msra.mxu1 %v18107_v20  ;;  %v4986_v20 = vld [vmem:[%s23522_s29 + $0x51] sm:$0xff] }
 0x2c7   :  { %16926 = vmatprep.subr.bf16.mxu1 %v20612_v21 }
 0x2ca   :  { %16927 = vmatpush3.bf16.msra.mxu1 %v18108_v22  ;;  %v20974_v22 = vld [vmem:[%s23522_s29 + $0x59] sm:$0xff] }
 0x2cb   :  { %16932 = vmatprep.subr.bf16.mxu1 %v20612_v21 }
 0x2cd   :  { %16929 = vmatmul.mubr.msk.bf16.vlgmr.msra.gmra.mrb[0].mxu1 %vm96_vm1, %v2743_v25  ;;  %v3533_v25 = vpack.c.bf16 %v3524_v23, %v3524_v23  ;;  %v21191_v23 = vld [vmem:[%s23522_s29 + $0x6b] sm:$0xff] }
 0x2ce   :  { %16933 = vmatpush3.bf16.msra.mxu1 %v18109_v24  ;;  %16940 = vmatprep.mubr.msk.bf16.mxu1 %vm19806_vm2, %v20612_v21  ;;  %v5004_v24 = vpack.c.bf16 %v20974_v22, %v4986_v20  ;;  %v21186_v20 = vld [vmem:[%s23522_s29 + $0x63] sm:$0xff] }
 0x2cf   :  { %16934 = vmatprep.subr.bf16.mxu1 %v20612_v21 }
 0x2d2   :  { %16935 = vmatpush3.bf16.msra.mxu1 %v18110_v26  ;;  %v18151_v26 = vld [vmem:[%s23521_s24 + $0x38] sm:$0xff]  }
 0x2d3   :  { %16936 = vmatprep.subr.bf16.mxu1 %v20612_v21 }
 0x2d6   :  { %16937 = vmatpush3.bf16.msra.mxu1 %v18111_v31  ;;  %v18152_v31 = vld [vmem:[%s23521_s24 + $0x40] sm:$0xff]  }
 0x2d7   :  { %16938 = vmatprep.subr.bf16.mxu1 %v20612_v21 }
 0x2da   :  { %16939 = vmatpush3.bf16.msra.mxu1 %v18112_v32  ;;  %v18153_v32 = vld [vmem:[%s23521_s24 + $0x48] sm:$0xff]  }
 0x2db   :  { %16944 = vmatprep.subr.bf16.mxu1 %v20612_v21 }
 0x2dd   :  { %16941 = vmatmul.mubr.msk.bf16.vlgmr.msra.gmra.mrb[0].mxu1 %vm96_vm1, %v2822_v36  ;;  %v18154_v36 = vld [vmem:[%s23521_s24] sm:$0xff]  }
 0x2de   :  { %16945 = vmatpush3.bf16.msra.mxu1 %v18113_v34  ;;  %16952 = vmatprep.mubr.msk.bf16.mxu1 %vm19806_vm2, %v20612_v21  ;;  %v20999_v34 = vld [vmem:[%s23522_s29 + $0x69] sm:$0xff] }
 0x2df   :  { %16946 = vmatprep.subr.bf16.mxu1 %v20612_v21 }
 0x2e2   :  { %16947 = vmatpush3.bf16.msra.mxu1 %v18114_v37  ;;  %v21007_v37 = vld [vmem:[%s23522_s29 + $0x71] sm:$0xff] }
 0x2e3   :  { %16948 = vmatprep.subr.bf16.mxu1 %v20612_v21 }
 0x2e6   :  { %16949 = vmatpush3.bf16.msra.mxu1 %v18115_v38  ;;  %v21012_v38 = vld [vmem:[%s23522_s29 + $0x79] sm:$0xff] }
 0x2e7   :  { %16950 = vmatprep.subr.bf16.mxu1 %v20612_v21  ;;  %v5006_v40 = vpack.c.bf16 %v21012_v38, %v21007_v37 }
 0x2ea   :  { %16951 = vmatpush3.bf16.msra.mxu1 %v18116_v39  ;;  %v5005_v39 = vpack.c.bf16 %v20999_v34, %v20994_v33 }
 0x2eb   :  { %16956 = vmatprep.subr.bf16.mxu1 %v20612_v21 }
 0x2ed   :  { %16953 = vmatmul.mubr.msk.bf16.vlgmr.msra.gmra.mrb[0].mxu1 %vm96_vm1, %v2901_v29  ;;  %v21026_v29 = vld [vmem:[%s23522_s29 + $0x81] sm:$0xff] }
 0x2ee   :  { %16957 = vmatpush3.bf16.msra.mxu1 %v18117_v27  ;;  %16964 = vmatprep.mubr.msk.bf16.mxu1 %vm19806_vm2, %v20612_v21  ;;  %v18155_v27 = vld [vmem:[%s23521_s24 + $0x8] sm:$0xff]  }
 0x2ef   :  { %16958 = vmatprep.subr.bf16.mxu1 %v20612_v21 }
 0x2f2   :  { %16959 = vmatpush3.bf16.msra.mxu1 %v18118_v42  ;;  %v21031_v42 = vld [vmem:[%s23522_s29 + $0x89] sm:$0xff] }
 0x2f3   :  { %16960 = vmatprep.subr.bf16.mxu1 %v20612_v21 }
 0x2f6   :  { %16961 = vmatpush3.bf16.msra.mxu1 %v18119_v28  ;;  %v18156_v28 = vld [vmem:[%s23521_s24 + $0x10] sm:$0xff]  }
 0x2f7   :  { %16962 = vmatprep.subr.bf16.mxu1 %v20612_v21 }
 0x2fa   :  { %16963 = vmatpush3.bf16.msra.mxu1 %v18120_v30  ;;  %v4964_v30 = vld [vmem:[%s23522_s29 + $0x50] sm:$0xff] }
 0x2fb   :  { %16968 = vmatprep.subr.bf16.mxu1 %v20612_v21 }
 0x2fd   :  { %16965 = vmatmul.mubr.msk.bf16.vlgmr.msra.gmra.mrb[0].mxu1 %vm96_vm1, %v2980_v56  ;;  %v4982_v56 = vpack.c.bf16 %v21042_v35, %v4964_v30  ;;  %v21223_v30 = vld [vmem:[%s23522_s29 + $0x8b] sm:$0xff] }
 0x2fe   :  { %16969 = vmatpush3.bf16.msra.mxu1 %v18121_v44  ;;  %16976 = vmatprep.mubr.msk.bf16.mxu1 %vm19806_vm2, %v20612_v21  ;;  %v5007_v44 = vpack.c.bf16 %v21031_v42, %v21026_v29 }
 0x2ff   :  { %16970 = vmatprep.subr.bf16.mxu1 %v20612_v21 }
 0x302   :  { %16971 = vmatpush3.bf16.msra.mxu1 %v18122_v41  ;;  %v18157_v41 = vld [vmem:[%s23521_s24 + $0x18] sm:$0xff]  }
 0x303   :  { %16972 = vmatprep.subr.bf16.mxu1 %v20612_v21 }
 0x306   :  { %16973 = vmatpush3.bf16.msra.mxu1 %v18123_v43  ;;  %v18158_v43 = vld [vmem:[%s23521_s24 + $0x20] sm:$0xff]  }
 0x307   :  { %16974 = vmatprep.subr.bf16.mxu1 %v20612_v21 }
 0x30a   :  { %16975 = vmatpush3.bf16.msra.mxu1 %v18124_v45  ;;  %v21058_v45 = vld [vmem:[%s23522_s29 + $0x60] sm:$0xff] }
 0x30b   :  { %16980 = vmatprep.subr.bf16.mxu1 %v20612_v21 }
 0x30d   :  { %16977 = vmatmul.mubr.msk.bf16.vlgmr.msra.gmra.mrb[0].mxu1 %vm96_vm1, %v3059_v48  ;;  %v21071_v48 = vld [vmem:[%s23522_s29 + $0x70] sm:$0xff] }
 0x30e   :  { %16981 = vmatpush3.bf16.msra.mxu1 %v18125_v47  ;;  %16988 = vmatprep.mubr.msk.bf16.mxu1 %vm19806_vm2, %v20612_v21  ;;  %v18159_v47 = vld [vmem:[%s23521_s24 + $0x50] sm:$0xff]  }
 0x30f   :  { %16982 = vmatprep.subr.bf16.mxu1 %v20612_v21 }
 0x312   :  { %16983 = vmatpush3.bf16.msra.mxu1 %v18126_v49  ;;  %v21076_v49 = vld [vmem:[%s23522_s29 + $0x78] sm:$0xff] }
 0x313   :  { %16984 = vmatprep.subr.bf16.mxu1 %v20612_v21 }
 0x316   :  { %16985 = vmatpush3.bf16.msra.mxu1 %v18127_v50  ;;  %v4983_v50 = vpack.c.bf16 %v21063_v46, %v21058_v45 }
 0x317   :  { %16986 = vmatprep.subr.bf16.mxu1 %v20612_v21 }
 0x31a   :  { %16987 = vmatpush3.bf16.msra.mxu1 %v18128_v51  ;;  %v4984_v51 = vpack.c.bf16 %v21076_v49, %v21071_v48 }
 0x31b   :  { %16992 = vmatprep.subr.bf16.mxu1 %v20612_v21 }
 0x31d   :  { %16989 = vmatmul.mubr.msk.bf16.vlgmr.msra.gmra.mrb[0].mxu1 %vm96_vm1, %v3138_v63  ;;  %v21095_v63 = vld [vmem:[%s23522_s29 + $0x88] sm:$0xff] }
 0x31e   :  { %16993 = vmatpush3.bf16.msra.mxu1 %v18129_v12  ;;  %17000 = vmatprep.mubr.msk.bf16.mxu1 %vm19806_vm2, %v20612_v21  ;;  %v21090_v12 = vld [vmem:[%s23522_s29 + $0x80] sm:$0xff] }
 0x31f   :  { %16994 = vmatprep.subr.bf16.mxu1 %v20612_v21  ;;  %v4985_v55 = vpack.c.bf16 %v21095_v63, %v21090_v12 }
 0x322   :  { %16995 = vmatpush3.bf16.msra.mxu1 %v18130_v52  ;;  %v18161_v52 = vld [vmem:[%s23521_s24 + $0x60] sm:$0xff]  }
 0x323   :  { %16996 = vmatprep.subr.bf16.mxu1 %v20612_v21 }
 0x326   :  { %16997 = vmatpush3.bf16.msra.mxu1 %v18131_v53  ;;  %v5222_v53 = vld [vmem:[%s23522_s29 + $0x52] sm:$0xff] }
 0x327   :  { %16998 = vmatprep.subr.bf16.mxu1 %v20612_v21 }
 0x32a   :  { %16999 = vmatpush3.bf16.msra.mxu1 %v18132_v54  ;;  %v21106_v54 = vld [vmem:[%s23522_s29 + $0x5a] sm:$0xff] }
 0x32b   :  { %17004 = vmatprep.subr.bf16.mxu1 %v20612_v21 }
 0x32d   :  { %17001 = vmatmul.mubr.msk.bf16.vlgmr.msra.gmra.mrb[0].mxu1 %vm96_vm1, %v3217_v58  ;;  %v18162_v58 = vld [vmem:[%s23521_s24 + $0x68] sm:$0xff]  }
 0x32e   :  { %17005 = vmatpush3.bf16.msra.mxu1 %v18133_v57  ;;  %17012 = vmatprep.mubr.msk.bf16.mxu1 %vm19806_vm2, %v20612_v21  ;;  %v5240_v57 = vpack.c.bf16 %v21106_v54, %v5222_v53  ;;  %v18218_v53 = vld [vmem:[#allocation7 + $0xd0] ss:$8 sps:$4 sm:$0xff]  }
 0x32f   :  { %17006 = vmatprep.subr.bf16.mxu1 %v20612_v21 }
 0x332   :  { %17007 = vmatpush3.bf16.msra.mxu1 %v18134_v59  ;;  %v18163_v59 = vld [vmem:[%s23521_s24 + $0x70] sm:$0xff]  }
 0x333   :  { %17008 = vmatprep.subr.bf16.mxu1 %v20612_v21 }
 0x336   :  { %17009 = vmatpush3.bf16.msra.mxu1 %v18135_v60  ;;  %v21122_v60 = vld [vmem:[%s23522_s29 + $0x62] sm:$0xff] }
 0x337   :  { %17010 = vmatprep.subr.bf16.mxu1 %v20612_v21 }
 0x33a   :  { %17011 = vmatpush3.bf16.msra.mxu1 %v18136_v61  ;;  %v21127_v61 = vld [vmem:[%s23522_s29 + $0x6a] sm:$0xff] }
 0x33b   :  { %17016 = vmatprep.subr.bf16.mxu1 %v20612_v21 }
 0x33d   :  { %17013 = vmatmul.mubr.msk.bf16.vlgmr.msra.gmra.mrb[0].mxu1 %vm96_vm1, %v3296_v1  ;;  %v21140_v1 = vld [vmem:[%s23522_s29 + $0x7a] sm:$0xff] }
 0x33e   :  { %17017 = vmatpush3.bf16.msra.mxu1 %v18137_v0  ;;  %17024 = vmatprep.mubr.msk.bf16.mxu1 %vm19806_vm2, %v20612_v21  ;;  %v21135_v0 = vld [vmem:[%s23522_s29 + $0x72] sm:$0xff] }
 0x33f   :  { %17018 = vmatprep.subr.bf16.mxu1 %v20612_v21 }
 0x342   :  { %17019 = vmatpush3.bf16.msra.mxu1 %v18138_v2  ;;  %v5241_v2 = vpack.c.bf16 %v21127_v61, %v21122_v60 }
 0x343   :  { %17020 = vmatprep.subr.bf16.mxu1 %v20612_v21 }
 0x346   :  { %17021 = vmatpush3.bf16.msra.mxu1 %v18139_v3  ;;  %v5242_v3 = vpack.c.bf16 %v21140_v1, %v21135_v0 }
 0x347   :  { %17022 = vmatprep.subr.bf16.mxu1 %v20612_v21 }
 0x34a   :  { %17023 = vmatpush3.bf16.msra.mxu1 %v18140_v4  ;;  %v18165_v4 = vld [vmem:[%s23521_s24 + $0x80] sm:$0xff]  }
 0x34b   :  { %17028 = vmatprep.subr.bf16.mxu1 %v20612_v21 }
 0x34d   :  { %17025 = vmatmul.mubr.msk.bf16.vlgmr.msra.gmra.mrb[0].mxu1 %vm96_vm1, %v3375_v7  ;;  %v18166_v7 = vld [vmem:[%s23521_s24 + $0x88] sm:$0xff]  }
 0x34e   :  { %17029 = vmatpush3.bf16.msra.mxu1 %v18141_v6  ;;  %17036 = vmatprep.mubr.msk.bf16.mxu1 %vm19806_vm2, %v20612_v21  ;;  %v21159_v6 = vld [vmem:[%s23522_s29 + $0x8a] sm:$0xff] }
 0x34f   :  { %17030 = vmatprep.subr.bf16.mxu1 %v20612_v21 }
 0x352   :  { %17031 = vmatpush3.bf16.msra.mxu1 %v18142_v8  ;;  %v5359_v8 = vld [vmem:[%s23522_s29 + $0x53] sm:$0xff] }
 0x353   :  { %17032 = vmatprep.subr.bf16.mxu1 %v20612_v21 }
 0x356   :  { %17033 = vmatpush3.bf16.msra.mxu1 %v18143_v9  ;;  %v21170_v9 = vld [vmem:[%s23522_s29 + $0x5b] sm:$0xff] }
 0x357   :  { %17034 = vmatprep.subr.bf16.mxu1 %v20612_v21  ;;  %v5377_v13 = vpack.c.bf16 %v21170_v9, %v5359_v8 }
 0x35a   :  { %17035 = vmatpush3.bf16.msra.mxu1 %v18144_v10  ;;  %v5243_v10 = vpack.c.bf16 %v21159_v6, %v21154_v5 }
 0x35b   :  { %17040 = vmatprep.subr.bf16.mxu1 %v20612_v21 }
 0x35d   :  { %17037 = vmatmul.mubr.msk.bf16.vlgmr.msra.gmra.mrb[0].mxu1 %vm96_vm1, %v3454_v15  ;;  %v18200_v15 = vld [vmem:[#allocation7 + $0x84] ss:$8 sps:$4 sm:$0xff]  }
 0x35e   :  { %17041 = vmatpush3.bf16.msra.mxu1 %v18145_v14  ;;  %17048 = vmatprep.mubr.msk.bf16.mxu1 %vm19806_vm2, %v20612_v21  ;;  %v18198_v14 = vld [vmem:[#allocation7 + $0x80] ss:$8 sps:$4 sm:$0xff]  }
 0x35f   :  { %17042 = vmatprep.subr.bf16.mxu1 %v20612_v21  ;;  %3737 = vmatprep.subr.bf16.mxu0 %v18200_v15  ;;  %v19807_v15 = vmov 0  }
 0x360   :  { %3738 = vmatpush1.bf16.msra.mxu0 %v18198_v14  ;;  %v18226_v14 = vld [vmem:[#allocation7 + $0xf0] ss:$8 sps:$4 sm:$0xff]   ;;  %3769 = vmatprep.mubr.bf16.mxu0 %v19807_v15 }
 0x362   :  { %17043 = vmatpush3.bf16.msra.mxu1 %v18146_v16  ;;  %v18167_v16 = vld [vmem:[%s23521_s24 + $0x90] sm:$0xff]  }
 0x363   :  { %17044 = vmatprep.subr.bf16.mxu1 %v20612_v21 }
 0x366   :  { %17045 = vmatpush3.bf16.msra.mxu1 %v18147_v17  ;;  %v18202_v17 = vld [vmem:[#allocation7 + $0x90] ss:$8 sps:$4 sm:$0xff]  }
 0x367   :  { %17046 = vmatprep.subr.bf16.mxu1 %v20612_v21  ;;  %v18150_v21 = vld [vmem:[%s23521_s24 + $0x30] sm:$0xff]  }
 0x36a   :  { %17047 = vmatpush3.bf16.msra.mxu1 %v18148_v18  ;;  %v18204_v18 = vld [vmem:[#allocation7 + $0x94] ss:$8 sps:$4 sm:$0xff]  }
 0x36b   :  { %17052 = vmatprep.subr.bf16.mxu1 %v18149_v19  ;;  %3739 = vmatprep.subr.bf16.mxu0 %v18204_v18  ;;  %v21288_v18 = vld [vmem:[%s23522_s29 + $0x8c] sm:$0xff] }
 0x36c   :  { %3740 = vmatpush1.bf16.msra.mxu0 %v18202_v17  ;;  %v21283_v17 = vld [vmem:[%s23522_s29 + $0x84] sm:$0xff] }
 0x36d   :  { %17049 = vmatmul.mubr.msk.bf16.vlgmr.msra.gmra.mrb[0].mxu1 %vm96_vm1, %v3533_v25  ;;  %v18208_v25 = vld [vmem:[#allocation7 + $0xa4] ss:$8 sps:$4 sm:$0xff]  }
 0x36e   :  { %17053 = vmatpush3.bf16.msra.mxu1 %v18149_v19  ;;  %17062 = vmatprep.mubr.msk.bf16.mxu1 %vm185_vm0, %v5004_v24  ;;  %v18168_v19 = vld [vmem:[%s23521_s24 + $0x98] sm:$0xff]   ;;  %v18206_v24 = vld [vmem:[#allocation7 + $0xa0] ss:$8 sps:$4 sm:$0xff]  }
 0x36f   :  { %17054 = vmatprep.subr.bf16.mxu1 %v18150_v21  ;;  %3741 = vmatprep.subr.bf16.mxu0 %v18208_v25  ;;  %v5634_v25 = vld [vmem:[%s23522_s29 + $0x5d] sm:$0xff] }
 0x370   :  { %3742 = vmatpush1.bf16.msra.mxu0 %v18206_v24  ;;  %v5633_v24 = vld [vmem:[%s23522_s29 + $0x55] sm:$0xff] }
 0x372   :  { %17055 = vmatpush3.bf16.msra.mxu1 %v18150_v21  ;;  %v18169_v21 = vld [vmem:[%s23521_s24 + $0xa0] sm:$0xff]  }
 0x373   :  { %17056 = vmatprep.subr.bf16.mxu1 %v18151_v26 }
 0x376   :  { %17057 = vmatpush3.bf16.msra.mxu1 %v18151_v26  ;;  %v21199_v26 = vld [vmem:[%s23522_s29 + $0x73] sm:$0xff] }
 0x377   :  { %17058 = vmatprep.subr.bf16.mxu1 %v18152_v31 }
 0x37a   :  { %17059 = vmatpush3.bf16.msra.mxu1 %v18152_v31  ;;  %v21204_v31 = vld [vmem:[%s23522_s29 + $0x7b] sm:$0xff] }
 0x37b   :  { %17060 = vmatprep.subr.bf16.mxu1 %v18153_v32 }
 0x37e   :  { %17061 = vmatpush3.bf16.msra.mxu1 %v18153_v32  ;;  %v5378_v32 = vpack.c.bf16 %v21191_v23, %v21186_v20 }
 0x37f   :  { %17070 = vmatprep.subr.bf16.mxu1 %v18154_v36 }
 0x381   :  { %17063 = vmatmul.mubr.msk.bf16.vlgmr.msra.gmra.mrb[4].mxu1 %vm185_vm0, %v5005_v39  ;;  %v18210_v39 = vld [vmem:[#allocation7 + $0xb0] ss:$8 sps:$4 sm:$0xff]  }
 0x382   :  { %17071 = vmatpush3.bf16.msra.mxu1 %v18154_v36  ;;  %17066 = vmatprep.mubr.msk.bf16.mxu1 %vm185_vm0, %v5006_v40  ;;  %v5379_v36 = vpack.c.bf16 %v21204_v31, %v21199_v26  ;;  %v18212_v40 = vld [vmem:[#allocation7 + $0xb4] ss:$8 sps:$4 sm:$0xff]  }
 0x383   :  { %17072 = vmatprep.subr.bf16.mxu1 %v18155_v27  ;;  %3743 = vmatprep.subr.bf16.mxu0 %v18212_v40  ;;  %v5635_v40 = vld [vmem:[%s23522_s29 + $0x65] sm:$0xff] }
 0x384   :  { %3744 = vmatpush1.bf16.msra.mxu0 %v18210_v39  ;;  %v18178_v39 = vld [vmem:[%s23521_s24 + $0xe8] sm:$0xff]  }
 0x386   :  { %17073 = vmatpush3.bf16.msra.mxu1 %v18155_v27  ;;  %v18170_v27 = vld [vmem:[%s23521_s24 + $0xa8] sm:$0xff]  }
 0x387   :  { %17074 = vmatprep.subr.bf16.mxu1 %v18156_v28 }
 0x389   :  { %17067 = vmatmul.mubr.msk.bf16.gmra.mrb[8].mxu1 %vm185_vm0, %v5007_v44  ;;  %v18171_v44 = vld [vmem:[%s23521_s24 + $0xb0] sm:$0xff]  }
 0x38a   :  { %17075 = vmatpush3.bf16.msra.mxu1 %v18156_v28  ;;  %17080 = vmatprep.mubr.msk.bf16.mxu1 %vm185_vm0, %v4982_v56  ;;  %v21218_v28 = vld [vmem:[%s23522_s29 + $0x83] sm:$0xff]  ;;  %v5496_v56 = vld [vmem:[%s23522_s29 + $0x54] sm:$0xff] }
 0x38b   :  { %17076 = vmatprep.subr.bf16.mxu1 %v18157_v41 }
 0x38e   :  { %17077 = vmatpush3.bf16.msra.mxu1 %v18157_v41  ;;  %v21234_v41 = vld [vmem:[%s23522_s29 + $0x5c] sm:$0xff] }
 0x38f   :  { %17078 = vmatprep.subr.bf16.mxu1 %v18158_v43 }
 0x392   :  { %17079 = vmatpush3.bf16.msra.mxu1 %v18158_v43  ;;  %v5380_v43 = vpack.c.bf16 %v21223_v30, %v21218_v28 }
 0x393   :  { %17088 = vmatprep.subr.bf16.mxu1 %v18159_v47 }
 0x395   :  { %17081 = vmatmul.mubr.msk.bf16.vlgmr.msra.gmra.mrb[4].mxu1 %vm185_vm0, %v4983_v50  ;;  %v18172_v50 = vld [vmem:[%s23521_s24 + $0xb8] sm:$0xff]  }
 0x396   :  { %17089 = vmatpush3.bf16.msra.mxu1 %v18159_v47  ;;  %17084 = vmatprep.mubr.msk.bf16.mxu1 %vm185_vm0, %v4984_v51  ;;  %v5514_v47 = vpack.c.bf16 %v21234_v41, %v5496_v56  ;;  %v18216_v51 = vld [vmem:[#allocation7 + $0xc4] ss:$8 sps:$4 sm:$0xff]   ;;  %v5637_v56 = vld [vmem:[%s23522_s29 + $0x75] sm:$0xff] }
 0x397   :  { %17090 = vmatprep.subr.bf16.mxu1 %v18160_v11  ;;  %3745 = vmatprep.subr.bf16.mxu0 %v18216_v51  ;;  %v18180_v51 = vld [vmem:[%s23521_s24 + $0xf8] sm:$0xff]  }
 0x39a   :  { %17091 = vmatpush3.bf16.msra.mxu1 %v18160_v11  ;;  %v18214_v11 = vld [vmem:[#allocation7 + $0xc0] ss:$8 sps:$4 sm:$0xff]  }
 0x39b   :  { %17092 = vmatprep.subr.bf16.mxu1 %v18161_v52  ;;  %3746 = vmatpush1.bf16.msra.mxu0 %v18214_v11  ;;  %v5639_v11 = vld [vmem:[%s23522_s29 + $0x85] sm:$0xff] }
 0x39d   :  { %17085 = vmatmul.mubr.msk.bf16.gmra.mrb[8].mxu1 %vm185_vm0, %v4985_v55  ;;  %v18220_v55 = vld [vmem:[#allocation7 + $0xd4] ss:$8 sps:$4 sm:$0xff]  }
 0x39e   :  { %17093 = vmatpush3.bf16.msra.mxu1 %v18161_v52  ;;  %17098 = vmatprep.mubr.msk.bf16.mxu1 %vm185_vm0, %v5240_v57  ;;  %v18173_v52 = vld [vmem:[%s23521_s24 + $0xc0] sm:$0xff]  }
 0x39f   :  { %17094 = vmatprep.subr.bf16.mxu1 %v18162_v58  ;;  %v18224_v57 = vld [vmem:[#allocation7 + $0xe4] ss:$8 sps:$4 sm:$0xff]   ;;  %3747 = vmatprep.subr.bf16.mxu0 %v18220_v55  ;;  %v5770_v55 = vld [vmem:[%s23522_s29 + $0x56] sm:$0xff] }
 0x3a0   :  { %3748 = vmatpush1.bf16.msra.mxu0 %v18218_v53  ;;  %v18181_v53 = vld [vmem:[%s23521_s24 + $0x100] sm:$0xff]  }
 0x3a1   :  { %3749 = vmatprep.subr.bf16.mxu0 %v18224_v57  ;;  %v5771_v57 = vld [vmem:[%s23522_s29 + $0x5e] sm:$0xff] }
 0x3a2   :  { %17095 = vmatpush3.bf16.msra.mxu1 %v18162_v58  ;;  %v18174_v58 = vld [vmem:[%s23521_s24 + $0xc8] sm:$0xff]  }
 0x3a3   :  { %17096 = vmatprep.subr.bf16.mxu1 %v18163_v59 }
 0x3a6   :  { %17097 = vmatpush3.bf16.msra.mxu1 %v18163_v59  ;;  %v21253_v59 = vld [vmem:[%s23522_s29 + $0x64] sm:$0xff] }
 0x3a7   :  { %17106 = vmatprep.subr.bf16.mxu1 %v18164_v62 }
 0x3a9   :  { %17099 = vmatmul.mubr.msk.bf16.vlgmr.msra.gmra.mrb[4].mxu1 %vm185_vm0, %v5241_v2  ;;  %v21263_v2 = vld [vmem:[%s23522_s29 + $0x74] sm:$0xff] }
 0x3aa   :  { %17107 = vmatpush3.bf16.msra.mxu1 %v18164_v62  ;;  %17102 = vmatprep.mubr.msk.bf16.mxu1 %vm185_vm0, %v5242_v3  ;;  %v21258_v62 = vld [vmem:[%s23522_s29 + $0x6c] sm:$0xff]  ;;  %v21268_v3 = vld [vmem:[%s23522_s29 + $0x7c] sm:$0xff] }
 0x3ab   :  { %17108 = vmatprep.subr.bf16.mxu1 %v18165_v4  ;;  %v5515_v8 = vpack.c.bf16 %v21258_v62, %v21253_v59 }
 0x3ae   :  { %17109 = vmatpush3.bf16.msra.mxu1 %v18165_v4  ;;  %v18222_v4 = vld [vmem:[#allocation7 + $0xe0] ss:$8 sps:$4 sm:$0xff]  }
 0x3af   :  { %17110 = vmatprep.subr.bf16.mxu1 %v18166_v7  ;;  %3750 = vmatpush1.bf16.msra.mxu0 %v18222_v4  ;;  %v5788_v4 = vpack.c.bf16 %v5771_v57, %v5770_v55 }
 0x3b1   :  { %17103 = vmatmul.mubr.msk.bf16.gmra.mrb[8].mxu1 %vm185_vm0, %v5243_v10  ;;  %v5516_v10 = vpack.c.bf16 %v21268_v3, %v21263_v2 }
 0x3b2   :  { %17111 = vmatpush3.bf16.msra.mxu1 %v18166_v7  ;;  %17116 = vmatprep.mubr.msk.bf16.mxu1 %vm185_vm0, %v5377_v13  ;;  %v18228_v7 = vld [vmem:[#allocation7 + $0xf4] ss:$8 sps:$4 sm:$0xff]  }
 0x3b3   :  { %17112 = vmatprep.subr.bf16.mxu1 %v18167_v16  ;;  %v18175_v13 = vld [vmem:[%s23521_s24 + $0xd0] sm:$0xff]   ;;  %3751 = vmatprep.subr.bf16.mxu0 %v18228_v7  ;;  %v18182_v7 = vld [vmem:[%s23521_s24 + $0x108] sm:$0xff]  }
 0x3b4   :  { %3752 = vmatpush1.bf16.msra.mxu0 %v18226_v14  ;;  %v18184_v14 = vld [vmem:[%s23521_s24 + $0x118] sm:$0xff]  }
 0x3b6   :  { %17113 = vmatpush3.bf16.msra.mxu1 %v18167_v16  ;;  %v18232_v16 = vld [vmem:[#allocation7 + $0x4] ss:$8 sps:$4 sm:$0xff]  }
 0x3b7   :  { %17114 = vmatprep.subr.bf16.mxu1 %v18168_v19  ;;  %3858 = vmatprep.subr.bf16.mxu0 %v18232_v16  ;;  %v5774_v16 = vld [vmem:[%s23522_s29 + $0x76] sm:$0xff] }
 0x3ba   :  { %17115 = vmatpush3.bf16.msra.mxu1 %v18168_v19  ;;  %v18176_v19 = vld [vmem:[%s23521_s24 + $0xd8] sm:$0xff]  }
 0x3bb   :  { %17124 = vmatprep.subr.bf16.mxu1 %v18169_v21 }
 0x3bd   :  { %17117 = vmatmul.mubr.msk.bf16.vlgmr.msra.gmra.mrb[4].mxu1 %vm185_vm0, %v5378_v32  ;;  %v5651_v32 = vpack.c.bf16 %v5634_v25, %v5633_v24 }
 0x3be   :  { %17125 = vmatpush3.bf16.msra.mxu1 %v18169_v21  ;;  %17120 = vmatprep.mubr.msk.bf16.mxu1 %vm185_vm0, %v5379_v36  ;;  %v5517_v21 = vpack.c.bf16 %v21288_v18, %v21283_v17  ;;  %v18177_v36 = vld [vmem:[%s23521_s24 + $0xe0] sm:$0xff]  }
 0x3bf   :  { %17126 = vmatprep.subr.bf16.mxu1 %v18170_v27 }
 0x3c2   :  { %17127 = vmatpush3.bf16.msra.mxu1 %v18170_v27  ;;  %v5636_v27 = vld [vmem:[%s23522_s29 + $0x6d] sm:$0xff] }
 0x3c3   :  { %17128 = vmatprep.subr.bf16.mxu1 %v18171_v44 }
 0x3c5   :  { %17121 = vmatmul.mubr.msk.bf16.gmra.mrb[8].mxu1 %vm185_vm0, %v5380_v43  ;;  %v5638_v43 = vld [vmem:[%s23522_s29 + $0x7d] sm:$0xff] }
 0x3c6   :  { %17129 = vmatpush3.bf16.msra.mxu1 %v18171_v44  ;;  %17134 = vmatprep.mubr.msk.bf16.mxu1 %vm185_vm0, %v5514_v47  ;;  %v18179_v44 = vld [vmem:[%s23521_s24 + $0xf0] sm:$0xff]   ;;  %v5652_v47 = vpack.c.bf16 %v5636_v27, %v5635_v40  ;;  %v5908_v27 = vld [vmem:[%s23522_s29 + $0x5f] sm:$0xff] }
 0x3c7   :  { %17130 = vmatprep.subr.bf16.mxu1 %v18172_v50  ;;  %v5907_v40 = vld [vmem:[%s23522_s29 + $0x57] sm:$0xff] }
 0x3ca   :  { %17131 = vmatpush3.bf16.msra.mxu1 %v18172_v50  ;;  %v5653_v50 = vpack.c.bf16 %v5638_v43, %v5637_v56  ;;  %v5925_v56 = vpack.c.bf16 %v5908_v27, %v5907_v40  ;;  %v18187_v43 = vld [vmem:[%s23521_s24 + $0x130] sm:$0xff]  }
 0x3cb   :  { %17132 = vmatprep.subr.bf16.mxu1 %v18173_v52 }
 0x3ce   :  { %17133 = vmatpush3.bf16.msra.mxu1 %v18173_v52  ;;  %v5640_v52 = vld [vmem:[%s23522_s29 + $0x8d] sm:$0xff] }
 0x3cf   :  { %17142 = vmatprep.subr.bf16.mxu1 %v18174_v58 }
 0x3d1   :  { %17135 = vmatmul.mubr.msk.bf16.vlgmr.msra.gmra.mrb[4].mxu1 %vm185_vm0, %v5515_v8  ;;  %v18183_v8 = vld [vmem:[%s23521_s24 + $0x110] sm:$0xff]  }
 0x3d2   :  { %17143 = vmatpush3.bf16.msra.mxu1 %v18174_v58  ;;  %17138 = vmatprep.mubr.msk.bf16.mxu1 %vm185_vm0, %v5516_v10  ;;  %v5654_v58 = vpack.c.bf16 %v5640_v52, %v5639_v11  ;;  %v5772_v10 = vld [vmem:[%s23522_s29 + $0x66] sm:$0xff]  ;;  %v5911_v52 = vld [vmem:[%s23522_s29 + $0x77] sm:$0xff] }
 0x3d3   :  { %17144 = vmatprep.subr.bf16.mxu1 %v18175_v13  ;;  %v18189_v11 = vld [vmem:[%s23521_s24 + $0x140] sm:$0xff]  }
 0x3d6   :  { %17145 = vmatpush3.bf16.msra.mxu1 %v18175_v13  ;;  %v5773_v13 = vld [vmem:[%s23522_s29 + $0x6e] sm:$0xff] }
 0x3d7   :  { %17146 = vmatprep.subr.bf16.mxu1 %v18176_v19  ;;  %v5789_v24 = vpack.c.bf16 %v5773_v13, %v5772_v10  ;;  %v6062_v13 = vpack.c.bf16 %v21058_v45, %v21042_v35  ;;  %v18194_v35 = vld [vmem:[%s23521_s24 + $0x168] sm:$0xff]   ;;  %v6063_v45 = vpack.c.bf16 %v21071_v48, %v21063_v46  ;;  %v18196_v46 = vld [vmem:[%s23521_s24 + $0x178] sm:$0xff]  }
 0x3d9   :  { %17139 = vmatmul.mubr.msk.bf16.gmra.mrb[8].mxu1 %vm185_vm0, %v5517_v21  ;;  %v18185_v21 = vld [vmem:[%s23521_s24 + $0x120] sm:$0xff]  }
 0x3da   :  { %17147 = vmatpush3.bf16.msra.mxu1 %v18176_v19  ;;  %17152 = vmatprep.mubr.msk.bf16.mxu1 %vm185_vm0, %v5651_v32  ;;  %v5775_v19 = vld [vmem:[%s23522_s29 + $0x7e] sm:$0xff]  ;;  %v5776_v32 = vld [vmem:[%s23522_s29 + $0x86] sm:$0xff] }
 0x3db   :  { %17148 = vmatprep.subr.bf16.mxu1 %v18177_v36  ;;  %v5790_v25 = vpack.c.bf16 %v5775_v19, %v5774_v16  ;;  %v18193_v16 = vld [vmem:[%s23521_s24 + $0x160] sm:$0xff]   ;;  %v6064_v19 = vpack.c.bf16 %v21090_v12, %v21076_v49  ;;  %v6199_v49 = vpack.c.bf16 %v20994_v33, %v20974_v22  ;;  %v18205_v22 = vld [vmem:[%s23521_s24 + $0x190] sm:$0xff]   ;;  %v6200_v33 = vpack.c.bf16 %v21007_v37, %v20999_v34 }
 0x3dc   :  { %v18197_v12 = vld [vmem:[%s23521_s24 + $0x180] sm:$0xff]  }
 0x3dd   :  { %v18213_v34 = vld [vmem:[%s23521_s24 + $0x1a0] sm:$0xff]  }
 0x3de   :  { %17149 = vmatpush3.bf16.msra.mxu1 %v18177_v36  ;;  %v5777_v36 = vld [vmem:[%s23522_s29 + $0x8e] sm:$0xff] }
 0x3df   :  { %17150 = vmatprep.subr.bf16.mxu1 %v18178_v39 }
 0x3e2   :  { %17151 = vmatpush3.bf16.msra.mxu1 %v18178_v39  ;;  %v18186_v39 = vld [vmem:[%s23521_s24 + $0x128] sm:$0xff]  }
 0x3e3   :  { %17160 = vmatprep.subr.bf16.mxu1 %v18179_v44 }
 0x3e5   :  { %17153 = vmatmul.mubr.msk.bf16.vlgmr.msra.gmra.mrb[4].mxu1 %vm185_vm0, %v5652_v47  ;;  %v18188_v47 = vld [vmem:[%s23521_s24 + $0x138] sm:$0xff]  }
 0x3e6   :  { %17161 = vmatpush3.bf16.msra.mxu1 %v18179_v44  ;;  %17156 = vmatprep.mubr.msk.bf16.mxu1 %vm185_vm0, %v5653_v50  ;;  %v5791_v44 = vpack.c.bf16 %v5777_v36, %v5776_v32  ;;  %v5909_v50 = vld [vmem:[%s23522_s29 + $0x67] sm:$0xff]  ;;  %v18209_v32 = vld [vmem:[%s23521_s24 + $0x198] sm:$0xff]  }
 0x3e7   :  { %17162 = vmatprep.subr.bf16.mxu1 %v18180_v51  ;;  %v6188_v36 = vld [vmem:[%s23522_s29 + $0x91] sm:$0xff] }
 0x3e8   :  { %v6202_v37 = vpack.c.bf16 %v6188_v36, %v21031_v42  ;;  %v18221_v42 = vld [vmem:[%s23521_s24 + $0x1b0] sm:$0xff]  }
 0x3e9   :  { %v18267_v36 = vld [vmem:[#allocation7 + $0x114] ss:$8 sps:$4 sm:$0xff]  }
 0x3ea   :  { %17163 = vmatpush3.bf16.msra.mxu1 %v18180_v51  ;;  %v5910_v51 = vld [vmem:[%s23522_s29 + $0x6f] sm:$0xff] }
 0x3eb   :  { %17164 = vmatprep.subr.bf16.mxu1 %v18181_v53  ;;  %v5926_v55 = vpack.c.bf16 %v5910_v51, %v5909_v50  ;;  %v6337_v51 = vpack.c.bf16 %v21135_v0, %v21127_v61  ;;  %v18233_v61 = vld [vmem:[%s23521_s24 + $0x1c8] sm:$0xff]  }
 0x3ed   :  { %17157 = vmatmul.mubr.msk.bf16.gmra.mrb[8].mxu1 %vm185_vm0, %v5654_v58  ;;  %v18190_v58 = vld [vmem:[%s23521_s24 + $0x148] sm:$0xff]  }
 0x3ee   :  { %17165 = vmatpush3.bf16.msra.mxu1 %v18181_v53  ;;  %17170 = vmatprep.mubr.msk.bf16.mxu1 %vm185_vm0, %v5788_v4  ;;  %v5912_v53 = vld [vmem:[%s23522_s29 + $0x7f] sm:$0xff]  ;;  %v5913_v4 = vld [vmem:[%s23522_s29 + $0x87] sm:$0xff] }
 0x3ef   :  { %17166 = vmatprep.subr.bf16.mxu1 %v18182_v7  ;;  %v5927_v57 = vpack.c.bf16 %v5912_v53, %v5911_v52  ;;  %v18229_v52 = vld [vmem:[%s23521_s24 + $0x1c0] sm:$0xff]   ;;  %v6325_v53 = vld [vmem:[%s23522_s29 + $0x92] sm:$0xff] }
 0x3f0   :  { %v6339_v0 = vpack.c.bf16 %v6325_v53, %v21159_v6  ;;  %v18240_v6 = vld [vmem:[#allocation7 + $0x24] ss:$8 sps:$4 sm:$0xff]   ;;  %v18297_v53 = vld [vmem:[#allocation7 + $0x1b4] ss:$8 sps:$4 sm:$0xff]  }
 0x3f2   :  { %17167 = vmatpush3.bf16.msra.mxu1 %v18182_v7  ;;  %v5914_v7 = vld [vmem:[%s23522_s29 + $0x8f] sm:$0xff] }
 0x3f3   :  { %17168 = vmatprep.subr.bf16.mxu1 %v18183_v8  ;;  %v5928_v10 = vpack.c.bf16 %v5914_v7, %v5913_v4  ;;  %v6473_v4 = vpack.c.bf16 %v21186_v20, %v21170_v9  ;;  %v18234_v7 = vld [vmem:[#allocation7 + $0x10] ss:$8 sps:$4 sm:$0xff]   ;;  %v18238_v9 = vld [vmem:[#allocation7 + $0x20] ss:$8 sps:$4 sm:$0xff]   ;;  %v18244_v20 = vld [vmem:[#allocation7 + $0x34] ss:$8 sps:$4 sm:$0xff]  }
 0x3f6   :  { %17169 = vmatpush3.bf16.msra.mxu1 %v18183_v8  ;;  %v18191_v8 = vld [vmem:[%s23521_s24 + $0x150] sm:$0xff]  }
 0x3f7   :  { %17178 = vmatprep.subr.bf16.mxu1 %v18184_v14 }
 0x3f9   :  { %17171 = vmatmul.mubr.msk.bf16.vlgmr.msra.gmra.mrb[4].mxu1 %vm185_vm0, %v5789_v24  ;;  %v18195_v24 = vld [vmem:[%s23521_s24 + $0x170] sm:$0xff]  }
 0x3fa   :  { %17179 = vmatpush3.bf16.msra.mxu1 %v18184_v14  ;;  %17174 = vmatprep.mubr.msk.bf16.mxu1 %vm185_vm0, %v5790_v25  ;;  %v18192_v14 = vld [vmem:[%s23521_s24 + $0x158] sm:$0xff]   ;;  %v6051_v25 = vld [vmem:[%s23522_s29 + $0x90] sm:$0xff] }
 0x3fb   :  { %17180 = vmatprep.subr.bf16.mxu1 %v18185_v21  ;;  %v6065_v48 = vpack.c.bf16 %v6051_v25, %v21095_v63  ;;  %v6201_v63 = vpack.c.bf16 %v21026_v29, %v21012_v38  ;;  %v6336_v38 = vpack.c.bf16 %v21122_v60, %v21106_v54  ;;  %v18217_v29 = vld [vmem:[%s23521_s24 + $0x1a8] sm:$0xff]   ;;  %v14935_v60 = vld [vmem:[%s23493_s6] ss:$0 sm:$0xff] }
 0x3fc   :  { %v18256_v25 = vld [vmem:[#allocation7 + $0x64] ss:$8 sps:$4 sm:$0xff]  }
 0x3fe   :  { %17181 = vmatpush3.bf16.msra.mxu1 %v18185_v21  ;;  %v18201_v21 = vld [vmem:[%s23521_s24 + $0x188] sm:$0xff]  }
 0x3ff   :  { %17182 = vmatprep.subr.bf16.mxu1 %v18186_v39 }
 0x401   :  { %17175 = vmatmul.mubr.msk.bf16.gmra.mrb[8].mxu1 %vm185_vm0, %v5791_v44 }
 0x402   :  { %17183 = vmatpush3.bf16.msra.mxu1 %v18186_v39  ;;  %17188 = vmatprep.mubr.msk.bf16.mxu1 %vm185_vm0, %v5925_v56  ;;  %v14934_v39 = vld [vmem:[%s23526_s22] ss:$0 sm:$0xff] }
 0x403   :  { %17184 = vmatprep.subr.bf16.mxu1 %v18187_v43 }
 0x406   :  { %17185 = vmatpush3.bf16.msra.mxu1 %v18187_v43 }
 0x407   :  { %17186 = vmatprep.subr.bf16.mxu1 %v18188_v47 }
 0x40a   :  { %17187 = vmatpush3.bf16.msra.mxu1 %v18188_v47  ;;  %v18225_v47 = vld [vmem:[%s23521_s24 + $0x1b8] sm:$0xff]  }
 0x40b   :  { %17196 = vmatprep.subr.bf16.mxu1 %v18189_v11 }
 0x40d   :  { %17189 = vmatmul.mubr.msk.bf16.vlgmr.msra.gmra.mrb[4].mxu1 %vm185_vm0, %v5926_v55 }
 0x40e   :  { %17197 = vmatpush3.bf16.msra.mxu1 %v18189_v11  ;;  %17192 = vmatprep.mubr.msk.bf16.mxu1 %vm185_vm0, %v5927_v57  ;;  %v6338_v11 = vpack.c.bf16 %v21154_v5, %v21140_v1  ;;  %v18230_v1 = vld [vmem:[#allocation7] ss:$8 sps:$4 sm:$0xff]   ;;  %v18236_v57 = vld [vmem:[#allocation7 + $0x14] ss:$8 sps:$4 sm:$0xff]  }
 0x40f   :  { %17198 = vmatprep.subr.bf16.mxu1 %v18190_v58 }
 0x412   :  { %17199 = vmatpush3.bf16.msra.mxu1 %v18190_v58  ;;  %v18237_v58 = vld [vmem:[%s23521_s24 + $0x1d0] sm:$0xff]  }
 0x413   :  { %17200 = vmatprep.subr.bf16.mxu1 %v18191_v8 }
 0x415   :  { %17193 = vmatmul.mubr.msk.bf16.gmra.mrb[8].mxu1 %vm185_vm0, %v5928_v10  ;;  %v18245_v10 = vld [vmem:[%s23521_s24 + $0x1e0] sm:$0xff]  }
 0x416   :  { %17201 = vmatpush3.bf16.msra.mxu1 %v18191_v8  ;;  %17206 = vmatprep.mubr.msk.bf16.mxu1 %vm185_vm0, %v6062_v13  ;;  %v18241_v8 = vld [vmem:[%s23521_s24 + $0x1d8] sm:$0xff]   ;;  %v6474_v13 = vpack.c.bf16 %v21199_v26, %v21191_v23 }
 0x417   :  { %17202 = vmatprep.subr.bf16.mxu1 %v18192_v14  ;;  %v6462_v23 = vld [vmem:[%s23522_s29 + $0x93] sm:$0xff] }
 0x418   :  { %v18252_v26 = vld [vmem:[#allocation7 + $0x54] ss:$8 sps:$4 sm:$0xff]  }
 0x41a   :  { %17203 = vmatpush3.bf16.msra.mxu1 %v18192_v14  ;;  %v18242_v14 = vld [vmem:[#allocation7 + $0x30] ss:$8 sps:$4 sm:$0xff]  }
 0x41b   :  { %17204 = vmatprep.subr.bf16.mxu1 %v18193_v16 }
 0x41e   :  { %17205 = vmatpush3.bf16.msra.mxu1 %v18193_v16  ;;  %v18248_v16 = vld [vmem:[#allocation7 + $0x44] ss:$8 sps:$4 sm:$0xff]  }
 0x41f   :  { %17214 = vmatprep.subr.bf16.mxu1 %v18194_v35 }
 0x421   :  { %17207 = vmatmul.mubr.msk.bf16.vlgmr.msra.gmra.mrb[4].mxu1 %vm185_vm0, %v6063_v45  ;;  %v6475_v45 = vpack.c.bf16 %v21218_v28, %v21204_v31  ;;  %v6476_v31 = vpack.c.bf16 %v6462_v23, %v21223_v30  ;;  %v18250_v28 = vld [vmem:[#allocation7 + $0x50] ss:$8 sps:$4 sm:$0xff]   ;;  %v18260_v30 = vld [vmem:[#allocation7 + $0x74] ss:$8 sps:$4 sm:$0xff]   ;;  %v18322_v23 = vld [vmem:[#allocation7 + $0x240] ss:$8 sps:$4 sm:$0xff]  }
 0x422   :  { %17215 = vmatpush3.bf16.msra.mxu1 %v18194_v35  ;;  %17210 = vmatprep.mubr.msk.bf16.mxu1 %vm185_vm0, %v6064_v19  ;;  %v18249_v35 = vld [vmem:[%s23521_s24 + $0x1e8] sm:$0xff]  }
 0x423   :  { %17216 = vmatprep.subr.bf16.mxu1 %v18195_v24  ;;  %v18246_v19 = vld [vmem:[#allocation7 + $0x40] ss:$8 sps:$4 sm:$0xff]  }
 0x426   :  { %17217 = vmatpush3.bf16.msra.mxu1 %v18195_v24  ;;  %v18253_v24 = vld [vmem:[%s23521_s24 + $0x1f0] sm:$0xff]  }
 0x427   :  { %17218 = vmatprep.subr.bf16.mxu1 %v18196_v46 }
 0x429   :  { %17211 = vmatmul.mubr.msk.bf16.gmra.mrb[8].mxu1 %vm185_vm0, %v6065_v48  ;;  %v6610_v48 = vpack.c.bf16 %v21253_v59, %v21234_v41  ;;  %v18264_v41 = vld [vmem:[#allocation7 + $0x104] ss:$8 sps:$4 sm:$0xff]  }
 0x42a   :  { %17219 = vmatpush3.bf16.msra.mxu1 %v18196_v46  ;;  %17224 = vmatprep.mubr.msk.bf16.mxu1 %vm185_vm0, %v6199_v49  ;;  %v18257_v46 = vld [vmem:[%s23521_s24 + $0x1f8] sm:$0xff]   ;;  %v18254_v49 = vld [vmem:[#allocation7 + $0x60] ss:$8 sps:$4 sm:$0xff]  }
 0x42b   :  { %17220 = vmatprep.subr.bf16.mxu1 %v18197_v12 }
 0x42e   :  { %17221 = vmatpush3.bf16.msra.mxu1 %v18197_v12  ;;  %v18261_v12 = vld [vmem:[%s23521_s24 + $0x200] sm:$0xff]  }
 0x42f   :  { %17222 = vmatprep.subr.bf16.mxu1 %v18201_v21 }
 0x432   :  { %17223 = vmatpush3.bf16.msra.mxu1 %v18201_v21  ;;  %v18258_v21 = vld [vmem:[#allocation7 + $0x70] ss:$8 sps:$4 sm:$0xff]  }
 0x433   :  { %17232 = vmatprep.subr.bf16.mxu1 %v18205_v22 }
 0x435   :  { %17225 = vmatmul.mubr.msk.bf16.vlgmr.msra.gmra.mrb[4].mxu1 %vm185_vm0, %v6200_v33  ;;  %v18262_v33 = vld [vmem:[#allocation7 + $0x100] ss:$8 sps:$4 sm:$0xff]  }
 0x436   :  { %17233 = vmatpush3.bf16.msra.mxu1 %v18205_v22  ;;  %17228 = vmatprep.mubr.msk.bf16.mxu1 %vm185_vm0, %v6201_v63  ;;  %v6611_v22 = vpack.c.bf16 %v21263_v2, %v21258_v62  ;;  %v6612_v63 = vpack.c.bf16 %v21283_v17, %v21268_v3  ;;  %v6599_v62 = vld [vmem:[%s23522_s29 + $0x94] sm:$0xff]  ;;  %v18270_v2 = vld [vmem:[#allocation7 + $0x124] ss:$8 sps:$4 sm:$0xff]   ;;  %v18268_v17 = vld [vmem:[#allocation7 + $0x120] ss:$8 sps:$4 sm:$0xff]  }
 0x437   :  { %17234 = vmatprep.subr.bf16.mxu1 %v18209_v32  ;;  %v6613_v3 = vpack.c.bf16 %v6599_v62, %v21288_v18  ;;  %v18282_v18 = vld [vmem:[#allocation7 + $0x164] ss:$8 sps:$4 sm:$0xff]   ;;  %v18349_v62 = vld [vmem:[#allocation7 + $0x2d0] ss:$8 sps:$4 sm:$0xff]  }
 0x43a   :  { %17235 = vmatpush3.bf16.msra.mxu1 %v18209_v32 }
 0x43b   :  { %17236 = vmatprep.subr.bf16.mxu1 %v18213_v34 }
 0x43d   :  { %17229 = vmatmul.mubr.msk.bf16.gmra.mrb[8].mxu1 %vm185_vm0, %v6202_v37  ;;  %v18273_v37 = vld [vmem:[#allocation7 + $0x134] ss:$8 sps:$4 sm:$0xff]  }
 0x43e   :  { %17237 = vmatpush3.bf16.msra.mxu1 %v18213_v34  ;;  %17242 = vmatprep.mubr.msk.bf16.mxu1 %vm185_vm0, %v6336_v38  ;;  %v18265_v34 = vld [vmem:[#allocation7 + $0x110] ss:$8 sps:$4 sm:$0xff]  }
 0x43f   :  { %17238 = vmatprep.subr.bf16.mxu1 %v18217_v29  ;;  %v18271_v38 = vld [vmem:[#allocation7 + $0x130] ss:$8 sps:$4 sm:$0xff]  }
 0x440   :  { %v3595_v54 = vpop.f32.mrb[0].mxu1 }
 0x441   :  { %v3609_v40 = vmul.f32 %v14934_v39, %v3595_v54  ;;  %v17050_v27 = vpop.f32.mrb[1].mxu1  ;;  %v18274_v39 = vld [vmem:[#allocation7 + $0x140] ss:$8 sps:$4 sm:$0xff]   ;;  %v18277_v54 = vld [vmem:[#allocation7 + $0x150] ss:$8 sps:$4 sm:$0xff]  }
 0x442   :  { %v3598_v44 = vpop.f32.mrb[2].mxu1  ;;  %17239 = vmatpush3.bf16.msra.mxu1 %v18217_v29  ;;  %v18276_v29 = vld [vmem:[#allocation7 + $0x144] ss:$8 sps:$4 sm:$0xff]   ;;  %v18283_v27 = vld [vmem:[#allocation7 + $0x170] ss:$8 sps:$4 sm:$0xff]  }
 0x443   :  { %v3617_v56 = vadd.f32 %v14935_v60, %v3609_v40  ;;  %v17051_v43 = vpop.f32.mrb[3].mxu1  ;;  %17240 = vmatprep.subr.bf16.mxu1 %v18221_v42  ;;  %v18280_v60 = vld [vmem:[#allocation7 + $0x160] ss:$8 sps:$4 sm:$0xff]   ;;  %v18285_v40 = vld [vmem:[#allocation7 + $0x174] ss:$8 sps:$4 sm:$0xff]  }
 0x444   :  { %v18288_v44 = vld [vmem:[#allocation7 + $0x184] ss:$8 sps:$4 sm:$0xff]   ;;  %v18286_v43 = vld [vmem:[#allocation7 + $0x180] ss:$8 sps:$4 sm:$0xff]  }
 0x445   :  { %v3618_v50 = vmax.f32 %v3617_v56, 0.0 }
 0x446   :  { %17241 = vmatpush3.bf16.msra.mxu1 %v18221_v42  ;;  %v18279_v42 = vld [vmem:[#allocation7 + $0x154] ss:$8 sps:$4 sm:$0xff]  }
 0x447   :  { %3619 = vst [vmem:[#allocation4 + $0x4] sm:$0xff] %v3618_v50  ;;  %17250 = vmatprep.subr.bf16.mxu1 %v18225_v47  ;;  %v18291_v50 = vld [vmem:[#allocation7 + $0x194] ss:$8 sps:$4 sm:$0xff]  }
 0x449   :  { %17243 = vmatmul.mubr.msk.bf16.vlgmr.msra.gmra.mrb[4].mxu1 %vm185_vm0, %v6337_v51  ;;  %v18289_v51 = vld [vmem:[#allocation7 + $0x190] ss:$8 sps:$4 sm:$0xff]  }
 0x44a   :  { %17251 = vmatpush3.bf16.msra.mxu1 %v18225_v47  ;;  %17246 = vmatprep.mubr.msk.bf16.mxu1 %vm185_vm0, %v6338_v11  ;;  %v18294_v11 = vld [vmem:[#allocation7 + $0x1a4] ss:$8 sps:$4 sm:$0xff]  }
 0x44b   :  { %17252 = vmatprep.subr.bf16.mxu1 %v18229_v52 }
 0x44e   :  { %17253 = vmatpush3.bf16.msra.mxu1 %v18229_v52  ;;  %v3639_v5 = vld [vmem:[#allocation4 + $0x1] ss:$2 sm:$0xf]  ;;  %v3620_v59 = vld [vmem:[#allocation4] ss:$2 sm:$0xf] }
 0x44f   :  { %v3656_v55 = vpack.c.bf16 %v3639_v5, %v3639_v5  ;;  %17254 = vmatprep.subr.bf16.mxu1 %v18233_v61  ;;  %v3637_v32 = vpack.c.bf16 %v3620_v59, %v3620_v59  ;;  %v3900_v56 = vld [vmem:[#allocation4 + $0x2] ss:$2 sm:$0xf]  ;;  %v18292_v52 = vld [vmem:[#allocation7 + $0x1a0] ss:$8 sps:$4 sm:$0xff]  }
 0x450   :  { %v3917_v47 = vpack.c.bf16 %v3900_v56, %v3900_v56  ;;  %v18303_v5 = vld [vmem:[#allocation7 + $0x1d4] ss:$8 sps:$4 sm:$0xff]   ;;  %v18342_v59 = vld [vmem:[#allocation7 + $0x2a4] ss:$8 sps:$4 sm:$0xff]  }
 0x451   :  { %3770 = vmatmul.mubr.bf16.vlgmr.msra.gmra.mrb[8].mxu0 %v3656_v55  ;;  %17247 = vmatmul.mubr.msk.bf16.gmra.mrb[8].mxu1 %vm185_vm0, %v6339_v0  ;;  %v18300_v0 = vld [vmem:[#allocation7 + $0x1c4] ss:$8 sps:$4 sm:$0xff]   ;;  %v18301_v55 = vld [vmem:[#allocation7 + $0x1d0] ss:$8 sps:$4 sm:$0xff]  }
 0x452   :  { %3859 = vmatpush1.bf16.msra.mxu0 %v18230_v1  ;;  %17255 = vmatpush3.bf16.msra.mxu1 %v18233_v61  ;;  %v18295_v61 = vld [vmem:[#allocation7 + $0x1b0] ss:$8 sps:$4 sm:$0xff]   ;;  %v18298_v1 = vld [vmem:[#allocation7 + $0x1c0] ss:$8 sps:$4 sm:$0xff]   ;;  %v18372_v56 = vld [vmem:[#allocation7 + $0x344] ss:$8 sps:$4 sm:$0xff]  }
 0x453   :  { %3860 = vmatprep.subr.bf16.mxu0 %v18236_v57  ;;  %17256 = vmatprep.subr.bf16.mxu1 %v18237_v58  ;;  %v18306_v57 = vld [vmem:[#allocation7 + $0x1e4] ss:$8 sps:$4 sm:$0xff]  }
 0x454   :  { %17260 = vmatprep.mubr.msk.bf16.mxu1 %vm185_vm0, %v6473_v4  ;;  %3890 = vmatprep.mubr.bf16.mxu0 %v19807_v15  ;;  %v18309_v4 = vld [vmem:[#allocation7 + $0x1f4] ss:$8 sps:$4 sm:$0xff]  }
 0x456   :  { %3861 = vmatpush1.bf16.msra.mxu0 %v18234_v7  ;;  %17257 = vmatpush3.bf16.msra.mxu1 %v18237_v58  ;;  %v18304_v58 = vld [vmem:[#allocation7 + $0x1e0] ss:$8 sps:$4 sm:$0xff]   ;;  %v18307_v7 = vld [vmem:[#allocation7 + $0x1f0] ss:$8 sps:$4 sm:$0xff]  }
 0x457   :  { %3862 = vmatprep.subr.bf16.mxu0 %v18240_v6  ;;  %17258 = vmatprep.subr.bf16.mxu1 %v18241_v8  ;;  %v18312_v6 = vld [vmem:[#allocation7 + $0x204] ss:$8 sps:$4 sm:$0xff]  }
 0x45a   :  { %3863 = vmatpush1.bf16.msra.mxu0 %v18238_v9  ;;  %17259 = vmatpush3.bf16.msra.mxu1 %v18241_v8  ;;  %v4042_v8 = vld [vmem:[#allocation4 + $0x3] ss:$2 sm:$0xf]  ;;  %v18310_v9 = vld [vmem:[#allocation7 + $0x200] ss:$8 sps:$4 sm:$0xff]  }
 0x45b   :  { %3864 = vmatprep.subr.bf16.mxu0 %v18244_v20  ;;  %17268 = vmatprep.subr.bf16.mxu1 %v18245_v10  ;;  %v4059_v20 = vpack.c.bf16 %v4042_v8, %v4042_v8  ;;  %v18396_v8 = vld [vmem:[#allocation7 + $0x3c4] ss:$8 sps:$4 sm:$0xff]  }
 0x45d   :  { %17261 = vmatmul.mubr.msk.bf16.vlgmr.msra.gmra.mrb[4].mxu1 %vm185_vm0, %v6474_v13  ;;  %v18313_v13 = vld [vmem:[#allocation7 + $0x210] ss:$8 sps:$4 sm:$0xff]  }
 0x45e   :  { %3865 = vmatpush1.bf16.msra.mxu0 %v18242_v14  ;;  %17269 = vmatpush3.bf16.msra.mxu1 %v18245_v10  ;;  %v18315_v10 = vld [vmem:[#allocation7 + $0x214] ss:$8 sps:$4 sm:$0xff]   ;;  %v18318_v14 = vld [vmem:[#allocation7 + $0x224] ss:$8 sps:$4 sm:$0xff]  }
 0x45f   :  { %3866 = vmatprep.subr.bf16.mxu0 %v18248_v16  ;;  %17270 = vmatprep.subr.bf16.mxu1 %v18249_v35  ;;  %v18316_v16 = vld [vmem:[#allocation7 + $0x220] ss:$8 sps:$4 sm:$0xff]  }
 0x460   :  { %17264 = vmatprep.mubr.msk.bf16.mxu1 %vm185_vm0, %v6475_v45  ;;  %v18319_v45 = vld [vmem:[#allocation7 + $0x230] ss:$8 sps:$4 sm:$0xff]  }
 0x462   :  { %3867 = vmatpush1.bf16.msra.mxu0 %v18246_v19  ;;  %17271 = vmatpush3.bf16.msra.mxu1 %v18249_v35  ;;  %v18321_v35 = vld [vmem:[#allocation7 + $0x234] ss:$8 sps:$4 sm:$0xff]   ;;  %v18324_v19 = vld [vmem:[#allocation7 + $0x244] ss:$8 sps:$4 sm:$0xff]  }
 0x463   :  { %3868 = vmatprep.subr.bf16.mxu0 %v18252_v26  ;;  %17272 = vmatprep.subr.bf16.mxu1 %v18253_v24  ;;  %v18327_v26 = vld [vmem:[#allocation7 + $0x254] ss:$8 sps:$4 sm:$0xff]  }
 0x465   :  { %17265 = vmatmul.mubr.msk.bf16.gmra.mrb[8].mxu1 %vm185_vm0, %v6476_v31  ;;  %v18330_v31 = vld [vmem:[#allocation7 + $0x264] ss:$8 sps:$4 sm:$0xff]  }
 0x466   :  { %3869 = vmatpush1.bf16.msra.mxu0 %v18250_v28  ;;  %17273 = vmatpush3.bf16.msra.mxu1 %v18253_v24  ;;  %v18325_v24 = vld [vmem:[#allocation7 + $0x250] ss:$8 sps:$4 sm:$0xff]   ;;  %v18328_v28 = vld [vmem:[#allocation7 + $0x260] ss:$8 sps:$4 sm:$0xff]  }
 0x467   :  { %3870 = vmatprep.subr.bf16.mxu0 %v18256_v25  ;;  %17274 = vmatprep.subr.bf16.mxu1 %v18257_v46  ;;  %v18333_v25 = vld [vmem:[#allocation7 + $0x274] ss:$8 sps:$4 sm:$0xff]  }
 0x468   :  { %17278 = vmatprep.mubr.msk.bf16.mxu1 %vm185_vm0, %v6610_v48  ;;  %v18336_v48 = vld [vmem:[#allocation7 + $0x284] ss:$8 sps:$4 sm:$0xff]  }
 0x46a   :  { %3871 = vmatpush1.bf16.msra.mxu0 %v18254_v49  ;;  %17275 = vmatpush3.bf16.msra.mxu1 %v18257_v46  ;;  %v18331_v46 = vld [vmem:[#allocation7 + $0x270] ss:$8 sps:$4 sm:$0xff]  }
 0x46b   :  { %3872 = vmatprep.subr.bf16.mxu0 %v18260_v30  ;;  %17276 = vmatprep.subr.bf16.mxu1 %v18261_v12  ;;  %v4184_v49 = vld [vmem:[#allocation4 + $0x4] ss:$2 sm:$0xf]  ;;  %v18334_v30 = vld [vmem:[#allocation7 + $0x280] ss:$8 sps:$4 sm:$0xff]  }
 0x46e   :  { %3873 = vmatpush1.bf16.msra.mxu0 %v18258_v21  ;;  %17277 = vmatpush3.bf16.msra.mxu1 %v18261_v12  ;;  %v4201_v12 = vpack.c.bf16 %v4184_v49, %v4184_v49  ;;  %v18339_v21 = vld [vmem:[#allocation7 + $0x294] ss:$8 sps:$4 sm:$0xff]   ;;  %v18420_v49 = vld [vmem:[#allocation7 + $0x444] ss:$8 sps:$4 sm:$0xff]  }
 0x46f   :  { %3998 = vmatprep.subr.bf16.mxu0 %v18264_v41  ;;  %v18337_v41 = vld [vmem:[#allocation7 + $0x290] ss:$8 sps:$4 sm:$0xff]  }
 0x471   :  { %3891 = vmatmul.mubr.bf16.vlgmr.msra.gmra.mrb[8].mxu0 %v3637_v32  ;;  %17279 = vmatmul.mubr.msk.bf16.vlgmr.msra.gmra.mrb[4].mxu1 %vm185_vm0, %v6611_v22  ;;  %v18340_v22 = vld [vmem:[#allocation7 + $0x2a0] ss:$8 sps:$4 sm:$0xff]   ;;  %v18348_v32 = vld [vmem:[#allocation7 + $0x2c4] ss:$8 sps:$4 sm:$0xff]  }
 0x472   :  { %3999 = vmatpush1.bf16.msra.mxu0 %v18262_v33  ;;  %17282 = vmatprep.mubr.msk.bf16.mxu1 %vm185_vm0, %v6612_v63  ;;  %v18345_v33 = vld [vmem:[#allocation7 + $0x2b4] ss:$8 sps:$4 sm:$0xff]   ;;  %v18343_v63 = vld [vmem:[#allocation7 + $0x2b0] ss:$8 sps:$4 sm:$0xff]  }
 0x473   :  { %4000 = vmatprep.subr.bf16.mxu0 %v18267_v36  ;;  %4030 = vmatprep.mubr.bf16.mxu0 %v19807_v15  ;;  %v18346_v36 = vld [vmem:[#allocation7 + $0x2c0] ss:$8 sps:$4 sm:$0xff]  }
 0x476   :  { %4001 = vmatpush1.bf16.msra.mxu0 %v18265_v34  ;;  %v18351_v34 = vld [vmem:[#allocation7 + $0x2d4] ss:$8 sps:$4 sm:$0xff]  }
 0x477   :  { %4002 = vmatprep.subr.bf16.mxu0 %v18270_v2  ;;  %v18354_v2 = vld [vmem:[#allocation7 + $0x2e4] ss:$8 sps:$4 sm:$0xff]  }
 0x479   :  { %17283 = vmatmul.mubr.msk.bf16.gmra.mrb[8].mxu1 %vm185_vm0, %v6613_v3  ;;  %v18352_v3 = vld [vmem:[#allocation7 + $0x2e0] ss:$8 sps:$4 sm:$0xff]  }
 0x47a   :  { %4003 = vmatpush1.bf16.msra.mxu0 %v18268_v17  ;;  %8624 = vmatprep.mubr.bf16.mxu1 %v19807_v15  ;;  %v18357_v17 = vld [vmem:[#allocation7 + $0x2f4] ss:$8 sps:$4 sm:$0xff]  }
 0x47b   :  { %4004 = vmatprep.subr.bf16.mxu0 %v18273_v37  ;;  %v18355_v37 = vld [vmem:[#allocation7 + $0x2f0] ss:$8 sps:$4 sm:$0xff]  }
 0x47e   :  { %4005 = vmatpush1.bf16.msra.mxu0 %v18271_v38  ;;  %v18360_v38 = vld [vmem:[#allocation7 + $0x304] ss:$8 sps:$4 sm:$0xff]  }
 0x47f   :  { %4006 = vmatprep.subr.bf16.mxu0 %v18276_v29  ;;  %v4326_v29 = vld [vmem:[#allocation4 + $0x5] ss:$2 sm:$0xf] }
 0x482   :  { %4007 = vmatpush1.bf16.msra.mxu0 %v18274_v39  ;;  %v18358_v39 = vld [vmem:[#allocation7 + $0x300] ss:$8 sps:$4 sm:$0xff]  }
 0x483   :  { %4008 = vmatprep.subr.bf16.mxu0 %v18279_v42  ;;  %v4343_v42 = vpack.c.bf16 %v4326_v29, %v4326_v29 }
 0x486   :  { %4009 = vmatpush1.bf16.msra.mxu0 %v18277_v54  ;;  %v18363_v54 = vld [vmem:[#allocation7 + $0x314] ss:$8 sps:$4 sm:$0xff]  }
 0x487   :  { %4010 = vmatprep.subr.bf16.mxu0 %v18282_v18  ;;  %v18361_v18 = vld [vmem:[#allocation7 + $0x310] ss:$8 sps:$4 sm:$0xff]  }
 0x48a   :  { %4011 = vmatpush1.bf16.msra.mxu0 %v18280_v60  ;;  %v18366_v60 = vld [vmem:[#allocation7 + $0x324] ss:$8 sps:$4 sm:$0xff]  }
 0x48b   :  { %4012 = vmatprep.subr.bf16.mxu0 %v18285_v40  ;;  %v18364_v40 = vld [vmem:[#allocation7 + $0x320] ss:$8 sps:$4 sm:$0xff]  }
 0x48e   :  { %4013 = vmatpush1.bf16.msra.mxu0 %v18283_v27  ;;  %v18369_v27 = vld [vmem:[#allocation7 + $0x334] ss:$8 sps:$4 sm:$0xff]  }
 0x48f   :  { %4140 = vmatprep.subr.bf16.mxu0 %v18288_v44  ;;  %v18367_v44 = vld [vmem:[#allocation7 + $0x330] ss:$8 sps:$4 sm:$0xff]  }
 0x491   :  { %4031 = vmatmul.mubr.bf16.vlgmr.msra.gmra.mrb[8].mxu0 %v3917_v47  ;;  %v18375_v47 = vld [vmem:[#allocation7 + $0x354] ss:$8 sps:$4 sm:$0xff]  }
 0x492   :  { %4141 = vmatpush1.bf16.msra.mxu0 %v18286_v43  ;;  %4172 = vmatprep.mubr.bf16.mxu0 %v19807_v15  ;;  %v18370_v43 = vld [vmem:[#allocation7 + $0x340] ss:$8 sps:$4 sm:$0xff]  }
 0x493   :  { %4142 = vmatprep.subr.bf16.mxu0 %v18291_v50  ;;  %v18373_v50 = vld [vmem:[#allocation7 + $0x350] ss:$8 sps:$4 sm:$0xff]  }
 0x496   :  { %4143 = vmatpush1.bf16.msra.mxu0 %v18289_v51  ;;  %v18378_v51 = vld [vmem:[#allocation7 + $0x364] ss:$8 sps:$4 sm:$0xff]  }
 0x497   :  { %4144 = vmatprep.subr.bf16.mxu0 %v18294_v11  ;;  %v18376_v11 = vld [vmem:[#allocation7 + $0x360] ss:$8 sps:$4 sm:$0xff]  }
 0x49a   :  { %4145 = vmatpush1.bf16.msra.mxu0 %v18292_v52  ;;  %v18381_v52 = vld [vmem:[#allocation7 + $0x374] ss:$8 sps:$4 sm:$0xff]  }
 0x49b   :  { %4146 = vmatprep.subr.bf16.mxu0 %v18297_v53  ;;  %v18379_v53 = vld [vmem:[#allocation7 + $0x370] ss:$8 sps:$4 sm:$0xff]  }
 0x49e   :  { %4147 = vmatpush1.bf16.msra.mxu0 %v18295_v61  ;;  %v18384_v61 = vld [vmem:[#allocation7 + $0x384] ss:$8 sps:$4 sm:$0xff]  }
 0x49f   :  { %4148 = vmatprep.subr.bf16.mxu0 %v18300_v0  ;;  %v4468_v0 = vld [vmem:[#allocation4 + $0x6] ss:$2 sm:$0xf] }
 0x4a2   :  { %4149 = vmatpush1.bf16.msra.mxu0 %v18298_v1  ;;  %v18382_v1 = vld [vmem:[#allocation7 + $0x380] ss:$8 sps:$4 sm:$0xff]  }
 0x4a3   :  { %4150 = vmatprep.subr.bf16.mxu0 %v18303_v5  ;;  %v4485_v5 = vpack.c.bf16 %v4468_v0, %v4468_v0 }
 0x4a6   :  { %4151 = vmatpush1.bf16.msra.mxu0 %v18301_v55  ;;  %v18387_v55 = vld [vmem:[#allocation7 + $0x394] ss:$8 sps:$4 sm:$0xff]  }
 0x4a7   :  { %4152 = vmatprep.subr.bf16.mxu0 %v18306_v57  ;;  %v18385_v57 = vld [vmem:[#allocation7 + $0x390] ss:$8 sps:$4 sm:$0xff]  }
 0x4aa   :  { %4153 = vmatpush1.bf16.msra.mxu0 %v18304_v58  ;;  %v18390_v58 = vld [vmem:[#allocation7 + $0x3a4] ss:$8 sps:$4 sm:$0xff]  }
 0x4ab   :  { %4154 = vmatprep.subr.bf16.mxu0 %v18309_v4  ;;  %v18388_v4 = vld [vmem:[#allocation7 + $0x3a0] ss:$8 sps:$4 sm:$0xff]  }
 0x4ae   :  { %4155 = vmatpush1.bf16.msra.mxu0 %v18307_v7  ;;  %v18393_v7 = vld [vmem:[#allocation7 + $0x3b4] ss:$8 sps:$4 sm:$0xff]  }
 0x4af   :  { %4282 = vmatprep.subr.bf16.mxu0 %v18312_v6  ;;  %v18391_v6 = vld [vmem:[#allocation7 + $0x3b0] ss:$8 sps:$4 sm:$0xff]  }
 0x4b1   :  { %4173 = vmatmul.mubr.bf16.vlgmr.msra.gmra.mrb[8].mxu0 %v4059_v20  ;;  %v18399_v20 = vld [vmem:[#allocation7 + $0x3d4] ss:$8 sps:$4 sm:$0xff]  }
 0x4b2   :  { %4283 = vmatpush1.bf16.msra.mxu0 %v18310_v9  ;;  %4314 = vmatprep.mubr.bf16.mxu0 %v19807_v15  ;;  %v18394_v9 = vld [vmem:[#allocation7 + $0x3c0] ss:$8 sps:$4 sm:$0xff]  }
 0x4b3   :  { %4284 = vmatprep.subr.bf16.mxu0 %v18315_v10  ;;  %v18397_v10 = vld [vmem:[#allocation7 + $0x3d0] ss:$8 sps:$4 sm:$0xff]  }
 0x4b6   :  { %4285 = vmatpush1.bf16.msra.mxu0 %v18313_v13  ;;  %v18402_v13 = vld [vmem:[#allocation7 + $0x3e4] ss:$8 sps:$4 sm:$0xff]  }
 0x4b7   :  { %4286 = vmatprep.subr.bf16.mxu0 %v18318_v14  ;;  %v18400_v14 = vld [vmem:[#allocation7 + $0x3e0] ss:$8 sps:$4 sm:$0xff]  }
 0x4ba   :  { %4287 = vmatpush1.bf16.msra.mxu0 %v18316_v16  ;;  %v18405_v16 = vld [vmem:[#allocation7 + $0x3f4] ss:$8 sps:$4 sm:$0xff]  }
 0x4bb   :  { %4288 = vmatprep.subr.bf16.mxu0 %v18321_v35  ;;  %v18403_v35 = vld [vmem:[#allocation7 + $0x3f0] ss:$8 sps:$4 sm:$0xff]  }
 0x4be   :  { %4289 = vmatpush1.bf16.msra.mxu0 %v18319_v45  ;;  %v18408_v45 = vld [vmem:[#allocation7 + $0x404] ss:$8 sps:$4 sm:$0xff]  }
 0x4bf   :  { %4290 = vmatprep.subr.bf16.mxu0 %v18324_v19  ;;  %v4610_v19 = vld [vmem:[#allocation4 + $0x7] ss:$2 sm:$0xf] }
 0x4c2   :  { %4291 = vmatpush1.bf16.msra.mxu0 %v18322_v23  ;;  %v18406_v23 = vld [vmem:[#allocation7 + $0x400] ss:$8 sps:$4 sm:$0xff]  }
 0x4c3   :  { %4292 = vmatprep.subr.bf16.mxu0 %v18327_v26  ;;  %v4627_v26 = vpack.c.bf16 %v4610_v19, %v4610_v19 }
 0x4c6   :  { %4293 = vmatpush1.bf16.msra.mxu0 %v18325_v24  ;;  %v18411_v24 = vld [vmem:[#allocation7 + $0x414] ss:$8 sps:$4 sm:$0xff]  }
 0x4c7   :  { %4294 = vmatprep.subr.bf16.mxu0 %v18330_v31  ;;  %v18409_v31 = vld [vmem:[#allocation7 + $0x410] ss:$8 sps:$4 sm:$0xff]  }
 0x4ca   :  { %4295 = vmatpush1.bf16.msra.mxu0 %v18328_v28  ;;  %v18414_v28 = vld [vmem:[#allocation7 + $0x424] ss:$8 sps:$4 sm:$0xff]  }
 0x4cb   :  { %4296 = vmatprep.subr.bf16.mxu0 %v18333_v25  ;;  %v18412_v25 = vld [vmem:[#allocation7 + $0x420] ss:$8 sps:$4 sm:$0xff]  }
 0x4ce   :  { %4297 = vmatpush1.bf16.msra.mxu0 %v18331_v46  ;;  %v18417_v46 = vld [vmem:[#allocation7 + $0x434] ss:$8 sps:$4 sm:$0xff]  }
 0x4cf   :  { %4424 = vmatprep.subr.bf16.mxu0 %v18336_v48  ;;  %v18415_v48 = vld [vmem:[#allocation7 + $0x430] ss:$8 sps:$4 sm:$0xff]  }
 0x4d1   :  { %4315 = vmatmul.mubr.bf16.vlgmr.msra.gmra.mrb[8].mxu0 %v4201_v12  ;;  %v18423_v12 = vld [vmem:[#allocation7 + $0x454] ss:$8 sps:$4 sm:$0xff]  }
 0x4d2   :  { %4425 = vmatpush1.bf16.msra.mxu0 %v18334_v30  ;;  %4456 = vmatprep.mubr.bf16.mxu0 %v19807_v15  ;;  %v18418_v30 = vld [vmem:[#allocation7 + $0x440] ss:$8 sps:$4 sm:$0xff]  }
 0x4d3   :  { %4426 = vmatprep.subr.bf16.mxu0 %v18339_v21  ;;  %v18421_v21 = vld [vmem:[#allocation7 + $0x450] ss:$8 sps:$4 sm:$0xff]  }
 0x4d6   :  { %4427 = vmatpush1.bf16.msra.mxu0 %v18337_v41  ;;  %v15197_v41 = vld [vmem:[%s23524_s27] ss:$0 sm:$0xff] }
 0x4d7   :  { %4428 = vmatprep.subr.bf16.mxu0 %v18342_v59  ;;  %v18426_v59 = vld [vmem:[#allocation7 + $0x464] ss:$8 sps:$4 sm:$0xff]  }
 0x4da   :  { %4429 = vmatpush1.bf16.msra.mxu0 %v18340_v22 }
 0x4db   :  { %4430 = vmatprep.subr.bf16.mxu0 %v18345_v33  ;;  %v15198_v33 = vld [vmem:[%s23525_s23] ss:$0 sm:$0xff] }
 0x4de   :  { %4431 = vmatpush1.bf16.msra.mxu0 %v18343_v63 }
 0x4df   :  { %4432 = vmatprep.subr.bf16.mxu0 %v18348_v32 }
 0x4e2   :  { %4433 = vmatpush1.bf16.msra.mxu0 %v18346_v36 }
 0x4e3   :  { %4434 = vmatprep.subr.bf16.mxu0 %v18351_v34 }
 0x4e6   :  { %4435 = vmatpush1.bf16.msra.mxu0 %v18349_v62  ;;  %v18424_v62 = vld [vmem:[#allocation7 + $0x460] ss:$8 sps:$4 sm:$0xff]  }
 0x4e7   :  { %4436 = vmatprep.subr.bf16.mxu0 %v18354_v2 }
 0x4ea   :  { %4437 = vmatpush1.bf16.msra.mxu0 %v18352_v3 }
 0x4eb   :  { %4438 = vmatprep.subr.bf16.mxu0 %v18357_v17 }
 0x4ee   :  { %4439 = vmatpush1.bf16.msra.mxu0 %v18355_v37  ;;  %v18429_v37 = vld [vmem:[#allocation7 + $0x474] ss:$8 sps:$4 sm:$0xff]  }
 0x4ef   :  { %4566 = vmatprep.subr.bf16.mxu0 %v18360_v38 }
 0x4f1   :  { %4457 = vmatmul.mubr.bf16.vlgmr.msra.gmra.mrb[8].mxu0 %v4343_v42 }
 0x4f2   :  { %4567 = vmatpush1.bf16.msra.mxu0 %v18358_v39  ;;  %4598 = vmatprep.mubr.bf16.mxu0 %v19807_v15 }
 0x4f3   :  { %4568 = vmatprep.subr.bf16.mxu0 %v18363_v54 }
 0x4f6   :  { %4569 = vmatpush1.bf16.msra.mxu0 %v18361_v18 }
 0x4f7   :  { %4570 = vmatprep.subr.bf16.mxu0 %v18366_v60  ;;  %v18427_v60 = vld [vmem:[#allocation7 + $0x470] ss:$8 sps:$4 sm:$0xff]  }
 0x4fa   :  { %4571 = vmatpush1.bf16.msra.mxu0 %v18364_v40 }
 0x4fb   :  { %4572 = vmatprep.subr.bf16.mxu0 %v18369_v27 }
 0x4fe   :  { %4573 = vmatpush1.bf16.msra.mxu0 %v18367_v44 }
 0x4ff   :  { %4574 = vmatprep.subr.bf16.mxu0 %v18372_v56  ;;  %v4752_v56 = vld [vmem:[#allocation4 + $0x8] ss:$2 sm:$0xf] }
 0x500   :  { %v4769_v0 = vpack.c.bf16 %v4752_v56, %v4752_v56  ;;  %v18451_v56 = vld [vmem:[%s23523_s3 + $0xa8] sm:$0xff]  }
 0x502   :  { %4575 = vmatpush1.bf16.msra.mxu0 %v18370_v43 }
 0x503   :  { %4576 = vmatprep.subr.bf16.mxu0 %v18375_v47 }
 0x506   :  { %4577 = vmatpush1.bf16.msra.mxu0 %v18373_v50 }
 0x507   :  { %4578 = vmatprep.subr.bf16.mxu0 %v18378_v51 }
 0x50a   :  { %4579 = vmatpush1.bf16.msra.mxu0 %v18376_v11  ;;  %v18430_v11 = vld [vmem:[%s23523_s3 + $0x20] sm:$0xff]  }
 0x50b   :  { %4580 = vmatprep.subr.bf16.mxu0 %v18381_v52 }
 0x50e   :  { %4581 = vmatpush1.bf16.msra.mxu0 %v18379_v53 }
 0x50f   :  { %4708 = vmatprep.subr.bf16.mxu0 %v18384_v61 }
 0x511   :  { %4599 = vmatmul.mubr.bf16.vlgmr.msra.gmra.mrb[8].mxu0 %v4485_v5 }
 0x512   :  { %4709 = vmatpush1.bf16.msra.mxu0 %v18382_v1  ;;  %4740 = vmatprep.mubr.bf16.mxu0 %v19807_v15  ;;  %v21589_v1 = vld [vmem:[#allocation4 + $0x10] sm:$0xff] }
 0x513   :  { %4710 = vmatprep.subr.bf16.mxu0 %v18387_v55 }
 0x516   :  { %4711 = vmatpush1.bf16.msra.mxu0 %v18385_v57 }
 0x517   :  { %4712 = vmatprep.subr.bf16.mxu0 %v18390_v58 }
 0x51a   :  { %4713 = vmatpush1.bf16.msra.mxu0 %v18388_v4 }
 0x51b   :  { %4714 = vmatprep.subr.bf16.mxu0 %v18393_v7 }
 0x51e   :  { %4715 = vmatpush1.bf16.msra.mxu0 %v18391_v6  ;;  %v18431_v6 = vld [vmem:[%s23523_s3 + $0x28] sm:$0xff]  }
 0x51f   :  { %4716 = vmatprep.subr.bf16.mxu0 %v18396_v8 }
 0x522   :  { %4717 = vmatpush1.bf16.msra.mxu0 %v18394_v9 }
 0x523   :  { %4718 = vmatprep.subr.bf16.mxu0 %v18399_v20 }
 0x526   :  { %4719 = vmatpush1.bf16.msra.mxu0 %v18397_v10 }
 0x527   :  { %4720 = vmatprep.subr.bf16.mxu0 %v18402_v13 }
 0x52a   :  { %4721 = vmatpush1.bf16.msra.mxu0 %v18400_v14  ;;  %v18432_v14 = vld [vmem:[%s23523_s3 + $0x30] sm:$0xff]  }
 0x52b   :  { %4722 = vmatprep.subr.bf16.mxu0 %v18405_v16 }
 0x52e   :  { %4723 = vmatpush1.bf16.msra.mxu0 %v18403_v35 }
 0x52f   :  { %4850 = vmatprep.subr.bf16.mxu0 %v18408_v45 }
 0x531   :  { %4741 = vmatmul.mubr.bf16.vlgmr.msra.gmra.mrb[8].mxu0 %v4627_v26 }
 0x532   :  { %4851 = vmatpush1.bf16.msra.mxu0 %v18406_v23  ;;  %4882 = vmatprep.mubr.bf16.mxu0 %v19807_v15  ;;  %v18433_v23 = vld [vmem:[%s23523_s3 + $0x38] sm:$0xff]  }
 0x533   :  { %4852 = vmatprep.subr.bf16.mxu0 %v18411_v24 }
 0x536   :  { %4853 = vmatpush1.bf16.msra.mxu0 %v18409_v31 }
 0x537   :  { %4854 = vmatprep.subr.bf16.mxu0 %v18414_v28 }
 0x53a   :  { %4855 = vmatpush1.bf16.msra.mxu0 %v18412_v25 }
 0x53b   :  { %4856 = vmatprep.subr.bf16.mxu0 %v18417_v46 }
 0x53e   :  { %4857 = vmatpush1.bf16.msra.mxu0 %v18415_v48 }
 0x53f   :  { %4858 = vmatprep.subr.bf16.mxu0 %v18420_v49 }
 0x542   :  { %4859 = vmatpush1.bf16.msra.mxu0 %v18418_v30  ;;  %v18434_v30 = vld [vmem:[%s23523_s3] sm:$0xff]  }
 0x543   :  { %4860 = vmatprep.subr.bf16.mxu0 %v18423_v12 }
 0x544   :  { %v17280_v22 = vpop.f32.mrb[4].mxu1 }
 0x545   :  { %v6738_v63 = vmul.f32 %v17280_v22, %v15197_v41  ;;  %v6690_v32 = vpop.f32.mrb[5].mxu1 }
 0x546   :  { %4861 = vmatpush1.bf16.msra.mxu0 %v18421_v21  ;;  %v6736_v36 = vmul.f32 %v15197_v41, %v6690_v32  ;;  %v17281_v34 = vpop.f32.mrb[6].mxu1  ;;  %v18435_v21 = vld [vmem:[%s23523_s3 + $0x8] sm:$0xff]  }
 0x547   :  { %v6753_v2 = vadd.f32 %v15198_v33, %v6738_v63  ;;  %v6739_v3 = vmul.f32 %v17281_v34, %v15197_v41  ;;  %v6693_v17 = vpop.f32.mrb[7].mxu1  ;;  %4862 = vmatprep.subr.bf16.mxu0 %v18426_v59  ;;  %v18437_v59 = vld [vmem:[%s23523_s3 + $0x18] sm:$0xff]   ;;  %v18439_v32 = vld [vmem:[%s23523_s3 + $0x48] sm:$0xff]  }
 0x548   :  { %v6751_v38 = vadd.f32 %v15198_v33, %v6736_v36  ;;  %v6737_v29 = vmul.f32 %v15197_v41, %v6693_v17  ;;  %v18440_v36 = vld [vmem:[%s23523_s3 + $0x50] sm:$0xff]   ;;  %v18441_v34 = vld [vmem:[%s23523_s3 + $0x58] sm:$0xff]   ;;  %v18443_v17 = vld [vmem:[%s23523_s3 + $0x68] sm:$0xff]  }
 0x549   :  { %v6761_v39 = vmax.f32 %v6753_v2, 0.0  ;;  %v6754_v42 = vadd.f32 %v15198_v33, %v6739_v3  ;;  %v18442_v2 = vld [vmem:[%s23523_s3 + $0x60] sm:$0xff]  }
 0x54a   :  { %v6759_v54 = vmax.f32 %v6751_v38, 0.0  ;;  %v6752_v18 = vadd.f32 %v15198_v33, %v6737_v29  ;;  %4863 = vmatpush1.bf16.msra.mxu0 %v18424_v62  ;;  %v18445_v38 = vld [vmem:[%s23523_s3 + $0x78] sm:$0xff]  }
 0x54b   :  { %6769 = vst.msk [vmem:[#allocation2 + $0x50] sm:$0xff] %vm96_vm1, %v6761_v39  ;;  %v6762_v40 = vmax.f32 %v6754_v42, 0.0  ;;  %4864 = vmatprep.subr.bf16.mxu0 %v18429_v37  ;;  %v18444_v37 = vld [vmem:[%s23523_s3 + $0x70] sm:$0xff]   ;;  %v18446_v39 = vld [vmem:[%s23523_s3 + $0x80] sm:$0xff]  }
 0x54c   :  { %6767 = vst.msk [vmem:[#allocation2 + $0x40] sm:$0xff] %vm96_vm1, %v6759_v54  ;;  %v6760_v27 = vmax.f32 %v6752_v18, 0.0  ;;  %v17284_v44 = vpop.f32.mrb[8].mxu1  ;;  %v18447_v54 = vld [vmem:[%s23523_s3 + $0x88] sm:$0xff]   ;;  %v18448_v18 = vld [vmem:[%s23523_s3 + $0x90] sm:$0xff]  }
 0x54d   :  { %6770 = vst.msk [vmem:[#allocation2 + $0x58] sm:$0xff] %vm96_vm1, %v6762_v40  ;;  %v6742_v43 = vmul.f32 %v17284_v44, %v15197_v41  ;;  %v6706_v47 = vpop.f32.mrb[9].mxu1 }
 0x54e   :  { %6768 = vst.msk [vmem:[#allocation2 + $0x48] sm:$0xff] %vm96_vm1, %v6760_v27  ;;  %4865 = vmatpush1.bf16.msra.mxu0 %v18427_v60  ;;  %v6740_v50 = vmul.f32 %v15197_v41, %v6706_v47  ;;  %v17285_v51 = vpop.f32.mrb[10].mxu1  ;;  %v18449_v60 = vld [vmem:[%s23523_s3 + $0x98] sm:$0xff]   ;;  %v18450_v27 = vld [vmem:[%s23523_s3 + $0xa0] sm:$0xff]  }
 0x54f   :  { %v6757_v52 = vadd.f32 %v15198_v33, %v6742_v43  ;;  %v6743_v53 = vmul.f32 %v17285_v51, %v15197_v41  ;;  %v6709_v61 = vpop.f32.mrb[11].mxu1  ;;  %17286 = vmatprep.subr.bf16.mxu0 %v21589_v1  ;;  %v18452_v43 = vld [vmem:[%s23523_s3 + $0xb0] sm:$0xff]   ;;  %v18453_v47 = vld [vmem:[%s23523_s3 + $0xb8] sm:$0xff]   ;;  %v18454_v51 = vld [vmem:[%s23523_s3 + $0xc0] sm:$0xff]  }
 0x550   :  { %v6755_v5 = vadd.f32 %v15198_v33, %v6740_v50  ;;  %v6741_v55 = vmul.f32 %v15197_v41, %v6709_v61  ;;  %v18436_v41 = vld [vmem:[%s23523_s3 + $0x10] sm:$0xff]   ;;  %v18457_v61 = vld [vmem:[%s23523_s3 + $0xd8] sm:$0xff]  }
 0x551   :  { %v6765_v57 = vmax.f32 %v6757_v52, 0.0  ;;  %v6758_v58 = vadd.f32 %v15198_v33, %v6743_v53  ;;  %4883 = vmatmul.mubr.bf16.vlgmr.msra.gmra.mrb[8].mxu0 %v4769_v0  ;;  %v18455_v52 = vld [vmem:[%s23523_s3 + $0xc8] sm:$0xff]   ;;  %v18456_v53 = vld [vmem:[%s23523_s3 + $0xd0] sm:$0xff]  }
 0x552   :  { %v6763_v4 = vmax.f32 %v6755_v5, 0.0  ;;  %v6756_v7 = vadd.f32 %v15198_v33, %v6741_v55  ;;  %17287 = vmatpush3.bf16.msra.mxu0 %v18430_v11  ;;  %17294 = vmatprep.mubr.msk.bf16.mxu0 %vm19806_vm2, %v21589_v1  ;;  %v18438_v33 = vld [vmem:[%s23523_s3 + $0x40] sm:$0xff]  }
 0x553   :  { %6773 = vst.msk [vmem:[#allocation2 + $0x70] sm:$0xff] %vm96_vm1, %v6765_v57  ;;  %v6766_v8 = vmax.f32 %v6758_v58, 0.0  ;;  %17288 = vmatprep.subr.bf16.mxu0 %v21589_v1  ;;  %v18458_v5 = vld [vmem:[%s23523_s3 + $0xe0] sm:$0xff]   ;;  %v18459_v57 = vld [vmem:[%s23523_s3 + $0xe8] sm:$0xff]   ;;  %v18460_v58 = vld [vmem:[%s23523_s3 + $0xf0] sm:$0xff]  }
 0x554   :  { %6771 = vst.msk [vmem:[#allocation2 + $0x60] sm:$0xff] %vm96_vm1, %v6763_v4  ;;  %v6764_v9 = vmax.f32 %v6756_v7, 0.0  ;;  %v18461_v4 = vld [vmem:[%s23523_s3 + $0xf8] sm:$0xff]  }
 0x555   :  { %v6776_v20 = vld [vmem:[#allocation2 + $0x40] ss:$4 sm:$0xff]  ;;  %v6780_v10 = vld [vmem:[#allocation2 + $0x41] ss:$4 sm:$0xff]  ;;  %6774 = vst.msk [vmem:[#allocation2 + $0x78] sm:$0xff] %vm96_vm1, %v6766_v8 }
 0x556   :  { %v6783_v13 = vmax.f32 %v6776_v20, %v6780_v10  ;;  %6772 = vst.msk [vmem:[#allocation2 + $0x68] sm:$0xff] %vm96_vm1, %v6764_v9  ;;  %17289 = vmatpush3.bf16.msra.mxu0 %v18431_v6  ;;  %v6786_v16 = vld [vmem:[#allocation2 + $0x42] ss:$4 sm:$0xff]  ;;  %v6792_v45 = vld [vmem:[#allocation2 + $0x43] ss:$4 sm:$0xff] }
 0x557   :  { %17290 = vmatprep.subr.bf16.mxu0 %v21589_v1  ;;  %v18462_v6 = vld [vmem:[%s23523_s3 + $0x100] sm:$0xff]   ;;  %v18463_v9 = vld [vmem:[%s23523_s3 + $0x108] sm:$0xff]   ;;  %v18464_v20 = vld [vmem:[%s23523_s3 + $0x110] sm:$0xff]  }
 0x558   :  { %v6789_v35 = vmax.f32 %v6783_v13, %v6786_v16  ;;  %v18465_v10 = vld [vmem:[%s23523_s3 + $0x118] sm:$0xff]  }
 0x55a   :  { %v6795_v19 = vmax.f32 %v6789_v35, %v6792_v45  ;;  %17291 = vmatpush3.bf16.msra.mxu0 %v18432_v14  ;;  %v18466_v14 = vld [vmem:[%s23523_s3 + $0x120] sm:$0xff]   ;;  %v18467_v35 = vld [vmem:[%s23523_s3 + $0x128] sm:$0xff]   ;;  %v18468_v45 = vld [vmem:[%s23523_s3 + $0x130] sm:$0xff]  }
 0x55b   :  { %17292 = vmatprep.subr.bf16.mxu0 %v21589_v1 }
 0x55c   :  { %6797 = vst.msk [vmem:[#allocation3 + $0x32] sm:$0xff] %vm96_vm1, %v6795_v19  ;;  %v18469_v19 = vld [vmem:[%s23523_s3 + $0x138] sm:$0xff]  }
 0x55d   :  { %v6778_v26 = vld [vmem:[#allocation2 + $0x60] ss:$4 sm:$0xff]  ;;  %v6782_v24 = vld [vmem:[#allocation2 + $0x61] ss:$4 sm:$0xff]  ;;  %v6788_v28 = vld [vmem:[#allocation2 + $0x62] ss:$4 sm:$0xff] }
 0x55e   :  { %v6784_v31 = vmax.f32 %v6778_v26, %v6782_v24  ;;  %17293 = vmatpush3.bf16.msra.mxu0 %v18433_v23  ;;  %v6794_v46 = vld [vmem:[#allocation2 + $0x63] ss:$4 sm:$0xff] }
 0x55f   :  { %17298 = vmatprep.subr.bf16.mxu0 %v21589_v1  ;;  %v18470_v26 = vld [vmem:[%s23523_s3 + $0x140] sm:$0xff]  }
 0x560   :  { %v6790_v25 = vmax.f32 %v6784_v31, %v6788_v28  ;;  %v18471_v31 = vld [vmem:[%s23523_s3 + $0x148] sm:$0xff]   ;;  %v18472_v28 = vld [vmem:[%s23523_s3 + $0x150] sm:$0xff]  }
 0x562   :  { %v6796_v48 = vmax.f32 %v6790_v25, %v6794_v46  ;;  %v18473_v25 = vld [vmem:[%s23523_s3 + $0x158] sm:$0xff]  }
 0x563   :  { %v6811_v49 = vld [vmem:[#allocation3 + $0x29] ss:$2 sm:$0xff]  ;;  %v6800_v22 = vld [vmem:[#allocation3 + $0x28] ss:$2 sm:$0xff] }
 0x564   :  { %6798 = vst.msk [vmem:[#allocation3 + $0x3a] sm:$0xff] %vm96_vm1, %v6796_v48  ;;  %v6820_v12 = vpack.c.bf16 %v6811_v49, %v6811_v49  ;;  %v6809_v63 = vpack.c.bf16 %v6800_v22, %v6800_v22  ;;  %v6956_v62 = vld [vmem:[#allocation3 + $0x2a] ss:$2 sm:$0xff]  ;;  %v7035_v29 = vld [vmem:[#allocation3 + $0x2b] ss:$2 sm:$0xff]  ;;  %v18474_v48 = vld [vmem:[%s23523_s3 + $0x160] sm:$0xff]  }
 0x565   :  { %v6965_v3 = vpack.c.bf16 %v6956_v62, %v6956_v62  ;;  %v7044_v42 = vpack.c.bf16 %v7035_v29, %v7035_v29  ;;  %v4893_v62 = vld [vmem:[%s23495_s8] sm:$0x3] }
 0x566   :  { %17295 = vmatmul.mubr.msk.bf16.vlgmr.msra.gmra.mrb[12].mxu0 %vm96_vm1, %v6820_v12  ;;  %v18476_v12 = vld [vmem:[%s23523_s3 + $0x170] sm:$0xff]  }
 0x567   :  { %17299 = vmatpush3.bf16.msra.mxu0 %v18434_v30  ;;  %17306 = vmatprep.mubr.msk.bf16.mxu0 %vm19806_vm2, %v21589_v1  ;;  %v18475_v30 = vld [vmem:[%s23523_s3 + $0x168] sm:$0xff]  }
 0x568   :  { %17300 = vmatprep.subr.bf16.mxu0 %v21589_v1 }
 0x56b   :  { %17301 = vmatpush3.bf16.msra.mxu0 %v18435_v21  ;;  %v7114_v40 = vld [vmem:[#allocation3 + $0x2c] ss:$2 sm:$0xff]  ;;  %v7193_v50 = vld [vmem:[#allocation3 + $0x2d] ss:$2 sm:$0xff] }
 0x56c   :  { %17302 = vmatprep.subr.bf16.mxu0 %v21589_v1  ;;  %v7123_v44 = vpack.c.bf16 %v7114_v40, %v7114_v40  ;;  %v7202_v11 = vpack.c.bf16 %v7193_v50, %v7193_v50  ;;  %v7272_v0 = vld [vmem:[#allocation3 + $0x2e] ss:$2 sm:$0xff]  ;;  %v7351_v7 = vld [vmem:[#allocation3 + $0x2f] ss:$2 sm:$0xff] }
 0x56d   :  { %v7281_v55 = vpack.c.bf16 %v7272_v0, %v7272_v0  ;;  %v7360_v8 = vpack.c.bf16 %v7351_v7, %v7351_v7  ;;  %v7430_v13 = vld [vmem:[#allocation3 + $0x30] ss:$2 sm:$0xff]  ;;  %v7509_v23 = vld [vmem:[#allocation3 + $0x31] ss:$2 sm:$0xff] }
 0x56e   :  { %v7439_v16 = vpack.c.bf16 %v7430_v13, %v7430_v13  ;;  %v7518_v24 = vpack.c.bf16 %v7509_v23, %v7509_v23  ;;  %v7588_v46 = vld [vmem:[#allocation3 + $0x32] ss:$2 sm:$0xff] }
 0x56f   :  { %17303 = vmatpush3.bf16.msra.mxu0 %v18436_v41  ;;  %v7597_v49 = vpack.c.bf16 %v7588_v46, %v7588_v46  ;;  %v18477_v21 = vld [vmem:[%s23523_s3 + $0x178] sm:$0xff]  }
 0x570   :  { %17304 = vmatprep.subr.bf16.mxu0 %v21589_v1  ;;  %v7667_v41 = vld [vmem:[#allocation3 + $0x33] ss:$2 sm:$0xff] }
 0x571   :  { %v7676_v22 = vpack.c.bf16 %v7667_v41, %v7667_v41  ;;  %v18517_v0 = vld [vmem:[#allocation7 + $0x90] ss:$8 sps:$4 sm:$0xff]  }
 0x572   :  { %v18485_v13 = vld [vmem:[%s23523_s3 + $0x1b8] sm:$0xff]  }
 0x573   :  { %17305 = vmatpush3.bf16.msra.mxu0 %v18437_v59  ;;  %v18478_v59 = vld [vmem:[%s23523_s3 + $0x180] sm:$0xff]   ;;  %v18523_v23 = vld [vmem:[#allocation7 + $0xb0] ss:$8 sps:$4 sm:$0xff]  }
 0x574   :  { %17310 = vmatprep.subr.bf16.mxu0 %v21589_v1 }
 0x576   :  { %17307 = vmatmul.mubr.msk.bf16.vlgmr.msra.gmra.mrb[12].mxu0 %vm96_vm1, %v6809_v63  ;;  %v18479_v63 = vld [vmem:[%s23523_s3 + $0x188] sm:$0xff]  }
 0x577   :  { %17311 = vmatpush3.bf16.msra.mxu0 %v18438_v33  ;;  %17318 = vmatprep.mubr.msk.bf16.mxu0 %vm19806_vm2, %v21589_v1  ;;  %v4895_v33 = vlaneseq }
 0x578   :  { %17312 = vmatprep.subr.bf16.mxu0 %v21589_v1 }
 0x579   :  { %vm21900_vm4 = vcmp.lt.s32.totalorder %v4895_v33, 256 }
 0x57b   :  { %17313 = vmatpush3.bf16.msra.mxu0 %v18439_v32  ;;  %v21833_v32 = vshrl.u32 %v4895_v33, 7  ;;  %v18490_v33 = vld [vmem:[%s23523_s3 + $0x1e0] sm:$0xff]  }
 0x57c   :  { %17314 = vmatprep.subr.bf16.mxu0 %v21589_v1 }
 0x57f   :  { %17315 = vmatpush3.bf16.msra.mxu0 %v18440_v36  ;;  %v18480_v36 = vld [vmem:[%s23523_s3 + $0x190] sm:$0xff]  }
 0x580   :  { %17316 = vmatprep.subr.bf16.mxu0 %v21589_v1 }
 0x583   :  { %17317 = vmatpush3.bf16.msra.mxu0 %v18441_v34  ;;  %v21840_v34 = vsub.s32 0, %v21833_v32 }
 0x584   :  { %17322 = vmatprep.subr.bf16.mxu0 %v21589_v1 }
 0x586   :  { %17319 = vmatmul.mubr.msk.bf16.vlgmr.msra.gmra.mrb[12].mxu0 %vm96_vm1, %v6965_v3  ;;  %v18481_v3 = vld [vmem:[%s23523_s3 + $0x198] sm:$0xff]  }
 0x587   :  { %17323 = vmatpush3.bf16.msra.mxu0 %v18442_v2  ;;  %17330 = vmatprep.mubr.msk.bf16.mxu0 %vm19806_vm2, %v21589_v1  ;;  %v21846_v2 = vsub.s32 1, %v21833_v32 }
 0x588   :  { %17324 = vmatprep.subr.bf16.mxu0 %v21589_v1 }
 0x589   :  { %v4902_v29 = vrot.slane %v4893_v62, %v21846_v2 }
 0x58b   :  { %17325 = vmatpush3.bf16.msra.mxu0 %v18443_v17  ;;  %v4907_v17 = vld [vmem:[%s23496_s9] sm:$0x3] }
 0x58c   :  { %17326 = vmatprep.subr.bf16.mxu0 %v21589_v1 }
 0x58f   :  { %17327 = vmatpush3.bf16.msra.mxu0 %v18444_v37  ;;  %v4898_v37 = vrot.slane %v4893_v62, %v21840_v34  ;;  %v18835_v62 = vld [vmem:[#allocation9 + $0x78] ss:$48 sps:$4 sm:$0xff]  }
 0x590   :  { %17328 = vmatprep.subr.bf16.mxu0 %v21589_v1 }
 0x593   :  { %17329 = vmatpush3.bf16.msra.mxu0 %v18445_v38  ;;  %v7746_v38 = vld [vmem:[#allocation3 + $0x34] ss:$2 sm:$0xff] }
 0x594   :  { %17334 = vmatprep.subr.bf16.mxu0 %v21589_v1 }
 0x596   :  { %17331 = vmatmul.mubr.msk.bf16.vlgmr.msra.gmra.mrb[12].mxu0 %vm96_vm1, %v7044_v42  ;;  %v18482_v42 = vld [vmem:[%s23523_s3 + $0x1a0] sm:$0xff]  }
 0x597   :  { %17335 = vmatpush3.bf16.msra.mxu0 %v18446_v39  ;;  %17342 = vmatprep.mubr.msk.bf16.mxu0 %vm19806_vm2, %v21589_v1  ;;  %v4912_v39 = vrot.slane %v4907_v17, %v21840_v34 }
 0x598   :  { %17336 = vmatprep.subr.bf16.mxu0 %v21589_v1 }
 0x59b   :  { %17337 = vmatpush3.bf16.msra.mxu0 %v18447_v54 }
 0x59c   :  { %17338 = vmatprep.subr.bf16.mxu0 %v21589_v1 }
 0x59f   :  { %17339 = vmatpush3.bf16.msra.mxu0 %v18448_v18  ;;  %v4916_v18 = vrot.slane %v4907_v17, %v21846_v2  ;;  %v18489_v17 = vld [vmem:[%s23523_s3 + $0x1d8] sm:$0xff]  }
 0x5a0   :  { %17340 = vmatprep.subr.bf16.mxu0 %v21589_v1 }
 0x5a3   :  { %17341 = vmatpush3.bf16.msra.mxu0 %v18449_v60  ;;  %v7755_v60 = vpack.c.bf16 %v7746_v38, %v7746_v38 }
 0x5a4   :  { %17346 = vmatprep.subr.bf16.mxu0 %v21589_v1 }
 0x5a6   :  { %17343 = vmatmul.mubr.msk.bf16.vlgmr.msra.gmra.mrb[12].mxu0 %vm96_vm1, %v7123_v44 }
 0x5a7   :  { %17347 = vmatpush3.bf16.msra.mxu0 %v18450_v27  ;;  %17354 = vmatprep.mubr.msk.bf16.mxu0 %vm19806_vm2, %v21589_v1 }
 0x5a8   :  { %17348 = vmatprep.subr.bf16.mxu0 %v21589_v1 }
 0x5ab   :  { %17349 = vmatpush3.bf16.msra.mxu0 %v18451_v56 }
 0x5ac   :  { %17350 = vmatprep.subr.bf16.mxu0 %v21589_v1 }
 0x5af   :  { %17351 = vmatpush3.bf16.msra.mxu0 %v18452_v43  ;;  %v18514_v43 = vld [vmem:[#allocation7 + $0x80] ss:$8 sps:$4 sm:$0xff]  }
 0x5b0   :  { %17352 = vmatprep.subr.bf16.mxu0 %v21589_v1 }
 0x5b3   :  { %17353 = vmatpush3.bf16.msra.mxu0 %v18453_v47  ;;  %v18516_v47 = vld [vmem:[#allocation7 + $0x84] ss:$8 sps:$4 sm:$0xff]  }
 0x5b4   :  { %17358 = vmatprep.subr.bf16.mxu0 %v21589_v1  ;;  %8592 = vmatprep.subr.bf16.mxu1 %v18516_v47 }
 0x5b5   :  { %8593 = vmatpush1.bf16.msra.mxu1 %v18514_v43  ;;  %v18498_v43 = vld [vmem:[%s23523_s3 + $0x220] sm:$0xff]  }
 0x5b6   :  { %17355 = vmatmul.mubr.msk.bf16.vlgmr.msra.gmra.mrb[12].mxu0 %vm96_vm1, %v7202_v11  ;;  %v18483_v11 = vld [vmem:[%s23523_s3 + $0x1a8] sm:$0xff]  }
 0x5b7   :  { %17359 = vmatpush3.bf16.msra.mxu0 %v18454_v51  ;;  %17366 = vmatprep.mubr.msk.bf16.mxu0 %vm19806_vm2, %v21589_v1 }
 0x5b8   :  { %17360 = vmatprep.subr.bf16.mxu0 %v21589_v1 }
 0x5bb   :  { %17361 = vmatpush3.bf16.msra.mxu0 %v18455_v52  ;;  %v18519_v52 = vld [vmem:[#allocation7 + $0x94] ss:$8 sps:$4 sm:$0xff]  }
 0x5bc   :  { %17362 = vmatprep.subr.bf16.mxu0 %v21589_v1  ;;  %8594 = vmatprep.subr.bf16.mxu1 %v18519_v52  ;;  %v8141_v52 = vld [vmem:[#allocation3 + $0x39] ss:$2 sm:$0xff] }
 0x5bd   :  { %8595 = vmatpush1.bf16.msra.mxu1 %v18517_v0  ;;  %v18503_v0 = vld [vmem:[%s23523_s3 + $0x248] sm:$0xff]  }
 0x5bf   :  { %17363 = vmatpush3.bf16.msra.mxu0 %v18456_v53 }
 0x5c0   :  { %17364 = vmatprep.subr.bf16.mxu0 %v21589_v1 }
 0x5c3   :  { %17365 = vmatpush3.bf16.msra.mxu0 %v18457_v61 }
 0x5c4   :  { %17370 = vmatprep.subr.bf16.mxu0 %v21589_v1 }
 0x5c6   :  { %17367 = vmatmul.mubr.msk.bf16.vlgmr.msra.gmra.mrb[12].mxu0 %vm96_vm1, %v7281_v55  ;;  %v18522_v55 = vld [vmem:[#allocation7 + $0xa4] ss:$8 sps:$4 sm:$0xff]  }
 0x5c7   :  { %17371 = vmatpush3.bf16.msra.mxu0 %v18458_v5  ;;  %17378 = vmatprep.mubr.msk.bf16.mxu0 %vm19806_vm2, %v21589_v1 }
 0x5c8   :  { %17372 = vmatprep.subr.bf16.mxu0 %v21589_v1  ;;  %8596 = vmatprep.subr.bf16.mxu1 %v18522_v55  ;;  %v18505_v55 = vld [vmem:[%s23523_s3 + $0x258] sm:$0xff]  }
 0x5cb   :  { %17373 = vmatpush3.bf16.msra.mxu0 %v18459_v57 }
 0x5cc   :  { %17374 = vmatprep.subr.bf16.mxu0 %v21589_v1 }
 0x5cf   :  { %17375 = vmatpush3.bf16.msra.mxu0 %v18460_v58  ;;  %v18484_v58 = vld [vmem:[%s23523_s3 + $0x1b0] sm:$0xff]  }
 0x5d0   :  { %17376 = vmatprep.subr.bf16.mxu0 %v21589_v1 }
 0x5d3   :  { %17377 = vmatpush3.bf16.msra.mxu0 %v18461_v4 }
 0x5d4   :  { %17382 = vmatprep.subr.bf16.mxu0 %v21589_v1 }
 0x5d6   :  { %17379 = vmatmul.mubr.msk.bf16.vlgmr.msra.gmra.mrb[12].mxu0 %vm96_vm1, %v7360_v8  ;;  %v18520_v8 = vld [vmem:[#allocation7 + $0xa0] ss:$8 sps:$4 sm:$0xff]  }
 0x5d7   :  { %17383 = vmatpush3.bf16.msra.mxu0 %v18462_v6  ;;  %17390 = vmatprep.mubr.msk.bf16.mxu0 %vm19806_vm2, %v21589_v1 }
 0x5d8   :  { %17384 = vmatprep.subr.bf16.mxu0 %v21589_v1  ;;  %8597 = vmatpush1.bf16.msra.mxu1 %v18520_v8  ;;  %v18509_v8 = vld [vmem:[%s23523_s3 + $0x278] sm:$0xff]  }
 0x5db   :  { %17385 = vmatpush3.bf16.msra.mxu0 %v18463_v9 }
 0x5dc   :  { %17386 = vmatprep.subr.bf16.mxu0 %v21589_v1 }
 0x5df   :  { %17387 = vmatpush3.bf16.msra.mxu0 %v18464_v20  ;;  %v18525_v20 = vld [vmem:[#allocation7 + $0xb4] ss:$8 sps:$4 sm:$0xff]  }
 0x5e0   :  { %17388 = vmatprep.subr.bf16.mxu0 %v21589_v1  ;;  %8598 = vmatprep.subr.bf16.mxu1 %v18525_v20  ;;  %v18510_v20 = vld [vmem:[%s23523_s3 + $0x280] sm:$0xff]  }
 0x5e1   :  { %8599 = vmatpush1.bf16.msra.mxu1 %v18523_v23  ;;  %v18526_v23 = vld [vmem:[#allocation7 + $0xc0] ss:$8 sps:$4 sm:$0xff]  }
 0x5e3   :  { %17389 = vmatpush3.bf16.msra.mxu0 %v18465_v10 }
 0x5e4   :  { %17394 = vmatprep.subr.bf16.mxu0 %v21589_v1 }
 0x5e6   :  { %17391 = vmatmul.mubr.msk.bf16.vlgmr.msra.gmra.mrb[12].mxu0 %vm96_vm1, %v7439_v16 }
 0x5e7   :  { %17395 = vmatpush3.bf16.msra.mxu0 %v18466_v14  ;;  %17402 = vmatprep.mubr.msk.bf16.mxu0 %vm19806_vm2, %v21589_v1 }
 0x5e8   :  { %17396 = vmatprep.subr.bf16.mxu0 %v21589_v1 }
 0x5eb   :  { %17397 = vmatpush3.bf16.msra.mxu0 %v18467_v35  ;;  %v19808_v35 = vmov 1966171168  }
 0x5ec   :  { %17398 = vmatprep.subr.bf16.mxu0 %v21589_v1 }
 0x5ef   :  { %17399 = vmatpush3.bf16.msra.mxu0 %v18468_v45  ;;  %v4944_v45 = vunpack.c.l.s4 %v19808_v35  ;;  %v8378_v35 = vld [vmem:[#allocation3 + $0x3c] ss:$2 sm:$0xff] }
 0x5f0   :  { %17400 = vmatprep.subr.bf16.mxu0 %v21589_v1 }
 0x5f3   :  { %17401 = vmatpush3.bf16.msra.mxu0 %v18469_v19  ;;  %v7825_v19 = vld [vmem:[#allocation3 + $0x35] ss:$2 sm:$0xff] }
 0x5f4   :  { %17406 = vmatprep.subr.bf16.mxu0 %v21589_v1 }
 0x5f6   :  { %17403 = vmatmul.mubr.msk.bf16.vlgmr.msra.gmra.mrb[12].mxu0 %vm96_vm1, %v7518_v24 }
 0x5f7   :  { %17407 = vmatpush3.bf16.msra.mxu0 %v18470_v26  ;;  %17414 = vmatprep.mubr.msk.bf16.mxu0 %vm19806_vm2, %v21589_v1 }
 0x5f8   :  { %17408 = vmatprep.subr.bf16.mxu0 %v21589_v1 }
 0x5fb   :  { %17409 = vmatpush3.bf16.msra.mxu0 %v18471_v31  ;;  %v18486_v31 = vld [vmem:[%s23523_s3 + $0x1c0] sm:$0xff]  }
 0x5fc   :  { %17410 = vmatprep.subr.bf16.mxu0 %v21589_v1 }
 0x5ff   :  { %17411 = vmatpush3.bf16.msra.mxu0 %v18472_v28 }
 0x600   :  { %17412 = vmatprep.subr.bf16.mxu0 %v21589_v1 }
 0x603   :  { %17413 = vmatpush3.bf16.msra.mxu0 %v18473_v25  ;;  %v7834_v25 = vpack.c.bf16 %v7825_v19, %v7825_v19  ;;  %v18528_v19 = vld [vmem:[#allocation7 + $0xc4] ss:$8 sps:$4 sm:$0xff]  }
 0x604   :  { %17418 = vmatprep.subr.bf16.mxu0 %v21589_v1  ;;  %8600 = vmatprep.subr.bf16.mxu1 %v18528_v19  ;;  %v18589_v19 = vld [vmem:[#allocation7 + $0x190] ss:$8 sps:$4 sm:$0xff]  }
 0x605   :  { %8601 = vmatpush1.bf16.msra.mxu1 %v18526_v23  ;;  %v18594_v23 = vld [vmem:[#allocation7 + $0x1a4] ss:$8 sps:$4 sm:$0xff]  }
 0x606   :  { %17415 = vmatmul.mubr.msk.bf16.vlgmr.msra.gmra.mrb[12].mxu0 %vm96_vm1, %v7597_v49 }
 0x607   :  { %17419 = vmatpush3.bf16.msra.mxu0 %v18474_v48  ;;  %17426 = vmatprep.mubr.msk.bf16.mxu0 %vm19806_vm2, %v21589_v1  ;;  %v4945_v48 = vunpack.c.0.s8 %v4944_v45  ;;  %v8387_v45 = vpack.c.bf16 %v8378_v35, %v8378_v35 }
 0x608   :  { %17420 = vmatprep.subr.bf16.mxu0 %v21589_v1 }
 0x60b   :  { %17421 = vmatpush3.bf16.msra.mxu0 %v18475_v30 }
 0x60c   :  { %17422 = vmatprep.subr.bf16.mxu0 %v21589_v1 }
 0x60f   :  { %17423 = vmatpush3.bf16.msra.mxu0 %v18476_v12  ;;  %v18487_v12 = vld [vmem:[%s23523_s3 + $0x1c8] sm:$0xff]  }
 0x610   :  { %17424 = vmatprep.subr.bf16.mxu0 %v21589_v1 }
 0x613   :  { %17425 = vmatpush3.bf16.msra.mxu0 %v18477_v21 }
 0x614   :  { %17430 = vmatprep.subr.bf16.mxu0 %v21589_v1 }
 0x616   :  { %17427 = vmatmul.mubr.msk.bf16.vlgmr.msra.gmra.mrb[12].mxu0 %vm96_vm1, %v7676_v22 }
 0x617   :  { %17431 = vmatpush3.bf16.msra.mxu0 %v18478_v59  ;;  %17438 = vmatprep.mubr.msk.bf16.mxu0 %vm19806_vm2, %v21589_v1  ;;  %v21892_v59 = vsub.s32 %v4945_v48, %v21833_v32  ;;  %v15304_v48 = vld [vmem:[%s23526_s22] ss:$0 sm:$0xff] }
 0x618   :  { %17432 = vmatprep.subr.bf16.mxu0 %v21589_v1 }
 0x61b   :  { %17433 = vmatpush3.bf16.msra.mxu0 %v18479_v63  ;;  %v18488_v63 = vld [vmem:[%s23523_s3 + $0x1d0] sm:$0xff]  }
 0x61c   :  { %17434 = vmatprep.subr.bf16.mxu0 %v21589_v1 }
 0x61f   :  { %17435 = vmatpush3.bf16.msra.mxu0 %v18480_v36 }
 0x620   :  { %17436 = vmatprep.subr.bf16.mxu0 %v21589_v1 }
 0x623   :  { %17437 = vmatpush3.bf16.msra.mxu0 %v18481_v3 }
 0x624   :  { %v4884_v54 = vpop.f32.mrb[8].mxu0  ;;  %17442 = vmatprep.subr.bf16.mxu0 %v21589_v1 }
 0x625   :  { %v4905_v40 = vmul.f32 %v4898_v37, %v4884_v54  ;;  %v4886_v27 = vpop.f32.mrb[9].mxu0  ;;  %v7904_v37 = vld [vmem:[#allocation3 + $0x36] ss:$2 sm:$0xff]  ;;  %v7983_v54 = vld [vmem:[#allocation3 + $0x37] ss:$2 sm:$0xff] }
 0x626   :  { %v4906_v44 = vmul.f32 %v4902_v29, %v4886_v27  ;;  %v4888_v56 = vpop.f32.mrb[10].mxu0  ;;  %17439 = vmatmul.mubr.msk.bf16.vlgmr.msra.gmra.mrb[12].mxu0 %vm96_vm1, %v7755_v60  ;;  %v7913_v38 = vpack.c.bf16 %v7904_v37, %v7904_v37  ;;  %v18491_v29 = vld [vmem:[%s23523_s3 + $0x1e8] sm:$0xff]   ;;  %v7992_v60 = vpack.c.bf16 %v7983_v54, %v7983_v54  ;;  %v18496_v27 = vld [vmem:[%s23523_s3 + $0x210] sm:$0xff]  }
 0x627   :  { %v4919_v50 = vadd.f32 %v4912_v39, %v4905_v40  ;;  %v4889_v51 = vpop.f32.mrb[11].mxu0  ;;  %17443 = vmatpush3.bf16.msra.mxu0 %v18482_v42  ;;  %17450 = vmatprep.mubr.msk.bf16.mxu0 %vm19806_vm2, %v21589_v1  ;;  %v18492_v39 = vld [vmem:[%s23523_s3 + $0x1f0] sm:$0xff]   ;;  %v18493_v42 = vld [vmem:[%s23523_s3 + $0x1f8] sm:$0xff]   ;;  %v18495_v40 = vld [vmem:[%s23523_s3 + $0x208] sm:$0xff]  }
 0x628   :  { %v4920_v53 = vadd.f32 %v4916_v18, %v4906_v44  ;;  %17444 = vmatprep.subr.bf16.mxu0 %v21589_v1  ;;  %v18494_v18 = vld [vmem:[%s23523_s3 + $0x200] sm:$0xff]   ;;  %v18497_v44 = vld [vmem:[%s23523_s3 + $0x218] sm:$0xff]   ;;  %v18500_v51 = vld [vmem:[%s23523_s3 + $0x230] sm:$0xff]  }
 0x629   :  { %v4921_v61 = vmax.f32 %v4919_v50, 0.0  ;;  %v8062_v56 = vld [vmem:[#allocation3 + $0x38] ss:$2 sm:$0xff]  ;;  %v18499_v50 = vld [vmem:[%s23523_s3 + $0x228] sm:$0xff]  }
 0x62a   :  { %v4922_v5 = vmax.f32 %v4920_v53, 0.0  ;;  %v8071_v47 = vpack.c.bf16 %v8062_v56, %v8062_v56  ;;  %v18502_v53 = vld [vmem:[%s23523_s3 + $0x240] sm:$0xff]   ;;  %v18547_v54 = vld [vmem:[#allocation7 + $0x30] ss:$8 sps:$4 sm:$0xff]  }
 0x62b   :  { %v4924_v57 = vsel %vm4923_vm3, %v4921_v61, 0.0  ;;  %17445 = vmatpush3.bf16.msra.mxu0 %v18483_v11  ;;  %v18501_v11 = vld [vmem:[%s23523_s3 + $0x238] sm:$0xff]   ;;  %v8150_v61 = vpack.c.bf16 %v8141_v52, %v8141_v52  ;;  %v18556_v56 = vld [vmem:[#allocation7 + $0x60] ss:$8 sps:$4 sm:$0xff]  }
 0x62c   :  { %v4925_v4 = vrot.slane %v4924_v57, 4  ;;  %v4931_v7 = vsel %vm4923_vm3, %v4922_v5, 0.0  ;;  %17446 = vmatprep.subr.bf16.mxu0 %v21589_v1  ;;  %v18504_v5 = vld [vmem:[%s23523_s3 + $0x250] sm:$0xff]  }
 0x62d   :  { %v4932_v6 = vrot.slane %v4931_v7, 4 }
 0x62e   :  { %v4926_v9 = vadd.f32 %v4925_v4, %v4924_v57  ;;  %v8220_v57 = vld [vmem:[#allocation3 + $0x3a] ss:$2 sm:$0xff] }
 0x62f   :  { %v4933_v10 = vadd.f32 %v4932_v6, %v4931_v7  ;;  %17447 = vmatpush3.bf16.msra.mxu0 %v18484_v58  ;;  %v18506_v58 = vld [vmem:[%s23523_s3 + $0x260] sm:$0xff]   ;;  %v8229_v4 = vpack.c.bf16 %v8220_v57, %v8220_v57  ;;  %v18507_v7 = vld [vmem:[%s23523_s3 + $0x268] sm:$0xff]   ;;  %v18508_v6 = vld [vmem:[%s23523_s3 + $0x270] sm:$0xff]  }
 0x630   :  { %v4927_v14 = vrot.slane %v4926_v9, 2  ;;  %17448 = vmatprep.subr.bf16.mxu0 %v21589_v1  ;;  %v18571_v57 = vld [vmem:[#allocation7 + $0x130] ss:$8 sps:$4 sm:$0xff]  }
 0x631   :  { %v4934_v16 = vrot.slane %v4933_v10, 2 }
 0x632   :  { %v4928_v26 = vadd.f32 %v4927_v14, %v4926_v9  ;;  %v8299_v9 = vld [vmem:[#allocation3 + $0x3b] ss:$2 sm:$0xff]  ;;  %v18512_v14 = vld [vmem:[%s23523_s3 + $0x290] sm:$0xff]  }
 0x633   :  { %v4935_v24 = vadd.f32 %v4934_v16, %v4933_v10  ;;  %17449 = vmatpush3.bf16.msra.mxu0 %v18485_v13  ;;  %v8308_v10 = vpack.c.bf16 %v8299_v9, %v8299_v9  ;;  %v18511_v13 = vld [vmem:[%s23523_s3 + $0x288] sm:$0xff]   ;;  %v18513_v16 = vld [vmem:[%s23523_s3 + $0x298] sm:$0xff]  }
 0x634   :  { %v4929_v28 = vrot.slane %v4928_v26, 1  ;;  %17454 = vmatprep.subr.bf16.mxu0 %v21589_v1  ;;  %v18580_v9 = vld [vmem:[#allocation7 + $0x160] ss:$8 sps:$4 sm:$0xff]  }
 0x635   :  { %v4936_v46 = vrot.slane %v4935_v24, 1 }
 0x636   :  { %v4930_v49 = vadd.f32 %v4929_v28, %v4928_v26  ;;  %17451 = vmatmul.mubr.msk.bf16.vlgmr.msra.gmra.mrb[12].mxu0 %vm96_vm1, %v7834_v25  ;;  %v18529_v26 = vld [vmem:[#allocation7 + $0xd0] ss:$8 sps:$4 sm:$0xff]   ;;  %v18532_v28 = vld [vmem:[#allocation7 + $0xe0] ss:$8 sps:$4 sm:$0xff]   ;;  %v18537_v25 = vld [vmem:[#allocation7 + $0xf4] ss:$8 sps:$4 sm:$0xff]  }
 0x637   :  { %v4937_v30 = vadd.f32 %v4936_v46, %v4935_v24  ;;  %17455 = vmatpush3.bf16.msra.mxu0 %v18486_v31  ;;  %17462 = vmatprep.mubr.msk.bf16.mxu0 %vm19806_vm2, %v21589_v1  ;;  %v18531_v24 = vld [vmem:[#allocation7 + $0xd4] ss:$8 sps:$4 sm:$0xff]   ;;  %v18534_v31 = vld [vmem:[#allocation7 + $0xe4] ss:$8 sps:$4 sm:$0xff]   ;;  %v18535_v46 = vld [vmem:[#allocation7 + $0xf0] ss:$8 sps:$4 sm:$0xff]  }
 0x638   :  { %v4938_v21 = vmul.f32 0.25, %v4930_v49  ;;  %17456 = vmatprep.subr.bf16.mxu0 %v21589_v1  ;;  %8602 = vmatprep.subr.bf16.mxu1 %v18531_v24  ;;  %v18597_v24 = vld [vmem:[#allocation7 + $0x1b4] ss:$8 sps:$4 sm:$0xff]  }
 0x639   :  { %v4939_v41 = vmul.f32 0.25, %v4937_v30  ;;  %8603 = vmatpush1.bf16.msra.mxu1 %v18529_v26  ;;  %v15305_v30 = vld [vmem:[%s23493_s6] ss:$0 sm:$0xff]  ;;  %v18592_v26 = vld [vmem:[#allocation7 + $0x1a0] ss:$8 sps:$4 sm:$0xff]  }
 0x63a   :  { %8604 = vmatprep.subr.bf16.mxu1 %v18534_v31  ;;  %v18595_v31 = vld [vmem:[#allocation7 + $0x1b0] ss:$8 sps:$4 sm:$0xff]  }
 0x63b   :  { %v4942_v22 = vcombine.low %v4938_v21, %v4939_v41  ;;  %17457 = vmatpush3.bf16.msra.mxu0 %v18487_v12 }
 0x63c   :  { %17458 = vmatprep.subr.bf16.mxu0 %v21589_v1 }
 0x63d   :  { %v4949_v36 = vrot.slane %v4942_v22, %v21892_v59  ;;  %8605 = vmatpush1.bf16.msra.mxu1 %v18532_v28  ;;  %v18600_v28 = vld [vmem:[#allocation7 + $0x1c4] ss:$8 sps:$4 sm:$0xff]  }
 0x63e   :  { %8606 = vmatprep.subr.bf16.mxu1 %v18537_v25  ;;  %v18598_v25 = vld [vmem:[#allocation7 + $0x1c0] ss:$8 sps:$4 sm:$0xff]  }
 0x63f   :  { %v4956_v3 = vrot.slane %v4949_v36, %v21892_v59  ;;  %17459 = vmatpush3.bf16.msra.mxu0 %v18488_v63 }
 0x640   :  { %17460 = vmatprep.subr.bf16.mxu0 %v21589_v1 }
 0x641   :  { %4962 = vst.msk [vmem:[#allocation5] ss:$8 sm:$0x3] %vm21900_vm4, %v4956_v3  ;;  %8607 = vmatpush1.bf16.msra.mxu1 %v18535_v46  ;;  %v18538_v3 = vld [vmem:[#allocation7] ss:$8 sps:$4 sm:$0xff]  }
 0x642   :  { %v18603_v46 = vld [vmem:[#allocation7 + $0x1d4] ss:$8 sps:$4 sm:$0xff]  }
 0x643   :  { %17461 = vmatpush3.bf16.msra.mxu0 %v18489_v17 }
 0x644   :  { %17466 = vmatprep.subr.bf16.mxu0 %v21589_v1 }
 0x646   :  { %17463 = vmatmul.mubr.msk.bf16.vlgmr.msra.gmra.mrb[12].mxu0 %vm96_vm1, %v7913_v38  ;;  %v18541_v38 = vld [vmem:[#allocation7 + $0x10] ss:$8 sps:$4 sm:$0xff]  }
 0x647   :  { %17467 = vmatpush3.bf16.msra.mxu0 %v18490_v33  ;;  %17474 = vmatprep.mubr.msk.bf16.mxu0 %vm19806_vm2, %v21589_v1  ;;  %v18543_v33 = vld [vmem:[#allocation7 + $0x14] ss:$8 sps:$4 sm:$0xff]  }
 0x648   :  { %17468 = vmatprep.subr.bf16.mxu0 %v21589_v1 }
 0x64b   :  { %17469 = vmatpush3.bf16.msra.mxu0 %v18491_v29  ;;  %v18546_v29 = vld [vmem:[#allocation7 + $0x24] ss:$8 sps:$4 sm:$0xff]  }
 0x64c   :  { %17470 = vmatprep.subr.bf16.mxu0 %v21589_v1 }
 0x64f   :  { %17471 = vmatpush3.bf16.msra.mxu0 %v18492_v39  ;;  %v18544_v39 = vld [vmem:[#allocation7 + $0x20] ss:$8 sps:$4 sm:$0xff]  }
 0x650   :  { %17472 = vmatprep.subr.bf16.mxu0 %v21589_v1 }
 0x653   :  { %17473 = vmatpush3.bf16.msra.mxu0 %v18493_v42  ;;  %v18549_v42 = vld [vmem:[#allocation7 + $0x34] ss:$8 sps:$4 sm:$0xff]  }
 0x654   :  { %17478 = vmatprep.subr.bf16.mxu0 %v21589_v1 }
 0x656   :  { %17475 = vmatmul.mubr.msk.bf16.vlgmr.msra.gmra.mrb[12].mxu0 %vm96_vm1, %v7992_v60  ;;  %v18550_v60 = vld [vmem:[#allocation7 + $0x40] ss:$8 sps:$4 sm:$0xff]  }
 0x657   :  { %17479 = vmatpush3.bf16.msra.mxu0 %v18494_v18  ;;  %17486 = vmatprep.mubr.msk.bf16.mxu0 %vm19806_vm2, %v21589_v1  ;;  %v18552_v18 = vld [vmem:[#allocation7 + $0x44] ss:$8 sps:$4 sm:$0xff]  }
 0x658   :  { %17480 = vmatprep.subr.bf16.mxu0 %v21589_v1 }
 0x65b   :  { %17481 = vmatpush3.bf16.msra.mxu0 %v18495_v40  ;;  %v18555_v40 = vld [vmem:[#allocation7 + $0x54] ss:$8 sps:$4 sm:$0xff]  }
 0x65c   :  { %17482 = vmatprep.subr.bf16.mxu0 %v21589_v1 }
 0x65f   :  { %17483 = vmatpush3.bf16.msra.mxu0 %v18496_v27  ;;  %v18553_v27 = vld [vmem:[#allocation7 + $0x50] ss:$8 sps:$4 sm:$0xff]  }
 0x660   :  { %17484 = vmatprep.subr.bf16.mxu0 %v21589_v1 }
 0x663   :  { %17485 = vmatpush3.bf16.msra.mxu0 %v18497_v44  ;;  %v18558_v44 = vld [vmem:[#allocation7 + $0x64] ss:$8 sps:$4 sm:$0xff]  }
 0x664   :  { %17490 = vmatprep.subr.bf16.mxu0 %v21589_v1 }
 0x666   :  { %17487 = vmatmul.mubr.msk.bf16.vlgmr.msra.gmra.mrb[12].mxu0 %vm96_vm1, %v8071_v47  ;;  %v18559_v47 = vld [vmem:[#allocation7 + $0x70] ss:$8 sps:$4 sm:$0xff]  }
 0x667   :  { %17491 = vmatpush3.bf16.msra.mxu0 %v18498_v43  ;;  %17498 = vmatprep.mubr.msk.bf16.mxu0 %vm19806_vm2, %v21589_v1  ;;  %v18561_v43 = vld [vmem:[#allocation7 + $0x74] ss:$8 sps:$4 sm:$0xff]  }
 0x668   :  { %17492 = vmatprep.subr.bf16.mxu0 %v21589_v1 }
 0x66b   :  { %17493 = vmatpush3.bf16.msra.mxu0 %v18499_v50  ;;  %v18564_v50 = vld [vmem:[#allocation7 + $0x104] ss:$8 sps:$4 sm:$0xff]  }
 0x66c   :  { %17494 = vmatprep.subr.bf16.mxu0 %v21589_v1 }
 0x66f   :  { %17495 = vmatpush3.bf16.msra.mxu0 %v18500_v51 }
 0x670   :  { %17496 = vmatprep.subr.bf16.mxu0 %v21589_v1 }
 0x673   :  { %17497 = vmatpush3.bf16.msra.mxu0 %v18501_v11  ;;  %v18562_v11 = vld [vmem:[#allocation7 + $0x100] ss:$8 sps:$4 sm:$0xff]  }
 0x674   :  { %17502 = vmatprep.subr.bf16.mxu0 %v21589_v1 }
 0x676   :  { %17499 = vmatmul.mubr.msk.bf16.vlgmr.msra.gmra.mrb[12].mxu0 %vm96_vm1, %v8150_v61  ;;  %v18565_v61 = vld [vmem:[#allocation7 + $0x110] ss:$8 sps:$4 sm:$0xff]  }
 0x677   :  { %17503 = vmatpush3.bf16.msra.mxu0 %v18502_v53  ;;  %17510 = vmatprep.mubr.msk.bf16.mxu0 %vm19806_vm2, %v21589_v1  ;;  %v18567_v53 = vld [vmem:[#allocation7 + $0x114] ss:$8 sps:$4 sm:$0xff]  }
 0x678   :  { %17504 = vmatprep.subr.bf16.mxu0 %v21589_v1 }
 0x67b   :  { %17505 = vmatpush3.bf16.msra.mxu0 %v18503_v0  ;;  %v18570_v0 = vld [vmem:[#allocation7 + $0x124] ss:$8 sps:$4 sm:$0xff]  }
 0x67c   :  { %17506 = vmatprep.subr.bf16.mxu0 %v21589_v1 }
 0x67f   :  { %17507 = vmatpush3.bf16.msra.mxu0 %v18504_v5  ;;  %v18568_v5 = vld [vmem:[#allocation7 + $0x120] ss:$8 sps:$4 sm:$0xff]  }
 0x680   :  { %17508 = vmatprep.subr.bf16.mxu0 %v21589_v1 }
 0x683   :  { %17509 = vmatpush3.bf16.msra.mxu0 %v18505_v55  ;;  %v18573_v55 = vld [vmem:[#allocation7 + $0x134] ss:$8 sps:$4 sm:$0xff]  }
 0x684   :  { %17514 = vmatprep.subr.bf16.mxu0 %v21589_v1 }
 0x686   :  { %17511 = vmatmul.mubr.msk.bf16.vlgmr.msra.gmra.mrb[12].mxu0 %vm96_vm1, %v8229_v4  ;;  %v18574_v4 = vld [vmem:[#allocation7 + $0x140] ss:$8 sps:$4 sm:$0xff]  }
 0x687   :  { %17515 = vmatpush3.bf16.msra.mxu0 %v18506_v58  ;;  %17522 = vmatprep.mubr.msk.bf16.mxu0 %vm19806_vm2, %v21589_v1  ;;  %v18576_v58 = vld [vmem:[#allocation7 + $0x144] ss:$8 sps:$4 sm:$0xff]  }
 0x688   :  { %17516 = vmatprep.subr.bf16.mxu0 %v21589_v1 }
 0x68b   :  { %17517 = vmatpush3.bf16.msra.mxu0 %v18507_v7  ;;  %v18579_v7 = vld [vmem:[#allocation7 + $0x154] ss:$8 sps:$4 sm:$0xff]  }
 0x68c   :  { %17518 = vmatprep.subr.bf16.mxu0 %v21589_v1 }
 0x68f   :  { %17519 = vmatpush3.bf16.msra.mxu0 %v18508_v6  ;;  %v18577_v6 = vld [vmem:[#allocation7 + $0x150] ss:$8 sps:$4 sm:$0xff]  }
 0x690   :  { %17520 = vmatprep.subr.bf16.mxu0 %v21589_v1 }
 0x693   :  { %17521 = vmatpush3.bf16.msra.mxu0 %v18509_v8  ;;  %v18582_v8 = vld [vmem:[#allocation7 + $0x164] ss:$8 sps:$4 sm:$0xff]  }
 0x694   :  { %17526 = vmatprep.subr.bf16.mxu0 %v21589_v1 }
 0x696   :  { %17523 = vmatmul.mubr.msk.bf16.vlgmr.msra.gmra.mrb[12].mxu0 %vm96_vm1, %v8308_v10  ;;  %v18583_v10 = vld [vmem:[#allocation7 + $0x170] ss:$8 sps:$4 sm:$0xff]  }
 0x697   :  { %17527 = vmatpush3.bf16.msra.mxu0 %v18510_v20  ;;  %17534 = vmatprep.mubr.msk.bf16.mxu0 %vm19806_vm2, %v21589_v1  ;;  %v18585_v20 = vld [vmem:[#allocation7 + $0x174] ss:$8 sps:$4 sm:$0xff]  }
 0x698   :  { %17528 = vmatprep.subr.bf16.mxu0 %v21589_v1 }
 0x69b   :  { %17529 = vmatpush3.bf16.msra.mxu0 %v18511_v13  ;;  %v18588_v13 = vld [vmem:[#allocation7 + $0x184] ss:$8 sps:$4 sm:$0xff]  }
 0x69c   :  { %17530 = vmatprep.subr.bf16.mxu0 %v21589_v1 }
 0x69f   :  { %17531 = vmatpush3.bf16.msra.mxu0 %v18512_v14 }
 0x6a0   :  { %17532 = vmatprep.subr.bf16.mxu0 %v21589_v1  ;;  %v18540_v1 = vld [vmem:[#allocation7 + $0x4] ss:$8 sps:$4 sm:$0xff]  }
 0x6a1   :  { %8713 = vmatprep.subr.bf16.mxu1 %v18540_v1  ;;  %v18601_v1 = vld [vmem:[#allocation7 + $0x1d0] ss:$8 sps:$4 sm:$0xff]  }
 0x6a3   :  { %17533 = vmatpush3.bf16.msra.mxu0 %v18513_v16  ;;  %v18586_v16 = vld [vmem:[#allocation7 + $0x180] ss:$8 sps:$4 sm:$0xff]  }
 0x6a6   :  { %17535 = vmatmul.mubr.msk.bf16.vlgmr.msra.gmra.mrb[12].mxu0 %vm96_vm1, %v8387_v45  ;;  %v18591_v45 = vld [vmem:[#allocation7 + $0x194] ss:$8 sps:$4 sm:$0xff]  }
 0x779   :  { %v8449_v49 = vpop.f32.mrb[12].mxu0 }
 0x77a   :  { %v8463_v12 = vmul.f32 %v15304_v48, %v8449_v49  ;;  %v17536_v21 = vpop.f32.mrb[13].mxu0  ;;  %v18606_v48 = vld [vmem:[#allocation7 + $0x1e4] ss:$8 sps:$4 sm:$0xff]   ;;  %v18604_v49 = vld [vmem:[#allocation7 + $0x1e0] ss:$8 sps:$4 sm:$0xff]  }
 0x77b   :  { %v8452_v41 = vpop.f32.mrb[14].mxu0  ;;  %v18612_v21 = vld [vmem:[#allocation7 + $0x204] ss:$8 sps:$4 sm:$0xff]  }
 0x77c   :  { %v8471_v22 = vadd.f32 %v15305_v30, %v8463_v12  ;;  %v17537_v63 = vpop.f32.mrb[15].mxu0  ;;  %v18609_v30 = vld [vmem:[#allocation7 + $0x1f4] ss:$8 sps:$4 sm:$0xff]   ;;  %v18607_v12 = vld [vmem:[#allocation7 + $0x1f0] ss:$8 sps:$4 sm:$0xff]  }
 0x77e   :  { %v8472_v36 = vmax.f32 %v8471_v22, 0.0  ;;  %v18610_v22 = vld [vmem:[#allocation7 + $0x200] ss:$8 sps:$4 sm:$0xff]  }
 0x780   :  { %8473 = vst [vmem:[#allocation4 + $0x14] sm:$0xff] %v8472_v36  ;;  %v18615_v36 = vld [vmem:[#allocation7 + $0x214] ss:$8 sps:$4 sm:$0xff]  }
 0x787   :  { %v8494_v17 = vld [vmem:[#allocation4 + $0x11] ss:$2 sm:$0xf]  ;;  %v8475_v51 = vld [vmem:[#allocation4 + $0x10] ss:$2 sm:$0xf] }
 0x788   :  { %v8511_v37 = vpack.c.bf16 %v8494_v17, %v8494_v17  ;;  %v8492_v52 = vpack.c.bf16 %v8475_v51, %v8475_v51  ;;  %v8755_v14 = vld [vmem:[#allocation4 + $0x12] ss:$2 sm:$0xf]  ;;  %v8897_v41 = vld [vmem:[#allocation4 + $0x13] ss:$2 sm:$0xf] }
 0x789   :  { %v8772_v35 = vpack.c.bf16 %v8755_v14, %v8755_v14  ;;  %v8914_v63 = vpack.c.bf16 %v8897_v41, %v8897_v41  ;;  %v18618_v17 = vld [vmem:[#allocation7 + $0x224] ss:$8 sps:$4 sm:$0xff]   ;;  %v18730_v51 = vld [vmem:[#allocation9] ss:$48 sps:$4 sm:$0xff]  }
 0x78a   :  { %8625 = vmatmul.mubr.bf16.vlgmr.msra.gmra.mrb[12].mxu1 %v8511_v37  ;;  %v18616_v37 = vld [vmem:[#allocation7 + $0x220] ss:$8 sps:$4 sm:$0xff]   ;;  %v18649_v14 = vld [vmem:[#allocation7 + $0x2d0] ss:$8 sps:$4 sm:$0xff]  }
 0x78b   :  { %8714 = vmatpush1.bf16.msra.mxu1 %v18538_v3  ;;  %8745 = vmatprep.mubr.bf16.mxu1 %v19807_v15  ;;  %v18613_v3 = vld [vmem:[#allocation7 + $0x210] ss:$8 sps:$4 sm:$0xff]  }
 0x78c   :  { %8715 = vmatprep.subr.bf16.mxu1 %v18543_v33  ;;  %v18621_v33 = vld [vmem:[#allocation7 + $0x234] ss:$8 sps:$4 sm:$0xff]   ;;  %v18667_v41 = vld [vmem:[#allocation7 + $0x330] ss:$8 sps:$4 sm:$0xff]  }
 0x78f   :  { %8716 = vmatpush1.bf16.msra.mxu1 %v18541_v38  ;;  %v18619_v38 = vld [vmem:[#allocation7 + $0x230] ss:$8 sps:$4 sm:$0xff]  }
 0x790   :  { %8717 = vmatprep.subr.bf16.mxu1 %v18546_v29  ;;  %v18624_v29 = vld [vmem:[#allocation7 + $0x244] ss:$8 sps:$4 sm:$0xff]  }
 0x793   :  { %8718 = vmatpush1.bf16.msra.mxu1 %v18544_v39  ;;  %v18622_v39 = vld [vmem:[#allocation7 + $0x240] ss:$8 sps:$4 sm:$0xff]  }
 0x794   :  { %8719 = vmatprep.subr.bf16.mxu1 %v18549_v42  ;;  %v18627_v42 = vld [vmem:[#allocation7 + $0x254] ss:$8 sps:$4 sm:$0xff]  }
 0x797   :  { %8720 = vmatpush1.bf16.msra.mxu1 %v18547_v54  ;;  %v18625_v54 = vld [vmem:[#allocation7 + $0x250] ss:$8 sps:$4 sm:$0xff]  }
 0x798   :  { %8721 = vmatprep.subr.bf16.mxu1 %v18552_v18  ;;  %v18630_v18 = vld [vmem:[#allocation7 + $0x264] ss:$8 sps:$4 sm:$0xff]  }
 0x79b   :  { %8722 = vmatpush1.bf16.msra.mxu1 %v18550_v60  ;;  %v18628_v60 = vld [vmem:[#allocation7 + $0x260] ss:$8 sps:$4 sm:$0xff]  }
 0x79c   :  { %8723 = vmatprep.subr.bf16.mxu1 %v18555_v40  ;;  %v18633_v40 = vld [vmem:[#allocation7 + $0x274] ss:$8 sps:$4 sm:$0xff]  }
 0x79f   :  { %8724 = vmatpush1.bf16.msra.mxu1 %v18553_v27  ;;  %v18631_v27 = vld [vmem:[#allocation7 + $0x270] ss:$8 sps:$4 sm:$0xff]  }
 0x7a0   :  { %8725 = vmatprep.subr.bf16.mxu1 %v18558_v44  ;;  %v18636_v44 = vld [vmem:[#allocation7 + $0x284] ss:$8 sps:$4 sm:$0xff]  }
 0x7a3   :  { %8726 = vmatpush1.bf16.msra.mxu1 %v18556_v56  ;;  %v9039_v56 = vld [vmem:[#allocation4 + $0x14] ss:$2 sm:$0xf] }
 0x7a4   :  { %8727 = vmatprep.subr.bf16.mxu1 %v18561_v43  ;;  %v18634_v43 = vld [vmem:[#allocation7 + $0x280] ss:$8 sps:$4 sm:$0xff]  }
 0x7a7   :  { %8728 = vmatpush1.bf16.msra.mxu1 %v18559_v47  ;;  %v9056_v47 = vpack.c.bf16 %v9039_v56, %v9039_v56  ;;  %v18691_v56 = vld [vmem:[#allocation7 + $0x3b0] ss:$8 sps:$4 sm:$0xff]  }
 0x7a8   :  { %8853 = vmatprep.subr.bf16.mxu1 %v18564_v50  ;;  %v18639_v50 = vld [vmem:[#allocation7 + $0x294] ss:$8 sps:$4 sm:$0xff]  }
 0x7aa   :  { %8746 = vmatmul.mubr.bf16.vlgmr.msra.gmra.mrb[12].mxu1 %v8492_v52  ;;  %v18637_v52 = vld [vmem:[#allocation7 + $0x290] ss:$8 sps:$4 sm:$0xff]  }
 0x7ab   :  { %8854 = vmatpush1.bf16.msra.mxu1 %v18562_v11  ;;  %8885 = vmatprep.mubr.bf16.mxu1 %v19807_v15  ;;  %v18732_v11 = vld [vmem:[#allocation9 + $0x4] ss:$48 sps:$4 sm:$0xff]  }
 0x7ac   :  { %8855 = vmatprep.subr.bf16.mxu1 %v18567_v53  ;;  %v18738_v53 = vld [vmem:[#allocation9 + $0x64] ss:$48 sps:$4 sm:$0xff]   ;;  %11035 = vmatprep.subr.bf16.mxu0 %v18732_v11 }
 0x7ad   :  { %11036 = vmatpush1.bf16.msra.mxu0 %v18730_v51  ;;  %v18697_v51 = vld [vmem:[#allocation7 + $0x3d0] ss:$8 sps:$4 sm:$0xff]   ;;  %v18702_v11 = vld [vmem:[#allocation7 + $0x3e4] ss:$8 sps:$4 sm:$0xff]  }
 0x7ae   :  { %11037 = vmatprep.subr.bf16.mxu0 %v18738_v53  ;;  %v18705_v53 = vld [vmem:[#allocation7 + $0x3f4] ss:$8 sps:$4 sm:$0xff]  }
 0x7af   :  { %8856 = vmatpush1.bf16.msra.mxu1 %v18565_v61  ;;  %v18642_v61 = vld [vmem:[#allocation7 + $0x2a4] ss:$8 sps:$4 sm:$0xff]  }
 0x7b0   :  { %8857 = vmatprep.subr.bf16.mxu1 %v18570_v0  ;;  %v18736_v0 = vld [vmem:[#allocation9 + $0x60] ss:$48 sps:$4 sm:$0xff]  }
 0x7b1   :  { %11038 = vmatpush1.bf16.msra.mxu0 %v18736_v0  ;;  %v18708_v0 = vld [vmem:[#allocation7 + $0x404] ss:$8 sps:$4 sm:$0xff]  }
 0x7b3   :  { %8858 = vmatpush1.bf16.msra.mxu1 %v18568_v5  ;;  %v18640_v5 = vld [vmem:[#allocation7 + $0x2a0] ss:$8 sps:$4 sm:$0xff]  }
 0x7b4   :  { %8859 = vmatprep.subr.bf16.mxu1 %v18573_v55  ;;  %v18744_v55 = vld [vmem:[#allocation9 + $0xc4] ss:$48 sps:$4 sm:$0xff]  }
 0x7b5   :  { %11039 = vmatprep.subr.bf16.mxu0 %v18744_v55  ;;  %v18706_v55 = vld [vmem:[#allocation7 + $0x400] ss:$8 sps:$4 sm:$0xff]  }
 0x7b7   :  { %8860 = vmatpush1.bf16.msra.mxu1 %v18571_v57  ;;  %v18645_v57 = vld [vmem:[#allocation7 + $0x2b4] ss:$8 sps:$4 sm:$0xff]  }
 0x7b8   :  { %8861 = vmatprep.subr.bf16.mxu1 %v18576_v58  ;;  %v18742_v58 = vld [vmem:[#allocation9 + $0xc0] ss:$48 sps:$4 sm:$0xff]  }
 0x7b9   :  { %11040 = vmatpush1.bf16.msra.mxu0 %v18742_v58  ;;  %v18711_v58 = vld [vmem:[#allocation7 + $0x414] ss:$8 sps:$4 sm:$0xff]  }
 0x7bb   :  { %8862 = vmatpush1.bf16.msra.mxu1 %v18574_v4  ;;  %v18643_v4 = vld [vmem:[#allocation7 + $0x2b0] ss:$8 sps:$4 sm:$0xff]  }
 0x7bc   :  { %8863 = vmatprep.subr.bf16.mxu1 %v18579_v7  ;;  %v18750_v7 = vld [vmem:[#allocation9 + $0x124] ss:$48 sps:$4 sm:$0xff]  }
 0x7bd   :  { %11041 = vmatprep.subr.bf16.mxu0 %v18750_v7  ;;  %v18714_v7 = vld [vmem:[#allocation7 + $0x424] ss:$8 sps:$4 sm:$0xff]  }
 0x7bf   :  { %8864 = vmatpush1.bf16.msra.mxu1 %v18577_v6  ;;  %v18648_v6 = vld [vmem:[#allocation7 + $0x2c4] ss:$8 sps:$4 sm:$0xff]  }
 0x7c0   :  { %8865 = vmatprep.subr.bf16.mxu1 %v18582_v8  ;;  %v18748_v8 = vld [vmem:[#allocation9 + $0x120] ss:$48 sps:$4 sm:$0xff]  }
 0x7c1   :  { %11042 = vmatpush1.bf16.msra.mxu0 %v18748_v8  ;;  %v18717_v8 = vld [vmem:[#allocation7 + $0x434] ss:$8 sps:$4 sm:$0xff]  }
 0x7c3   :  { %8866 = vmatpush1.bf16.msra.mxu1 %v18580_v9  ;;  %v18646_v9 = vld [vmem:[#allocation7 + $0x2c0] ss:$8 sps:$4 sm:$0xff]  }
 0x7c4   :  { %8867 = vmatprep.subr.bf16.mxu1 %v18585_v20  ;;  %v18756_v20 = vld [vmem:[#allocation9 + $0x184] ss:$48 sps:$4 sm:$0xff]  }
 0x7c5   :  { %11043 = vmatprep.subr.bf16.mxu0 %v18756_v20  ;;  %v18720_v20 = vld [vmem:[#allocation7 + $0x444] ss:$8 sps:$4 sm:$0xff]  }
 0x7c7   :  { %8868 = vmatpush1.bf16.msra.mxu1 %v18583_v10  ;;  %v18651_v10 = vld [vmem:[#allocation7 + $0x2d4] ss:$8 sps:$4 sm:$0xff]  }
 0x7c8   :  { %8995 = vmatprep.subr.bf16.mxu1 %v18588_v13  ;;  %v18754_v13 = vld [vmem:[#allocation9 + $0x180] ss:$48 sps:$4 sm:$0xff]  }
 0x7c9   :  { %11044 = vmatpush1.bf16.msra.mxu0 %v18754_v13  ;;  %v18723_v13 = vld [vmem:[#allocation7 + $0x454] ss:$8 sps:$4 sm:$0xff]  }
 0x7ca   :  { %8886 = vmatmul.mubr.bf16.vlgmr.msra.gmra.mrb[12].mxu1 %v8772_v35  ;;  %v18654_v35 = vld [vmem:[#allocation7 + $0x2e4] ss:$8 sps:$4 sm:$0xff]  }
 0x7cb   :  { %8996 = vmatpush1.bf16.msra.mxu1 %v18586_v16  ;;  %9027 = vmatprep.mubr.bf16.mxu1 %v19807_v15  ;;  %v18762_v16 = vld [vmem:[#allocation9 + $0x1e4] ss:$48 sps:$4 sm:$0xff]  }
 0x7cc   :  { %8997 = vmatprep.subr.bf16.mxu1 %v18591_v45  ;;  %v18760_v45 = vld [vmem:[#allocation9 + $0x1e0] ss:$48 sps:$4 sm:$0xff]   ;;  %11045 = vmatprep.subr.bf16.mxu0 %v18762_v16  ;;  %v18726_v16 = vld [vmem:[#allocation7 + $0x464] ss:$8 sps:$4 sm:$0xff]  }
 0x7cd   :  { %11046 = vmatpush1.bf16.msra.mxu0 %v18760_v45  ;;  %v18727_v45 = vld [vmem:[#allocation7 + $0x470] ss:$8 sps:$4 sm:$0xff]  }
 0x7cf   :  { %8998 = vmatpush1.bf16.msra.mxu1 %v18589_v19  ;;  %v18652_v19 = vld [vmem:[#allocation7 + $0x2e0] ss:$8 sps:$4 sm:$0xff]  }
 0x7d0   :  { %8999 = vmatprep.subr.bf16.mxu1 %v18594_v23  ;;  %v18768_v23 = vld [vmem:[#allocation9 + $0x244] ss:$48 sps:$4 sm:$0xff]  }
 0x7d1   :  { %11047 = vmatprep.subr.bf16.mxu0 %v18768_v23  ;;  %v9607_v23 = vld [vmem:[#allocation4 + $0x18] ss:$2 sm:$0xf] }
 0x7d3   :  { %9000 = vmatpush1.bf16.msra.mxu1 %v18592_v26  ;;  %v18657_v26 = vld [vmem:[#allocation7 + $0x2f4] ss:$8 sps:$4 sm:$0xff]  }
 0x7d4   :  { %9001 = vmatprep.subr.bf16.mxu1 %v18597_v24  ;;  %v18766_v24 = vld [vmem:[#allocation9 + $0x240] ss:$48 sps:$4 sm:$0xff]  }
 0x7d5   :  { %11048 = vmatpush1.bf16.msra.mxu0 %v18766_v24  ;;  %v9624_v24 = vpack.c.bf16 %v9607_v23, %v9607_v23 }
 0x7d7   :  { %9002 = vmatpush1.bf16.msra.mxu1 %v18595_v31  ;;  %v18655_v31 = vld [vmem:[#allocation7 + $0x2f0] ss:$8 sps:$4 sm:$0xff]  }
 0x7d8   :  { %9003 = vmatprep.subr.bf16.mxu1 %v18600_v28  ;;  %v18660_v28 = vld [vmem:[#allocation7 + $0x304] ss:$8 sps:$4 sm:$0xff]  }
 0x7db   :  { %9004 = vmatpush1.bf16.msra.mxu1 %v18598_v25  ;;  %v9181_v25 = vld [vmem:[#allocation4 + $0x15] ss:$2 sm:$0xf] }
 0x7dc   :  { %9005 = vmatprep.subr.bf16.mxu1 %v18603_v46  ;;  %v18658_v46 = vld [vmem:[#allocation7 + $0x300] ss:$8 sps:$4 sm:$0xff]  }
 0x7df   :  { %9006 = vmatpush1.bf16.msra.mxu1 %v18601_v1  ;;  %v9198_v1 = vpack.c.bf16 %v9181_v25, %v9181_v25  ;;  %v18747_v25 = vld [vmem:[#allocation9 + $0xcc] ss:$48 sps:$4 sm:$0xff]  }
 0x7e0   :  { %9007 = vmatprep.subr.bf16.mxu1 %v18606_v48  ;;  %v18663_v48 = vld [vmem:[#allocation7 + $0x314] ss:$8 sps:$4 sm:$0xff]  }
 0x7e3   :  { %9008 = vmatpush1.bf16.msra.mxu1 %v18604_v49  ;;  %v18661_v49 = vld [vmem:[#allocation7 + $0x310] ss:$8 sps:$4 sm:$0xff]  }
 0x7e4   :  { %9009 = vmatprep.subr.bf16.mxu1 %v18609_v30  ;;  %v18666_v30 = vld [vmem:[#allocation7 + $0x324] ss:$8 sps:$4 sm:$0xff]  }
 0x7e7   :  { %9010 = vmatpush1.bf16.msra.mxu1 %v18607_v12  ;;  %v18664_v12 = vld [vmem:[#allocation7 + $0x320] ss:$8 sps:$4 sm:$0xff]  }
 0x7e8   :  { %9137 = vmatprep.subr.bf16.mxu1 %v18612_v21  ;;  %v18669_v21 = vld [vmem:[#allocation7 + $0x334] ss:$8 sps:$4 sm:$0xff]  }
 0x7ea   :  { %9028 = vmatmul.mubr.bf16.vlgmr.msra.gmra.mrb[12].mxu1 %v8914_v63  ;;  %v18670_v63 = vld [vmem:[#allocation7 + $0x340] ss:$8 sps:$4 sm:$0xff]  }
 0x7eb   :  { %9138 = vmatpush1.bf16.msra.mxu1 %v18610_v22  ;;  %9169 = vmatprep.mubr.bf16.mxu1 %v19807_v15  ;;  %v18672_v22 = vld [vmem:[#allocation7 + $0x344] ss:$8 sps:$4 sm:$0xff]  }
 0x7ec   :  { %9139 = vmatprep.subr.bf16.mxu1 %v18615_v36  ;;  %v18675_v36 = vld [vmem:[#allocation7 + $0x354] ss:$8 sps:$4 sm:$0xff]  }
 0x7ef   :  { %9140 = vmatpush1.bf16.msra.mxu1 %v18613_v3  ;;  %v18673_v3 = vld [vmem:[#allocation7 + $0x350] ss:$8 sps:$4 sm:$0xff]  }
 0x7f0   :  { %9141 = vmatprep.subr.bf16.mxu1 %v18618_v17  ;;  %v18678_v17 = vld [vmem:[#allocation7 + $0x364] ss:$8 sps:$4 sm:$0xff]  }
 0x7f3   :  { %9142 = vmatpush1.bf16.msra.mxu1 %v18616_v37  ;;  %v18676_v37 = vld [vmem:[#allocation7 + $0x360] ss:$8 sps:$4 sm:$0xff]  }
 0x7f4   :  { %9143 = vmatprep.subr.bf16.mxu1 %v18621_v33  ;;  %v18681_v33 = vld [vmem:[#allocation7 + $0x374] ss:$8 sps:$4 sm:$0xff]  }
 0x7f7   :  { %9144 = vmatpush1.bf16.msra.mxu1 %v18619_v38  ;;  %v18679_v38 = vld [vmem:[#allocation7 + $0x370] ss:$8 sps:$4 sm:$0xff]  }
 0x7f8   :  { %9145 = vmatprep.subr.bf16.mxu1 %v18624_v29  ;;  %v18684_v29 = vld [vmem:[#allocation7 + $0x384] ss:$8 sps:$4 sm:$0xff]  }
 0x7fb   :  { %9146 = vmatpush1.bf16.msra.mxu1 %v18622_v39  ;;  %v9323_v39 = vld [vmem:[#allocation4 + $0x16] ss:$2 sm:$0xf] }
 0x7fc   :  { %9147 = vmatprep.subr.bf16.mxu1 %v18627_v42  ;;  %v18682_v42 = vld [vmem:[#allocation7 + $0x380] ss:$8 sps:$4 sm:$0xff]  }
 0x7ff   :  { %9148 = vmatpush1.bf16.msra.mxu1 %v18625_v54  ;;  %v9340_v54 = vpack.c.bf16 %v9323_v39, %v9323_v39  ;;  %v18786_v39 = vld [vmem:[#allocation9 + $0x364] ss:$48 sps:$4 sm:$0xff]  }
 0x800   :  { %9149 = vmatprep.subr.bf16.mxu1 %v18630_v18  ;;  %v18687_v18 = vld [vmem:[#allocation7 + $0x394] ss:$8 sps:$4 sm:$0xff]  }
 0x803   :  { %9150 = vmatpush1.bf16.msra.mxu1 %v18628_v60  ;;  %v18685_v60 = vld [vmem:[#allocation7 + $0x390] ss:$8 sps:$4 sm:$0xff]  }
 0x804   :  { %9151 = vmatprep.subr.bf16.mxu1 %v18633_v40  ;;  %v18690_v40 = vld [vmem:[#allocation7 + $0x3a4] ss:$8 sps:$4 sm:$0xff]  }
 0x807   :  { %9152 = vmatpush1.bf16.msra.mxu1 %v18631_v27  ;;  %v18688_v27 = vld [vmem:[#allocation7 + $0x3a0] ss:$8 sps:$4 sm:$0xff]  }
 0x808   :  { %9279 = vmatprep.subr.bf16.mxu1 %v18636_v44  ;;  %v18693_v44 = vld [vmem:[#allocation7 + $0x3b4] ss:$8 sps:$4 sm:$0xff]  }
 0x80a   :  { %9170 = vmatmul.mubr.bf16.vlgmr.msra.gmra.mrb[12].mxu1 %v9056_v47  ;;  %v18694_v47 = vld [vmem:[#allocation7 + $0x3c0] ss:$8 sps:$4 sm:$0xff]  }
 0x80b   :  { %9280 = vmatpush1.bf16.msra.mxu1 %v18634_v43  ;;  %9311 = vmatprep.mubr.bf16.mxu1 %v19807_v15  ;;  %v18696_v43 = vld [vmem:[#allocation7 + $0x3c4] ss:$8 sps:$4 sm:$0xff]  }
 0x80c   :  { %9281 = vmatprep.subr.bf16.mxu1 %v18639_v50  ;;  %v18699_v50 = vld [vmem:[#allocation7 + $0x3d4] ss:$8 sps:$4 sm:$0xff]  }
 0x80f   :  { %9282 = vmatpush1.bf16.msra.mxu1 %v18637_v52  ;;  %v18700_v52 = vld [vmem:[#allocation7 + $0x3e0] ss:$8 sps:$4 sm:$0xff]  }
 0x810   :  { %9283 = vmatprep.subr.bf16.mxu1 %v18642_v61  ;;  %v18703_v61 = vld [vmem:[#allocation7 + $0x3f0] ss:$8 sps:$4 sm:$0xff]  }
 0x813   :  { %9284 = vmatpush1.bf16.msra.mxu1 %v18640_v5  ;;  %v9465_v5 = vld [vmem:[#allocation4 + $0x17] ss:$2 sm:$0xf] }
 0x814   :  { %9285 = vmatprep.subr.bf16.mxu1 %v18645_v57  ;;  %v9482_v57 = vpack.c.bf16 %v9465_v5, %v9465_v5  ;;  %v18811_v5 = vld [vmem:[#allocation9 + $0x4e8] ss:$48 sps:$4 sm:$0xff]  }
 0x817   :  { %9286 = vmatpush1.bf16.msra.mxu1 %v18643_v4  ;;  %v18709_v4 = vld [vmem:[#allocation7 + $0x410] ss:$8 sps:$4 sm:$0xff]  }
 0x818   :  { %9287 = vmatprep.subr.bf16.mxu1 %v18648_v6  ;;  %v18712_v6 = vld [vmem:[#allocation7 + $0x420] ss:$8 sps:$4 sm:$0xff]  }
 0x81b   :  { %9288 = vmatpush1.bf16.msra.mxu1 %v18646_v9  ;;  %v18715_v9 = vld [vmem:[#allocation7 + $0x430] ss:$8 sps:$4 sm:$0xff]  }
 0x81c   :  { %9289 = vmatprep.subr.bf16.mxu1 %v18651_v10  ;;  %v18718_v10 = vld [vmem:[#allocation7 + $0x440] ss:$8 sps:$4 sm:$0xff]  }
 0x81f   :  { %9290 = vmatpush1.bf16.msra.mxu1 %v18649_v14  ;;  %v18721_v14 = vld [vmem:[#allocation7 + $0x450] ss:$8 sps:$4 sm:$0xff]  }
 0x820   :  { %9291 = vmatprep.subr.bf16.mxu1 %v18654_v35  ;;  %v18729_v35 = vld [vmem:[#allocation7 + $0x474] ss:$8 sps:$4 sm:$0xff]  }
 0x823   :  { %9292 = vmatpush1.bf16.msra.mxu1 %v18652_v19  ;;  %v18735_v19 = vld [vmem:[#allocation9 + $0xc] ss:$48 sps:$4 sm:$0xff]  }
 0x824   :  { %9293 = vmatprep.subr.bf16.mxu1 %v18657_v26  ;;  %v18733_v26 = vld [vmem:[#allocation9 + $0x8] ss:$48 sps:$4 sm:$0xff]  }
 0x827   :  { %9294 = vmatpush1.bf16.msra.mxu1 %v18655_v31  ;;  %v18741_v31 = vld [vmem:[#allocation9 + $0x6c] ss:$48 sps:$4 sm:$0xff]  }
 0x828   :  { %9421 = vmatprep.subr.bf16.mxu1 %v18660_v28  ;;  %v18739_v28 = vld [vmem:[#allocation9 + $0x68] ss:$48 sps:$4 sm:$0xff]  }
 0x82a   :  { %9312 = vmatmul.mubr.bf16.vlgmr.msra.gmra.mrb[12].mxu1 %v9198_v1  ;;  %v18753_v1 = vld [vmem:[#allocation9 + $0x12c] ss:$48 sps:$4 sm:$0xff]  }
 0x82b   :  { %9422 = vmatpush1.bf16.msra.mxu1 %v18658_v46  ;;  %9453 = vmatprep.mubr.bf16.mxu1 %v19807_v15  ;;  %v18745_v46 = vld [vmem:[#allocation9 + $0xc8] ss:$48 sps:$4 sm:$0xff]  }
 0x82c   :  { %9423 = vmatprep.subr.bf16.mxu1 %v18663_v48  ;;  %v18751_v48 = vld [vmem:[#allocation9 + $0x128] ss:$48 sps:$4 sm:$0xff]  }
 0x82f   :  { %9424 = vmatpush1.bf16.msra.mxu1 %v18661_v49  ;;  %v18759_v49 = vld [vmem:[#allocation9 + $0x18c] ss:$48 sps:$4 sm:$0xff]  }
 0x830   :  { %9425 = vmatprep.subr.bf16.mxu1 %v18666_v30  ;;  %v18757_v30 = vld [vmem:[#allocation9 + $0x188] ss:$48 sps:$4 sm:$0xff]  }
 0x833   :  { %9426 = vmatpush1.bf16.msra.mxu1 %v18664_v12  ;;  %v18765_v12 = vld [vmem:[#allocation9 + $0x1ec] ss:$48 sps:$4 sm:$0xff]  }
 0x834   :  { %9427 = vmatprep.subr.bf16.mxu1 %v18669_v21  ;;  %v18763_v21 = vld [vmem:[#allocation9 + $0x1e8] ss:$48 sps:$4 sm:$0xff]  }
 0x837   :  { %9428 = vmatpush1.bf16.msra.mxu1 %v18667_v41  ;;  %v18771_v41 = vld [vmem:[#allocation9 + $0x24c] ss:$48 sps:$4 sm:$0xff]  }
 0x838   :  { %9429 = vmatprep.subr.bf16.mxu1 %v18672_v22  ;;  %v18769_v22 = vld [vmem:[#allocation9 + $0x248] ss:$48 sps:$4 sm:$0xff]  }
 0x83b   :  { %9430 = vmatpush1.bf16.msra.mxu1 %v18670_v63  ;;  %v18774_v63 = vld [vmem:[#allocation9 + $0x2a4] ss:$48 sps:$4 sm:$0xff]  }
 0x83c   :  { %9431 = vmatprep.subr.bf16.mxu1 %v18675_v36  ;;  %v18777_v36 = vld [vmem:[#allocation9 + $0x2ac] ss:$48 sps:$4 sm:$0xff]   ;;  %11049 = vmatprep.subr.bf16.mxu0 %v18774_v63 }
 0x83f   :  { %9432 = vmatpush1.bf16.msra.mxu1 %v18673_v3  ;;  %v18772_v3 = vld [vmem:[#allocation9 + $0x2a0] ss:$48 sps:$4 sm:$0xff]  }
 0x840   :  { %9433 = vmatprep.subr.bf16.mxu1 %v18678_v17  ;;  %v18775_v17 = vld [vmem:[#allocation9 + $0x2a8] ss:$48 sps:$4 sm:$0xff]   ;;  %11050 = vmatpush1.bf16.msra.mxu0 %v18772_v3 }
 0x843   :  { %9434 = vmatpush1.bf16.msra.mxu1 %v18676_v37  ;;  %v18780_v37 = vld [vmem:[#allocation9 + $0x304] ss:$48 sps:$4 sm:$0xff]  }
 0x844   :  { %9435 = vmatprep.subr.bf16.mxu1 %v18681_v33  ;;  %v18783_v33 = vld [vmem:[#allocation9 + $0x30c] ss:$48 sps:$4 sm:$0xff]   ;;  %11051 = vmatprep.subr.bf16.mxu0 %v18780_v37 }
 0x847   :  { %9436 = vmatpush1.bf16.msra.mxu1 %v18679_v38  ;;  %v18778_v38 = vld [vmem:[#allocation9 + $0x300] ss:$48 sps:$4 sm:$0xff]  }
 0x848   :  { %9563 = vmatprep.subr.bf16.mxu1 %v18684_v29  ;;  %v18781_v29 = vld [vmem:[#allocation9 + $0x308] ss:$48 sps:$4 sm:$0xff]   ;;  %11052 = vmatpush1.bf16.msra.mxu0 %v18778_v38 }
 0x849   :  { %11053 = vmatprep.subr.bf16.mxu0 %v18786_v39 }
 0x84a   :  { %9454 = vmatmul.mubr.bf16.vlgmr.msra.gmra.mrb[12].mxu1 %v9340_v54  ;;  %v18784_v54 = vld [vmem:[#allocation9 + $0x360] ss:$48 sps:$4 sm:$0xff]  }
 0x84b   :  { %9564 = vmatpush1.bf16.msra.mxu1 %v18682_v42  ;;  %9595 = vmatprep.mubr.bf16.mxu1 %v19807_v15  ;;  %v18789_v42 = vld [vmem:[#allocation9 + $0x36c] ss:$48 sps:$4 sm:$0xff]  }
 0x84c   :  { %9565 = vmatprep.subr.bf16.mxu1 %v18687_v18  ;;  %v18787_v18 = vld [vmem:[#allocation9 + $0x368] ss:$48 sps:$4 sm:$0xff]   ;;  %11054 = vmatpush1.bf16.msra.mxu0 %v18784_v54 }
 0x84f   :  { %9566 = vmatpush1.bf16.msra.mxu1 %v18685_v60  ;;  %v18792_v60 = vld [vmem:[#allocation9 + $0x3c4] ss:$48 sps:$4 sm:$0xff]  }
 0x850   :  { %9567 = vmatprep.subr.bf16.mxu1 %v18690_v40  ;;  %v18795_v40 = vld [vmem:[#allocation9 + $0x3cc] ss:$48 sps:$4 sm:$0xff]   ;;  %11055 = vmatprep.subr.bf16.mxu0 %v18792_v60 }
 0x853   :  { %9568 = vmatpush1.bf16.msra.mxu1 %v18688_v27  ;;  %v18790_v27 = vld [vmem:[#allocation9 + $0x3c0] ss:$48 sps:$4 sm:$0xff]  }
 0x854   :  { %9569 = vmatprep.subr.bf16.mxu1 %v18693_v44  ;;  %v18793_v44 = vld [vmem:[#allocation9 + $0x3c8] ss:$48 sps:$4 sm:$0xff]   ;;  %11056 = vmatpush1.bf16.msra.mxu0 %v18790_v27 }
 0x857   :  { %9570 = vmatpush1.bf16.msra.mxu1 %v18691_v56  ;;  %v18798_v56 = vld [vmem:[#allocation9 + $0x424] ss:$48 sps:$4 sm:$0xff]  }
 0x858   :  { %9571 = vmatprep.subr.bf16.mxu1 %v18696_v43  ;;  %v18801_v43 = vld [vmem:[#allocation9 + $0x42c] ss:$48 sps:$4 sm:$0xff]   ;;  %11057 = vmatprep.subr.bf16.mxu0 %v18798_v56 }
 0x85b   :  { %9572 = vmatpush1.bf16.msra.mxu1 %v18694_v47  ;;  %v18796_v47 = vld [vmem:[#allocation9 + $0x420] ss:$48 sps:$4 sm:$0xff]  }
 0x85c   :  { %9573 = vmatprep.subr.bf16.mxu1 %v18699_v50  ;;  %v18799_v50 = vld [vmem:[#allocation9 + $0x428] ss:$48 sps:$4 sm:$0xff]   ;;  %11058 = vmatpush1.bf16.msra.mxu0 %v18796_v47 }
 0x85d   :  { %v18829_v47 = vld [vmem:[#allocation9 + $0x18] ss:$48 sps:$4 sm:$0xff]  }
 0x85f   :  { %9574 = vmatpush1.bf16.msra.mxu1 %v18697_v51  ;;  %v18804_v51 = vld [vmem:[#allocation9 + $0x484] ss:$48 sps:$4 sm:$0xff]  }
 0x860   :  { %9575 = vmatprep.subr.bf16.mxu1 %v18702_v11  ;;  %v18807_v11 = vld [vmem:[#allocation9 + $0x48c] ss:$48 sps:$4 sm:$0xff]   ;;  %11059 = vmatprep.subr.bf16.mxu0 %v18804_v51  ;;  %v18834_v51 = vld [vmem:[#allocation9 + $0x74] ss:$48 sps:$4 sm:$0xff]  }
 0x863   :  { %9576 = vmatpush1.bf16.msra.mxu1 %v18700_v52  ;;  %v18802_v52 = vld [vmem:[#allocation9 + $0x480] ss:$48 sps:$4 sm:$0xff]  }
 0x864   :  { %9577 = vmatprep.subr.bf16.mxu1 %v18705_v53  ;;  %v18805_v53 = vld [vmem:[#allocation9 + $0x488] ss:$48 sps:$4 sm:$0xff]   ;;  %11060 = vmatpush1.bf16.msra.mxu0 %v18802_v52  ;;  %v18840_v52 = vld [vmem:[#allocation9 + $0xd4] ss:$48 sps:$4 sm:$0xff]  }
 0x867   :  { %9578 = vmatpush1.bf16.msra.mxu1 %v18703_v61  ;;  %v18808_v61 = vld [vmem:[#allocation9 + $0x4e0] ss:$48 sps:$4 sm:$0xff]  }
 0x868   :  { %9705 = vmatprep.subr.bf16.mxu1 %v18708_v0  ;;  %v18810_v0 = vld [vmem:[#allocation9 + $0x4e4] ss:$48 sps:$4 sm:$0xff]  }
 0x869   :  { %11061 = vmatprep.subr.bf16.mxu0 %v18810_v0  ;;  %v18841_v0 = vld [vmem:[#allocation9 + $0xd8] ss:$48 sps:$4 sm:$0xff]  }
 0x86a   :  { %9596 = vmatmul.mubr.bf16.vlgmr.msra.gmra.mrb[12].mxu1 %v9482_v57  ;;  %v18816_v57 = vld [vmem:[#allocation9 + $0x544] ss:$48 sps:$4 sm:$0xff]   ;;  %11062 = vmatpush1.bf16.msra.mxu0 %v18808_v61  ;;  %v18838_v61 = vld [vmem:[#allocation9 + $0xd0] ss:$48 sps:$4 sm:$0xff]  }
 0x86b   :  { %9706 = vmatpush1.bf16.msra.mxu1 %v18706_v55  ;;  %9737 = vmatprep.mubr.bf16.mxu1 %v19807_v15  ;;  %v18724_v15 = vld [vmem:[#allocation7 + $0x460] ss:$8 sps:$4 sm:$0xff]   ;;  %v18813_v55 = vld [vmem:[#allocation9 + $0x4ec] ss:$48 sps:$4 sm:$0xff]  }
 0x86c   :  { %9707 = vmatprep.subr.bf16.mxu1 %v18711_v58  ;;  %v18819_v58 = vld [vmem:[#allocation9 + $0x54c] ss:$48 sps:$4 sm:$0xff]   ;;  %11063 = vmatprep.subr.bf16.mxu0 %v18816_v57  ;;  %v18844_v57 = vld [vmem:[#allocation9 + $0x130] ss:$48 sps:$4 sm:$0xff]  }
 0x86f   :  { %9708 = vmatpush1.bf16.msra.mxu1 %v18709_v4  ;;  %v18814_v4 = vld [vmem:[#allocation9 + $0x540] ss:$48 sps:$4 sm:$0xff]  }
 0x870   :  { %9709 = vmatprep.subr.bf16.mxu1 %v18714_v7  ;;  %v18817_v7 = vld [vmem:[#allocation9 + $0x548] ss:$48 sps:$4 sm:$0xff]   ;;  %11064 = vmatpush1.bf16.msra.mxu0 %v18814_v4  ;;  %v18852_v4 = vld [vmem:[#allocation9 + $0x194] ss:$48 sps:$4 sm:$0xff]  }
 0x873   :  { %9710 = vmatpush1.bf16.msra.mxu1 %v18712_v6  ;;  %v18822_v6 = vld [vmem:[#allocation9 + $0x5a4] ss:$48 sps:$4 sm:$0xff]  }
 0x874   :  { %9711 = vmatprep.subr.bf16.mxu1 %v18717_v8  ;;  %v18825_v8 = vld [vmem:[#allocation9 + $0x5ac] ss:$48 sps:$4 sm:$0xff]   ;;  %11065 = vmatprep.subr.bf16.mxu0 %v18822_v6  ;;  %v18850_v6 = vld [vmem:[#allocation9 + $0x190] ss:$48 sps:$4 sm:$0xff]  }
 0x877   :  { %9712 = vmatpush1.bf16.msra.mxu1 %v18715_v9  ;;  %v18820_v9 = vld [vmem:[#allocation9 + $0x5a0] ss:$48 sps:$4 sm:$0xff]  }
 0x878   :  { %9713 = vmatprep.subr.bf16.mxu1 %v18720_v20  ;;  %v18823_v20 = vld [vmem:[#allocation9 + $0x5a8] ss:$48 sps:$4 sm:$0xff]   ;;  %11066 = vmatpush1.bf16.msra.mxu0 %v18820_v9  ;;  %v18858_v9 = vld [vmem:[#allocation9 + $0x1f4] ss:$48 sps:$4 sm:$0xff]  }
 0x87b   :  { %9714 = vmatpush1.bf16.msra.mxu1 %v18718_v10  ;;  %v18828_v10 = vld [vmem:[#allocation9 + $0x14] ss:$48 sps:$4 sm:$0xff]  }
 0x87c   :  { %9715 = vmatprep.subr.bf16.mxu1 %v18723_v13  ;;  %v18831_v13 = vld [vmem:[#allocation9 + $0x1c] ss:$48 sps:$4 sm:$0xff]   ;;  %11117 = vmatprep.subr.bf16.mxu0 %v18828_v10  ;;  %v18856_v10 = vld [vmem:[#allocation9 + $0x1f0] ss:$48 sps:$4 sm:$0xff]  }
 0x87f   :  { %9716 = vmatpush1.bf16.msra.mxu1 %v18721_v14  ;;  %v9748_v14 = vld [vmem:[%s23495_s8] sm:$0x3] }
 0x880   :  { %9717 = vmatprep.subr.bf16.mxu1 %v18726_v16  ;;  %v9762_v16 = vld [vmem:[%s23496_s9] sm:$0x3] }
 0x881   :  { %v9771_v23 = vrot.slane %v9762_v16, %v21846_v2 }
 0x883   :  { %9718 = vmatpush1.bf16.msra.mxu1 %v18724_v15  ;;  %v9753_v15 = vrot.slane %v9748_v14, %v21840_v34 }
 0x884   :  { %9719 = vmatprep.subr.bf16.mxu1 %v18729_v35  ;;  %v9757_v35 = vrot.slane %v9748_v14, %v21846_v2  ;;  %v18864_v14 = vld [vmem:[#allocation9 + $0x254] ss:$48 sps:$4 sm:$0xff]  }
 0x887   :  { %9720 = vmatpush1.bf16.msra.mxu1 %v18727_v45  ;;  %v9767_v45 = vrot.slane %v9762_v16, %v21840_v34  ;;  %v18867_v16 = vld [vmem:[#allocation9 + $0x25c] ss:$48 sps:$4 sm:$0xff]  }
 0x888   :  { %11076 = vmatprep.subr.bf16.mxu1 %v18735_v19 }
 0x88a   :  { %9738 = vmatmul.mubr.bf16.vlgmr.msra.gmra.mrb[12].mxu1 %v9624_v24 }
 0x88b   :  { %11077 = vmatpush1.bf16.msra.mxu1 %v18733_v26 }
 0x88c   :  { %11078 = vmatprep.subr.bf16.mxu1 %v18741_v31 }
 0x88f   :  { %11079 = vmatpush1.bf16.msra.mxu1 %v18739_v28 }
 0x890   :  { %11080 = vmatprep.subr.bf16.mxu1 %v18747_v25 }
 0x893   :  { %11081 = vmatpush1.bf16.msra.mxu1 %v18745_v46 }
 0x894   :  { %11082 = vmatprep.subr.bf16.mxu1 %v18753_v1 }
 0x897   :  { %11083 = vmatpush1.bf16.msra.mxu1 %v18751_v48 }
 0x898   :  { %11084 = vmatprep.subr.bf16.mxu1 %v18759_v49 }
 0x89b   :  { %11085 = vmatpush1.bf16.msra.mxu1 %v18757_v30 }
 0x89c   :  { %11086 = vmatprep.subr.bf16.mxu1 %v18765_v12 }
 0x89f   :  { %11087 = vmatpush1.bf16.msra.mxu1 %v18763_v21 }
 0x8a0   :  { %11088 = vmatprep.subr.bf16.mxu1 %v18771_v41 }
 0x8a3   :  { %11089 = vmatpush1.bf16.msra.mxu1 %v18769_v22 }
 0x8a4   :  { %11090 = vmatprep.subr.bf16.mxu1 %v18777_v36 }
 0x8a7   :  { %11091 = vmatpush1.bf16.msra.mxu1 %v18775_v17 }
 0x8a8   :  { %11092 = vmatprep.subr.bf16.mxu1 %v18783_v33 }
 0x8ab   :  { %11093 = vmatpush1.bf16.msra.mxu1 %v18781_v29 }
 0x8ac   :  { %11094 = vmatprep.subr.bf16.mxu1 %v18789_v42 }
 0x8af   :  { %11095 = vmatpush1.bf16.msra.mxu1 %v18787_v18 }
 0x8b0   :  { %11096 = vmatprep.subr.bf16.mxu1 %v18795_v40 }
 0x8b3   :  { %11097 = vmatpush1.bf16.msra.mxu1 %v18793_v44 }
 0x8b4   :  { %11098 = vmatprep.subr.bf16.mxu1 %v18801_v43  ;;  %v18826_v43 = vld [vmem:[#allocation9 + $0x10] ss:$48 sps:$4 sm:$0xff]  }
 0x8b7   :  { %11099 = vmatpush1.bf16.msra.mxu1 %v18799_v50 }
 0x8b8   :  { %11100 = vmatprep.subr.bf16.mxu1 %v18807_v11  ;;  %v18837_v11 = vld [vmem:[#allocation9 + $0x7c] ss:$48 sps:$4 sm:$0xff]  }
 0x8bb   :  { %11101 = vmatpush1.bf16.msra.mxu1 %v18805_v53  ;;  %v18843_v53 = vld [vmem:[#allocation9 + $0xdc] ss:$48 sps:$4 sm:$0xff]  }
 0x8bc   :  { %11102 = vmatprep.subr.bf16.mxu1 %v18813_v55  ;;  %v18849_v55 = vld [vmem:[#allocation9 + $0x13c] ss:$48 sps:$4 sm:$0xff]  }
 0x8bf   :  { %11103 = vmatpush1.bf16.msra.mxu1 %v18811_v5  ;;  %v18846_v5 = vld [vmem:[#allocation9 + $0x134] ss:$48 sps:$4 sm:$0xff]  }
 0x8c0   :  { %11104 = vmatprep.subr.bf16.mxu1 %v18819_v58  ;;  %v18847_v58 = vld [vmem:[#allocation9 + $0x138] ss:$48 sps:$4 sm:$0xff]  }
 0x8c3   :  { %11105 = vmatpush1.bf16.msra.mxu1 %v18817_v7  ;;  %v18855_v7 = vld [vmem:[#allocation9 + $0x19c] ss:$48 sps:$4 sm:$0xff]  }
 0x8c4   :  { %11106 = vmatprep.subr.bf16.mxu1 %v18825_v8  ;;  %v18853_v8 = vld [vmem:[#allocation9 + $0x198] ss:$48 sps:$4 sm:$0xff]  }
 0x8c7   :  { %11107 = vmatpush1.bf16.msra.mxu1 %v18823_v20  ;;  %v18861_v20 = vld [vmem:[#allocation9 + $0x1fc] ss:$48 sps:$4 sm:$0xff]  }
 0x8c8   :  { %11158 = vmatprep.subr.bf16.mxu1 %v18831_v13  ;;  %v18859_v13 = vld [vmem:[#allocation9 + $0x1f8] ss:$48 sps:$4 sm:$0xff]  }
 0x95d   :  { %v9739_v19 = vpop.f32.mrb[12].mxu1 }
 0x95e   :  { %v9760_v26 = vmul.f32 %v9753_v15, %v9739_v19  ;;  %v9741_v24 = vpop.f32.mrb[13].mxu1  ;;  %v18862_v15 = vld [vmem:[#allocation9 + $0x250] ss:$48 sps:$4 sm:$0xff]   ;;  %v18873_v19 = vld [vmem:[#allocation9 + $0x2bc] ss:$48 sps:$4 sm:$0xff]  }
 0x95f   :  { %v9761_v31 = vmul.f32 %v9757_v35, %v9741_v24  ;;  %v9743_v28 = vpop.f32.mrb[14].mxu1  ;;  %v18865_v35 = vld [vmem:[#allocation9 + $0x258] ss:$48 sps:$4 sm:$0xff]   ;;  %v18876_v24 = vld [vmem:[#allocation9 + $0x314] ss:$48 sps:$4 sm:$0xff]  }
 0x960   :  { %v9774_v25 = vadd.f32 %v9767_v45, %v9760_v26  ;;  %v9744_v46 = vpop.f32.mrb[15].mxu1  ;;  %v18870_v45 = vld [vmem:[#allocation9 + $0x2b4] ss:$48 sps:$4 sm:$0xff]   ;;  %v18871_v26 = vld [vmem:[#allocation9 + $0x2b8] ss:$48 sps:$4 sm:$0xff]  }
 0x961   :  { %v9775_v1 = vadd.f32 %v9771_v23, %v9761_v31  ;;  %v18868_v23 = vld [vmem:[#allocation9 + $0x2b0] ss:$48 sps:$4 sm:$0xff]   ;;  %v18879_v31 = vld [vmem:[#allocation9 + $0x31c] ss:$48 sps:$4 sm:$0xff]   ;;  %v18882_v46 = vld [vmem:[#allocation9 + $0x374] ss:$48 sps:$4 sm:$0xff]  }
 0x962   :  { %v9776_v48 = vmax.f32 %v9774_v25, 0.0  ;;  %v18874_v28 = vld [vmem:[#allocation9 + $0x310] ss:$48 sps:$4 sm:$0xff]   ;;  %v18877_v25 = vld [vmem:[#allocation9 + $0x318] ss:$48 sps:$4 sm:$0xff]  }
 0x963   :  { %v9777_v49 = vmax.f32 %v9775_v1, 0.0  ;;  %v18885_v1 = vld [vmem:[#allocation9 + $0x37c] ss:$48 sps:$4 sm:$0xff]  }
 0x964   :  { %v9778_v30 = vsel %vm4923_vm3, %v9776_v48, 0.0  ;;  %v18880_v48 = vld [vmem:[#allocation9 + $0x370] ss:$48 sps:$4 sm:$0xff]  }
 0x965   :  { %v9779_v12 = vrot.slane %v9778_v30, 4  ;;  %v9785_v21 = vsel %vm4923_vm3, %v9777_v49, 0.0  ;;  %v18883_v49 = vld [vmem:[#allocation9 + $0x378] ss:$48 sps:$4 sm:$0xff]  }
 0x966   :  { %v9786_v41 = vrot.slane %v9785_v21, 4 }
 0x967   :  { %v9780_v22 = vadd.f32 %v9779_v12, %v9778_v30  ;;  %v18888_v30 = vld [vmem:[#allocation9 + $0x3d4] ss:$48 sps:$4 sm:$0xff]   ;;  %v18891_v12 = vld [vmem:[#allocation9 + $0x3dc] ss:$48 sps:$4 sm:$0xff]  }
 0x968   :  { %v9787_v63 = vadd.f32 %v9786_v41, %v9785_v21  ;;  %v18886_v21 = vld [vmem:[#allocation9 + $0x3d0] ss:$48 sps:$4 sm:$0xff]   ;;  %v18889_v41 = vld [vmem:[#allocation9 + $0x3d8] ss:$48 sps:$4 sm:$0xff]  }
 0x969   :  { %v9781_v36 = vrot.slane %v9780_v22, 2 }
 0x96a   :  { %v9788_v3 = vrot.slane %v9787_v63, 2 }
 0x96b   :  { %v9782_v17 = vadd.f32 %v9781_v36, %v9780_v22  ;;  %v18894_v22 = vld [vmem:[#allocation9 + $0x434] ss:$48 sps:$4 sm:$0xff]   ;;  %v18892_v36 = vld [vmem:[#allocation9 + $0x430] ss:$48 sps:$4 sm:$0xff]  }
 0x96c   :  { %v9789_v37 = vadd.f32 %v9788_v3, %v9787_v63  ;;  %v18897_v63 = vld [vmem:[#allocation9 + $0x43c] ss:$48 sps:$4 sm:$0xff]   ;;  %v18895_v3 = vld [vmem:[#allocation9 + $0x438] ss:$48 sps:$4 sm:$0xff]  }
 0x96d   :  { %v9783_v33 = vrot.slane %v9782_v17, 1 }
 0x96e   :  { %v9790_v38 = vrot.slane %v9789_v37, 1 }
 0x96f   :  { %v9784_v29 = vadd.f32 %v9783_v33, %v9782_v17  ;;  %v18900_v17 = vld [vmem:[#allocation9 + $0x494] ss:$48 sps:$4 sm:$0xff]   ;;  %v18898_v33 = vld [vmem:[#allocation9 + $0x490] ss:$48 sps:$4 sm:$0xff]  }
 0x970   :  { %v9791_v39 = vadd.f32 %v9790_v38, %v9789_v37  ;;  %v18903_v37 = vld [vmem:[#allocation9 + $0x49c] ss:$48 sps:$4 sm:$0xff]   ;;  %v18901_v38 = vld [vmem:[#allocation9 + $0x498] ss:$48 sps:$4 sm:$0xff]  }
 0x971   :  { %v9792_v42 = vmul.f32 0.25, %v9784_v29  ;;  %v18906_v29 = vld [vmem:[#allocation9 + $0x4f4] ss:$48 sps:$4 sm:$0xff]  }
 0x972   :  { %v9793_v54 = vmul.f32 0.25, %v9791_v39  ;;  %v18909_v39 = vld [vmem:[#allocation9 + $0x4fc] ss:$48 sps:$4 sm:$0xff]  }
 0x974   :  { %v9796_v18 = vcombine.low %v9792_v42, %v9793_v54  ;;  %v18904_v42 = vld [vmem:[#allocation9 + $0x4f0] ss:$48 sps:$4 sm:$0xff]   ;;  %v18907_v54 = vld [vmem:[#allocation9 + $0x4f8] ss:$48 sps:$4 sm:$0xff]  }
 0x976   :  { %v9803_v60 = vrot.slane %v9796_v18, %v21892_v59  ;;  %v18912_v18 = vld [vmem:[#allocation9 + $0x554] ss:$48 sps:$4 sm:$0xff]  }
 0x978   :  { %v9810_v40 = vrot.slane %v9803_v60, %v21892_v59  ;;  %v18832_v59 = vld [vmem:[#allocation9 + $0x70] ss:$48 sps:$4 sm:$0xff]   ;;  %v18915_v60 = vld [vmem:[#allocation9 + $0x55c] ss:$48 sps:$4 sm:$0xff]  }
 0x97a   :  { %9813 = vst.msk [vmem:[#allocation5 + $0x1] ss:$8 sm:$0x3] %vm21900_vm4, %v9810_v40  ;;  %v18910_v40 = vld [vmem:[#allocation9 + $0x550] ss:$48 sps:$4 sm:$0xff]  }
 0x981   :  { %v9816_v27 = vld [vmem:[#allocation5 + $0x8] sm:$0x3]  ;;  %v9815_v44 = vld [vmem:[#allocation5] sm:$0x3] }
 0x982   :  { %v22056_v56 = vpack.c.bf16 %v9816_v27, %v9816_v27  ;;  %v22058_v50 = vpack.c.bf16 %v9815_v44, %v9815_v44  ;;  %v18913_v27 = vld [vmem:[#allocation9 + $0x558] ss:$48 sps:$4 sm:$0xff]   ;;  %v18918_v44 = vld [vmem:[#allocation9 + $0x5b4] ss:$48 sps:$4 sm:$0xff]  }
 0x984   :  { %11067 = vmatprep.mubr.bf16.mxu0 %v22056_v56  ;;  %11108 = vmatprep.mubr.bf16.mxu1 %v22056_v56 }
 0x985   :  { %11068 = vmatmul.mubr.bf16.vlgmr.msra.gmra.mrb[16].mxu0 %v22058_v50  ;;  %11109 = vmatmul.mubr.bf16.vlgmr.msra.gmra.mrb[16].mxu1 %v22058_v50 }
 0x986   :  { %11118 = vmatpush1.bf16.msra.mxu0 %v18826_v43  ;;  %11159 = vmatpush1.bf16.msra.mxu1 %v18829_v47  ;;  %v18921_v43 = vld [vmem:[#allocation9 + $0x5bc] ss:$48 sps:$4 sm:$0xff]   ;;  %v18916_v47 = vld [vmem:[#allocation9 + $0x5b0] ss:$48 sps:$4 sm:$0xff]  }
 0x987   :  { %11149 = vmatprep.mubr.bf16.mxu0 %v22056_v56  ;;  %11190 = vmatprep.mubr.bf16.mxu1 %v22056_v56 }
 0x988   :  { %11119 = vmatprep.subr.bf16.mxu0 %v18834_v51  ;;  %11160 = vmatprep.subr.bf16.mxu1 %v18837_v11  ;;  %v18919_v51 = vld [vmem:[#allocation9 + $0x5b8] ss:$48 sps:$4 sm:$0xff]   ;;  %v18924_v11 = vld [vmem:[#allocation9 + $0x24] ss:$48 sps:$4 sm:$0xff]  }
 0x98a   :  { %11120 = vmatpush1.bf16.msra.mxu0 %v18832_v59  ;;  %11161 = vmatpush1.bf16.msra.mxu1 %v18835_v62  ;;  %v18927_v59 = vld [vmem:[#allocation9 + $0x2c] ss:$48 sps:$4 sm:$0xff]   ;;  %v18922_v62 = vld [vmem:[#allocation9 + $0x20] ss:$48 sps:$4 sm:$0xff]  }
 0x98b   :  { %11121 = vmatprep.subr.bf16.mxu0 %v18840_v52  ;;  %11162 = vmatprep.subr.bf16.mxu1 %v18843_v53  ;;  %v18925_v52 = vld [vmem:[#allocation9 + $0x28] ss:$48 sps:$4 sm:$0xff]   ;;  %v18930_v53 = vld [vmem:[#allocation9 + $0x84] ss:$48 sps:$4 sm:$0xff]  }
 0x98e   :  { %11122 = vmatpush1.bf16.msra.mxu0 %v18838_v61  ;;  %11163 = vmatpush1.bf16.msra.mxu1 %v18841_v0  ;;  %v18933_v61 = vld [vmem:[#allocation9 + $0x8c] ss:$48 sps:$4 sm:$0xff]   ;;  %v18928_v0 = vld [vmem:[#allocation9 + $0x80] ss:$48 sps:$4 sm:$0xff]  }
 0x98f   :  { %11123 = vmatprep.subr.bf16.mxu0 %v18846_v5  ;;  %11164 = vmatprep.subr.bf16.mxu1 %v18849_v55  ;;  %v18931_v5 = vld [vmem:[#allocation9 + $0x88] ss:$48 sps:$4 sm:$0xff]   ;;  %v18936_v55 = vld [vmem:[#allocation9 + $0xe4] ss:$48 sps:$4 sm:$0xff]  }
 0x992   :  { %11124 = vmatpush1.bf16.msra.mxu0 %v18844_v57  ;;  %11165 = vmatpush1.bf16.msra.mxu1 %v18847_v58  ;;  %v18939_v57 = vld [vmem:[#allocation9 + $0xec] ss:$48 sps:$4 sm:$0xff]   ;;  %v18934_v58 = vld [vmem:[#allocation9 + $0xe0] ss:$48 sps:$4 sm:$0xff]  }
 0x993   :  { %11125 = vmatprep.subr.bf16.mxu0 %v18852_v4  ;;  %11166 = vmatprep.subr.bf16.mxu1 %v18855_v7  ;;  %v18937_v4 = vld [vmem:[#allocation9 + $0xe8] ss:$48 sps:$4 sm:$0xff]   ;;  %v18942_v7 = vld [vmem:[#allocation9 + $0x144] ss:$48 sps:$4 sm:$0xff]  }
 0x996   :  { %11126 = vmatpush1.bf16.msra.mxu0 %v18850_v6  ;;  %11167 = vmatpush1.bf16.msra.mxu1 %v18853_v8  ;;  %v18945_v6 = vld [vmem:[#allocation9 + $0x14c] ss:$48 sps:$4 sm:$0xff]   ;;  %v18940_v8 = vld [vmem:[#allocation9 + $0x140] ss:$48 sps:$4 sm:$0xff]  }
 0x997   :  { %11127 = vmatprep.subr.bf16.mxu0 %v18858_v9  ;;  %11168 = vmatprep.subr.bf16.mxu1 %v18861_v20  ;;  %v18943_v9 = vld [vmem:[#allocation9 + $0x148] ss:$48 sps:$4 sm:$0xff]   ;;  %v18948_v20 = vld [vmem:[#allocation9 + $0x1a4] ss:$48 sps:$4 sm:$0xff]  }
 0x99a   :  { %11128 = vmatpush1.bf16.msra.mxu0 %v18856_v10  ;;  %11169 = vmatpush1.bf16.msra.mxu1 %v18859_v13  ;;  %v18946_v10 = vld [vmem:[#allocation9 + $0x1a0] ss:$48 sps:$4 sm:$0xff]   ;;  %v18949_v13 = vld [vmem:[#allocation9 + $0x1a8] ss:$48 sps:$4 sm:$0xff]  }
 0x99b   :  { %11129 = vmatprep.subr.bf16.mxu0 %v18864_v14  ;;  %11170 = vmatprep.subr.bf16.mxu1 %v18867_v16  ;;  %v18954_v14 = vld [vmem:[#allocation9 + $0x204] ss:$48 sps:$4 sm:$0xff]   ;;  %v18957_v16 = vld [vmem:[#allocation9 + $0x20c] ss:$48 sps:$4 sm:$0xff]  }
 0x99e   :  { %11130 = vmatpush1.bf16.msra.mxu0 %v18862_v15  ;;  %11171 = vmatpush1.bf16.msra.mxu1 %v18865_v35  ;;  %v18952_v15 = vld [vmem:[#allocation9 + $0x200] ss:$48 sps:$4 sm:$0xff]   ;;  %v18955_v35 = vld [vmem:[#allocation9 + $0x208] ss:$48 sps:$4 sm:$0xff]  }
 0x99f   :  { %11131 = vmatprep.subr.bf16.mxu0 %v18870_v45  ;;  %11172 = vmatprep.subr.bf16.mxu1 %v18873_v19  ;;  %v18960_v45 = vld [vmem:[#allocation9 + $0x264] ss:$48 sps:$4 sm:$0xff]   ;;  %v18963_v19 = vld [vmem:[#allocation9 + $0x26c] ss:$48 sps:$4 sm:$0xff]  }
 0x9a2   :  { %11132 = vmatpush1.bf16.msra.mxu0 %v18868_v23  ;;  %11173 = vmatpush1.bf16.msra.mxu1 %v18871_v26  ;;  %v18958_v23 = vld [vmem:[#allocation9 + $0x260] ss:$48 sps:$4 sm:$0xff]   ;;  %v18961_v26 = vld [vmem:[#allocation9 + $0x268] ss:$48 sps:$4 sm:$0xff]  }
 0x9a3   :  { %11133 = vmatprep.subr.bf16.mxu0 %v18876_v24  ;;  %11174 = vmatprep.subr.bf16.mxu1 %v18879_v31  ;;  %v18966_v24 = vld [vmem:[#allocation9 + $0x2c4] ss:$48 sps:$4 sm:$0xff]   ;;  %v18969_v31 = vld [vmem:[#allocation9 + $0x2cc] ss:$48 sps:$4 sm:$0xff]  }
 0x9a6   :  { %11134 = vmatpush1.bf16.msra.mxu0 %v18874_v28  ;;  %11175 = vmatpush1.bf16.msra.mxu1 %v18877_v25  ;;  %v18964_v28 = vld [vmem:[#allocation9 + $0x2c0] ss:$48 sps:$4 sm:$0xff]   ;;  %v18967_v25 = vld [vmem:[#allocation9 + $0x2c8] ss:$48 sps:$4 sm:$0xff]  }
 0x9a7   :  { %11135 = vmatprep.subr.bf16.mxu0 %v18882_v46  ;;  %11176 = vmatprep.subr.bf16.mxu1 %v18885_v1  ;;  %v18972_v46 = vld [vmem:[#allocation9 + $0x324] ss:$48 sps:$4 sm:$0xff]   ;;  %v18975_v1 = vld [vmem:[#allocation9 + $0x32c] ss:$48 sps:$4 sm:$0xff]  }
 0x9aa   :  { %11136 = vmatpush1.bf16.msra.mxu0 %v18880_v48  ;;  %11177 = vmatpush1.bf16.msra.mxu1 %v18883_v49  ;;  %v18970_v48 = vld [vmem:[#allocation9 + $0x320] ss:$48 sps:$4 sm:$0xff]   ;;  %v18973_v49 = vld [vmem:[#allocation9 + $0x328] ss:$48 sps:$4 sm:$0xff]  }
 0x9ab   :  { %11137 = vmatprep.subr.bf16.mxu0 %v18888_v30  ;;  %11178 = vmatprep.subr.bf16.mxu1 %v18891_v12  ;;  %v18978_v30 = vld [vmem:[#allocation9 + $0x384] ss:$48 sps:$4 sm:$0xff]   ;;  %v18981_v12 = vld [vmem:[#allocation9 + $0x38c] ss:$48 sps:$4 sm:$0xff]  }
 0x9ae   :  { %11138 = vmatpush1.bf16.msra.mxu0 %v18886_v21  ;;  %11179 = vmatpush1.bf16.msra.mxu1 %v18889_v41  ;;  %v18976_v21 = vld [vmem:[#allocation9 + $0x380] ss:$48 sps:$4 sm:$0xff]   ;;  %v18979_v41 = vld [vmem:[#allocation9 + $0x388] ss:$48 sps:$4 sm:$0xff]  }
 0x9af   :  { %11139 = vmatprep.subr.bf16.mxu0 %v18894_v22  ;;  %11180 = vmatprep.subr.bf16.mxu1 %v18897_v63  ;;  %v18984_v22 = vld [vmem:[#allocation9 + $0x3e4] ss:$48 sps:$4 sm:$0xff]   ;;  %v18987_v63 = vld [vmem:[#allocation9 + $0x3ec] ss:$48 sps:$4 sm:$0xff]  }
 0x9b2   :  { %11140 = vmatpush1.bf16.msra.mxu0 %v18892_v36  ;;  %11181 = vmatpush1.bf16.msra.mxu1 %v18895_v3  ;;  %v18982_v36 = vld [vmem:[#allocation9 + $0x3e0] ss:$48 sps:$4 sm:$0xff]   ;;  %v18985_v3 = vld [vmem:[#allocation9 + $0x3e8] ss:$48 sps:$4 sm:$0xff]  }
 0x9b3   :  { %11141 = vmatprep.subr.bf16.mxu0 %v18900_v17  ;;  %11182 = vmatprep.subr.bf16.mxu1 %v18903_v37  ;;  %v18990_v17 = vld [vmem:[#allocation9 + $0x444] ss:$48 sps:$4 sm:$0xff]   ;;  %v18993_v37 = vld [vmem:[#allocation9 + $0x44c] ss:$48 sps:$4 sm:$0xff]  }
 0x9b6   :  { %11142 = vmatpush1.bf16.msra.mxu0 %v18898_v33  ;;  %11183 = vmatpush1.bf16.msra.mxu1 %v18901_v38  ;;  %v18988_v33 = vld [vmem:[#allocation9 + $0x440] ss:$48 sps:$4 sm:$0xff]   ;;  %v18991_v38 = vld [vmem:[#allocation9 + $0x448] ss:$48 sps:$4 sm:$0xff]  }
 0x9b7   :  { %11143 = vmatprep.subr.bf16.mxu0 %v18906_v29  ;;  %11184 = vmatprep.subr.bf16.mxu1 %v18909_v39  ;;  %v18996_v29 = vld [vmem:[#allocation9 + $0x4a4] ss:$48 sps:$4 sm:$0xff]   ;;  %v18999_v39 = vld [vmem:[#allocation9 + $0x4ac] ss:$48 sps:$4 sm:$0xff]  }
 0x9ba   :  { %11144 = vmatpush1.bf16.msra.mxu0 %v18904_v42  ;;  %11185 = vmatpush1.bf16.msra.mxu1 %v18907_v54  ;;  %v18994_v42 = vld [vmem:[#allocation9 + $0x4a0] ss:$48 sps:$4 sm:$0xff]   ;;  %v18997_v54 = vld [vmem:[#allocation9 + $0x4a8] ss:$48 sps:$4 sm:$0xff]  }
 0x9bb   :  { %11145 = vmatprep.subr.bf16.mxu0 %v18912_v18  ;;  %11186 = vmatprep.subr.bf16.mxu1 %v18915_v60  ;;  %v19002_v18 = vld [vmem:[#allocation9 + $0x504] ss:$48 sps:$4 sm:$0xff]   ;;  %v19005_v60 = vld [vmem:[#allocation9 + $0x50c] ss:$48 sps:$4 sm:$0xff]  }
 0x9be   :  { %11146 = vmatpush1.bf16.msra.mxu0 %v18910_v40  ;;  %11187 = vmatpush1.bf16.msra.mxu1 %v18913_v27  ;;  %v19000_v40 = vld [vmem:[#allocation9 + $0x500] ss:$48 sps:$4 sm:$0xff]   ;;  %v19003_v27 = vld [vmem:[#allocation9 + $0x508] ss:$48 sps:$4 sm:$0xff]  }
 0x9bf   :  { %11147 = vmatprep.subr.bf16.mxu0 %v18918_v44  ;;  %11188 = vmatprep.subr.bf16.mxu1 %v18921_v43  ;;  %v19008_v44 = vld [vmem:[#allocation9 + $0x564] ss:$48 sps:$4 sm:$0xff]   ;;  %v19011_v43 = vld [vmem:[#allocation9 + $0x56c] ss:$48 sps:$4 sm:$0xff]  }
 0x9c2   :  { %11148 = vmatpush1.bf16.msra.mxu0 %v18916_v47  ;;  %11189 = vmatpush1.bf16.msra.mxu1 %v18919_v51  ;;  %v19006_v47 = vld [vmem:[#allocation9 + $0x560] ss:$48 sps:$4 sm:$0xff]   ;;  %v19009_v51 = vld [vmem:[#allocation9 + $0x568] ss:$48 sps:$4 sm:$0xff]  }
 0x9c3   :  { %11199 = vmatprep.subr.bf16.mxu0 %v18924_v11  ;;  %11240 = vmatprep.subr.bf16.mxu1 %v18927_v59  ;;  %v19014_v11 = vld [vmem:[#allocation9 + $0x5c4] ss:$48 sps:$4 sm:$0xff]   ;;  %v19017_v59 = vld [vmem:[#allocation9 + $0x5cc] ss:$48 sps:$4 sm:$0xff]  }
 0x9c5   :  { %11150 = vmatmul.mubr.bf16.vlgmr.msra.gmra.mrb[20].mxu0 %v22058_v50  ;;  %11191 = vmatmul.mubr.bf16.vlgmr.msra.gmra.mrb[20].mxu1 %v22058_v50 }
 0x9c6   :  { %11200 = vmatpush1.bf16.msra.mxu0 %v18922_v62  ;;  %11231 = vmatprep.mubr.bf16.mxu0 %v22056_v56  ;;  %v19012_v62 = vld [vmem:[#allocation9 + $0x5c0] ss:$48 sps:$4 sm:$0xff]  }
 0x9c7   :  { %11241 = vmatpush1.bf16.msra.mxu1 %v18925_v52  ;;  %11272 = vmatprep.mubr.bf16.mxu1 %v22056_v56  ;;  %v18951_v56 = vld [vmem:[#allocation9 + $0x1ac] ss:$48 sps:$4 sm:$0xff]   ;;  %v19015_v52 = vld [vmem:[#allocation9 + $0x5c8] ss:$48 sps:$4 sm:$0xff]  }
 0x9c8   :  { %11201 = vmatprep.subr.bf16.mxu0 %v18930_v53  ;;  %11242 = vmatprep.subr.bf16.mxu1 %v18933_v61  ;;  %v19018_v53 = vld [vmem:[%s23499_s12] ss:$48 sps:$4 sm:$0xff]   ;;  %v19020_v61 = vld [vmem:[%s23499_s12 + $0x4] ss:$48 sps:$4 sm:$0xff]  }
 0x9ca   :  { %11202 = vmatpush1.bf16.msra.mxu0 %v18928_v0  ;;  %v19021_v0 = vld [vmem:[%s23499_s12 + $0x8] ss:$48 sps:$4 sm:$0xff]  }
 0x9cb   :  { %11243 = vmatpush1.bf16.msra.mxu1 %v18931_v5  ;;  %11203 = vmatprep.subr.bf16.mxu0 %v18936_v55  ;;  %v19023_v5 = vld [vmem:[%s23499_s12 + $0xc] ss:$48 sps:$4 sm:$0xff]  }
 0x9cc   :  { %11244 = vmatprep.subr.bf16.mxu1 %v18939_v57  ;;  %v19029_v55 = vld [vmem:[%s23499_s12 + $0x6c] ss:$48 sps:$4 sm:$0xff]   ;;  %v19024_v57 = vld [vmem:[%s23499_s12 + $0x60] ss:$48 sps:$4 sm:$0xff]  }
 0x9ce   :  { %11204 = vmatpush1.bf16.msra.mxu0 %v18934_v58  ;;  %v19027_v58 = vld [vmem:[%s23499_s12 + $0x68] ss:$48 sps:$4 sm:$0xff]  }
 0x9cf   :  { %11245 = vmatpush1.bf16.msra.mxu1 %v18937_v4  ;;  %11205 = vmatprep.subr.bf16.mxu0 %v18942_v7  ;;  %v19032_v4 = vld [vmem:[%s23499_s12 + $0xc4] ss:$48 sps:$4 sm:$0xff]   ;;  %v19035_v7 = vld [vmem:[%s23499_s12 + $0xcc] ss:$48 sps:$4 sm:$0xff]  }
 0x9d0   :  { %11246 = vmatprep.subr.bf16.mxu1 %v18945_v6  ;;  %v19030_v6 = vld [vmem:[%s23499_s12 + $0xc0] ss:$48 sps:$4 sm:$0xff]  }
 0x9d2   :  { %11206 = vmatpush1.bf16.msra.mxu0 %v18940_v8  ;;  %v19033_v8 = vld [vmem:[%s23499_s12 + $0xc8] ss:$48 sps:$4 sm:$0xff]  }
 0x9d3   :  { %11247 = vmatpush1.bf16.msra.mxu1 %v18943_v9  ;;  %11207 = vmatprep.subr.bf16.mxu0 %v18948_v20  ;;  %v19038_v9 = vld [vmem:[%s23499_s12 + $0x124] ss:$48 sps:$4 sm:$0xff]   ;;  %v19041_v20 = vld [vmem:[%s23499_s12 + $0x12c] ss:$48 sps:$4 sm:$0xff]  }
 0x9d4   :  { %11248 = vmatprep.subr.bf16.mxu1 %v18951_v56  ;;  %v19036_v56 = vld [vmem:[%s23499_s12 + $0x120] ss:$48 sps:$4 sm:$0xff]  }
 0x9d6   :  { %11208 = vmatpush1.bf16.msra.mxu0 %v18946_v10  ;;  %v19039_v10 = vld [vmem:[%s23499_s12 + $0x128] ss:$48 sps:$4 sm:$0xff]  }
 0x9d7   :  { %11249 = vmatpush1.bf16.msra.mxu1 %v18949_v13  ;;  %11209 = vmatprep.subr.bf16.mxu0 %v18954_v14  ;;  %v19044_v13 = vld [vmem:[%s23499_s12 + $0x184] ss:$48 sps:$4 sm:$0xff]   ;;  %v19047_v14 = vld [vmem:[%s23499_s12 + $0x18c] ss:$48 sps:$4 sm:$0xff]  }
 0x9d8   :  { %11250 = vmatprep.subr.bf16.mxu1 %v18957_v16  ;;  %v19042_v16 = vld [vmem:[%s23499_s12 + $0x180] ss:$48 sps:$4 sm:$0xff]  }
 0x9da   :  { %11210 = vmatpush1.bf16.msra.mxu0 %v18952_v15  ;;  %v19045_v15 = vld [vmem:[%s23499_s12 + $0x188] ss:$48 sps:$4 sm:$0xff]  }
 0x9db   :  { %11251 = vmatpush1.bf16.msra.mxu1 %v18955_v35  ;;  %11211 = vmatprep.subr.bf16.mxu0 %v18960_v45  ;;  %v19050_v35 = vld [vmem:[%s23499_s12 + $0x1e4] ss:$48 sps:$4 sm:$0xff]   ;;  %v19053_v45 = vld [vmem:[%s23499_s12 + $0x1ec] ss:$48 sps:$4 sm:$0xff]  }
 0x9dc   :  { %11252 = vmatprep.subr.bf16.mxu1 %v18963_v19  ;;  %v19048_v19 = vld [vmem:[%s23499_s12 + $0x1e0] ss:$48 sps:$4 sm:$0xff]  }
 0x9de   :  { %11212 = vmatpush1.bf16.msra.mxu0 %v18958_v23  ;;  %v19051_v23 = vld [vmem:[%s23499_s12 + $0x1e8] ss:$48 sps:$4 sm:$0xff]  }
 0x9df   :  { %11253 = vmatpush1.bf16.msra.mxu1 %v18961_v26  ;;  %11213 = vmatprep.subr.bf16.mxu0 %v18966_v24  ;;  %v19056_v26 = vld [vmem:[%s23499_s12 + $0x244] ss:$48 sps:$4 sm:$0xff]   ;;  %v19059_v24 = vld [vmem:[%s23499_s12 + $0x24c] ss:$48 sps:$4 sm:$0xff]  }
 0x9e0   :  { %11254 = vmatprep.subr.bf16.mxu1 %v18969_v31  ;;  %v19054_v31 = vld [vmem:[%s23499_s12 + $0x240] ss:$48 sps:$4 sm:$0xff]  }
 0x9e2   :  { %11214 = vmatpush1.bf16.msra.mxu0 %v18964_v28  ;;  %v19057_v28 = vld [vmem:[%s23499_s12 + $0x248] ss:$48 sps:$4 sm:$0xff]  }
 0x9e3   :  { %11255 = vmatpush1.bf16.msra.mxu1 %v18967_v25  ;;  %11215 = vmatprep.subr.bf16.mxu0 %v18972_v46  ;;  %v19062_v25 = vld [vmem:[%s23499_s12 + $0x2a4] ss:$48 sps:$4 sm:$0xff]   ;;  %v19065_v46 = vld [vmem:[%s23499_s12 + $0x2ac] ss:$48 sps:$4 sm:$0xff]  }
 0x9e4   :  { %11256 = vmatprep.subr.bf16.mxu1 %v18975_v1  ;;  %v19060_v1 = vld [vmem:[%s23499_s12 + $0x2a0] ss:$48 sps:$4 sm:$0xff]  }
 0x9e6   :  { %11216 = vmatpush1.bf16.msra.mxu0 %v18970_v48  ;;  %v19063_v48 = vld [vmem:[%s23499_s12 + $0x2a8] ss:$48 sps:$4 sm:$0xff]  }
 0x9e7   :  { %11257 = vmatpush1.bf16.msra.mxu1 %v18973_v49  ;;  %11217 = vmatprep.subr.bf16.mxu0 %v18978_v30 }
 0x9e8   :  { %11258 = vmatprep.subr.bf16.mxu1 %v18981_v12 }
 0x9ea   :  { %11218 = vmatpush1.bf16.msra.mxu0 %v18976_v21 }
 0x9eb   :  { %11259 = vmatpush1.bf16.msra.mxu1 %v18979_v41  ;;  %11219 = vmatprep.subr.bf16.mxu0 %v18984_v22 }
 0x9ec   :  { %11260 = vmatprep.subr.bf16.mxu1 %v18987_v63 }
 0x9ee   :  { %11220 = vmatpush1.bf16.msra.mxu0 %v18982_v36 }
 0x9ef   :  { %11261 = vmatpush1.bf16.msra.mxu1 %v18985_v3  ;;  %11221 = vmatprep.subr.bf16.mxu0 %v18990_v17  ;;  %v19068_v3 = vld [vmem:[%s23499_s12 + $0x304] ss:$48 sps:$4 sm:$0xff]   ;;  %v19066_v17 = vld [vmem:[%s23499_s12 + $0x300] ss:$48 sps:$4 sm:$0xff]  }
 0x9f0   :  { %11262 = vmatprep.subr.bf16.mxu1 %v18993_v37  ;;  %v19069_v37 = vld [vmem:[%s23499_s12 + $0x308] ss:$48 sps:$4 sm:$0xff]  }
 0x9f2   :  { %11222 = vmatpush1.bf16.msra.mxu0 %v18988_v33  ;;  %v19071_v33 = vld [vmem:[%s23499_s12 + $0x30c] ss:$48 sps:$4 sm:$0xff]  }
 0x9f3   :  { %11263 = vmatpush1.bf16.msra.mxu1 %v18991_v38  ;;  %11223 = vmatprep.subr.bf16.mxu0 %v18996_v29  ;;  %v19074_v38 = vld [vmem:[%s23499_s12 + $0x364] ss:$48 sps:$4 sm:$0xff]   ;;  %v19077_v29 = vld [vmem:[%s23499_s12 + $0x36c] ss:$48 sps:$4 sm:$0xff]  }
 0x9f4   :  { %11264 = vmatprep.subr.bf16.mxu1 %v18999_v39  ;;  %v19072_v39 = vld [vmem:[%s23499_s12 + $0x360] ss:$48 sps:$4 sm:$0xff]  }
 0x9f6   :  { %11224 = vmatpush1.bf16.msra.mxu0 %v18994_v42  ;;  %v19075_v42 = vld [vmem:[%s23499_s12 + $0x368] ss:$48 sps:$4 sm:$0xff]  }
 0x9f7   :  { %11265 = vmatpush1.bf16.msra.mxu1 %v18997_v54  ;;  %11225 = vmatprep.subr.bf16.mxu0 %v19002_v18  ;;  %v19080_v54 = vld [vmem:[%s23499_s12 + $0x3c4] ss:$48 sps:$4 sm:$0xff]   ;;  %v19083_v18 = vld [vmem:[%s23499_s12 + $0x3cc] ss:$48 sps:$4 sm:$0xff]  }
 0x9f8   :  { %11266 = vmatprep.subr.bf16.mxu1 %v19005_v60  ;;  %v19078_v60 = vld [vmem:[%s23499_s12 + $0x3c0] ss:$48 sps:$4 sm:$0xff]  }
 0x9fa   :  { %11226 = vmatpush1.bf16.msra.mxu0 %v19000_v40  ;;  %v19081_v40 = vld [vmem:[%s23499_s12 + $0x3c8] ss:$48 sps:$4 sm:$0xff]  }
 0x9fb   :  { %11267 = vmatpush1.bf16.msra.mxu1 %v19003_v27  ;;  %11227 = vmatprep.subr.bf16.mxu0 %v19008_v44  ;;  %v19086_v27 = vld [vmem:[%s23499_s12 + $0x424] ss:$48 sps:$4 sm:$0xff]   ;;  %v19089_v44 = vld [vmem:[%s23499_s12 + $0x42c] ss:$48 sps:$4 sm:$0xff]  }
 0x9fc   :  { %11268 = vmatprep.subr.bf16.mxu1 %v19011_v43  ;;  %v19084_v43 = vld [vmem:[%s23499_s12 + $0x420] ss:$48 sps:$4 sm:$0xff]  }
 0x9fe   :  { %11228 = vmatpush1.bf16.msra.mxu0 %v19006_v47  ;;  %v19087_v47 = vld [vmem:[%s23499_s12 + $0x428] ss:$48 sps:$4 sm:$0xff]  }
 0x9ff   :  { %11269 = vmatpush1.bf16.msra.mxu1 %v19009_v51  ;;  %11229 = vmatprep.subr.bf16.mxu0 %v19014_v11  ;;  %v19092_v51 = vld [vmem:[%s23499_s12 + $0x484] ss:$48 sps:$4 sm:$0xff]   ;;  %v19095_v11 = vld [vmem:[%s23499_s12 + $0x48c] ss:$48 sps:$4 sm:$0xff]  }
 0xa00   :  { %11270 = vmatprep.subr.bf16.mxu1 %v19017_v59  ;;  %v19090_v59 = vld [vmem:[%s23499_s12 + $0x480] ss:$48 sps:$4 sm:$0xff]  }
 0xa02   :  { %11230 = vmatpush1.bf16.msra.mxu0 %v19012_v62  ;;  %v19093_v62 = vld [vmem:[%s23499_s12 + $0x488] ss:$48 sps:$4 sm:$0xff]  }
 0xa03   :  { %11271 = vmatpush1.bf16.msra.mxu1 %v19015_v52  ;;  %13737 = vmatprep.subr.bf16.mxu0 %v19020_v61  ;;  %v19098_v52 = vld [vmem:[%s23499_s12 + $0x4e4] ss:$48 sps:$4 sm:$0xff]   ;;  %v19096_v61 = vld [vmem:[%s23499_s12 + $0x4e0] ss:$48 sps:$4 sm:$0xff]  }
 0xa04   :  { %13819 = vmatprep.subr.bf16.mxu1 %v19023_v5  ;;  %v19104_v5 = vld [vmem:[%s23499_s12 + $0x544] ss:$48 sps:$4 sm:$0xff]  }
 0xa05   :  { %11232 = vmatmul.mubr.bf16.vlgmr.msra.gmra.mrb[24].mxu0 %v22058_v50 }
 0xa06   :  { %11273 = vmatmul.mubr.bf16.vlgmr.msra.gmra.mrb[24].mxu1 %v22058_v50  ;;  %v19026_v50 = vld [vmem:[%s23499_s12 + $0x64] ss:$48 sps:$4 sm:$0xff]   ;;  %13738 = vmatpush1.bf16.msra.mxu0 %v19018_v53  ;;  %v19101_v53 = vld [vmem:[%s23499_s12 + $0x4ec] ss:$48 sps:$4 sm:$0xff]  }
 0xa07   :  { %13820 = vmatpush1.bf16.msra.mxu1 %v19021_v0  ;;  %13739 = vmatprep.subr.bf16.mxu0 %v19026_v50  ;;  %v19099_v0 = vld [vmem:[%s23499_s12 + $0x4e8] ss:$48 sps:$4 sm:$0xff]   ;;  %v19107_v50 = vld [vmem:[%s23499_s12 + $0x54c] ss:$48 sps:$4 sm:$0xff]  }
 0xa08   :  { %13821 = vmatprep.subr.bf16.mxu1 %v19029_v55  ;;  %v19102_v55 = vld [vmem:[%s23499_s12 + $0x540] ss:$48 sps:$4 sm:$0xff]  }
 0xa0a   :  { %13740 = vmatpush1.bf16.msra.mxu0 %v19024_v57  ;;  %v19105_v57 = vld [vmem:[%s23499_s12 + $0x548] ss:$48 sps:$4 sm:$0xff]  }
 0xa0b   :  { %13822 = vmatpush1.bf16.msra.mxu1 %v19027_v58  ;;  %13741 = vmatprep.subr.bf16.mxu0 %v19032_v4  ;;  %v10011_v58 = vld [vmem:[%s23498_s11] sm:$0xff]  ;;  %v22264_v4 = vsub.s32 2, %v21833_v32 }
 0xa0c   :  { %13823 = vmatprep.subr.bf16.mxu1 %v19035_v7  ;;  %v19110_v7 = vld [vmem:[%s23499_s12 + $0x5a4] ss:$48 sps:$4 sm:$0xff]  }
 0xa0e   :  { %13742 = vmatpush1.bf16.msra.mxu0 %v19030_v6  ;;  %v19113_v6 = vld [vmem:[%s23499_s12 + $0x5ac] ss:$48 sps:$4 sm:$0xff]  }
 0xa0f   :  { %13824 = vmatpush1.bf16.msra.mxu1 %v19033_v8  ;;  %13743 = vmatprep.subr.bf16.mxu0 %v19038_v9  ;;  %v22273_v8 = vsub.s32 3, %v21833_v32  ;;  %v19108_v9 = vld [vmem:[%s23499_s12 + $0x5a0] ss:$48 sps:$4 sm:$0xff]  }
 0xa10   :  { %13825 = vmatprep.subr.bf16.mxu1 %v19041_v20  ;;  %v19111_v20 = vld [vmem:[%s23499_s12 + $0x5a8] ss:$48 sps:$4 sm:$0xff]  }
 0xa12   :  { %13744 = vmatpush1.bf16.msra.mxu0 %v19036_v56  ;;  %v10018_v56 = vrot.slane %v10011_v58, %v21840_v34 }
 0xa13   :  { %13826 = vmatpush1.bf16.msra.mxu1 %v19039_v10  ;;  %13745 = vmatprep.subr.bf16.mxu0 %v19044_v13  ;;  %v10026_v10 = vrot.slane %v10011_v58, %v22264_v4  ;;  %v10022_v13 = vrot.slane %v10011_v58, %v21846_v2 }
 0xa14   :  { %13827 = vmatprep.subr.bf16.mxu1 %v19047_v14  ;;  %v19116_v14 = vld [vmem:[%s23499_s12 + $0x604] ss:$48 sps:$4 sm:$0xff]  }
 0xa16   :  { %13746 = vmatpush1.bf16.msra.mxu0 %v19042_v16  ;;  %v10030_v16 = vrot.slane %v10011_v58, %v22273_v8 }
 0xa17   :  { %13828 = vmatpush1.bf16.msra.mxu1 %v19045_v15  ;;  %13747 = vmatprep.subr.bf16.mxu0 %v19050_v35  ;;  %v19119_v15 = vld [vmem:[%s23499_s12 + $0x60c] ss:$48 sps:$4 sm:$0xff]  }
 0xa18   :  { %13829 = vmatprep.subr.bf16.mxu1 %v19053_v45 }
 0xa1a   :  { %13748 = vmatpush1.bf16.msra.mxu0 %v19048_v19 }
 0xa1b   :  { %13830 = vmatpush1.bf16.msra.mxu1 %v19051_v23  ;;  %13749 = vmatprep.subr.bf16.mxu0 %v19056_v26 }
 0xa1c   :  { %13831 = vmatprep.subr.bf16.mxu1 %v19059_v24 }
 0xa1e   :  { %13750 = vmatpush1.bf16.msra.mxu0 %v19054_v31 }
 0xa1f   :  { %13832 = vmatpush1.bf16.msra.mxu1 %v19057_v28  ;;  %13751 = vmatprep.subr.bf16.mxu0 %v19062_v25 }
 0xa20   :  { %13833 = vmatprep.subr.bf16.mxu1 %v19065_v46 }
 0xa22   :  { %13752 = vmatpush1.bf16.msra.mxu0 %v19060_v1  ;;  %v10033_v1 = vsub.s32 4, %v21833_v32 }
 0xa23   :  { %13834 = vmatpush1.bf16.msra.mxu1 %v19063_v48  ;;  %13753 = vmatprep.subr.bf16.mxu0 %v19068_v3  ;;  %v10041_v48 = vsub.s32 6, %v21833_v32 }
 0xa24   :  { %13835 = vmatprep.subr.bf16.mxu1 %v19071_v33 }
 0xa25   :  { %v10042_v3 = vrot.slane %v10011_v58, %v10041_v48 }
 0xa26   :  { %13754 = vmatpush1.bf16.msra.mxu0 %v19066_v17 }
 0xa27   :  { %13836 = vmatpush1.bf16.msra.mxu1 %v19069_v37  ;;  %13755 = vmatprep.subr.bf16.mxu0 %v19074_v38 }
 0xa28   :  { %13837 = vmatprep.subr.bf16.mxu1 %v19077_v29 }
 0xa2a   :  { %13756 = vmatpush1.bf16.msra.mxu0 %v19072_v39 }
 0xa2b   :  { %13838 = vmatpush1.bf16.msra.mxu1 %v19075_v42  ;;  %13757 = vmatprep.subr.bf16.mxu0 %v19080_v54 }
 0xa2c   :  { %13839 = vmatprep.subr.bf16.mxu1 %v19083_v18 }
 0xa2e   :  { %13758 = vmatpush1.bf16.msra.mxu0 %v19078_v60 }
 0xa2f   :  { %13840 = vmatpush1.bf16.msra.mxu1 %v19081_v40  ;;  %13759 = vmatprep.subr.bf16.mxu0 %v19086_v27 }
 0xa30   :  { %13841 = vmatprep.subr.bf16.mxu1 %v19089_v44 }
 0xa32   :  { %13760 = vmatpush1.bf16.msra.mxu0 %v19084_v43 }
 0xa33   :  { %13842 = vmatpush1.bf16.msra.mxu1 %v19087_v47  ;;  %13761 = vmatprep.subr.bf16.mxu0 %v19092_v51 }
 0xa34   :  { %13843 = vmatprep.subr.bf16.mxu1 %v19095_v11 }
 0xa36   :  { %13762 = vmatpush1.bf16.msra.mxu0 %v19090_v59 }
 0xa37   :  { %13844 = vmatpush1.bf16.msra.mxu1 %v19093_v62  ;;  %13763 = vmatprep.subr.bf16.mxu0 %v19098_v52 }
 0xa38   :  { %13845 = vmatprep.subr.bf16.mxu1 %v19101_v53 }
 0xa3a   :  { %13764 = vmatpush1.bf16.msra.mxu0 %v19096_v61 }
 0xa3b   :  { %13846 = vmatpush1.bf16.msra.mxu1 %v19099_v0  ;;  %13765 = vmatprep.subr.bf16.mxu0 %v19104_v5 }
 0xa3c   :  { %13847 = vmatprep.subr.bf16.mxu1 %v19107_v50 }
 0xa3e   :  { %13766 = vmatpush1.bf16.msra.mxu0 %v19102_v55 }
 0xa3f   :  { %13848 = vmatpush1.bf16.msra.mxu1 %v19105_v57  ;;  %13767 = vmatprep.subr.bf16.mxu0 %v19110_v7 }
 0xa40   :  { %13849 = vmatprep.subr.bf16.mxu1 %v19113_v6  ;;  %v10012_v6 = vld [vmem:[%s23498_s11 + $0x8] sm:$0xf] }
 0xa42   :  { %13768 = vmatpush1.bf16.msra.mxu0 %v19108_v9  ;;  %v10050_v9 = vrot.slane %v10012_v6, %v21840_v34 }
 0xa43   :  { %13850 = vmatpush1.bf16.msra.mxu1 %v19111_v20  ;;  %13778 = vmatprep.subr.bf16.mxu0 %v19116_v14  ;;  %v10058_v20 = vrot.slane %v10012_v6, %v22264_v4 }
 0xa44   :  { %13860 = vmatprep.subr.bf16.mxu1 %v19119_v15 }
 0xa58   :  { %v22168_v49 = vpop.f32.mrb[16].mxu0  ;;  %v22170_v30 = vpop.f32.mrb[16].mxu1 }
 0xa59   :  { %v22172_v12 = vpop.f32.mrb[17].mxu0  ;;  %v22174_v21 = vpop.f32.mrb[17].mxu1  ;;  %v11070_v35 = vadd.f32 %v22168_v49, %v10018_v56  ;;  %v11111_v45 = vadd.f32 %v22170_v30, %v10026_v10  ;;  %v10037_v30 = vsub.s32 5, %v21833_v32  ;;  %v10054_v56 = vrot.slane %v10012_v6, %v21846_v2 }
 0xa5a   :  { %v11073_v41 = vpop.f32.mrb[18].mxu0  ;;  %v11114_v22 = vpop.f32.mrb[18].mxu1  ;;  %v11072_v19 = vadd.f32 %v22172_v12, %v10022_v13  ;;  %v11113_v23 = vadd.f32 %v22174_v21, %v10030_v16  ;;  %v10045_v12 = vsub.s32 7, %v21833_v32  ;;  %v10062_v10 = vrot.slane %v10012_v6, %v22273_v8  ;;  %v19129_v6 = vld [vmem:[%s23499_s12 + $0x6c8] ss:$48 sps:$4 sm:$0xff]   ;;  %v19594_v32 = vld [vmem:[%s23501_s14 + $0x40] sm:$0xff]  }
 0xa5b   :  { %v11074_v63 = vpop.f32.mrb[19].mxu0  ;;  %v11115_v36 = vpop.f32.mrb[19].mxu1  ;;  %v15642_v26 = vmul.f32 -1.442695, %v11070_v35  ;;  %v15644_v24 = vmul.f32 -1.442695, %v11111_v45  ;;  %v10038_v37 = vrot.slane %v10011_v58, %v10037_v30 }
 0xa5c   :  { %v15643_v31 = vmul.f32 -1.442695, %v11072_v19  ;;  %v15645_v28 = vmul.f32 -1.442695, %v11113_v23  ;;  %v10034_v36 = vrot.slane %v10011_v58, %v10033_v1  ;;  %v10046_v33 = vrot.slane %v10011_v58, %v10045_v12 }
 0xa5d   :  { %19626 = vpow2.f32 %v15642_v26 }
 0xa5e   :  { %19628 = vpow2.f32 %v15644_v24 }
 0xa5f   :  { %19630 = vpow2.f32 %v15643_v31 }
 0xa60   :  { %19632 = vpow2.f32 %v15645_v28 }
 0xa67   :  { %v19627_v25 = vpop.eup %19626 }
 0xa68   :  { %v19629_v46 = vpop.eup %19628  ;;  %v11293_v41 = vadd.f32 1.0, %v19627_v25 }
 0xa69   :  { %v19631_v49 = vpop.eup %19630  ;;  %v11295_v22 = vadd.f32 1.0, %v19629_v46 }
 0xa6a   :  { %v19633_v21 = vpop.eup %19632  ;;  %v11294_v63 = vadd.f32 1.0, %v19631_v49  ;;  %19634 = vrcp.f32 %v11293_v41 }
 0xa6b   :  { %v11296_v17 = vadd.f32 1.0, %v19633_v21  ;;  %19636 = vrcp.f32 %v11295_v22 }
 0xa6c   :  { %19638 = vrcp.f32 %v11294_v63 }
 0xa6d   :  { %19640 = vrcp.f32 %v11296_v17 }
 0xa74   :  { %v19635_v51 = vpop.eup %19634 }
 0xa75   :  { %v19637_v11 = vpop.eup %19636 }
 0xa76   :  { %v19639_v59 = vpop.eup %19638 }
 0xa77   :  { %v19641_v62 = vpop.eup %19640 }
 0xa98   :  { %v11151_v38 = vpop.f32.mrb[20].mxu0  ;;  %v11192_v29 = vpop.f32.mrb[20].mxu1 }
 0xa99   :  { %v11152_v39 = vadd.f32 %v11151_v38, %v10034_v36  ;;  %v11193_v42 = vadd.f32 %v11192_v29, %v10042_v3  ;;  %v11153_v54 = vpop.f32.mrb[21].mxu0  ;;  %v11194_v18 = vpop.f32.mrb[21].mxu1 }
 0xa9a   :  { %v11154_v60 = vadd.f32 %v11153_v54, %v10038_v37  ;;  %v11195_v40 = vadd.f32 %v11194_v18, %v10046_v33  ;;  %v11155_v27 = vpop.f32.mrb[22].mxu0  ;;  %v11196_v44 = vpop.f32.mrb[22].mxu1 }
 0xa9b   :  { %19642 = vtanh.f32 %v11152_v39  ;;  %v11156_v43 = vpop.f32.mrb[23].mxu0  ;;  %v11197_v47 = vpop.f32.mrb[23].mxu1 }
 0xa9c   :  { %19644 = vtanh.f32 %v11193_v42 }
 0xa9d   :  { %19646 = vtanh.f32 %v11154_v60 }
 0xa9e   :  { %19648 = vtanh.f32 %v11195_v40 }
 0xaa5   :  { %v19643_v52 = vpop.eup %19642 }
 0xaa6   :  { %v19645_v53 = vpop.eup %19644  ;;  %v11333_v61 = vmul.f32 %v19643_v52, %v19635_v51 }
 0xaa7   :  { %v19647_v0 = vpop.eup %19646  ;;  %v11335_v5 = vmul.f32 %v19645_v53, %v19637_v11 }
 0xaa8   :  { %v19649_v50 = vpop.eup %19648  ;;  %v11334_v55 = vmul.f32 %v19647_v0, %v19639_v59  ;;  %v19114_v59 = vld [vmem:[%s23499_s12 + $0x600] ss:$48 sps:$4 sm:$0xff]   ;;  %v19125_v0 = vld [vmem:[%s23499_s12 + $0x66c] ss:$48 sps:$4 sm:$0xff]  }
 0xaa9   :  { %v11336_v57 = vmul.f32 %v19649_v50, %v19641_v62  ;;  %v19117_v62 = vld [vmem:[%s23499_s12 + $0x608] ss:$48 sps:$4 sm:$0xff]   ;;  %v19120_v50 = vld [vmem:[%s23499_s12 + $0x660] ss:$48 sps:$4 sm:$0xff]  }
 0xaaa   :  { %v11359_v58 = vcombine.low %v11333_v61, %v11334_v55 }
 0xaab   :  { %v11360_v7 = vcombine.low %v11335_v5, %v11336_v57 }
 0xaac   :  { %11363 = vst [vmem:[%s23508_s21] sm:$0x33] %v11359_v58  ;;  %v19131_v58 = vld [vmem:[%s23499_s12 + $0x6cc] ss:$48 sps:$4 sm:$0xff]  }
 0xaad   :  { %11364 = vst [vmem:[%s23508_s21 + $0x8] sm:$0x33] %v11360_v7  ;;  %v19126_v7 = vld [vmem:[%s23499_s12 + $0x6c0] ss:$48 sps:$4 sm:$0xff]  }
 0xad8   :  { %v11233_v13 = vpop.f32.mrb[24].mxu0 }
 0xad9   :  { %v11234_v14 = vadd.f32 %v11233_v13, %v10050_v9  ;;  %v11274_v16 = vpop.f32.mrb[24].mxu1  ;;  %v11235_v15 = vpop.f32.mrb[25].mxu0  ;;  %v19134_v9 = vld [vmem:[%s23499_s12 + $0x724] ss:$48 sps:$4 sm:$0xff]  }
 0xada   :  { %v11275_v35 = vadd.f32 %v11274_v16, %v10058_v20  ;;  %v11236_v45 = vadd.f32 %v11235_v15, %v10054_v56  ;;  %v11276_v19 = vpop.f32.mrb[25].mxu1  ;;  %v11237_v23 = vpop.f32.mrb[26].mxu0  ;;  %v19137_v20 = vld [vmem:[%s23499_s12 + $0x72c] ss:$48 sps:$4 sm:$0xff]   ;;  %v19132_v56 = vld [vmem:[%s23499_s12 + $0x720] ss:$48 sps:$4 sm:$0xff]  }
 0xadb   :  { %v15646_v26 = vmul.f32 -1.442695, %v11234_v14  ;;  %v11277_v24 = vadd.f32 %v11276_v19, %v10062_v10  ;;  %v11278_v31 = vpop.f32.mrb[26].mxu1  ;;  %v11238_v28 = vpop.f32.mrb[27].mxu0  ;;  %v19135_v10 = vld [vmem:[%s23499_s12 + $0x728] ss:$48 sps:$4 sm:$0xff]  }
 0xadc   :  { %v15648_v25 = vmul.f32 -1.442695, %v11275_v35  ;;  %v15647_v46 = vmul.f32 -1.442695, %v11236_v45  ;;  %v11279_v49 = vpop.f32.mrb[27].mxu1 }
 0xadd   :  { %19650 = vpow2.f32 %v15646_v26  ;;  %v15649_v21 = vmul.f32 -1.442695, %v11277_v24  ;;  %v19140_v13 = vld [vmem:[%s23499_s12 + $0x784] ss:$48 sps:$4 sm:$0xff]   ;;  %v19143_v14 = vld [vmem:[%s23499_s12 + $0x78c] ss:$48 sps:$4 sm:$0xff]  }
 0xade   :  { %19652 = vpow2.f32 %v15648_v25  ;;  %v19138_v16 = vld [vmem:[%s23499_s12 + $0x780] ss:$48 sps:$4 sm:$0xff]   ;;  %v19141_v15 = vld [vmem:[%s23499_s12 + $0x788] ss:$48 sps:$4 sm:$0xff]   ;;  %v19146_v35 = vld [vmem:[%s23499_s12 + $0x7e4] ss:$48 sps:$4 sm:$0xff]  }
 0xadf   :  { %19654 = vpow2.f32 %v15647_v46  ;;  %v19149_v45 = vld [vmem:[%s23499_s12 + $0x7ec] ss:$48 sps:$4 sm:$0xff]   ;;  %v19144_v19 = vld [vmem:[%s23499_s12 + $0x7e0] ss:$48 sps:$4 sm:$0xff]   ;;  %v19147_v23 = vld [vmem:[%s23499_s12 + $0x7e8] ss:$48 sps:$4 sm:$0xff]  }
 0xae0   :  { %19656 = vpow2.f32 %v15649_v21  ;;  %v19152_v26 = vld [vmem:[%s23499_s12 + $0x844] ss:$48 sps:$4 sm:$0xff]   ;;  %v19155_v24 = vld [vmem:[%s23499_s12 + $0x84c] ss:$48 sps:$4 sm:$0xff]   ;;  %v19150_v31 = vld [vmem:[%s23499_s12 + $0x840] ss:$48 sps:$4 sm:$0xff]  }
 0xae1   :  { %19658 = vtanh.f32 %v11333_v61  ;;  %v19122_v61 = vld [vmem:[%s23499_s12 + $0x664] ss:$48 sps:$4 sm:$0xff]   ;;  %v19153_v28 = vld [vmem:[%s23499_s12 + $0x848] ss:$48 sps:$4 sm:$0xff]   ;;  %v19161_v46 = vld [vmem:[%s23499_s12 + $0x8ac] ss:$48 sps:$4 sm:$0xff]  }
 0xae2   :  { %19660 = vtanh.f32 %v11335_v5  ;;  %v19158_v25 = vld [vmem:[%s23499_s12 + $0x8a4] ss:$48 sps:$4 sm:$0xff]   ;;  %v19156_v49 = vld [vmem:[%s23499_s12 + $0x8a0] ss:$48 sps:$4 sm:$0xff]   ;;  %v19159_v21 = vld [vmem:[%s23499_s12 + $0x8a8] ss:$48 sps:$4 sm:$0xff]  }
 0xae3   :  { %19662 = vtanh.f32 %v11334_v55  ;;  %v19123_v55 = vld [vmem:[%s23499_s12 + $0x668] ss:$48 sps:$4 sm:$0xff]  }
 0xae4   :  { %19664 = vtanh.f32 %v11336_v57  ;;  %v19128_v57 = vld [vmem:[%s23499_s12 + $0x6c4] ss:$48 sps:$4 sm:$0xff]  }
 0xae7   :  { %v19651_v41 = vpop.eup %19650 }
 0xae8   :  { %v19653_v22 = vpop.eup %19652  ;;  %v11321_v63 = vadd.f32 1.0, %v19651_v41  ;;  %v19164_v41 = vld [vmem:[%s23499_s12 + $0x904] ss:$48 sps:$4 sm:$0xff]  }
 0xae9   :  { %v19655_v36 = vpop.eup %19654  ;;  %v11323_v3 = vadd.f32 1.0, %v19653_v22  ;;  %v19167_v22 = vld [vmem:[%s23499_s12 + $0x90c] ss:$48 sps:$4 sm:$0xff]  }
 0xaea   :  { %v19657_v17 = vpop.eup %19656  ;;  %19666 = vrcp.f32 %v11321_v63  ;;  %v11322_v37 = vadd.f32 1.0, %v19655_v36  ;;  %v19162_v63 = vld [vmem:[%s23499_s12 + $0x900] ss:$48 sps:$4 sm:$0xff]   ;;  %v19165_v36 = vld [vmem:[%s23499_s12 + $0x908] ss:$48 sps:$4 sm:$0xff]  }
 0xaeb   :  { %19668 = vrcp.f32 %v11323_v3  ;;  %v11324_v33 = vadd.f32 1.0, %v19657_v17  ;;  %v19659_v38 = vpop.eup %19658  ;;  %v19170_v3 = vld [vmem:[%s23499_s12 + $0x964] ss:$48 sps:$4 sm:$0xff]   ;;  %v19173_v17 = vld [vmem:[%s23499_s12 + $0x96c] ss:$48 sps:$4 sm:$0xff]  }
 0xaec   :  { %19670 = vrcp.f32 %v11322_v37  ;;  %v19661_v29 = vpop.eup %19660  ;;  %v19168_v37 = vld [vmem:[%s23499_s12 + $0x960] ss:$48 sps:$4 sm:$0xff]  }
 0xaed   :  { %19672 = vrcp.f32 %v11324_v33  ;;  %v19663_v39 = vpop.eup %19662  ;;  %v19171_v33 = vld [vmem:[%s23499_s12 + $0x968] ss:$48 sps:$4 sm:$0xff]  }
 0xaee   :  { %v19665_v42 = vpop.eup %19664 }
 0xaf4   :  { %v19667_v54 = vpop.eup %19666 }
 0xaf5   :  { %v19669_v18 = vpop.eup %19668  ;;  %v11341_v60 = vmul.f32 %v19667_v54, %v19659_v38  ;;  %v19176_v38 = vld [vmem:[%s23499_s12 + $0x9c4] ss:$48 sps:$4 sm:$0xff]  }
 0xaf6   :  { %v19671_v40 = vpop.eup %19670  ;;  %v22320_v27 = vmul.f32 %v19669_v18, %v19661_v29  ;;  %v19179_v29 = vld [vmem:[%s23499_s12 + $0x9cc] ss:$48 sps:$4 sm:$0xff]   ;;  %v19182_v54 = vld [vmem:[%s23499_s12 + $0xa24] ss:$48 sps:$4 sm:$0xff]  }
 0xaf7   :  { %v19673_v44 = vpop.eup %19672  ;;  %v11342_v43 = vmul.f32 %v19671_v40, %v19663_v39  ;;  %v22331_v53 = vpack.c.bf16 %v11341_v60, %v11341_v60  ;;  %v19174_v39 = vld [vmem:[%s23499_s12 + $0x9c0] ss:$48 sps:$4 sm:$0xff]   ;;  %v19185_v18 = vld [vmem:[%s23499_s12 + $0xa2c] ss:$48 sps:$4 sm:$0xff]   ;;  %v19183_v40 = vld [vmem:[%s23499_s12 + $0xa28] ss:$48 sps:$4 sm:$0xff]  }
 0xaf8   :  { %v11344_v47 = vmul.f32 %v19673_v44, %v19665_v42  ;;  %v19177_v42 = vld [vmem:[%s23499_s12 + $0x9c8] ss:$48 sps:$4 sm:$0xff]   ;;  %v19188_v44 = vld [vmem:[%s23499_s12 + $0xa84] ss:$48 sps:$4 sm:$0xff]  }
 0xaf9   :  { %v11349_v51 = vcombine.low %v11341_v60, %v11342_v43  ;;  %v22322_v11 = vpack.c.bf16 %v11342_v43, %v11342_v43  ;;  %v19180_v60 = vld [vmem:[%s23499_s12 + $0xa20] ss:$48 sps:$4 sm:$0xff]   ;;  %v19191_v43 = vld [vmem:[%s23499_s12 + $0xa8c] ss:$48 sps:$4 sm:$0xff]  }
 0xafa   :  { %v11350_v52 = vcombine.low %v22320_v27, %v11344_v47  ;;  %v22349_v5 = vpack.c.bf16 %v11344_v47, %v11344_v47  ;;  %v19186_v47 = vld [vmem:[%s23499_s12 + $0xa80] ss:$48 sps:$4 sm:$0xff]  }
 0xafb   :  { %11353 = vst [vmem:[%s23507_s20] sm:$0x33] %v11349_v51  ;;  %13769 = vmatprep.mubr.bf16.mxu0 %v22322_v11  ;;  %13851 = vmatprep.mubr.bf16.mxu1 %v22322_v11  ;;  %v19189_v51 = vld [vmem:[%s23499_s12 + $0xa88] ss:$48 sps:$4 sm:$0xff]  }
 0xafc   :  { %11354 = vst [vmem:[%s23507_s20 + $0x8] sm:$0x33] %v11350_v52  ;;  %13770 = vmatmul.mubr.bf16.vlgmr.msra.gmra.mrb[28].mxu0 %v22331_v53  ;;  %13852 = vmatmul.mubr.bf16.vlgmr.msra.gmra.mrb[28].mxu1 %v22331_v53  ;;  %v19192_v52 = vld [vmem:[%s23499_s12 + $0xae0] ss:$48 sps:$4 sm:$0xff]  }
 0xafd   :  { %13779 = vmatpush1.bf16.msra.mxu0 %v19114_v59  ;;  %13861 = vmatpush1.bf16.msra.mxu1 %v19117_v62  ;;  %v19194_v59 = vld [vmem:[%s23499_s12 + $0xae4] ss:$48 sps:$4 sm:$0xff]   ;;  %v19197_v62 = vld [vmem:[%s23499_s12 + $0xaec] ss:$48 sps:$4 sm:$0xff]  }
 0xafe   :  { %13810 = vmatprep.mubr.bf16.mxu0 %v22349_v5  ;;  %13892 = vmatprep.mubr.bf16.mxu1 %v22349_v5 }
 0xaff   :  { %13780 = vmatprep.subr.bf16.mxu0 %v19122_v61  ;;  %13862 = vmatprep.subr.bf16.mxu1 %v19125_v0  ;;  %v19195_v61 = vld [vmem:[%s23499_s12 + $0xae8] ss:$48 sps:$4 sm:$0xff]   ;;  %v19200_v0 = vld [vmem:[%s23499_s12 + $0xb44] ss:$48 sps:$4 sm:$0xff]  }
 0xb01   :  { %13781 = vmatpush1.bf16.msra.mxu0 %v19120_v50  ;;  %13863 = vmatpush1.bf16.msra.mxu1 %v19123_v55  ;;  %v19203_v50 = vld [vmem:[%s23499_s12 + $0xb4c] ss:$48 sps:$4 sm:$0xff]   ;;  %v19198_v55 = vld [vmem:[%s23499_s12 + $0xb40] ss:$48 sps:$4 sm:$0xff]  }
 0xb02   :  { %13782 = vmatprep.subr.bf16.mxu0 %v19128_v57  ;;  %13864 = vmatprep.subr.bf16.mxu1 %v19131_v58  ;;  %v19201_v57 = vld [vmem:[%s23499_s12 + $0xb48] ss:$48 sps:$4 sm:$0xff]   ;;  %v19206_v58 = vld [vmem:[%s23499_s12 + $0xba4] ss:$48 sps:$4 sm:$0xff]  }
 0xb05   :  { %13783 = vmatpush1.bf16.msra.mxu0 %v19126_v7  ;;  %13865 = vmatpush1.bf16.msra.mxu1 %v19129_v6  ;;  %v19209_v7 = vld [vmem:[%s23499_s12 + $0xbac] ss:$48 sps:$4 sm:$0xff]   ;;  %v19204_v6 = vld [vmem:[%s23499_s12 + $0xba0] ss:$48 sps:$4 sm:$0xff]  }
 0xb06   :  { %13784 = vmatprep.subr.bf16.mxu0 %v19134_v9  ;;  %13866 = vmatprep.subr.bf16.mxu1 %v19137_v20  ;;  %v19207_v9 = vld [vmem:[%s23499_s12 + $0xba8] ss:$48 sps:$4 sm:$0xff]   ;;  %v19212_v20 = vld [vmem:[%s23499_s12 + $0x14] ss:$48 sps:$4 sm:$0xff]  }
 0xb09   :  { %13785 = vmatpush1.bf16.msra.mxu0 %v19132_v56  ;;  %13867 = vmatpush1.bf16.msra.mxu1 %v19135_v10  ;;  %v19215_v56 = vld [vmem:[%s23499_s12 + $0x1c] ss:$48 sps:$4 sm:$0xff]   ;;  %v19210_v10 = vld [vmem:[%s23499_s12 + $0x10] ss:$48 sps:$4 sm:$0xff]  }
 0xb0a   :  { %13786 = vmatprep.subr.bf16.mxu0 %v19140_v13  ;;  %13868 = vmatprep.subr.bf16.mxu1 %v19143_v14  ;;  %v22538_v13 = vpack.c.bf16 %v22320_v27, %v22320_v27  ;;  %v19213_v14 = vld [vmem:[%s23499_s12 + $0x18] ss:$48 sps:$4 sm:$0xff]   ;;  %v19216_v27 = vld [vmem:[%s23499_s12 + $0x70] ss:$48 sps:$4 sm:$0xff]  }
 0xb0d   :  { %13787 = vmatpush1.bf16.msra.mxu0 %v19138_v16  ;;  %13869 = vmatpush1.bf16.msra.mxu1 %v19141_v15  ;;  %v19218_v16 = vld [vmem:[%s23499_s12 + $0x74] ss:$48 sps:$4 sm:$0xff]   ;;  %v19221_v15 = vld [vmem:[%s23499_s12 + $0x7c] ss:$48 sps:$4 sm:$0xff]  }
 0xb0e   :  { %13788 = vmatprep.subr.bf16.mxu0 %v19146_v35  ;;  %13870 = vmatprep.subr.bf16.mxu1 %v19149_v45  ;;  %v19219_v35 = vld [vmem:[%s23499_s12 + $0x78] ss:$48 sps:$4 sm:$0xff]   ;;  %v19224_v45 = vld [vmem:[%s23499_s12 + $0xd4] ss:$48 sps:$4 sm:$0xff]  }
 0xb11   :  { %13789 = vmatpush1.bf16.msra.mxu0 %v19144_v19  ;;  %13871 = vmatpush1.bf16.msra.mxu1 %v19147_v23  ;;  %v19227_v19 = vld [vmem:[%s23499_s12 + $0xdc] ss:$48 sps:$4 sm:$0xff]   ;;  %v19222_v23 = vld [vmem:[%s23499_s12 + $0xd0] ss:$48 sps:$4 sm:$0xff]  }
 0xb12   :  { %13790 = vmatprep.subr.bf16.mxu0 %v19152_v26  ;;  %13872 = vmatprep.subr.bf16.mxu1 %v19155_v24  ;;  %v19225_v26 = vld [vmem:[%s23499_s12 + $0xd8] ss:$48 sps:$4 sm:$0xff]   ;;  %v19230_v24 = vld [vmem:[%s23499_s12 + $0x134] ss:$48 sps:$4 sm:$0xff]  }
 0xb15   :  { %13791 = vmatpush1.bf16.msra.mxu0 %v19150_v31  ;;  %13873 = vmatpush1.bf16.msra.mxu1 %v19153_v28  ;;  %v19233_v31 = vld [vmem:[%s23499_s12 + $0x13c] ss:$48 sps:$4 sm:$0xff]   ;;  %v19228_v28 = vld [vmem:[%s23499_s12 + $0x130] ss:$48 sps:$4 sm:$0xff]  }
 0xb16   :  { %13792 = vmatprep.subr.bf16.mxu0 %v19158_v25  ;;  %13874 = vmatprep.subr.bf16.mxu1 %v19161_v46  ;;  %v19231_v25 = vld [vmem:[%s23499_s12 + $0x138] ss:$48 sps:$4 sm:$0xff]   ;;  %v19236_v46 = vld [vmem:[%s23499_s12 + $0x194] ss:$48 sps:$4 sm:$0xff]  }
 0xb19   :  { %13793 = vmatpush1.bf16.msra.mxu0 %v19156_v49  ;;  %13875 = vmatpush1.bf16.msra.mxu1 %v19159_v21  ;;  %v19239_v49 = vld [vmem:[%s23499_s12 + $0x19c] ss:$48 sps:$4 sm:$0xff]   ;;  %v19234_v21 = vld [vmem:[%s23499_s12 + $0x190] ss:$48 sps:$4 sm:$0xff]  }
 0xb1a   :  { %13794 = vmatprep.subr.bf16.mxu0 %v19164_v41  ;;  %13876 = vmatprep.subr.bf16.mxu1 %v19167_v22  ;;  %v19237_v41 = vld [vmem:[%s23499_s12 + $0x198] ss:$48 sps:$4 sm:$0xff]   ;;  %v19242_v22 = vld [vmem:[%s23499_s12 + $0x1f4] ss:$48 sps:$4 sm:$0xff]  }
 0xb1d   :  { %13795 = vmatpush1.bf16.msra.mxu0 %v19162_v63  ;;  %13877 = vmatpush1.bf16.msra.mxu1 %v19165_v36  ;;  %v19245_v63 = vld [vmem:[%s23499_s12 + $0x1fc] ss:$48 sps:$4 sm:$0xff]   ;;  %v19240_v36 = vld [vmem:[%s23499_s12 + $0x1f0] ss:$48 sps:$4 sm:$0xff]  }
 0xb1e   :  { %13796 = vmatprep.subr.bf16.mxu0 %v19170_v3  ;;  %13878 = vmatprep.subr.bf16.mxu1 %v19173_v17  ;;  %v19243_v3 = vld [vmem:[%s23499_s12 + $0x1f8] ss:$48 sps:$4 sm:$0xff]   ;;  %v19248_v17 = vld [vmem:[%s23499_s12 + $0x254] ss:$48 sps:$4 sm:$0xff]  }
 0xb21   :  { %13797 = vmatpush1.bf16.msra.mxu0 %v19168_v37  ;;  %13879 = vmatpush1.bf16.msra.mxu1 %v19171_v33  ;;  %v19251_v37 = vld [vmem:[%s23499_s12 + $0x25c] ss:$48 sps:$4 sm:$0xff]   ;;  %v19246_v33 = vld [vmem:[%s23499_s12 + $0x250] ss:$48 sps:$4 sm:$0xff]  }
 0xb22   :  { %13798 = vmatprep.subr.bf16.mxu0 %v19176_v38  ;;  %13880 = vmatprep.subr.bf16.mxu1 %v19179_v29  ;;  %v19249_v38 = vld [vmem:[%s23499_s12 + $0x258] ss:$48 sps:$4 sm:$0xff]   ;;  %v19254_v29 = vld [vmem:[%s23499_s12 + $0x2b4] ss:$48 sps:$4 sm:$0xff]  }
 0xb25   :  { %13799 = vmatpush1.bf16.msra.mxu0 %v19174_v39  ;;  %13881 = vmatpush1.bf16.msra.mxu1 %v19177_v42  ;;  %v19257_v39 = vld [vmem:[%s23499_s12 + $0x2bc] ss:$48 sps:$4 sm:$0xff]   ;;  %v19252_v42 = vld [vmem:[%s23499_s12 + $0x2b0] ss:$48 sps:$4 sm:$0xff]  }
 0xb26   :  { %13800 = vmatprep.subr.bf16.mxu0 %v19182_v54  ;;  %13882 = vmatprep.subr.bf16.mxu1 %v19185_v18  ;;  %v19255_v54 = vld [vmem:[%s23499_s12 + $0x2b8] ss:$48 sps:$4 sm:$0xff]   ;;  %v19260_v18 = vld [vmem:[%s23499_s12 + $0x314] ss:$48 sps:$4 sm:$0xff]  }
 0xb29   :  { %13801 = vmatpush1.bf16.msra.mxu0 %v19180_v60  ;;  %13883 = vmatpush1.bf16.msra.mxu1 %v19183_v40  ;;  %v19263_v60 = vld [vmem:[%s23499_s12 + $0x31c] ss:$48 sps:$4 sm:$0xff]   ;;  %v19258_v40 = vld [vmem:[%s23499_s12 + $0x310] ss:$48 sps:$4 sm:$0xff]  }
 0xb2a   :  { %13802 = vmatprep.subr.bf16.mxu0 %v19188_v44  ;;  %13884 = vmatprep.subr.bf16.mxu1 %v19191_v43  ;;  %v19261_v44 = vld [vmem:[%s23499_s12 + $0x318] ss:$48 sps:$4 sm:$0xff]   ;;  %v19266_v43 = vld [vmem:[%s23499_s12 + $0x374] ss:$48 sps:$4 sm:$0xff]  }
 0xb2d   :  { %13803 = vmatpush1.bf16.msra.mxu0 %v19186_v47  ;;  %13885 = vmatpush1.bf16.msra.mxu1 %v19189_v51  ;;  %v19269_v47 = vld [vmem:[%s23499_s12 + $0x37c] ss:$48 sps:$4 sm:$0xff]   ;;  %v19264_v51 = vld [vmem:[%s23499_s12 + $0x370] ss:$48 sps:$4 sm:$0xff]  }
 0xb2e   :  { %13804 = vmatprep.subr.bf16.mxu0 %v19194_v59  ;;  %13886 = vmatprep.subr.bf16.mxu1 %v19197_v62  ;;  %v19267_v59 = vld [vmem:[%s23499_s12 + $0x378] ss:$48 sps:$4 sm:$0xff]   ;;  %v19272_v62 = vld [vmem:[%s23499_s12 + $0x3d4] ss:$48 sps:$4 sm:$0xff]  }
 0xb31   :  { %13805 = vmatpush1.bf16.msra.mxu0 %v19192_v52  ;;  %13887 = vmatpush1.bf16.msra.mxu1 %v19195_v61  ;;  %v19275_v52 = vld [vmem:[%s23499_s12 + $0x3dc] ss:$48 sps:$4 sm:$0xff]   ;;  %v19270_v61 = vld [vmem:[%s23499_s12 + $0x3d0] ss:$48 sps:$4 sm:$0xff]  }
 0xb32   :  { %13806 = vmatprep.subr.bf16.mxu0 %v19200_v0  ;;  %13888 = vmatprep.subr.bf16.mxu1 %v19203_v50  ;;  %v19273_v0 = vld [vmem:[%s23499_s12 + $0x3d8] ss:$48 sps:$4 sm:$0xff]   ;;  %v19278_v50 = vld [vmem:[%s23499_s12 + $0x434] ss:$48 sps:$4 sm:$0xff]  }
 0xb35   :  { %13807 = vmatpush1.bf16.msra.mxu0 %v19198_v55  ;;  %13889 = vmatpush1.bf16.msra.mxu1 %v19201_v57  ;;  %v19281_v55 = vld [vmem:[%s23499_s12 + $0x43c] ss:$48 sps:$4 sm:$0xff]   ;;  %v19276_v57 = vld [vmem:[%s23499_s12 + $0x430] ss:$48 sps:$4 sm:$0xff]  }
 0xb36   :  { %13808 = vmatprep.subr.bf16.mxu0 %v19206_v58  ;;  %13890 = vmatprep.subr.bf16.mxu1 %v19209_v7  ;;  %v19279_v58 = vld [vmem:[%s23499_s12 + $0x438] ss:$48 sps:$4 sm:$0xff]   ;;  %v19284_v7 = vld [vmem:[%s23499_s12 + $0x494] ss:$48 sps:$4 sm:$0xff]  }
 0xb39   :  { %13809 = vmatpush1.bf16.msra.mxu0 %v19204_v6  ;;  %13891 = vmatpush1.bf16.msra.mxu1 %v19207_v9  ;;  %v19287_v6 = vld [vmem:[%s23499_s12 + $0x49c] ss:$48 sps:$4 sm:$0xff]   ;;  %v19282_v9 = vld [vmem:[%s23499_s12 + $0x490] ss:$48 sps:$4 sm:$0xff]  }
 0xb3a   :  { %13901 = vmatprep.subr.bf16.mxu0 %v19212_v20  ;;  %13983 = vmatprep.subr.bf16.mxu1 %v19215_v56  ;;  %v19285_v20 = vld [vmem:[%s23499_s12 + $0x498] ss:$48 sps:$4 sm:$0xff]   ;;  %v19290_v56 = vld [vmem:[%s23499_s12 + $0x4f4] ss:$48 sps:$4 sm:$0xff]  }
 0xb3c   :  { %13811 = vmatmul.mubr.bf16.vlgmr.msra.gmra.mrb[28].mxu0 %v22538_v13  ;;  %13893 = vmatmul.mubr.bf16.vlgmr.msra.gmra.mrb[28].mxu1 %v22538_v13 }
 0xb3d   :  { %13902 = vmatpush1.bf16.msra.mxu0 %v19210_v10  ;;  %13933 = vmatprep.mubr.bf16.mxu0 %v22322_v11  ;;  %v19293_v10 = vld [vmem:[%s23499_s12 + $0x4fc] ss:$48 sps:$4 sm:$0xff]  }
 0xb3e   :  { %13984 = vmatpush1.bf16.msra.mxu1 %v19213_v14  ;;  %14015 = vmatprep.mubr.bf16.mxu1 %v22322_v11  ;;  %v19288_v14 = vld [vmem:[%s23499_s12 + $0x4f0] ss:$48 sps:$4 sm:$0xff]  }
 0xb3f   :  { %13903 = vmatprep.subr.bf16.mxu0 %v19218_v16  ;;  %13985 = vmatprep.subr.bf16.mxu1 %v19221_v15  ;;  %v19291_v16 = vld [vmem:[%s23499_s12 + $0x4f8] ss:$48 sps:$4 sm:$0xff]   ;;  %v19296_v15 = vld [vmem:[%s23499_s12 + $0x554] ss:$48 sps:$4 sm:$0xff]  }
 0xb41   :  { %13904 = vmatpush1.bf16.msra.mxu0 %v19216_v27  ;;  %v19299_v27 = vld [vmem:[%s23499_s12 + $0x55c] ss:$48 sps:$4 sm:$0xff]  }
 0xb42   :  { %13986 = vmatpush1.bf16.msra.mxu1 %v19219_v35  ;;  %13905 = vmatprep.subr.bf16.mxu0 %v19224_v45  ;;  %v19294_v35 = vld [vmem:[%s23499_s12 + $0x550] ss:$48 sps:$4 sm:$0xff]   ;;  %v19297_v45 = vld [vmem:[%s23499_s12 + $0x558] ss:$48 sps:$4 sm:$0xff]  }
 0xb43   :  { %13987 = vmatprep.subr.bf16.mxu1 %v19227_v19  ;;  %v19302_v19 = vld [vmem:[%s23499_s12 + $0x5b4] ss:$48 sps:$4 sm:$0xff]  }
 0xb45   :  { %13906 = vmatpush1.bf16.msra.mxu0 %v19222_v23  ;;  %v19305_v23 = vld [vmem:[%s23499_s12 + $0x5bc] ss:$48 sps:$4 sm:$0xff]  }
 0xb46   :  { %13988 = vmatpush1.bf16.msra.mxu1 %v19225_v26  ;;  %13907 = vmatprep.subr.bf16.mxu0 %v19230_v24  ;;  %v19300_v26 = vld [vmem:[%s23499_s12 + $0x5b0] ss:$48 sps:$4 sm:$0xff]   ;;  %v19303_v24 = vld [vmem:[%s23499_s12 + $0x5b8] ss:$48 sps:$4 sm:$0xff]  }
 0xb47   :  { %13989 = vmatprep.subr.bf16.mxu1 %v19233_v31  ;;  %v19308_v31 = vld [vmem:[%s23499_s12 + $0x614] ss:$48 sps:$4 sm:$0xff]  }
 0xb49   :  { %13908 = vmatpush1.bf16.msra.mxu0 %v19228_v28  ;;  %v19311_v28 = vld [vmem:[%s23499_s12 + $0x61c] ss:$48 sps:$4 sm:$0xff]  }
 0xb4a   :  { %13990 = vmatpush1.bf16.msra.mxu1 %v19231_v25  ;;  %13909 = vmatprep.subr.bf16.mxu0 %v19236_v46  ;;  %v19306_v25 = vld [vmem:[%s23499_s12 + $0x610] ss:$48 sps:$4 sm:$0xff]   ;;  %v19309_v46 = vld [vmem:[%s23499_s12 + $0x618] ss:$48 sps:$4 sm:$0xff]  }
 0xb4b   :  { %13991 = vmatprep.subr.bf16.mxu1 %v19239_v49  ;;  %v19314_v49 = vld [vmem:[%s23499_s12 + $0x674] ss:$48 sps:$4 sm:$0xff]  }
 0xb4d   :  { %13910 = vmatpush1.bf16.msra.mxu0 %v19234_v21  ;;  %v19317_v21 = vld [vmem:[%s23499_s12 + $0x67c] ss:$48 sps:$4 sm:$0xff]  }
 0xb4e   :  { %13992 = vmatpush1.bf16.msra.mxu1 %v19237_v41  ;;  %13911 = vmatprep.subr.bf16.mxu0 %v19242_v22  ;;  %v19312_v41 = vld [vmem:[%s23499_s12 + $0x670] ss:$48 sps:$4 sm:$0xff]   ;;  %v19315_v22 = vld [vmem:[%s23499_s12 + $0x678] ss:$48 sps:$4 sm:$0xff]  }
 0xb4f   :  { %13993 = vmatprep.subr.bf16.mxu1 %v19245_v63  ;;  %v19320_v63 = vld [vmem:[%s23499_s12 + $0x6d4] ss:$48 sps:$4 sm:$0xff]  }
 0xb51   :  { %13912 = vmatpush1.bf16.msra.mxu0 %v19240_v36  ;;  %v19323_v36 = vld [vmem:[%s23499_s12 + $0x6dc] ss:$48 sps:$4 sm:$0xff]  }
 0xb52   :  { %13994 = vmatpush1.bf16.msra.mxu1 %v19243_v3  ;;  %13913 = vmatprep.subr.bf16.mxu0 %v19248_v17  ;;  %v19318_v3 = vld [vmem:[%s23499_s12 + $0x6d0] ss:$48 sps:$4 sm:$0xff]   ;;  %v19321_v17 = vld [vmem:[%s23499_s12 + $0x6d8] ss:$48 sps:$4 sm:$0xff]  }
 0xb53   :  { %13995 = vmatprep.subr.bf16.mxu1 %v19251_v37  ;;  %v19326_v37 = vld [vmem:[%s23499_s12 + $0x734] ss:$48 sps:$4 sm:$0xff]  }
 0xb55   :  { %13914 = vmatpush1.bf16.msra.mxu0 %v19246_v33  ;;  %v19329_v33 = vld [vmem:[%s23499_s12 + $0x73c] ss:$48 sps:$4 sm:$0xff]  }
 0xb56   :  { %13996 = vmatpush1.bf16.msra.mxu1 %v19249_v38  ;;  %13915 = vmatprep.subr.bf16.mxu0 %v19254_v29  ;;  %v19324_v38 = vld [vmem:[%s23499_s12 + $0x730] ss:$48 sps:$4 sm:$0xff]   ;;  %v19327_v29 = vld [vmem:[%s23499_s12 + $0x738] ss:$48 sps:$4 sm:$0xff]  }
 0xb57   :  { %13997 = vmatprep.subr.bf16.mxu1 %v19257_v39  ;;  %v19332_v39 = vld [vmem:[%s23499_s12 + $0x794] ss:$48 sps:$4 sm:$0xff]  }
 0xb59   :  { %13916 = vmatpush1.bf16.msra.mxu0 %v19252_v42  ;;  %v19335_v42 = vld [vmem:[%s23499_s12 + $0x79c] ss:$48 sps:$4 sm:$0xff]  }
 0xb5a   :  { %13998 = vmatpush1.bf16.msra.mxu1 %v19255_v54  ;;  %13917 = vmatprep.subr.bf16.mxu0 %v19260_v18  ;;  %v19330_v54 = vld [vmem:[%s23499_s12 + $0x790] ss:$48 sps:$4 sm:$0xff]   ;;  %v19333_v18 = vld [vmem:[%s23499_s12 + $0x798] ss:$48 sps:$4 sm:$0xff]  }
 0xb5b   :  { %13999 = vmatprep.subr.bf16.mxu1 %v19263_v60  ;;  %v19338_v60 = vld [vmem:[%s23499_s12 + $0x7f4] ss:$48 sps:$4 sm:$0xff]  }
 0xb5d   :  { %13918 = vmatpush1.bf16.msra.mxu0 %v19258_v40  ;;  %v19341_v40 = vld [vmem:[%s23499_s12 + $0x7fc] ss:$48 sps:$4 sm:$0xff]  }
 0xb5e   :  { %14000 = vmatpush1.bf16.msra.mxu1 %v19261_v44  ;;  %13919 = vmatprep.subr.bf16.mxu0 %v19266_v43  ;;  %v19336_v44 = vld [vmem:[%s23499_s12 + $0x7f0] ss:$48 sps:$4 sm:$0xff]   ;;  %v19339_v43 = vld [vmem:[%s23499_s12 + $0x7f8] ss:$48 sps:$4 sm:$0xff]  }
 0xb5f   :  { %14001 = vmatprep.subr.bf16.mxu1 %v19269_v47  ;;  %v19344_v47 = vld [vmem:[%s23499_s12 + $0x854] ss:$48 sps:$4 sm:$0xff]  }
 0xb61   :  { %13920 = vmatpush1.bf16.msra.mxu0 %v19264_v51  ;;  %v19347_v51 = vld [vmem:[%s23499_s12 + $0x85c] ss:$48 sps:$4 sm:$0xff]  }
 0xb62   :  { %14002 = vmatpush1.bf16.msra.mxu1 %v19267_v59  ;;  %13921 = vmatprep.subr.bf16.mxu0 %v19272_v62  ;;  %v19342_v59 = vld [vmem:[%s23499_s12 + $0x850] ss:$48 sps:$4 sm:$0xff]   ;;  %v19345_v62 = vld [vmem:[%s23499_s12 + $0x858] ss:$48 sps:$4 sm:$0xff]  }
 0xb63   :  { %14003 = vmatprep.subr.bf16.mxu1 %v19275_v52  ;;  %v19350_v52 = vld [vmem:[%s23499_s12 + $0x8b4] ss:$48 sps:$4 sm:$0xff]  }
 0xb65   :  { %13922 = vmatpush1.bf16.msra.mxu0 %v19270_v61  ;;  %v19353_v61 = vld [vmem:[%s23499_s12 + $0x8bc] ss:$48 sps:$4 sm:$0xff]  }
 0xb66   :  { %14004 = vmatpush1.bf16.msra.mxu1 %v19273_v0  ;;  %13923 = vmatprep.subr.bf16.mxu0 %v19278_v50  ;;  %v19348_v0 = vld [vmem:[%s23499_s12 + $0x8b0] ss:$48 sps:$4 sm:$0xff]   ;;  %v19351_v50 = vld [vmem:[%s23499_s12 + $0x8b8] ss:$48 sps:$4 sm:$0xff]  }
 0xb67   :  { %14005 = vmatprep.subr.bf16.mxu1 %v19281_v55  ;;  %v19356_v55 = vld [vmem:[%s23499_s12 + $0x914] ss:$48 sps:$4 sm:$0xff]  }
 0xb69   :  { %13924 = vmatpush1.bf16.msra.mxu0 %v19276_v57  ;;  %v19359_v57 = vld [vmem:[%s23499_s12 + $0x91c] ss:$48 sps:$4 sm:$0xff]  }
 0xb6a   :  { %14006 = vmatpush1.bf16.msra.mxu1 %v19279_v58  ;;  %13925 = vmatprep.subr.bf16.mxu0 %v19284_v7  ;;  %v19354_v58 = vld [vmem:[%s23499_s12 + $0x910] ss:$48 sps:$4 sm:$0xff]   ;;  %v19357_v7 = vld [vmem:[%s23499_s12 + $0x918] ss:$48 sps:$4 sm:$0xff]  }
 0xb6b   :  { %14007 = vmatprep.subr.bf16.mxu1 %v19287_v6  ;;  %v19362_v6 = vld [vmem:[%s23499_s12 + $0x974] ss:$48 sps:$4 sm:$0xff]  }
 0xb6d   :  { %13926 = vmatpush1.bf16.msra.mxu0 %v19282_v9  ;;  %v19365_v9 = vld [vmem:[%s23499_s12 + $0x97c] ss:$48 sps:$4 sm:$0xff]  }
 0xb6e   :  { %14008 = vmatpush1.bf16.msra.mxu1 %v19285_v20  ;;  %13927 = vmatprep.subr.bf16.mxu0 %v19290_v56  ;;  %v19360_v20 = vld [vmem:[%s23499_s12 + $0x970] ss:$48 sps:$4 sm:$0xff]   ;;  %v19363_v56 = vld [vmem:[%s23499_s12 + $0x978] ss:$48 sps:$4 sm:$0xff]  }
 0xb6f   :  { %14009 = vmatprep.subr.bf16.mxu1 %v19293_v10  ;;  %v19368_v10 = vld [vmem:[%s23499_s12 + $0x9d4] ss:$48 sps:$4 sm:$0xff]  }
 0xb71   :  { %13928 = vmatpush1.bf16.msra.mxu0 %v19288_v14  ;;  %v19371_v14 = vld [vmem:[%s23499_s12 + $0x9dc] ss:$48 sps:$4 sm:$0xff]  }
 0xb72   :  { %14010 = vmatpush1.bf16.msra.mxu1 %v19291_v16  ;;  %13929 = vmatprep.subr.bf16.mxu0 %v19296_v15  ;;  %v19366_v16 = vld [vmem:[%s23499_s12 + $0x9d0] ss:$48 sps:$4 sm:$0xff]   ;;  %v19369_v15 = vld [vmem:[%s23499_s12 + $0x9d8] ss:$48 sps:$4 sm:$0xff]  }
 0xb73   :  { %14011 = vmatprep.subr.bf16.mxu1 %v19299_v27  ;;  %v19374_v27 = vld [vmem:[%s23499_s12 + $0xa34] ss:$48 sps:$4 sm:$0xff]  }
 0xb75   :  { %13930 = vmatpush1.bf16.msra.mxu0 %v19294_v35  ;;  %v19377_v35 = vld [vmem:[%s23499_s12 + $0xa3c] ss:$48 sps:$4 sm:$0xff]  }
 0xb76   :  { %14012 = vmatpush1.bf16.msra.mxu1 %v19297_v45  ;;  %13931 = vmatprep.subr.bf16.mxu0 %v19302_v19  ;;  %v19372_v45 = vld [vmem:[%s23499_s12 + $0xa30] ss:$48 sps:$4 sm:$0xff]   ;;  %v19375_v19 = vld [vmem:[%s23499_s12 + $0xa38] ss:$48 sps:$4 sm:$0xff]  }
 0xb77   :  { %14013 = vmatprep.subr.bf16.mxu1 %v19305_v23  ;;  %v19380_v23 = vld [vmem:[%s23499_s12 + $0xa94] ss:$48 sps:$4 sm:$0xff]  }
 0xb79   :  { %13932 = vmatpush1.bf16.msra.mxu0 %v19300_v26  ;;  %v19383_v26 = vld [vmem:[%s23499_s12 + $0xa9c] ss:$48 sps:$4 sm:$0xff]  }
 0xb7a   :  { %14014 = vmatpush1.bf16.msra.mxu1 %v19303_v24  ;;  %13942 = vmatprep.subr.bf16.mxu0 %v19308_v31  ;;  %v19378_v24 = vld [vmem:[%s23499_s12 + $0xa90] ss:$48 sps:$4 sm:$0xff]   ;;  %v19381_v31 = vld [vmem:[%s23499_s12 + $0xa98] ss:$48 sps:$4 sm:$0xff]  }
 0xb7b   :  { %14024 = vmatprep.subr.bf16.mxu1 %v19311_v28  ;;  %v19386_v28 = vld [vmem:[%s23499_s12 + $0xaf4] ss:$48 sps:$4 sm:$0xff]  }
 0xb7c   :  { %13934 = vmatmul.mubr.bf16.vlgmr.msra.gmra.mrb[32].mxu0 %v22331_v53 }
 0xb7d   :  { %14016 = vmatmul.mubr.bf16.vlgmr.msra.gmra.mrb[32].mxu1 %v22331_v53  ;;  %13943 = vmatpush1.bf16.msra.mxu0 %v19306_v25  ;;  %v19389_v25 = vld [vmem:[%s23499_s12 + $0xafc] ss:$48 sps:$4 sm:$0xff]  }
 0xb7e   :  { %13974 = vmatprep.mubr.bf16.mxu0 %v22349_v5  ;;  %14025 = vmatpush1.bf16.msra.mxu1 %v19309_v46  ;;  %v19384_v46 = vld [vmem:[%s23499_s12 + $0xaf0] ss:$48 sps:$4 sm:$0xff]  }
 0xb7f   :  { %14056 = vmatprep.mubr.bf16.mxu1 %v22349_v5  ;;  %13944 = vmatprep.subr.bf16.mxu0 %v19314_v49  ;;  %v19387_v49 = vld [vmem:[%s23499_s12 + $0xaf8] ss:$48 sps:$4 sm:$0xff]  }
 0xb80   :  { %14026 = vmatprep.subr.bf16.mxu1 %v19317_v21  ;;  %v19392_v21 = vld [vmem:[%s23499_s12 + $0xb54] ss:$48 sps:$4 sm:$0xff]  }
 0xb81   :  { %13945 = vmatpush1.bf16.msra.mxu0 %v19312_v41  ;;  %v19395_v41 = vld [vmem:[%s23499_s12 + $0xb5c] ss:$48 sps:$4 sm:$0xff]  }
 0xb82   :  { %14027 = vmatpush1.bf16.msra.mxu1 %v19315_v22  ;;  %13946 = vmatprep.subr.bf16.mxu0 %v19320_v63  ;;  %v19390_v22 = vld [vmem:[%s23499_s12 + $0xb50] ss:$48 sps:$4 sm:$0xff]   ;;  %v19393_v63 = vld [vmem:[%s23499_s12 + $0xb58] ss:$48 sps:$4 sm:$0xff]  }
 0xb83   :  { %14028 = vmatprep.subr.bf16.mxu1 %v19323_v36  ;;  %v19398_v36 = vld [vmem:[%s23499_s12 + $0xbb4] ss:$48 sps:$4 sm:$0xff]  }
 0xb85   :  { %13947 = vmatpush1.bf16.msra.mxu0 %v19318_v3  ;;  %v19401_v3 = vld [vmem:[%s23499_s12 + $0xbbc] ss:$48 sps:$4 sm:$0xff]  }
 0xb86   :  { %14029 = vmatpush1.bf16.msra.mxu1 %v19321_v17  ;;  %13948 = vmatprep.subr.bf16.mxu0 %v19326_v37  ;;  %v19396_v17 = vld [vmem:[%s23499_s12 + $0xbb0] ss:$48 sps:$4 sm:$0xff]   ;;  %v19399_v37 = vld [vmem:[%s23499_s12 + $0xbb8] ss:$48 sps:$4 sm:$0xff]  }
 0xb87   :  { %14030 = vmatprep.subr.bf16.mxu1 %v19329_v33  ;;  %v19404_v33 = vld [vmem:[%s23499_s12 + $0x24] ss:$48 sps:$4 sm:$0xff]  }
 0xb89   :  { %13949 = vmatpush1.bf16.msra.mxu0 %v19324_v38  ;;  %v19407_v38 = vld [vmem:[%s23499_s12 + $0x2c] ss:$48 sps:$4 sm:$0xff]  }
 0xb8a   :  { %14031 = vmatpush1.bf16.msra.mxu1 %v19327_v29  ;;  %13950 = vmatprep.subr.bf16.mxu0 %v19332_v39  ;;  %v19402_v29 = vld [vmem:[%s23499_s12 + $0x20] ss:$48 sps:$4 sm:$0xff]   ;;  %v19405_v39 = vld [vmem:[%s23499_s12 + $0x28] ss:$48 sps:$4 sm:$0xff]  }
 0xb8b   :  { %14032 = vmatprep.subr.bf16.mxu1 %v19335_v42  ;;  %v19410_v42 = vld [vmem:[%s23499_s12 + $0x84] ss:$48 sps:$4 sm:$0xff]  }
 0xb8d   :  { %13951 = vmatpush1.bf16.msra.mxu0 %v19330_v54  ;;  %v19413_v54 = vld [vmem:[%s23499_s12 + $0x8c] ss:$48 sps:$4 sm:$0xff]  }
 0xb8e   :  { %14033 = vmatpush1.bf16.msra.mxu1 %v19333_v18  ;;  %13952 = vmatprep.subr.bf16.mxu0 %v19338_v60  ;;  %v19408_v18 = vld [vmem:[%s23499_s12 + $0x80] ss:$48 sps:$4 sm:$0xff]   ;;  %v19411_v60 = vld [vmem:[%s23499_s12 + $0x88] ss:$48 sps:$4 sm:$0xff]  }
 0xb8f   :  { %14034 = vmatprep.subr.bf16.mxu1 %v19341_v40  ;;  %v19416_v40 = vld [vmem:[%s23499_s12 + $0xe4] ss:$48 sps:$4 sm:$0xff]  }
 0xb91   :  { %13953 = vmatpush1.bf16.msra.mxu0 %v19336_v44  ;;  %v19419_v44 = vld [vmem:[%s23499_s12 + $0xec] ss:$48 sps:$4 sm:$0xff]  }
 0xb92   :  { %14035 = vmatpush1.bf16.msra.mxu1 %v19339_v43  ;;  %13954 = vmatprep.subr.bf16.mxu0 %v19344_v47  ;;  %v19414_v43 = vld [vmem:[%s23499_s12 + $0xe0] ss:$48 sps:$4 sm:$0xff]   ;;  %v19417_v47 = vld [vmem:[%s23499_s12 + $0xe8] ss:$48 sps:$4 sm:$0xff]  }
 0xb93   :  { %14036 = vmatprep.subr.bf16.mxu1 %v19347_v51  ;;  %v19425_v51 = vld [vmem:[%s23499_s12 + $0x14c] ss:$48 sps:$4 sm:$0xff]  }
 0xb95   :  { %13955 = vmatpush1.bf16.msra.mxu0 %v19342_v59  ;;  %v19420_v59 = vld [vmem:[%s23499_s12 + $0x140] ss:$48 sps:$4 sm:$0xff]  }
 0xb96   :  { %14037 = vmatpush1.bf16.msra.mxu1 %v19345_v62  ;;  %13956 = vmatprep.subr.bf16.mxu0 %v19350_v52  ;;  %v19423_v62 = vld [vmem:[%s23499_s12 + $0x148] ss:$48 sps:$4 sm:$0xff]   ;;  %v19428_v52 = vld [vmem:[%s23499_s12 + $0x1a4] ss:$48 sps:$4 sm:$0xff]  }
 0xb97   :  { %14038 = vmatprep.subr.bf16.mxu1 %v19353_v61  ;;  %v19431_v61 = vld [vmem:[%s23499_s12 + $0x1ac] ss:$48 sps:$4 sm:$0xff]  }
 0xb99   :  { %13957 = vmatpush1.bf16.msra.mxu0 %v19348_v0  ;;  %v19426_v0 = vld [vmem:[%s23499_s12 + $0x1a0] ss:$48 sps:$4 sm:$0xff]  }
 0xb9a   :  { %14039 = vmatpush1.bf16.msra.mxu1 %v19351_v50  ;;  %13958 = vmatprep.subr.bf16.mxu0 %v19356_v55  ;;  %v19429_v50 = vld [vmem:[%s23499_s12 + $0x1a8] ss:$48 sps:$4 sm:$0xff]   ;;  %v19434_v55 = vld [vmem:[%s23499_s12 + $0x204] ss:$48 sps:$4 sm:$0xff]  }
 0xb9b   :  { %14040 = vmatprep.subr.bf16.mxu1 %v19359_v57  ;;  %v19437_v57 = vld [vmem:[%s23499_s12 + $0x20c] ss:$48 sps:$4 sm:$0xff]  }
 0xb9d   :  { %13959 = vmatpush1.bf16.msra.mxu0 %v19354_v58  ;;  %v19432_v58 = vld [vmem:[%s23499_s12 + $0x200] ss:$48 sps:$4 sm:$0xff]  }
 0xb9e   :  { %14041 = vmatpush1.bf16.msra.mxu1 %v19357_v7  ;;  %13960 = vmatprep.subr.bf16.mxu0 %v19362_v6  ;;  %v19435_v7 = vld [vmem:[%s23499_s12 + $0x208] ss:$48 sps:$4 sm:$0xff]   ;;  %v19440_v6 = vld [vmem:[%s23499_s12 + $0x264] ss:$48 sps:$4 sm:$0xff]  }
 0xb9f   :  { %14042 = vmatprep.subr.bf16.mxu1 %v19365_v9  ;;  %v19443_v9 = vld [vmem:[%s23499_s12 + $0x26c] ss:$48 sps:$4 sm:$0xff]  }
 0xba1   :  { %13961 = vmatpush1.bf16.msra.mxu0 %v19360_v20  ;;  %v19438_v20 = vld [vmem:[%s23499_s12 + $0x260] ss:$48 sps:$4 sm:$0xff]  }
 0xba2   :  { %14043 = vmatpush1.bf16.msra.mxu1 %v19363_v56  ;;  %13962 = vmatprep.subr.bf16.mxu0 %v19368_v10  ;;  %v19441_v56 = vld [vmem:[%s23499_s12 + $0x268] ss:$48 sps:$4 sm:$0xff]   ;;  %v19446_v10 = vld [vmem:[%s23499_s12 + $0x2c4] ss:$48 sps:$4 sm:$0xff]  }
 0xba3   :  { %14044 = vmatprep.subr.bf16.mxu1 %v19371_v14  ;;  %v19449_v14 = vld [vmem:[%s23499_s12 + $0x2cc] ss:$48 sps:$4 sm:$0xff]  }
 0xba5   :  { %13963 = vmatpush1.bf16.msra.mxu0 %v19366_v16  ;;  %v19444_v16 = vld [vmem:[%s23499_s12 + $0x2c0] ss:$48 sps:$4 sm:$0xff]  }
 0xba6   :  { %14045 = vmatpush1.bf16.msra.mxu1 %v19369_v15  ;;  %13964 = vmatprep.subr.bf16.mxu0 %v19374_v27  ;;  %v19447_v15 = vld [vmem:[%s23499_s12 + $0x2c8] ss:$48 sps:$4 sm:$0xff]   ;;  %v19452_v27 = vld [vmem:[%s23499_s12 + $0x324] ss:$48 sps:$4 sm:$0xff]  }
 0xba7   :  { %14046 = vmatprep.subr.bf16.mxu1 %v19377_v35  ;;  %v19455_v35 = vld [vmem:[%s23499_s12 + $0x32c] ss:$48 sps:$4 sm:$0xff]  }
 0xba9   :  { %13965 = vmatpush1.bf16.msra.mxu0 %v19372_v45  ;;  %v19450_v45 = vld [vmem:[%s23499_s12 + $0x320] ss:$48 sps:$4 sm:$0xff]  }
 0xbaa   :  { %14047 = vmatpush1.bf16.msra.mxu1 %v19375_v19  ;;  %13966 = vmatprep.subr.bf16.mxu0 %v19380_v23  ;;  %v19453_v19 = vld [vmem:[%s23499_s12 + $0x328] ss:$48 sps:$4 sm:$0xff]   ;;  %v19458_v23 = vld [vmem:[%s23499_s12 + $0x384] ss:$48 sps:$4 sm:$0xff]  }
 0xbab   :  { %14048 = vmatprep.subr.bf16.mxu1 %v19383_v26  ;;  %v19461_v26 = vld [vmem:[%s23499_s12 + $0x38c] ss:$48 sps:$4 sm:$0xff]  }
 0xbad   :  { %13967 = vmatpush1.bf16.msra.mxu0 %v19378_v24  ;;  %v19456_v24 = vld [vmem:[%s23499_s12 + $0x380] ss:$48 sps:$4 sm:$0xff]  }
 0xbae   :  { %14049 = vmatpush1.bf16.msra.mxu1 %v19381_v31  ;;  %13968 = vmatprep.subr.bf16.mxu0 %v19386_v28  ;;  %v19459_v31 = vld [vmem:[%s23499_s12 + $0x388] ss:$48 sps:$4 sm:$0xff]   ;;  %v19464_v28 = vld [vmem:[%s23499_s12 + $0x3e4] ss:$48 sps:$4 sm:$0xff]  }
 0xbaf   :  { %14050 = vmatprep.subr.bf16.mxu1 %v19389_v25  ;;  %v19467_v25 = vld [vmem:[%s23499_s12 + $0x3ec] ss:$48 sps:$4 sm:$0xff]  }
 0xbb1   :  { %13969 = vmatpush1.bf16.msra.mxu0 %v19384_v46  ;;  %v19462_v46 = vld [vmem:[%s23499_s12 + $0x3e0] ss:$48 sps:$4 sm:$0xff]  }
 0xbb2   :  { %14051 = vmatpush1.bf16.msra.mxu1 %v19387_v49  ;;  %13970 = vmatprep.subr.bf16.mxu0 %v19392_v21  ;;  %v19465_v49 = vld [vmem:[%s23499_s12 + $0x3e8] ss:$48 sps:$4 sm:$0xff]   ;;  %v19470_v21 = vld [vmem:[%s23499_s12 + $0x444] ss:$48 sps:$4 sm:$0xff]  }
 0xbb3   :  { %14052 = vmatprep.subr.bf16.mxu1 %v19395_v41  ;;  %v19473_v41 = vld [vmem:[%s23499_s12 + $0x44c] ss:$48 sps:$4 sm:$0xff]  }
 0xbb5   :  { %13971 = vmatpush1.bf16.msra.mxu0 %v19390_v22  ;;  %v19468_v22 = vld [vmem:[%s23499_s12 + $0x440] ss:$48 sps:$4 sm:$0xff]  }
 0xbb6   :  { %14053 = vmatpush1.bf16.msra.mxu1 %v19393_v63  ;;  %13972 = vmatprep.subr.bf16.mxu0 %v19398_v36  ;;  %v19471_v63 = vld [vmem:[%s23499_s12 + $0x448] ss:$48 sps:$4 sm:$0xff]   ;;  %v19476_v36 = vld [vmem:[%s23499_s12 + $0x4a4] ss:$48 sps:$4 sm:$0xff]  }
 0xbb7   :  { %14054 = vmatprep.subr.bf16.mxu1 %v19401_v3  ;;  %v19479_v3 = vld [vmem:[%s23499_s12 + $0x4ac] ss:$48 sps:$4 sm:$0xff]  }
 0xbb9   :  { %13973 = vmatpush1.bf16.msra.mxu0 %v19396_v17  ;;  %v19474_v17 = vld [vmem:[%s23499_s12 + $0x4a0] ss:$48 sps:$4 sm:$0xff]  }
 0xbba   :  { %14055 = vmatpush1.bf16.msra.mxu1 %v19399_v37  ;;  %14065 = vmatprep.subr.bf16.mxu0 %v19404_v33  ;;  %v19477_v37 = vld [vmem:[%s23499_s12 + $0x4a8] ss:$48 sps:$4 sm:$0xff]   ;;  %v19482_v33 = vld [vmem:[%s23499_s12 + $0x504] ss:$48 sps:$4 sm:$0xff]  }
 0xbbb   :  { %14147 = vmatprep.subr.bf16.mxu1 %v19407_v38  ;;  %v19485_v38 = vld [vmem:[%s23499_s12 + $0x50c] ss:$48 sps:$4 sm:$0xff]  }
 0xbbc   :  { %13975 = vmatmul.mubr.bf16.vlgmr.msra.gmra.mrb[32].mxu0 %v22538_v13 }
 0xbbd   :  { %14057 = vmatmul.mubr.bf16.vlgmr.msra.gmra.mrb[32].mxu1 %v22538_v13  ;;  %14066 = vmatpush1.bf16.msra.mxu0 %v19402_v29  ;;  %v19480_v29 = vld [vmem:[%s23499_s12 + $0x500] ss:$48 sps:$4 sm:$0xff]  }
 0xbbe   :  { %14097 = vmatprep.mubr.bf16.mxu0 %v22322_v11  ;;  %14148 = vmatpush1.bf16.msra.mxu1 %v19405_v39  ;;  %v19483_v39 = vld [vmem:[%s23499_s12 + $0x508] ss:$48 sps:$4 sm:$0xff]  }
 0xbbf   :  { %14179 = vmatprep.mubr.bf16.mxu1 %v22322_v11  ;;  %14067 = vmatprep.subr.bf16.mxu0 %v19410_v42  ;;  %v19422_v11 = vld [vmem:[%s23499_s12 + $0x144] ss:$48 sps:$4 sm:$0xff]  }
 0xbc0   :  { %14149 = vmatprep.subr.bf16.mxu1 %v19413_v54  ;;  %v19488_v42 = vld [vmem:[%s23499_s12 + $0x564] ss:$48 sps:$4 sm:$0xff]   ;;  %v19491_v54 = vld [vmem:[%s23499_s12 + $0x56c] ss:$48 sps:$4 sm:$0xff]  }
 0xbc1   :  { %14068 = vmatpush1.bf16.msra.mxu0 %v19408_v18  ;;  %v19486_v18 = vld [vmem:[%s23499_s12 + $0x560] ss:$48 sps:$4 sm:$0xff]  }
 0xbc2   :  { %14150 = vmatpush1.bf16.msra.mxu1 %v19411_v60  ;;  %14069 = vmatprep.subr.bf16.mxu0 %v19416_v40  ;;  %v19489_v60 = vld [vmem:[%s23499_s12 + $0x568] ss:$48 sps:$4 sm:$0xff]   ;;  %v19494_v40 = vld [vmem:[%s23499_s12 + $0x5c4] ss:$48 sps:$4 sm:$0xff]  }
 0xbc3   :  { %14151 = vmatprep.subr.bf16.mxu1 %v19419_v44  ;;  %v19497_v44 = vld [vmem:[%s23499_s12 + $0x5cc] ss:$48 sps:$4 sm:$0xff]  }
 0xbc5   :  { %14070 = vmatpush1.bf16.msra.mxu0 %v19414_v43  ;;  %v19492_v43 = vld [vmem:[%s23499_s12 + $0x5c0] ss:$48 sps:$4 sm:$0xff]  }
 0xbc6   :  { %14152 = vmatpush1.bf16.msra.mxu1 %v19417_v47  ;;  %14071 = vmatprep.subr.bf16.mxu0 %v19422_v11  ;;  %v19495_v47 = vld [vmem:[%s23499_s12 + $0x5c8] ss:$48 sps:$4 sm:$0xff]   ;;  %v19500_v11 = vld [vmem:[%s23499_s12 + $0x624] ss:$48 sps:$4 sm:$0xff]  }
 0xbc7   :  { %14153 = vmatprep.subr.bf16.mxu1 %v19425_v51  ;;  %v19503_v51 = vld [vmem:[%s23499_s12 + $0x62c] ss:$48 sps:$4 sm:$0xff]  }
 0xbc9   :  { %14072 = vmatpush1.bf16.msra.mxu0 %v19420_v59  ;;  %v19498_v59 = vld [vmem:[%s23499_s12 + $0x620] ss:$48 sps:$4 sm:$0xff]  }
 0xbca   :  { %14154 = vmatpush1.bf16.msra.mxu1 %v19423_v62  ;;  %14073 = vmatprep.subr.bf16.mxu0 %v19428_v52  ;;  %v19501_v62 = vld [vmem:[%s23499_s12 + $0x628] ss:$48 sps:$4 sm:$0xff]   ;;  %v19506_v52 = vld [vmem:[%s23499_s12 + $0x684] ss:$48 sps:$4 sm:$0xff]  }
 0xbcb   :  { %14155 = vmatprep.subr.bf16.mxu1 %v19431_v61  ;;  %v19509_v61 = vld [vmem:[%s23499_s12 + $0x68c] ss:$48 sps:$4 sm:$0xff]  }
 0xbcd   :  { %14074 = vmatpush1.bf16.msra.mxu0 %v19426_v0  ;;  %v19504_v0 = vld [vmem:[%s23499_s12 + $0x680] ss:$48 sps:$4 sm:$0xff]  }
 0xbce   :  { %14156 = vmatpush1.bf16.msra.mxu1 %v19429_v50  ;;  %14075 = vmatprep.subr.bf16.mxu0 %v19434_v55  ;;  %v19507_v50 = vld [vmem:[%s23499_s12 + $0x688] ss:$48 sps:$4 sm:$0xff]   ;;  %v19512_v55 = vld [vmem:[%s23499_s12 + $0x6e4] ss:$48 sps:$4 sm:$0xff]  }
 0xbcf   :  { %14157 = vmatprep.subr.bf16.mxu1 %v19437_v57  ;;  %v19510_v57 = vld [vmem:[%s23499_s12 + $0x6e0] ss:$48 sps:$4 sm:$0xff]  }
 0xbd1   :  { %14076 = vmatpush1.bf16.msra.mxu0 %v19432_v58  ;;  %v19513_v58 = vld [vmem:[%s23499_s12 + $0x6e8] ss:$48 sps:$4 sm:$0xff]  }
 0xbd2   :  { %14158 = vmatpush1.bf16.msra.mxu1 %v19435_v7  ;;  %14077 = vmatprep.subr.bf16.mxu0 %v19440_v6  ;;  %v19521_v7 = vld [vmem:[%s23499_s12 + $0x74c] ss:$48 sps:$4 sm:$0xff]   ;;  %v19516_v6 = vld [vmem:[%s23499_s12 + $0x740] ss:$48 sps:$4 sm:$0xff]  }
 0xbd3   :  { %14159 = vmatprep.subr.bf16.mxu1 %v19443_v9  ;;  %v19519_v9 = vld [vmem:[%s23499_s12 + $0x748] ss:$48 sps:$4 sm:$0xff]  }
 0xbd5   :  { %14078 = vmatpush1.bf16.msra.mxu0 %v19438_v20  ;;  %v19524_v20 = vld [vmem:[%s23499_s12 + $0x7a4] ss:$48 sps:$4 sm:$0xff]  }
 0xbd6   :  { %14160 = vmatpush1.bf16.msra.mxu1 %v19441_v56  ;;  %14079 = vmatprep.subr.bf16.mxu0 %v19446_v10  ;;  %v19527_v56 = vld [vmem:[%s23499_s12 + $0x7ac] ss:$48 sps:$4 sm:$0xff]   ;;  %v19522_v10 = vld [vmem:[%s23499_s12 + $0x7a0] ss:$48 sps:$4 sm:$0xff]  }
 0xbd7   :  { %14161 = vmatprep.subr.bf16.mxu1 %v19449_v14  ;;  %v19525_v14 = vld [vmem:[%s23499_s12 + $0x7a8] ss:$48 sps:$4 sm:$0xff]  }
 0xbd9   :  { %14080 = vmatpush1.bf16.msra.mxu0 %v19444_v16  ;;  %v19530_v16 = vld [vmem:[%s23499_s12 + $0x804] ss:$48 sps:$4 sm:$0xff]  }
 0xbda   :  { %14162 = vmatpush1.bf16.msra.mxu1 %v19447_v15  ;;  %14081 = vmatprep.subr.bf16.mxu0 %v19452_v27  ;;  %v19533_v15 = vld [vmem:[%s23499_s12 + $0x80c] ss:$48 sps:$4 sm:$0xff]   ;;  %v19528_v27 = vld [vmem:[%s23499_s12 + $0x800] ss:$48 sps:$4 sm:$0xff]  }
 0xbdb   :  { %14163 = vmatprep.subr.bf16.mxu1 %v19455_v35  ;;  %v19531_v35 = vld [vmem:[%s23499_s12 + $0x808] ss:$48 sps:$4 sm:$0xff]  }
 0xbdd   :  { %14082 = vmatpush1.bf16.msra.mxu0 %v19450_v45  ;;  %v19536_v45 = vld [vmem:[%s23499_s12 + $0x864] ss:$48 sps:$4 sm:$0xff]  }
 0xbde   :  { %14164 = vmatpush1.bf16.msra.mxu1 %v19453_v19  ;;  %14083 = vmatprep.subr.bf16.mxu0 %v19458_v23 }
 0xbdf   :  { %14165 = vmatprep.subr.bf16.mxu1 %v19461_v26  ;;  %v19539_v26 = vld [vmem:[%s23499_s12 + $0x86c] ss:$48 sps:$4 sm:$0xff]  }
 0xbe1   :  { %14084 = vmatpush1.bf16.msra.mxu0 %v19456_v24 }
 0xbe2   :  { %14166 = vmatpush1.bf16.msra.mxu1 %v19459_v31  ;;  %14085 = vmatprep.subr.bf16.mxu0 %v19464_v28 }
 0xbe3   :  { %14167 = vmatprep.subr.bf16.mxu1 %v19467_v25 }
 0xbe5   :  { %14086 = vmatpush1.bf16.msra.mxu0 %v19462_v46  ;;  %v19534_v46 = vld [vmem:[%s23499_s12 + $0x860] ss:$48 sps:$4 sm:$0xff]  }
 0xbe6   :  { %14168 = vmatpush1.bf16.msra.mxu1 %v19465_v49  ;;  %14087 = vmatprep.subr.bf16.mxu0 %v19470_v21 }
 0xbe7   :  { %14169 = vmatprep.subr.bf16.mxu1 %v19473_v41  ;;  %v19537_v41 = vld [vmem:[%s23499_s12 + $0x868] ss:$48 sps:$4 sm:$0xff]  }
 0xbe9   :  { %14088 = vmatpush1.bf16.msra.mxu0 %v19468_v22  ;;  %v19542_v22 = vld [vmem:[%s23499_s12 + $0x8c4] ss:$48 sps:$4 sm:$0xff]  }
 0xbea   :  { %14170 = vmatpush1.bf16.msra.mxu1 %v19471_v63  ;;  %14089 = vmatprep.subr.bf16.mxu0 %v19476_v36  ;;  %v19545_v63 = vld [vmem:[%s23499_s12 + $0x8cc] ss:$48 sps:$4 sm:$0xff]   ;;  %v19540_v36 = vld [vmem:[%s23499_s12 + $0x8c0] ss:$48 sps:$4 sm:$0xff]  }
 0xbeb   :  { %14171 = vmatprep.subr.bf16.mxu1 %v19479_v3  ;;  %v19543_v3 = vld [vmem:[%s23499_s12 + $0x8c8] ss:$48 sps:$4 sm:$0xff]  }
 0xbed   :  { %14090 = vmatpush1.bf16.msra.mxu0 %v19474_v17  ;;  %v19548_v17 = vld [vmem:[%s23499_s12 + $0x924] ss:$48 sps:$4 sm:$0xff]  }
 0xbee   :  { %14172 = vmatpush1.bf16.msra.mxu1 %v19477_v37  ;;  %14091 = vmatprep.subr.bf16.mxu0 %v19482_v33  ;;  %v19551_v37 = vld [vmem:[%s23499_s12 + $0x92c] ss:$48 sps:$4 sm:$0xff]   ;;  %v19546_v33 = vld [vmem:[%s23499_s12 + $0x920] ss:$48 sps:$4 sm:$0xff]  }
 0xbef   :  { %14173 = vmatprep.subr.bf16.mxu1 %v19485_v38  ;;  %v19549_v38 = vld [vmem:[%s23499_s12 + $0x928] ss:$48 sps:$4 sm:$0xff]  }
 0xbf1   :  { %14092 = vmatpush1.bf16.msra.mxu0 %v19480_v29  ;;  %v19554_v29 = vld [vmem:[%s23499_s12 + $0x984] ss:$48 sps:$4 sm:$0xff]  }
 0xbf2   :  { %14174 = vmatpush1.bf16.msra.mxu1 %v19483_v39  ;;  %14093 = vmatprep.subr.bf16.mxu0 %v19488_v42  ;;  %v19557_v39 = vld [vmem:[%s23499_s12 + $0x98c] ss:$48 sps:$4 sm:$0xff]   ;;  %v19552_v42 = vld [vmem:[%s23499_s12 + $0x980] ss:$48 sps:$4 sm:$0xff]  }
 0xbf3   :  { %14175 = vmatprep.subr.bf16.mxu1 %v19491_v54  ;;  %v19555_v54 = vld [vmem:[%s23499_s12 + $0x988] ss:$48 sps:$4 sm:$0xff]  }
 0xbf5   :  { %14094 = vmatpush1.bf16.msra.mxu0 %v19486_v18  ;;  %v19560_v18 = vld [vmem:[%s23499_s12 + $0x9e4] ss:$48 sps:$4 sm:$0xff]  }
 0xbf6   :  { %14176 = vmatpush1.bf16.msra.mxu1 %v19489_v60  ;;  %14095 = vmatprep.subr.bf16.mxu0 %v19494_v40  ;;  %v19563_v60 = vld [vmem:[%s23499_s12 + $0x9ec] ss:$48 sps:$4 sm:$0xff]   ;;  %v19558_v40 = vld [vmem:[%s23499_s12 + $0x9e0] ss:$48 sps:$4 sm:$0xff]  }
 0xbf7   :  { %14177 = vmatprep.subr.bf16.mxu1 %v19497_v44  ;;  %v19561_v44 = vld [vmem:[%s23499_s12 + $0x9e8] ss:$48 sps:$4 sm:$0xff]  }
 0xbf9   :  { %14096 = vmatpush1.bf16.msra.mxu0 %v19492_v43  ;;  %v19566_v43 = vld [vmem:[%s23499_s12 + $0xa44] ss:$48 sps:$4 sm:$0xff]  }
 0xbfa   :  { %14178 = vmatpush1.bf16.msra.mxu1 %v19495_v47  ;;  %14106 = vmatprep.subr.bf16.mxu0 %v19500_v11  ;;  %v19569_v47 = vld [vmem:[%s23499_s12 + $0xa4c] ss:$48 sps:$4 sm:$0xff]   ;;  %v19564_v11 = vld [vmem:[%s23499_s12 + $0xa40] ss:$48 sps:$4 sm:$0xff]  }
 0xbfb   :  { %14188 = vmatprep.subr.bf16.mxu1 %v19503_v51  ;;  %v19567_v51 = vld [vmem:[%s23499_s12 + $0xa48] ss:$48 sps:$4 sm:$0xff]  }
 0xbfc   :  { %14098 = vmatmul.mubr.bf16.vlgmr.msra.gmra.mrb[36].mxu0 %v22331_v53 }
 0xbfd   :  { %14180 = vmatmul.mubr.bf16.vlgmr.msra.gmra.mrb[36].mxu1 %v22331_v53  ;;  %14107 = vmatpush1.bf16.msra.mxu0 %v19498_v59  ;;  %v19515_v53 = vld [vmem:[%s23499_s12 + $0x6ec] ss:$48 sps:$4 sm:$0xff]   ;;  %v19572_v59 = vld [vmem:[%s23499_s12 + $0xaa4] ss:$48 sps:$4 sm:$0xff]  }
 0xbfe   :  { %14138 = vmatprep.mubr.bf16.mxu0 %v22349_v5  ;;  %14189 = vmatpush1.bf16.msra.mxu1 %v19501_v62  ;;  %v19575_v62 = vld [vmem:[%s23499_s12 + $0xaac] ss:$48 sps:$4 sm:$0xff]  }
 0xbff   :  { %14220 = vmatprep.mubr.bf16.mxu1 %v22349_v5  ;;  %14108 = vmatprep.subr.bf16.mxu0 %v19506_v52  ;;  %v19518_v5 = vld [vmem:[%s23499_s12 + $0x744] ss:$48 sps:$4 sm:$0xff]   ;;  %v19570_v52 = vld [vmem:[%s23499_s12 + $0xaa0] ss:$48 sps:$4 sm:$0xff]  }
 0xc00   :  { %14190 = vmatprep.subr.bf16.mxu1 %v19509_v61  ;;  %v19573_v61 = vld [vmem:[%s23499_s12 + $0xaa8] ss:$48 sps:$4 sm:$0xff]  }
 0xc01   :  { %14109 = vmatpush1.bf16.msra.mxu0 %v19504_v0  ;;  %v19578_v0 = vld [vmem:[%s23499_s12 + $0xb04] ss:$48 sps:$4 sm:$0xff]  }
 0xc02   :  { %14191 = vmatpush1.bf16.msra.mxu1 %v19507_v50  ;;  %14110 = vmatprep.subr.bf16.mxu0 %v19512_v55  ;;  %v19581_v50 = vld [vmem:[%s23499_s12 + $0xb0c] ss:$48 sps:$4 sm:$0xff]   ;;  %v19576_v55 = vld [vmem:[%s23499_s12 + $0xb00] ss:$48 sps:$4 sm:$0xff]  }
 0xc03   :  { %14192 = vmatprep.subr.bf16.mxu1 %v19515_v53  ;;  %v19579_v53 = vld [vmem:[%s23499_s12 + $0xb08] ss:$48 sps:$4 sm:$0xff]  }
 0xc05   :  { %14111 = vmatpush1.bf16.msra.mxu0 %v19510_v57  ;;  %v19584_v57 = vld [vmem:[%s23499_s12 + $0xb64] ss:$48 sps:$4 sm:$0xff]  }
 0xc06   :  { %14193 = vmatpush1.bf16.msra.mxu1 %v19513_v58  ;;  %14112 = vmatprep.subr.bf16.mxu0 %v19518_v5  ;;  %v19587_v58 = vld [vmem:[%s23499_s12 + $0xb6c] ss:$48 sps:$4 sm:$0xff]   ;;  %v19582_v5 = vld [vmem:[%s23499_s12 + $0xb60] ss:$48 sps:$4 sm:$0xff]  }
 0xc07   :  { %14194 = vmatprep.subr.bf16.mxu1 %v19521_v7  ;;  %v19585_v7 = vld [vmem:[%s23499_s12 + $0xb68] ss:$48 sps:$4 sm:$0xff]  }
 0xc09   :  { %14113 = vmatpush1.bf16.msra.mxu0 %v19516_v6  ;;  %v19590_v6 = vld [vmem:[%s23499_s12 + $0xbc4] ss:$48 sps:$4 sm:$0xff]  }
 0xc0a   :  { %14195 = vmatpush1.bf16.msra.mxu1 %v19519_v9  ;;  %14114 = vmatprep.subr.bf16.mxu0 %v19524_v20  ;;  %v19593_v9 = vld [vmem:[%s23499_s12 + $0xbcc] ss:$48 sps:$4 sm:$0xff]   ;;  %v19588_v20 = vld [vmem:[%s23499_s12 + $0xbc0] ss:$48 sps:$4 sm:$0xff]  }
 0xc0b   :  { %14196 = vmatprep.subr.bf16.mxu1 %v19527_v56  ;;  %v19591_v56 = vld [vmem:[%s23499_s12 + $0xbc8] ss:$48 sps:$4 sm:$0xff]  }
 0xc0d   :  { %14115 = vmatpush1.bf16.msra.mxu0 %v19522_v10  ;;  %v11753_v10 = vld [vmem:[%s23500_s13] sm:$0xff] }
 0xc0e   :  { %14197 = vmatpush1.bf16.msra.mxu1 %v19525_v14  ;;  %14116 = vmatprep.subr.bf16.mxu0 %v19530_v16  ;;  %v11760_v14 = vrot.slane %v11753_v10, %v21840_v34  ;;  %v11768_v16 = vrot.slane %v11753_v10, %v22264_v4 }
 0xc0f   :  { %v23198_v19 = vpop.f32.mrb[28].mxu0  ;;  %v23200_v23 = vpop.f32.mrb[28].mxu1  ;;  %14198 = vmatprep.subr.bf16.mxu1 %v19533_v15  ;;  %v11764_v15 = vrot.slane %v11753_v10, %v21846_v2 }
 0xc10   :  { %v23205_v24 = vpop.f32.mrb[29].mxu0  ;;  %v23207_v31 = vpop.f32.mrb[29].mxu1 }
 0xc11   :  { %v13816_v28 = vpop.f32.mrb[30].mxu0  ;;  %v13898_v25 = vpop.f32.mrb[30].mxu1  ;;  %14117 = vmatpush1.bf16.msra.mxu0 %v19528_v27  ;;  %v11772_v27 = vrot.slane %v11753_v10, %v22273_v8 }
 0xc12   :  { %14199 = vmatpush1.bf16.msra.mxu1 %v19531_v35  ;;  %v13817_v49 = vpop.f32.mrb[31].mxu0  ;;  %v13899_v21 = vpop.f32.mrb[31].mxu1  ;;  %14118 = vmatprep.subr.bf16.mxu0 %v19536_v45  ;;  %v17538_v35 = vadd.f32 %v23198_v19, %v11760_v14  ;;  %v17540_v45 = vadd.f32 %v23200_v23, %v11768_v16  ;;  %v11776_v23 = vrot.slane %v11753_v10, %v10033_v1  ;;  %v19608_v16 = vld [vmem:[%s23501_s14 + $0x18] sm:$0xff]  }
 0xc13   :  { %14200 = vmatprep.subr.bf16.mxu1 %v19539_v26  ;;  %v17539_v26 = vadd.f32 %v23205_v24, %v11764_v15  ;;  %v19609_v15 = vld [vmem:[%s23501_s14 + $0x98] sm:$0xff]  }
 0xc14   :  { %v16034_v28 = vmul.f32 -1.442695, %v17538_v35  ;;  %v16036_v25 = vmul.f32 -1.442695, %v17540_v45 }
 0xc15   :  { %14119 = vmatpush1.bf16.msra.mxu0 %v19534_v46  ;;  %v16035_v46 = vmul.f32 -1.442695, %v17539_v26  ;;  %v19610_v26 = vld [vmem:[%s23501_s14 + $0x60] sm:$0xff]  }
 0xc16   :  { %14201 = vmatpush1.bf16.msra.mxu1 %v19537_v41  ;;  %14120 = vmatprep.subr.bf16.mxu0 %v19542_v22  ;;  %19674 = vpow2.f32 %v16034_v28 }
 0xc17   :  { %14202 = vmatprep.subr.bf16.mxu1 %v19545_v63  ;;  %19676 = vpow2.f32 %v16036_v25  ;;  %v19612_v25 = vld [vmem:[%s23501_s14 + $0x20] sm:$0xff]  }
 0xc18   :  { %19678 = vpow2.f32 %v16035_v46  ;;  %v19613_v46 = vld [vmem:[%s23501_s14 + $0xa0] sm:$0xff]  }
 0xc19   :  { %14121 = vmatpush1.bf16.msra.mxu0 %v19540_v36 }
 0xc1a   :  { %14203 = vmatpush1.bf16.msra.mxu1 %v19543_v3  ;;  %14122 = vmatprep.subr.bf16.mxu0 %v19548_v17  ;;  %v11780_v17 = vrot.slane %v11753_v10, %v10037_v30  ;;  %v19595_v30 = vld [vmem:[%s23501_s14 + $0xc0] sm:$0xff]  }
 0xc1b   :  { %14204 = vmatprep.subr.bf16.mxu1 %v19551_v37  ;;  %v11788_v37 = vrot.slane %v11753_v10, %v10045_v12 }
 0xc1d   :  { %14123 = vmatpush1.bf16.msra.mxu0 %v19546_v33 }
 0xc1e   :  { %14205 = vmatpush1.bf16.msra.mxu1 %v19549_v38  ;;  %14124 = vmatprep.subr.bf16.mxu0 %v19554_v29 }
 0xc1f   :  { %14206 = vmatprep.subr.bf16.mxu1 %v19557_v39 }
 0xc20   :  { %v19675_v21 = vpop.eup %19674 }
 0xc21   :  { %14125 = vmatpush1.bf16.msra.mxu0 %v19552_v42  ;;  %v19677_v41 = vpop.eup %19676  ;;  %v14241_v36 = vadd.f32 1.0, %v19675_v21  ;;  %v19614_v21 = vld [vmem:[%s23501_s14 + $0x68] sm:$0xff]  }
 0xc22   :  { %14207 = vmatpush1.bf16.msra.mxu1 %v19555_v54  ;;  %14126 = vmatprep.subr.bf16.mxu0 %v19560_v18  ;;  %v19679_v22 = vpop.eup %19678  ;;  %v14243_v19 = vadd.f32 1.0, %v19677_v41  ;;  %v19615_v41 = vld [vmem:[%s23501_s14 + $0xe8] sm:$0xff]  }
 0xc23   :  { %14208 = vmatprep.subr.bf16.mxu1 %v19563_v60  ;;  %v14242_v3 = vadd.f32 1.0, %v19679_v22  ;;  %v19616_v22 = vld [vmem:[%s23501_s14 + $0x28] sm:$0xff]  }
 0xc25   :  { %14127 = vmatpush1.bf16.msra.mxu0 %v19558_v40 }
 0xc26   :  { %14209 = vmatpush1.bf16.msra.mxu1 %v19561_v44  ;;  %14128 = vmatprep.subr.bf16.mxu0 %v19566_v43  ;;  %v19596_v44 = vld [vmem:[%s23501_s14] sm:$0xff]  }
 0xc27   :  { %14210 = vmatprep.subr.bf16.mxu1 %v19569_v47  ;;  %v19597_v43 = vld [vmem:[%s23501_s14 + $0x80] sm:$0xff]   ;;  %v19598_v47 = vld [vmem:[%s23501_s14 + $0x48] sm:$0xff]  }
 0xc29   :  { %14129 = vmatpush1.bf16.msra.mxu0 %v19564_v11  ;;  %v19599_v11 = vld [vmem:[%s23501_s14 + $0xc8] sm:$0xff]  }
 0xc2a   :  { %14211 = vmatpush1.bf16.msra.mxu1 %v19567_v51  ;;  %14130 = vmatprep.subr.bf16.mxu0 %v19572_v59  ;;  %v19600_v51 = vld [vmem:[%s23501_s14 + $0x8] sm:$0xff]  }
 0xc2b   :  { %14212 = vmatprep.subr.bf16.mxu1 %v19575_v62  ;;  %v19601_v59 = vld [vmem:[%s23501_s14 + $0x88] sm:$0xff]  }
 0xc2d   :  { %14131 = vmatpush1.bf16.msra.mxu0 %v19570_v52 }
 0xc2e   :  { %14213 = vmatpush1.bf16.msra.mxu1 %v19573_v61  ;;  %14132 = vmatprep.subr.bf16.mxu0 %v19578_v0  ;;  %v19602_v0 = vld [vmem:[%s23501_s14 + $0x50] sm:$0xff]  }
 0xc2f   :  { %14214 = vmatprep.subr.bf16.mxu1 %v19581_v50  ;;  %v19603_v50 = vld [vmem:[%s23501_s14 + $0xd0] sm:$0xff]  }
 0xc31   :  { %14133 = vmatpush1.bf16.msra.mxu0 %v19576_v55 }
 0xc32   :  { %14215 = vmatpush1.bf16.msra.mxu1 %v19579_v53  ;;  %14134 = vmatprep.subr.bf16.mxu0 %v19584_v57  ;;  %v19604_v53 = vld [vmem:[%s23501_s14 + $0x10] sm:$0xff]  }
 0xc33   :  { %14216 = vmatprep.subr.bf16.mxu1 %v19587_v58  ;;  %v19605_v57 = vld [vmem:[%s23501_s14 + $0x90] sm:$0xff]  }
 0xc35   :  { %14135 = vmatpush1.bf16.msra.mxu0 %v19582_v5 }
 0xc36   :  { %14217 = vmatpush1.bf16.msra.mxu1 %v19585_v7  ;;  %14136 = vmatprep.subr.bf16.mxu0 %v19590_v6 }
 0xc37   :  { %14218 = vmatprep.subr.bf16.mxu1 %v19593_v9 }
 0xc39   :  { %14137 = vmatpush1.bf16.msra.mxu0 %v19588_v20  ;;  %v19606_v20 = vld [vmem:[%s23501_s14 + $0x58] sm:$0xff]  }
 0xc3a   :  { %14219 = vmatpush1.bf16.msra.mxu1 %v19591_v56  ;;  %16522 = vmatprep.subr.bf16.mxu0 %v19594_v32  ;;  %v19607_v56 = vld [vmem:[%s23501_s14 + $0xd8] sm:$0xff]  }
 0xc3b   :  { %16544 = vmatprep.subr.bf16.mxu1 %v19595_v30 }
 0xc3c   :  { %14139 = vmatmul.mubr.bf16.vlgmr.msra.gmra.mrb[36].mxu0 %v22538_v13 }
 0xc3d   :  { %14221 = vmatmul.mubr.bf16.vlgmr.msra.gmra.mrb[36].mxu1 %v22538_v13  ;;  %v17541_v13 = vadd.f32 %v23207_v31, %v11772_v27  ;;  %v11784_v31 = vrot.slane %v11753_v10, %v10041_v48  ;;  %16523 = vmatpush3.bf16.msra.mxu0 %v19596_v44 }
 0xc3e   :  { %16545 = vmatpush3.bf16.msra.mxu1 %v19597_v43  ;;  %16524 = vmatprep.subr.bf16.mxu0 %v19598_v47 }
 0xc3f   :  { %v16037_v49 = vmul.f32 -1.442695, %v17541_v13  ;;  %16546 = vmatprep.subr.bf16.mxu1 %v19599_v11  ;;  %v19611_v13 = vld [vmem:[%s23501_s14 + $0xe0] sm:$0xff]  }
 0xc41   :  { %19680 = vpow2.f32 %v16037_v49  ;;  %16525 = vmatpush3.bf16.msra.mxu0 %v19600_v51 }
 0xc42   :  { %19682 = vrcp.f32 %v14241_v36  ;;  %16547 = vmatpush3.bf16.msra.mxu1 %v19601_v59  ;;  %16526 = vmatprep.subr.bf16.mxu0 %v19602_v0  ;;  %v19618_v36 = vld [vmem:[%s23501_s14 + $0x70] sm:$0xff]  }
 0xc43   :  { %19684 = vrcp.f32 %v14243_v19  ;;  %16548 = vmatprep.subr.bf16.mxu1 %v19603_v50  ;;  %v19619_v19 = vld [vmem:[%s23501_s14 + $0xf0] sm:$0xff]  }
 0xc44   :  { %19686 = vrcp.f32 %v14242_v3  ;;  %v19620_v3 = vld [vmem:[%s23501_s14 + $0x30] sm:$0xff]  }
 0xc45   :  { %16527 = vmatpush3.bf16.msra.mxu0 %v19604_v53 }
 0xc46   :  { %16549 = vmatpush3.bf16.msra.mxu1 %v19605_v57  ;;  %16528 = vmatprep.subr.bf16.mxu0 %v19606_v20 }
 0xc47   :  { %16550 = vmatprep.subr.bf16.mxu1 %v19607_v56 }
 0xc49   :  { %16529 = vmatpush3.bf16.msra.mxu0 %v19608_v16 }
 0xc4a   :  { %16551 = vmatpush3.bf16.msra.mxu1 %v19609_v15  ;;  %16530 = vmatprep.subr.bf16.mxu0 %v19610_v26 }
 0xc4b   :  { %v19681_v63 = vpop.eup %19680  ;;  %16552 = vmatprep.subr.bf16.mxu1 %v19611_v13 }
 0xc4c   :  { %v14244_v24 = vadd.f32 1.0, %v19681_v63  ;;  %v19683_v62 = vpop.eup %19682  ;;  %v19617_v63 = vld [vmem:[%s23501_s14 + $0xa8] sm:$0xff]  }
 0xc4d   :  { %v19685_v52 = vpop.eup %19684  ;;  %16531 = vmatpush3.bf16.msra.mxu0 %v19612_v25 }
 0xc4e   :  { %19688 = vrcp.f32 %v14244_v24  ;;  %v19687_v61 = vpop.eup %19686  ;;  %16553 = vmatpush3.bf16.msra.mxu1 %v19613_v46  ;;  %16532 = vmatprep.subr.bf16.mxu0 %v19614_v21  ;;  %v19622_v24 = vld [vmem:[%s23501_s14 + $0x78] sm:$0xff]  }
 0xc4f   :  { %16554 = vmatprep.subr.bf16.mxu1 %v19615_v41 }
 0xc51   :  { %16533 = vmatpush3.bf16.msra.mxu0 %v19616_v22 }
 0xc52   :  { %16555 = vmatpush3.bf16.msra.mxu1 %v19617_v63  ;;  %16534 = vmatprep.subr.bf16.mxu0 %v19618_v36 }
 0xc53   :  { %16556 = vmatprep.subr.bf16.mxu1 %v19619_v19 }
 0xc55   :  { %16535 = vmatpush3.bf16.msra.mxu0 %v19620_v3  ;;  %v16074_v3 = vld [vmem:[%s23502_s15] ss:$0 sm:$0xff] }
 0xc56   :  { %16536 = vmatprep.subr.bf16.mxu0 %v19622_v24 }
 0xc58   :  { %v19689_v55 = vpop.eup %19688 }
 0xc8f   :  { %v13976_v33 = vpop.f32.mrb[32].mxu0 }
 0xc90   :  { %v17542_v38 = vadd.f32 %v13976_v33, %v11776_v23  ;;  %v14058_v29 = vpop.f32.mrb[32].mxu1  ;;  %v13978_v39 = vpop.f32.mrb[33].mxu0  ;;  %v19621_v23 = vld [vmem:[%s23501_s14 + $0xb0] sm:$0xff]   ;;  %v11754_v33 = vld [vmem:[%s23500_s13 + $0x8] sm:$0xf] }
 0xc91   :  { %v17544_v42 = vadd.f32 %v14058_v29, %v11784_v31  ;;  %v17543_v1 = vadd.f32 %v13978_v39, %v11780_v17  ;;  %v14060_v54 = vpop.f32.mrb[33].mxu1  ;;  %v13980_v18 = vpop.f32.mrb[34].mxu0  ;;  %v19623_v31 = vld [vmem:[%s23501_s14 + $0xf8] sm:$0xff]   ;;  %16557 = vmatpush3.bf16.msra.mxu1 %v19621_v23  ;;  %v11800_v29 = vrot.slane %v11754_v33, %v22264_v4  ;;  %v11796_v39 = vrot.slane %v11754_v33, %v21846_v2 }
 0xc92   :  { %19690 = vtanh.f32 %v17542_v38  ;;  %v17545_v48 = vadd.f32 %v14060_v54, %v11788_v37  ;;  %v14062_v60 = vpop.f32.mrb[34].mxu1  ;;  %v13981_v40 = vpop.f32.mrb[35].mxu0  ;;  %v19624_v17 = vld [vmem:[%s23501_s14 + $0x38] sm:$0xff]   ;;  %16558 = vmatprep.subr.bf16.mxu1 %v19623_v31  ;;  %v11792_v38 = vrot.slane %v11754_v33, %v21840_v34  ;;  %v16075_v31 = vld [vmem:[%s23503_s16] ss:$0 sm:$0xff] }
 0xc93   :  { %19692 = vtanh.f32 %v17544_v42  ;;  %v14063_v12 = vpop.f32.mrb[35].mxu1  ;;  %v19625_v37 = vld [vmem:[%s23501_s14 + $0xb8] sm:$0xff]   ;;  %16537 = vmatpush3.bf16.msra.mxu0 %v19624_v17  ;;  %v11804_v42 = vrot.slane %v11754_v33, %v22273_v8  ;;  %v16076_v33 = vld [vmem:[%s23504_s17] ss:$0 sm:$0xff] }
 0xc94   :  { %19694 = vtanh.f32 %v17543_v1 }
 0xc95   :  { %19696 = vtanh.f32 %v17545_v48  ;;  %16559 = vmatpush3.bf16.msra.mxu1 %v19625_v37 }
 0xc9c   :  { %v19691_v58 = vpop.eup %19690 }
 0xc9d   :  { %v19693_v5 = vpop.eup %19692  ;;  %v23380_v7 = vmul.f32 %v19691_v58, %v19683_v62 }
 0xc9e   :  { %v19695_v6 = vpop.eup %19694  ;;  %v23382_v9 = vmul.f32 %v19693_v5, %v19685_v52 }
 0xc9f   :  { %v19697_v10 = vpop.eup %19696  ;;  %v23390_v14 = vmul.f32 %v19695_v6, %v19687_v61 }
 0xca0   :  { %v23398_v27 = vmul.f32 %v19697_v10, %v19689_v55 }
 0xca1   :  { %v14309_v35 = vcombine.low %v23380_v7, %v23390_v14 }
 0xca2   :  { %v14310_v45 = vcombine.low %v23382_v9, %v23398_v27 }
 0xca3   :  { %v14311_v28 = vrot.slane %v14309_v35, 6 }
 0xca4   :  { %v14312_v49 = vrot.slane %v14310_v45, 6 }
 0xca5   :  { %14315 = vst [vmem:[%s23508_s21] sm:$0xcc] %v14311_v28 }
 0xca6   :  { %14316 = vst [vmem:[%s23508_s21 + $0x8] sm:$0xcc] %v14312_v49 }
 0xd0f   :  { %v14140_v1 = vpop.f32.mrb[36].mxu0 }
 0xd10   :  { %v17546_v54 = vadd.f32 %v14140_v1, %v11792_v38  ;;  %v14222_v18 = vpop.f32.mrb[36].mxu1  ;;  %v14142_v48 = vpop.f32.mrb[37].mxu0 }
 0xd11   :  { %v17548_v60 = vadd.f32 %v14222_v18, %v11800_v29  ;;  %v17547_v40 = vadd.f32 %v14142_v48, %v11796_v39  ;;  %v14224_v32 = vpop.f32.mrb[37].mxu1  ;;  %v14144_v30 = vpop.f32.mrb[38].mxu0 }
 0xd12   :  { %v16038_v12 = vmul.f32 -1.442695, %v17546_v54  ;;  %v17549_v44 = vadd.f32 %v14224_v32, %v11804_v42  ;;  %v14226_v43 = vpop.f32.mrb[38].mxu1  ;;  %v14145_v47 = vpop.f32.mrb[39].mxu0  ;;  %v16077_v42 = vld [vmem:[#allocation6] ss:$0 sm:$0xff] }
 0xd13   :  { %v16040_v11 = vmul.f32 -1.442695, %v17548_v60  ;;  %v16039_v34 = vmul.f32 -1.442695, %v17547_v40  ;;  %v14227_v51 = vpop.f32.mrb[39].mxu1 }
 0xd14   :  { %19698 = vpow2.f32 %v16038_v12  ;;  %v16041_v4 = vmul.f32 -1.442695, %v17549_v44 }
 0xd15   :  { %19700 = vpow2.f32 %v16040_v11 }
 0xd16   :  { %19702 = vpow2.f32 %v16039_v34 }
 0xd17   :  { %19704 = vpow2.f32 %v16041_v4 }
 0xd18   :  { %19706 = vtanh.f32 %v23380_v7 }
 0xd19   :  { %19708 = vtanh.f32 %v23382_v9 }
 0xd1a   :  { %19710 = vtanh.f32 %v23390_v14 }
 0xd1b   :  { %19712 = vtanh.f32 %v23398_v27 }
 0xd1e   :  { %v19699_v2 = vpop.eup %19698 }
 0xd1f   :  { %v19701_v8 = vpop.eup %19700  ;;  %v14269_v59 = vadd.f32 1.0, %v19699_v2 }
 0xd20   :  { %v19703_v62 = vpop.eup %19702  ;;  %v14271_v52 = vadd.f32 1.0, %v19701_v8 }
 0xd21   :  { %v19705_v61 = vpop.eup %19704  ;;  %19714 = vrcp.f32 %v14269_v59  ;;  %v14270_v0 = vadd.f32 1.0, %v19703_v62 }
 0xd22   :  { %19716 = vrcp.f32 %v14271_v52  ;;  %v14272_v50 = vadd.f32 1.0, %v19705_v61  ;;  %v19707_v55 = vpop.eup %19706 }
 0xd23   :  { %19718 = vrcp.f32 %v14270_v0  ;;  %v19709_v53 = vpop.eup %19708 }
 0xd24   :  { %19720 = vrcp.f32 %v14272_v50  ;;  %v19711_v57 = vpop.eup %19710 }
 0xd25   :  { %v19713_v58 = vpop.eup %19712 }
 0xd2b   :  { %v19715_v5 = vpop.eup %19714 }
 0xd2c   :  { %v19717_v7 = vpop.eup %19716  ;;  %v14289_v6 = vmul.f32 %v19715_v5, %v19707_v55 }
 0xd2d   :  { %v19719_v9 = vpop.eup %19718  ;;  %v14291_v20 = vmul.f32 %v19717_v7, %v19709_v53 }
 0xd2e   :  { %v19721_v56 = vpop.eup %19720  ;;  %v14290_v10 = vmul.f32 %v19719_v9, %v19711_v57  ;;  %v14317_v45 = vpack.c.bf16 %v14289_v6, %v14289_v6 }
 0xd2f   :  { %v14292_v14 = vmul.f32 %v19721_v56, %v19713_v58  ;;  %v14319_v13 = vpack.c.bf16 %v14291_v20, %v14291_v20 }
 0xd30   :  { %v14297_v16 = vcombine.low %v14289_v6, %v14290_v10  ;;  %v14318_v15 = vpack.c.bf16 %v14290_v10, %v14290_v10 }
 0xd31   :  { %v14298_v27 = vcombine.low %v14291_v20, %v14292_v14  ;;  %v14320_v35 = vpack.c.bf16 %v14292_v14, %v14292_v14 }
 0xd32   :  { %v14299_v26 = vrot.slane %v14297_v16, 6  ;;  %14609 = vmatprep.mubr.bf16.mxu0 %v14318_v15 }
 0xd33   :  { %v14300_v28 = vrot.slane %v14298_v27, 6  ;;  %14649 = vmatprep.mubr.bf16.mxu1 %v14320_v35  ;;  %14610 = vmatmul.mubr.bf16.vlgmr.msra.gmra.mrb[40].mxu0 %v14317_v45 }
 0xd34   :  { %14303 = vst [vmem:[%s23507_s20] sm:$0xcc] %v14299_v26  ;;  %14650 = vmatmul.mubr.bf16.vlgmr.msra.gmra.mrb[40].mxu1 %v14319_v13 }
 0xd35   :  { %14304 = vst [vmem:[%s23507_s20 + $0x8] sm:$0xcc] %v14300_v28 }
 0xe06   :  { %v16538_v25 = vpop.f32.mrb[40].mxu0 }
 0xe07   :  { %v16560_v46 = vpop.f32.mrb[40].mxu1  ;;  %v16539_v49 = vpop.f32.mrb[41].mxu0 }
 0xe08   :  { %v16540_v21 = vadd.f32 %v16539_v49, %v16538_v25  ;;  %v16561_v41 = vpop.f32.mrb[41].mxu1  ;;  %v16541_v22 = vpop.f32.mrb[42].mxu0 }
 0xe09   :  { %v16562_v63 = vadd.f32 %v16561_v41, %v16560_v46  ;;  %v16563_v36 = vpop.f32.mrb[42].mxu1  ;;  %v16542_v19 = vpop.f32.mrb[43].mxu0 }
 0xe0a   :  { %v16564_v23 = vpop.f32.mrb[43].mxu1 }
 0xe0b   :  { %v14652_v24 = vadd.f32 %v16562_v63, %v16540_v21 }
 0xe0d   :  { %v14664_v17 = vmul.f32 %v16074_v3, %v14652_v24 }
 0xe0f   :  { %v14672_v37 = vadd.f32 %v16075_v31, %v14664_v17 }
 0xe11   :  { %v14673_v38 = vmax.f32 %v14672_v37, 0.0 }
 0xe13   :  { %v14681_v29 = vmul.f32 %v16076_v33, %v14673_v38 }
 0xe15   :  { %v14683_v39 = vsel %vm14682_vm5, %v14681_v29, 0.0 }
 0xe16   :  { %14684 = vadd.xlane.f32.xlu0 %v14683_v39 }
 0xea3   :  { %v14685_v1 = vpop.xlane.xlu0 %14684 }
 0xea4   :  { %v14693_v54 = vadd.f32 %v16077_v42, %v14685_v1 }
 0xea6   :  { %14695 = vst.msk [vmem:[%s23506_s19] sm:$0x3] %vm14694_vm6, %v14693_v54 }
 0xea7   :  { %14708 = vsyncpa [#allocation8], 1 }
 0xea8   :  { %14709 = vsyncpa [#allocation10], 1 }

</bundles_post_ra>
